<compile_context>
chip_gen: v6e
topology: v6e:2x2x1
jax: 0.10.0
libtpu: 0.0.40
codegen_flags: <defaults>
</compile_context>

<pallas_src>
import numpy as np
import jax
import jax.numpy as jnp
from jax.experimental import pallas as pl
from jax.experimental.pallas import tpu as pltpu

_TILE_B_MAX = 128  # images per grid step (raise to 256 on v6e if desired)


# ---------------------------------------------------------------------------
# Fused forward kernel: conv1+pool -> conv2+pool -> fc1+relu -> fc2+logsoftmax
# ---------------------------------------------------------------------------
def _net_kernel(x_ref, w1_ref, b1_ref, w2_ref, b2_ref,
                wf1_ref, bf1_ref, wf2_ref, bf2_ref, out_ref):
    f32 = jnp.float32
    B = x_ref.shape[1]           # images in this tile (static)
    cdt = x_ref.dtype            # bf16 compute dtype for MXU inputs

    # ---- conv1 (1->20, 5x5), fused even/odd parity + 2x2 max-pool ----------
    # x_ref: (28, B, 28) = (input row, image, input col)
    # acc rows = oh*B + b ; lanes = parity*256 + pooled_col*20 + out_channel
    def lhs1(kh):
        return x_ref[kh:kh + 24, :, :].reshape(24 * B, 28)

    acc = jnp.dot(lhs1(0), w1_ref[0], preferred_element_type=f32)
    for kh in range(1, 5):
        acc = acc + jnp.dot(lhs1(kh), w1_ref[kh], preferred_element_type=f32)
    c1 = jnp.maximum(acc[:, :256], acc[:, 256:])          # width pool
    c1 = c1.reshape(12, 2 * B, 256)
    p1 = jnp.maximum(c1[:, :B, :], c1[:, B:, :])          # height pool
    p1 = jnp.maximum(p1 + b1_ref[...], 0.0).astype(cdt)   # (12, B, 256)

    # ---- conv2 (20->50, 5x5), fused even/odd parity + 2x2 max-pool ---------
    def lhs2(kh):
        return p1[kh:kh + 8].reshape(8 * B, 256)

    acc = jnp.dot(lhs2(0), w2_ref[0], preferred_element_type=f32)
    for kh in range(1, 5):
        acc = acc + jnp.dot(lhs2(kh), w2_ref[kh], preferred_element_type=f32)
    c2 = jnp.maximum(acc[:, :256], acc[:, 256:])
    c2 = c2.reshape(4, 2 * B, 256)
    p2 = jnp.maximum(c2[:, :B, :], c2[:, B:, :])
    p2 = jnp.maximum(p2 + b2_ref[...], 0.0).astype(cdt)   # (4, B, 256)

    # ---- fc1 (800->500, packed as 1024->512) + relu ------------------------
    # 256-lane-aligned concat of the 4 pooled-row slabs -> single K=1024 dot.
    p2f = jnp.concatenate([p2[0], p2[1], p2[2], p2[3]], axis=-1)   # (B, 1024)
    h = jnp.dot(p2f, wf1_ref[...], preferred_element_type=f32)
    h = jnp.maximum(h + bf1_ref[...], 0.0).astype(cdt)             # (B, 512)

    # ---- fc2 (500->10 padded to 128 lanes) + log_softmax -------------------
    # Pad logit columns carry a -1e30 bias, so they vanish in the softmax.
    logits = jnp.dot(h, wf2_ref[...], preferred_element_type=f32) + bf2_ref[...]
    m = jnp.max(logits, axis=-1, keepdims=True)
    s = logits - m
    lse = jnp.log(jnp.sum(jnp.exp(s), axis=-1, keepdims=True))
    out_ref[...] = (s - lse).astype(out_ref.dtype)


def _const_spec(shape):
    rank = len(shape)
    return pl.BlockSpec(shape, lambda i: (0,) * rank)


# ---------------------------------------------------------------------------
# One-time weight packing (done at init, NOT per forward)
# ---------------------------------------------------------------------------
def prepare_params(params, dtype=jnp.bfloat16):
    w1 = np.asarray(params["conv1_w"], np.float32)   # (20, 1, 5, 5)
    b1 = np.asarray(params["conv1_b"], np.float32)
    w2 = np.asarray(params["conv2_w"], np.float32)   # (50, 20, 5, 5)
    b2 = np.asarray(params["conv2_b"], np.float32)
    wf1 = np.asarray(params["fc1_w"], np.float32)    # (500, 800) torch (out,in)
    bf1 = np.asarray(params["fc1_b"], np.float32)
    wf2 = np.asarray(params["fc2_w"], np.float32)    # (10, 500)
    bf2 = np.asarray(params["fc2_b"], np.float32)

    def expand_fused(w, in_pad, out_w_pooled):
        # Fused even/odd RHS (even -> lanes [0,256), odd -> lanes [256,512)):
        #   W[kh, iw*IC + ci, par*256 + ow*OC + oc] = w[oc, ci, kh, kw]
        #   with iw = 2*ow + par + kw.
        OC, IC, KH, KW = w.shape
        We = np.zeros((KH, in_pad, 512), np.float32)
        for kh in range(KH):
            for par in (0, 1):
                for ow in range(out_w_pooled):
                    for kw in range(KW):
                        iw = 2 * ow + par + kw
                        We[kh, iw * IC:(iw + 1) * IC,
                           par * 256 + ow * OC: par * 256 + (ow + 1) * OC] = \
                            w[:, :, kh, kw].T
        return We

    w1f = expand_fused(w1, 28, 12)     # (5, 28, 512)
    w2f = expand_fused(w2, 256, 4)     # (5, 256, 512); rows 240..255 stay zero

    # fc1, re-indexed to the kernel layout (lane = qh*256 + qw*50 + c), which
    # maps to PyTorch's NCHW flatten index c*16 + qh*4 + qw; padded to 512 out.
    wfc1 = np.zeros((1024, 512), np.float32)
    for qh in range(4):
        for qw in range(4):
            cols = np.arange(50) * 16 + qh * 4 + qw
            wfc1[qh * 256 + qw * 50: qh * 256 + (qw + 1) * 50, :500] = \
                wf1[:, cols].T

    # fc2 padded to (512, 128); pad rows/cols are zero.
    wfc2 = np.zeros((512, 128), np.float32)
    wfc2[:500, :10] = wf2.T

    b1p = np.zeros((1, 256), np.float32); b1p[0, :240] = np.tile(b1, 12)
    b2p = np.zeros((1, 256), np.float32); b2p[0, :200] = np.tile(b2, 4)
    bf1p = np.zeros((1, 512), np.float32); bf1p[0, :500] = bf1
    bf2p = np.full((1, 128), -1e30, np.float32); bf2p[0, :10] = bf2

    return {
        "w1": jnp.asarray(w1f, dtype), "b1": jnp.asarray(b1p, jnp.float32),
        "w2": jnp.asarray(w2f, dtype), "b2": jnp.asarray(b2p, jnp.float32),
        "wf1": jnp.asarray(wfc1, dtype), "bf1": jnp.asarray(bf1p, jnp.float32),
        "wf2": jnp.asarray(wfc2, dtype), "bf2": jnp.asarray(bf2p, jnp.float32),
    }


# ---------------------------------------------------------------------------
# Forward pass: single fused pallas_call gridded over the batch
# ---------------------------------------------------------------------------
def net_forward(x_nchw, prep):
    N = x_nchw.shape[0]
    tb = min(_TILE_B_MAX, ((N + 15) // 16) * 16)   # batch tile (multiple of 16)
    G = pl.cdiv(N, tb)
    Npad = G * tb

    x = x_nchw.reshape(N, 28, 28).astype(jnp.bfloat16)
    if Npad != N:
        x = jnp.pad(x, ((0, Npad - N), (0, 0), (0, 0)))
    xt = jnp.transpose(x, (1, 0, 2))               # (28, Npad, 28)

    out = pl.pallas_call(
        _net_kernel,
        out_shape=jax.ShapeDtypeStruct((Npad, 128), jnp.float32),
        grid=(G,),
        in_specs=[
            pl.BlockSpec((28, tb, 28), lambda i: (0, i, 0)),
            _const_spec(prep["w1"].shape), _const_spec(prep["b1"].shape),
            _const_spec(prep["w2"].shape), _const_spec(prep["b2"].shape),
            _const_spec(prep["wf1"].shape), _const_spec(prep["bf1"].shape),
            _const_spec(prep["wf2"].shape), _const_spec(prep["bf2"].shape),
        ],
        out_specs=pl.BlockSpec((tb, 128), lambda i: (i, 0)),
        compiler_params=pltpu.CompilerParams(
            dimension_semantics=("parallel",),
            vmem_limit_bytes=48 * 1024 * 1024),
    )(xt, prep["w1"], prep["b1"], prep["w2"], prep["b2"],
      prep["wf1"], prep["bf1"], prep["wf2"], prep["bf2"])
    return out[:N, :10]


# ---------------------------------------------------------------------------
# Parameters (deterministic, PyTorch-default-style uniform init, torch layout)
# ---------------------------------------------------------------------------
def init_params(key):
    def uniform(k, shape, fan_in):
        bound = 1.0 / jnp.sqrt(jnp.asarray(fan_in, jnp.float32))
        return jax.random.uniform(k, shape, jnp.float32, -bound, bound)

    ks = jax.random.split(key, 8)
    return {
        "conv1_w": uniform(ks[0], (20, 1, 5, 5), 1 * 5 * 5),
        "conv1_b": uniform(ks[1], (20,), 1 * 5 * 5),
        "conv2_w": uniform(ks[2], (50, 20, 5, 5), 20 * 5 * 5),
        "conv2_b": uniform(ks[3], (50,), 20 * 5 * 5),
        "fc1_w":   uniform(ks[4], (500, 800), 800),
        "fc1_b":   uniform(ks[5], (500,), 800),
        "fc2_w":   uniform(ks[6], (10, 500), 500),
        "fc2_b":   uniform(ks[7], (10,), 500),
    }


# Pure-JAX reference (f32) for a numerical sanity check.
def reference_forward(x_nchw, params):
    x = x_nchw.astype(jnp.float32)

    def conv(y, w, b):
        y = jax.lax.conv_general_dilated(
            y, w, (1, 1), "VALID",
            dimension_numbers=("NCHW", "OIHW", "NCHW"))
        return y + b[None, :, None, None]

    def pool(y):
        return jax.lax.reduce_window(y, -jnp.inf, jax.lax.max,
                                     (1, 1, 2, 2), (1, 1, 2, 2), "VALID")

    x = pool(jax.nn.relu(conv(x, params["conv1_w"], params["conv1_b"])))
    x = pool(jax.nn.relu(conv(x, params["conv2_w"], params["conv2_b"])))
    x = x.reshape(x.shape[0], -1)                                   # (N, 800)
    x = jax.nn.relu(x @ params["fc1_w"].T + params["fc1_b"])
    x = x @ params["fc2_w"].T + params["fc2_b"]
    return jax.nn.log_softmax(x, axis=-1)


if __name__ == "__main__":
    key = jax.random.PRNGKey(0)
    k_x, k_p = jax.random.split(key)
    # Input shape implied by the module: (N, 1, 28, 28) so the flatten is 4*4*50.
    x = jax.random.normal(k_x, (2, 1, 28, 28), jnp.float32)
    params = init_params(k_p)
    prep = prepare_params(params)

    fwd = jax.jit(net_forward)
    out = jax.block_until_ready(fwd(x, prep))

    assert out.shape == (2, 10) and out.dtype == jnp.float32
    # log_softmax rows exponentiate-and-sum to ~1.
    assert jnp.allclose(jnp.exp(out).sum(axis=1), 1.0, atol=1e-3)
    # Match the pure-JAX reference (bf16 matmul tolerance).
    ref = reference_forward(x, params)
    assert jnp.max(jnp.abs(out - ref)) < 0.1
    print("KERNEL_OK")
</pallas_src>

<mosaic_0001>
module attributes {stable_mosaic.version = 11 : i64} {
  func.func @_net_kernel(%arg0: i32, %arg1: memref<28x16x28xbf16, #tpu.memory_space<vmem>>, %arg2: memref<5x28x512xbf16, #tpu.memory_space<vmem>>, %arg3: memref<1x256xf32, #tpu.memory_space<vmem>>, %arg4: memref<5x256x512xbf16, #tpu.memory_space<vmem>>, %arg5: memref<1x256xf32, #tpu.memory_space<vmem>>, %arg6: memref<1024x512xbf16, #tpu.memory_space<vmem>>, %arg7: memref<1x512xf32, #tpu.memory_space<vmem>>, %arg8: memref<512x128xbf16, #tpu.memory_space<vmem>>, %arg9: memref<1x128xf32, #tpu.memory_space<vmem>>, %arg10: memref<16x128xf32, #tpu.memory_space<vmem>>) attributes {dimension_semantics = [#tpu.dimension_semantics<parallel>], iteration_bounds = array<i64: 1>, scalar_prefetch = 0 : i64, scratch_operands = 0 : i64, tpu.core_type = #tpu.core_type<tc>, window_params = [{transform_indices = @transform_0, window_bounds = array<i64: 28, 16, 28>}, {pipeline_mode = #tpu.pipeline_mode<synchronous>, transform_indices = @transform_1, window_bounds = array<i64: 5, 28, 512>}, {pipeline_mode = #tpu.pipeline_mode<synchronous>, transform_indices = @transform_2, window_bounds = array<i64: 1, 256>}, {pipeline_mode = #tpu.pipeline_mode<synchronous>, transform_indices = @transform_3, window_bounds = array<i64: 5, 256, 512>}, {pipeline_mode = #tpu.pipeline_mode<synchronous>, transform_indices = @transform_4, window_bounds = array<i64: 1, 256>}, {pipeline_mode = #tpu.pipeline_mode<synchronous>, transform_indices = @transform_5, window_bounds = array<i64: 1024, 512>}, {pipeline_mode = #tpu.pipeline_mode<synchronous>, transform_indices = @transform_6, window_bounds = array<i64: 1, 512>}, {pipeline_mode = #tpu.pipeline_mode<synchronous>, transform_indices = @transform_7, window_bounds = array<i64: 512, 128>}, {pipeline_mode = #tpu.pipeline_mode<synchronous>, transform_indices = @transform_8, window_bounds = array<i64: 1, 128>}, {transform_indices = @transform_9, window_bounds = array<i64: 16, 128>}]} {
    %c0 = arith.constant 0 : index
    %c0_0 = arith.constant 0 : index
    %c0_1 = arith.constant 0 : index
    %0 = vector.load %arg1[%c0, %c0_0, %c0_1] : memref<28x16x28xbf16, #tpu.memory_space<vmem>>, vector<24x16x28xbf16>
    %1 = vector.shape_cast %0 : vector<24x16x28xbf16> to vector<384x28xbf16>
    %c0_2 = arith.constant 0 : index
    %c0_3 = arith.constant 0 : index
    %c0_4 = arith.constant 0 : index
    %2 = vector.load %arg2[%c0_2, %c0_3, %c0_4] : memref<5x28x512xbf16, #tpu.memory_space<vmem>>, vector<1x28x512xbf16>
    %3 = vector.shape_cast %2 : vector<1x28x512xbf16> to vector<28x512xbf16>
    %cst = arith.constant dense<0.000000e+00> : vector<384x512xf32>
    %4 = tpu.matmul %1, %3, %cst {dimension_numbers = #tpu.dot_dimension_numbers<[1], [0], [0], [1], [0, 0, 1, 1], [], []>} : vector<384x28xbf16>, vector<28x512xbf16>, vector<384x512xf32> -> vector<384x512xf32>
    %c1 = arith.constant 1 : index
    %c0_5 = arith.constant 0 : index
    %c0_6 = arith.constant 0 : index
    %5 = vector.load %arg1[%c1, %c0_5, %c0_6] : memref<28x16x28xbf16, #tpu.memory_space<vmem>>, vector<24x16x28xbf16>
    %6 = vector.shape_cast %5 : vector<24x16x28xbf16> to vector<384x28xbf16>
    %c1_7 = arith.constant 1 : index
    %c0_8 = arith.constant 0 : index
    %c0_9 = arith.constant 0 : index
    %7 = vector.load %arg2[%c1_7, %c0_8, %c0_9] : memref<5x28x512xbf16, #tpu.memory_space<vmem>>, vector<1x28x512xbf16>
    %8 = vector.shape_cast %7 : vector<1x28x512xbf16> to vector<28x512xbf16>
    %cst_10 = arith.constant dense<0.000000e+00> : vector<384x512xf32>
    %9 = tpu.matmul %6, %8, %cst_10 {dimension_numbers = #tpu.dot_dimension_numbers<[1], [0], [0], [1], [0, 0, 1, 1], [], []>} : vector<384x28xbf16>, vector<28x512xbf16>, vector<384x512xf32> -> vector<384x512xf32>
    %10 = arith.addf %4, %9 : vector<384x512xf32>
    %c2 = arith.constant 2 : index
    %c0_11 = arith.constant 0 : index
    %c0_12 = arith.constant 0 : index
    %11 = vector.load %arg1[%c2, %c0_11, %c0_12] : memref<28x16x28xbf16, #tpu.memory_space<vmem>>, vector<24x16x28xbf16>
    %12 = vector.shape_cast %11 : vector<24x16x28xbf16> to vector<384x28xbf16>
    %c2_13 = arith.constant 2 : index
    %c0_14 = arith.constant 0 : index
    %c0_15 = arith.constant 0 : index
    %13 = vector.load %arg2[%c2_13, %c0_14, %c0_15] : memref<5x28x512xbf16, #tpu.memory_space<vmem>>, vector<1x28x512xbf16>
    %14 = vector.shape_cast %13 : vector<1x28x512xbf16> to vector<28x512xbf16>
    %cst_16 = arith.constant dense<0.000000e+00> : vector<384x512xf32>
    %15 = tpu.matmul %12, %14, %cst_16 {dimension_numbers = #tpu.dot_dimension_numbers<[1], [0], [0], [1], [0, 0, 1, 1], [], []>} : vector<384x28xbf16>, vector<28x512xbf16>, vector<384x512xf32> -> vector<384x512xf32>
    %16 = arith.addf %10, %15 : vector<384x512xf32>
    %c3 = arith.constant 3 : index
    %c0_17 = arith.constant 0 : index
    %c0_18 = arith.constant 0 : index
    %17 = vector.load %arg1[%c3, %c0_17, %c0_18] : memref<28x16x28xbf16, #tpu.memory_space<vmem>>, vector<24x16x28xbf16>
    %18 = vector.shape_cast %17 : vector<24x16x28xbf16> to vector<384x28xbf16>
    %c3_19 = arith.constant 3 : index
    %c0_20 = arith.constant 0 : index
    %c0_21 = arith.constant 0 : index
    %19 = vector.load %arg2[%c3_19, %c0_20, %c0_21] : memref<5x28x512xbf16, #tpu.memory_space<vmem>>, vector<1x28x512xbf16>
    %20 = vector.shape_cast %19 : vector<1x28x512xbf16> to vector<28x512xbf16>
    %cst_22 = arith.constant dense<0.000000e+00> : vector<384x512xf32>
    %21 = tpu.matmul %18, %20, %cst_22 {dimension_numbers = #tpu.dot_dimension_numbers<[1], [0], [0], [1], [0, 0, 1, 1], [], []>} : vector<384x28xbf16>, vector<28x512xbf16>, vector<384x512xf32> -> vector<384x512xf32>
    %22 = arith.addf %16, %21 : vector<384x512xf32>
    %c4 = arith.constant 4 : index
    %c0_23 = arith.constant 0 : index
    %c0_24 = arith.constant 0 : index
    %23 = vector.load %arg1[%c4, %c0_23, %c0_24] : memref<28x16x28xbf16, #tpu.memory_space<vmem>>, vector<24x16x28xbf16>
    %24 = vector.shape_cast %23 : vector<24x16x28xbf16> to vector<384x28xbf16>
    %c4_25 = arith.constant 4 : index
    %c0_26 = arith.constant 0 : index
    %c0_27 = arith.constant 0 : index
    %25 = vector.load %arg2[%c4_25, %c0_26, %c0_27] : memref<5x28x512xbf16, #tpu.memory_space<vmem>>, vector<1x28x512xbf16>
    %26 = vector.shape_cast %25 : vector<1x28x512xbf16> to vector<28x512xbf16>
    %cst_28 = arith.constant dense<0.000000e+00> : vector<384x512xf32>
    %27 = tpu.matmul %24, %26, %cst_28 {dimension_numbers = #tpu.dot_dimension_numbers<[1], [0], [0], [1], [0, 0, 1, 1], [], []>} : vector<384x28xbf16>, vector<28x512xbf16>, vector<384x512xf32> -> vector<384x512xf32>
    %28 = arith.addf %22, %27 : vector<384x512xf32>
    %29 = vector.extract_strided_slice %28 {offsets = [0, 0], sizes = [384, 256], strides = [1, 1]} : vector<384x512xf32> to vector<384x256xf32>
    %30 = vector.extract_strided_slice %28 {offsets = [0, 256], sizes = [384, 256], strides = [1, 1]} : vector<384x512xf32> to vector<384x256xf32>
    %31 = arith.maximumf %29, %30 : vector<384x256xf32>
    %32 = vector.shape_cast %31 : vector<384x256xf32> to vector<12x32x256xf32>
    %33 = vector.extract_strided_slice %32 {offsets = [0, 0, 0], sizes = [12, 16, 256], strides = [1, 1, 1]} : vector<12x32x256xf32> to vector<12x16x256xf32>
    %34 = vector.extract_strided_slice %32 {offsets = [0, 16, 0], sizes = [12, 16, 256], strides = [1, 1, 1]} : vector<12x32x256xf32> to vector<12x16x256xf32>
    %35 = arith.maximumf %33, %34 : vector<12x16x256xf32>
    %c0_29 = arith.constant 0 : index
    %c0_30 = arith.constant 0 : index
    %36 = vector.load %arg3[%c0_29, %c0_30] : memref<1x256xf32, #tpu.memory_space<vmem>>, vector<1x256xf32>
    %37 = vector.shape_cast %36 : vector<1x256xf32> to vector<1x1x256xf32>
    %38 = vector.broadcast %37 : vector<1x1x256xf32> to vector<12x16x256xf32>
    %39 = arith.addf %35, %38 : vector<12x16x256xf32>
    %cst_31 = arith.constant 0.000000e+00 : f32
    %40 = vector.broadcast %cst_31 : f32 to vector<12x16x256xf32>
    %41 = arith.maximumf %39, %40 : vector<12x16x256xf32>
    %42 = arith.truncf %41 : vector<12x16x256xf32> to vector<12x16x256xbf16>
    %43 = vector.extract_strided_slice %42 {offsets = [0, 0, 0], sizes = [8, 16, 256], strides = [1, 1, 1]} : vector<12x16x256xbf16> to vector<8x16x256xbf16>
    %44 = vector.shape_cast %43 : vector<8x16x256xbf16> to vector<128x256xbf16>
    %c0_32 = arith.constant 0 : index
    %c0_33 = arith.constant 0 : index
    %c0_34 = arith.constant 0 : index
    %45 = vector.load %arg4[%c0_32, %c0_33, %c0_34] : memref<5x256x512xbf16, #tpu.memory_space<vmem>>, vector<1x256x512xbf16>
    %46 = vector.shape_cast %45 : vector<1x256x512xbf16> to vector<256x512xbf16>
    %cst_35 = arith.constant dense<0.000000e+00> : vector<128x512xf32>
    %47 = tpu.matmul %44, %46, %cst_35 {dimension_numbers = #tpu.dot_dimension_numbers<[1], [0], [0], [1], [0, 0, 1, 1], [], []>} : vector<128x256xbf16>, vector<256x512xbf16>, vector<128x512xf32> -> vector<128x512xf32>
    %48 = vector.extract_strided_slice %42 {offsets = [1, 0, 0], sizes = [8, 16, 256], strides = [1, 1, 1]} : vector<12x16x256xbf16> to vector<8x16x256xbf16>
    %49 = vector.shape_cast %48 : vector<8x16x256xbf16> to vector<128x256xbf16>
    %c1_36 = arith.constant 1 : index
    %c0_37 = arith.constant 0 : index
    %c0_38 = arith.constant 0 : index
    %50 = vector.load %arg4[%c1_36, %c0_37, %c0_38] : memref<5x256x512xbf16, #tpu.memory_space<vmem>>, vector<1x256x512xbf16>
    %51 = vector.shape_cast %50 : vector<1x256x512xbf16> to vector<256x512xbf16>
    %cst_39 = arith.constant dense<0.000000e+00> : vector<128x512xf32>
    %52 = tpu.matmul %49, %51, %cst_39 {dimension_numbers = #tpu.dot_dimension_numbers<[1], [0], [0], [1], [0, 0, 1, 1], [], []>} : vector<128x256xbf16>, vector<256x512xbf16>, vector<128x512xf32> -> vector<128x512xf32>
    %53 = arith.addf %47, %52 : vector<128x512xf32>
    %54 = vector.extract_strided_slice %42 {offsets = [2, 0, 0], sizes = [8, 16, 256], strides = [1, 1, 1]} : vector<12x16x256xbf16> to vector<8x16x256xbf16>
    %55 = vector.shape_cast %54 : vector<8x16x256xbf16> to vector<128x256xbf16>
    %c2_40 = arith.constant 2 : index
    %c0_41 = arith.constant 0 : index
    %c0_42 = arith.constant 0 : index
    %56 = vector.load %arg4[%c2_40, %c0_41, %c0_42] : memref<5x256x512xbf16, #tpu.memory_space<vmem>>, vector<1x256x512xbf16>
    %57 = vector.shape_cast %56 : vector<1x256x512xbf16> to vector<256x512xbf16>
    %cst_43 = arith.constant dense<0.000000e+00> : vector<128x512xf32>
    %58 = tpu.matmul %55, %57, %cst_43 {dimension_numbers = #tpu.dot_dimension_numbers<[1], [0], [0], [1], [0, 0, 1, 1], [], []>} : vector<128x256xbf16>, vector<256x512xbf16>, vector<128x512xf32> -> vector<128x512xf32>
    %59 = arith.addf %53, %58 : vector<128x512xf32>
    %60 = vector.extract_strided_slice %42 {offsets = [3, 0, 0], sizes = [8, 16, 256], strides = [1, 1, 1]} : vector<12x16x256xbf16> to vector<8x16x256xbf16>
    %61 = vector.shape_cast %60 : vector<8x16x256xbf16> to vector<128x256xbf16>
    %c3_44 = arith.constant 3 : index
    %c0_45 = arith.constant 0 : index
    %c0_46 = arith.constant 0 : index
    %62 = vector.load %arg4[%c3_44, %c0_45, %c0_46] : memref<5x256x512xbf16, #tpu.memory_space<vmem>>, vector<1x256x512xbf16>
    %63 = vector.shape_cast %62 : vector<1x256x512xbf16> to vector<256x512xbf16>
    %cst_47 = arith.constant dense<0.000000e+00> : vector<128x512xf32>
    %64 = tpu.matmul %61, %63, %cst_47 {dimension_numbers = #tpu.dot_dimension_numbers<[1], [0], [0], [1], [0, 0, 1, 1], [], []>} : vector<128x256xbf16>, vector<256x512xbf16>, vector<128x512xf32> -> vector<128x512xf32>
    %65 = arith.addf %59, %64 : vector<128x512xf32>
    %66 = vector.extract_strided_slice %42 {offsets = [4, 0, 0], sizes = [8, 16, 256], strides = [1, 1, 1]} : vector<12x16x256xbf16> to vector<8x16x256xbf16>
    %67 = vector.shape_cast %66 : vector<8x16x256xbf16> to vector<128x256xbf16>
    %c4_48 = arith.constant 4 : index
    %c0_49 = arith.constant 0 : index
    %c0_50 = arith.constant 0 : index
    %68 = vector.load %arg4[%c4_48, %c0_49, %c0_50] : memref<5x256x512xbf16, #tpu.memory_space<vmem>>, vector<1x256x512xbf16>
    %69 = vector.shape_cast %68 : vector<1x256x512xbf16> to vector<256x512xbf16>
    %cst_51 = arith.constant dense<0.000000e+00> : vector<128x512xf32>
    %70 = tpu.matmul %67, %69, %cst_51 {dimension_numbers = #tpu.dot_dimension_numbers<[1], [0], [0], [1], [0, 0, 1, 1], [], []>} : vector<128x256xbf16>, vector<256x512xbf16>, vector<128x512xf32> -> vector<128x512xf32>
    %71 = arith.addf %65, %70 : vector<128x512xf32>
    %72 = vector.extract_strided_slice %71 {offsets = [0, 0], sizes = [128, 256], strides = [1, 1]} : vector<128x512xf32> to vector<128x256xf32>
    %73 = vector.extract_strided_slice %71 {offsets = [0, 256], sizes = [128, 256], strides = [1, 1]} : vector<128x512xf32> to vector<128x256xf32>
    %74 = arith.maximumf %72, %73 : vector<128x256xf32>
    %75 = vector.shape_cast %74 : vector<128x256xf32> to vector<4x32x256xf32>
    %76 = vector.extract_strided_slice %75 {offsets = [0, 0, 0], sizes = [4, 16, 256], strides = [1, 1, 1]} : vector<4x32x256xf32> to vector<4x16x256xf32>
    %77 = vector.extract_strided_slice %75 {offsets = [0, 16, 0], sizes = [4, 16, 256], strides = [1, 1, 1]} : vector<4x32x256xf32> to vector<4x16x256xf32>
    %78 = arith.maximumf %76, %77 : vector<4x16x256xf32>
    %c0_52 = arith.constant 0 : index
    %c0_53 = arith.constant 0 : index
    %79 = vector.load %arg5[%c0_52, %c0_53] : memref<1x256xf32, #tpu.memory_space<vmem>>, vector<1x256xf32>
    %80 = vector.shape_cast %79 : vector<1x256xf32> to vector<1x1x256xf32>
    %81 = vector.broadcast %80 : vector<1x1x256xf32> to vector<4x16x256xf32>
    %82 = arith.addf %78, %81 : vector<4x16x256xf32>
    %cst_54 = arith.constant 0.000000e+00 : f32
    %83 = vector.broadcast %cst_54 : f32 to vector<4x16x256xf32>
    %84 = arith.maximumf %82, %83 : vector<4x16x256xf32>
    %85 = arith.truncf %84 : vector<4x16x256xf32> to vector<4x16x256xbf16>
    %86 = vector.extract_strided_slice %85 {offsets = [0, 0, 0], sizes = [1, 16, 256], strides = [1, 1, 1]} : vector<4x16x256xbf16> to vector<1x16x256xbf16>
    %87 = vector.shape_cast %86 : vector<1x16x256xbf16> to vector<16x256xbf16>
    %88 = vector.extract_strided_slice %85 {offsets = [1, 0, 0], sizes = [1, 16, 256], strides = [1, 1, 1]} : vector<4x16x256xbf16> to vector<1x16x256xbf16>
    %89 = vector.shape_cast %88 : vector<1x16x256xbf16> to vector<16x256xbf16>
    %90 = vector.extract_strided_slice %85 {offsets = [2, 0, 0], sizes = [1, 16, 256], strides = [1, 1, 1]} : vector<4x16x256xbf16> to vector<1x16x256xbf16>
    %91 = vector.shape_cast %90 : vector<1x16x256xbf16> to vector<16x256xbf16>
    %92 = vector.extract_strided_slice %85 {offsets = [3, 0, 0], sizes = [1, 16, 256], strides = [1, 1, 1]} : vector<4x16x256xbf16> to vector<1x16x256xbf16>
    %93 = vector.shape_cast %92 : vector<1x16x256xbf16> to vector<16x256xbf16>
    %94 = tpu.concatenate %87, %89, %91, %93 in 1 : vector<16x256xbf16>, vector<16x256xbf16>, vector<16x256xbf16>, vector<16x256xbf16> -> vector<16x1024xbf16>
    %c0_55 = arith.constant 0 : index
    %c0_56 = arith.constant 0 : index
    %95 = vector.load %arg6[%c0_55, %c0_56] : memref<1024x512xbf16, #tpu.memory_space<vmem>>, vector<1024x512xbf16>
    %cst_57 = arith.constant dense<0.000000e+00> : vector<16x512xf32>
    %96 = tpu.matmul %94, %95, %cst_57 {dimension_numbers = #tpu.dot_dimension_numbers<[1], [0], [0], [1], [0, 0, 1, 1], [], []>} : vector<16x1024xbf16>, vector<1024x512xbf16>, vector<16x512xf32> -> vector<16x512xf32>
    %c0_58 = arith.constant 0 : index
    %c0_59 = arith.constant 0 : index
    %97 = vector.load %arg7[%c0_58, %c0_59] : memref<1x512xf32, #tpu.memory_space<vmem>>, vector<1x512xf32>
    %98 = vector.broadcast %97 : vector<1x512xf32> to vector<16x512xf32>
    %99 = arith.addf %96, %98 : vector<16x512xf32>
    %cst_60 = arith.constant 0.000000e+00 : f32
    %100 = vector.broadcast %cst_60 : f32 to vector<16x512xf32>
    %101 = arith.maximumf %99, %100 : vector<16x512xf32>
    %102 = arith.truncf %101 : vector<16x512xf32> to vector<16x512xbf16>
    %c0_61 = arith.constant 0 : index
    %c0_62 = arith.constant 0 : index
    %103 = vector.load %arg8[%c0_61, %c0_62] : memref<512x128xbf16, #tpu.memory_space<vmem>>, vector<512x128xbf16>
    %cst_63 = arith.constant dense<0.000000e+00> : vector<16x128xf32>
    %104 = tpu.matmul %102, %103, %cst_63 {dimension_numbers = #tpu.dot_dimension_numbers<[1], [0], [0], [1], [0, 0, 1, 1], [], []>} : vector<16x512xbf16>, vector<512x128xbf16>, vector<16x128xf32> -> vector<16x128xf32>
    %c0_64 = arith.constant 0 : index
    %c0_65 = arith.constant 0 : index
    %105 = vector.load %arg9[%c0_64, %c0_65] : memref<1x128xf32, #tpu.memory_space<vmem>>, vector<1x128xf32>
    %106 = vector.broadcast %105 : vector<1x128xf32> to vector<16x128xf32>
    %107 = arith.addf %104, %106 : vector<16x128xf32>
    %cst_66 = arith.constant dense<0xFF800000> : vector<16xf32>
    %108 = vector.multi_reduction <maximumf>, %107, %cst_66 [1] : vector<16x128xf32> to vector<16xf32>
    %109 = vector.shape_cast %108 : vector<16xf32> to vector<16x1xf32>
    %110 = vector.broadcast %109 : vector<16x1xf32> to vector<16x128xf32>
    %111 = arith.subf %107, %110 : vector<16x128xf32>
    %112 = math.exp %111 : vector<16x128xf32>
    %cst_67 = arith.constant dense<0.000000e+00> : vector<16xf32>
    %113 = vector.multi_reduction <add>, %112, %cst_67 [1] : vector<16x128xf32> to vector<16xf32>
    %114 = vector.shape_cast %113 : vector<16xf32> to vector<16x1xf32>
    %115 = math.log %114 : vector<16x1xf32>
    %116 = vector.broadcast %115 : vector<16x1xf32> to vector<16x128xf32>
    %117 = arith.subf %111, %116 : vector<16x128xf32>
    %c0_68 = arith.constant 0 : index
    %c0_69 = arith.constant 0 : index
    %118 = vector.load %arg10[%c0_68, %c0_69] : memref<16x128xf32, #tpu.memory_space<vmem>>, vector<16x128xf32>
    tpu.vector_store %arg10[%c0_68, %c0_69], %117 {strides = array<i32>} : memref<16x128xf32, #tpu.memory_space<vmem>>, vector<16x128xf32>,
    return
  }
  func.func @transform_0(%arg0: i32) -> (i32, i32, i32) {
    %c0_i32 = arith.constant 0 : i32
    %c0_i32_0 = arith.constant 0 : i32
    %c0_i32_1 = arith.constant 0 : i32
    return %c0_i32, %arg0, %c0_i32_0 : i32, i32, i32
  }
  func.func @transform_1(%arg0: i32) -> (i32, i32, i32) {
    %c0_i32 = arith.constant 0 : i32
    %c0_i32_0 = arith.constant 0 : i32
    %c0_i32_1 = arith.constant 0 : i32
    %c0_i32_2 = arith.constant 0 : i32
    return %c0_i32, %c0_i32_0, %c0_i32_1 : i32, i32, i32
  }
  func.func @transform_2(%arg0: i32) -> (i32, i32) {
    %c0_i32 = arith.constant 0 : i32
    %c0_i32_0 = arith.constant 0 : i32
    %c0_i32_1 = arith.constant 0 : i32
    return %c0_i32, %c0_i32_0 : i32, i32
  }
  func.func @transform_3(%arg0: i32) -> (i32, i32, i32) {
    %c0_i32 = arith.constant 0 : i32
    %c0_i32_0 = arith.constant 0 : i32
    %c0_i32_1 = arith.constant 0 : i32
    %c0_i32_2 = arith.constant 0 : i32
    return %c0_i32, %c0_i32_0, %c0_i32_1 : i32, i32, i32
  }
  func.func @transform_4(%arg0: i32) -> (i32, i32) {
    %c0_i32 = arith.constant 0 : i32
    %c0_i32_0 = arith.constant 0 : i32
    %c0_i32_1 = arith.constant 0 : i32
    return %c0_i32, %c0_i32_0 : i32, i32
  }
  func.func @transform_5(%arg0: i32) -> (i32, i32) {
    %c0_i32 = arith.constant 0 : i32
    %c0_i32_0 = arith.constant 0 : i32
    %c0_i32_1 = arith.constant 0 : i32
    return %c0_i32, %c0_i32_0 : i32, i32
  }
  func.func @transform_6(%arg0: i32) -> (i32, i32) {
    %c0_i32 = arith.constant 0 : i32
    %c0_i32_0 = arith.constant 0 : i32
    %c0_i32_1 = arith.constant 0 : i32
    return %c0_i32, %c0_i32_0 : i32, i32
  }
  func.func @transform_7(%arg0: i32) -> (i32, i32) {
    %c0_i32 = arith.constant 0 : i32
    %c0_i32_0 = arith.constant 0 : i32
    %c0_i32_1 = arith.constant 0 : i32
    return %c0_i32, %c0_i32_0 : i32, i32
  }
  func.func @transform_8(%arg0: i32) -> (i32, i32) {
    %c0_i32 = arith.constant 0 : i32
    %c0_i32_0 = arith.constant 0 : i32
    %c0_i32_1 = arith.constant 0 : i32
    return %c0_i32, %c0_i32_0 : i32, i32
  }
  func.func @transform_9(%arg0: i32) -> (i32, i32) {
    %c0_i32 = arith.constant 0 : i32
    %c0_i32_0 = arith.constant 0 : i32
    return %arg0, %c0_i32 : i32, i32
  }
}

</mosaic_0001>

<bundles_post_ra>
// kernel: net_forward.1
= control target key start
LH: loop header
LB: loop body
LE: loop exit
PB: predicated region body
PF: predicated region fallthrough
CT: control target
= control target key end

     0   :  { %14 = vsyncpa [#allocation3], 0  ;;  %s17876_s0 = inlined_call_operand.vmem [shape: bf16[28,16,28], index: 0, kind: input, shape index: {}]   ;;  %s17877_s1 = inlined_call_operand.hbm [shape: bf16[5,28,512], index: 1, kind: input, shape index: {}]   ;;  %s17878_s2 = inlined_call_operand.hbm [shape: f32[1,256], index: 2, kind: input, shape index: {}]   ;;  %s17879_s3 = inlined_call_operand.hbm [shape: bf16[5,256,512], index: 3, kind: input, shape index: {}]   ;;  %s17880_s4 = inlined_call_operand.hbm [shape: f32[1,256], index: 4, kind: input, shape index: {}]   ;;  %s17881_s5 = inlined_call_operand.hbm [shape: bf16[1024,512], index: 5, kind: input, shape index: {}]   ;;  %s17882_s6 = inlined_call_operand.hbm [shape: f32[1,512], index: 6, kind: input, shape index: {}]   ;;  %s17883_s7 = inlined_call_operand.hbm [shape: bf16[512,128], index: 7, kind: input, shape index: {}]   ;;  %s17884_s8 = inlined_call_operand.hbm [shape: f32[1,128], index: 8, kind: input, shape index: {}]   ;;  %s17885_s9 = inlined_call_operand.vmem [shape: f32[16,128], index: 9, kind: output, shape index: {}]  }
   0x1   :  { %15 = vsyncpa [#allocation5], 0 }
   0x2   :  { %16 = vsyncpa [#allocation8], 0 }
   0x3   :  { %17 = vsyncpa [#allocation11], 0 }
   0x4   :  { %18 = vsyncpa [#allocation14], 0  ;;  %s13364_s30 = smov [#allocation4]   ;;  %s13365_s11 = smov [#allocation7]  }
   0x5   :  { %s39_s10 = sshll.u32 %s13364_s30, 4  ;;  %s61_s12 = sshll.u32 %s13365_s11, 4  ;;  %s40_s10 = int_to_ptr.vmem [resolvable:$true] %s39_s10  ;;  %s62_s12 = int_to_ptr.vmem [resolvable:$true] %s61_s12 }
   0x6   :  { %s13202_s13 = scalar_lea.vmem %s40_s10, 32  ;;  %p13207_p1 = scmp.lt.s32.totalorder %s40_s10, %s40_s10 }
   0x7   :  { %p13203_p0 = scmp.ne.s32.totalorder %s40_s10, %s13202_s13  ;;  %p13208_p2 = scmp.lt.s32.totalorder %s13202_s13, %s13202_s13 }
   0x9   :  { %p13209_p3 = por %p13208_p2, %p13207_p1 }
   0xb   :  { %p13210_p4 = pnand %p13209_p3, %p13203_p0 }
   0xd   :  { %13213 = shalt.err (!%p13210_p4)
}
   0xe   :  { %42 = dma.hbm_to_vmem [thread:$0]  %s17878_s2, 32, %s40_s10, [#allocation5]  }
   0xf   :  { %s13222_s16 = scalar_lea.vmem %s62_s12, 32  ;;  %p13227_p6 = scmp.lt.s32.totalorder %s62_s12, %s62_s12 }
  0x10   :  { %p13223_p5 = scmp.ne.s32.totalorder %s62_s12, %s13222_s16  ;;  %p13228_p7 = scmp.lt.s32.totalorder %s13222_s16, %s13222_s16 }
  0x12   :  { %p13229_p8 = por %p13228_p7, %p13227_p6 }
  0x14   :  { %p13230_p9 = pnand %p13229_p8, %p13223_p5 }
  0x16   :  { %13233 = shalt.err (!%p13230_p9)
}
  0x17   :  { %64 = dma.hbm_to_vmem [thread:$0]  %s17880_s4, 32, %s62_s12, [#allocation8]  }
  0x18   :  { %s13366_s19 = smov [#allocation10]   ;;  %s13367_s21 = smov [#allocation2]  }
  0x19   :  { %s83_s20 = sshll.u32 %s13366_s19, 4  ;;  %s26_s22 = sshll.u32 %s13367_s21, 4  ;;  %s84_s20 = int_to_ptr.vmem [resolvable:$true] %s83_s20  ;;  %s27_s22 = int_to_ptr.vmem [resolvable:$true] %s26_s22 }
  0x1a   :  { %s13242_s23 = scalar_lea.vmem %s84_s20, 64  ;;  %p13247_p11 = scmp.lt.s32.totalorder %s84_s20, %s84_s20 }
  0x1b   :  { %p13243_p10 = scmp.ne.s32.totalorder %s84_s20, %s13242_s23  ;;  %p13248_p12 = scmp.lt.s32.totalorder %s13242_s23, %s13242_s23 }
  0x1d   :  { %p13249_p13 = por %p13248_p12, %p13247_p11 }
  0x1f   :  { %p13250_p0 = pnand %p13249_p13, %p13243_p10 }
  0x21   :  { %13253 = shalt.err (!%p13250_p0)
}
  0x22   :  { %86 = dma.hbm_to_vmem [thread:$0]  %s17882_s6, 64, %s84_s20, [#allocation11]  }
  0x23   :  { %s13262_s25 = scalar_lea.vmem %s27_s22, 5120  ;;  %p13267_p2 = scmp.lt.s32.totalorder %s27_s22, %s27_s22 }
  0x24   :  { %p13263_p1 = scmp.ne.s32.totalorder %s27_s22, %s13262_s25  ;;  %p13268_p3 = scmp.lt.s32.totalorder %s13262_s25, %s13262_s25 }
  0x26   :  { %p13269_p4 = por %p13268_p3, %p13267_p2 }
  0x28   :  { %p13270_p5 = pnand %p13269_p4, %p13263_p1 }
  0x2a   :  { %13273 = shalt.err (!%p13270_p5)
}
  0x2b   :  { %s13368_s4 = smov 256   ;;  %s13369_s26 = smov 16  }
  0x2c   :  { %32 = dma.hbm_to_vmem [thread:$0]  %s17877_s1, 5120, %s27_s22, [#allocation3], %s13368_s4, %s13368_s4, %s13369_s26  }
  0x2d   :  { %s13370_s29 = smov [#allocation6]   ;;  %s13371_s10 = smov [#allocation9]  }
  0x2e   :  { %s48_s30 = sshll.u32 %s13370_s29, 4  ;;  %s70_s11 = sshll.u32 %s13371_s10, 4  ;;  %s49_s30 = int_to_ptr.vmem [resolvable:$true] %s48_s30  ;;  %s71_s11 = int_to_ptr.vmem [resolvable:$true] %s70_s11 }
  0x2f   :  { %s13282_s6 = scalar_lea.vmem %s49_s30, 40960  ;;  %p13287_p7 = scmp.lt.s32.totalorder %s49_s30, %s49_s30 }
  0x30   :  { %p13283_p6 = scmp.ne.s32.totalorder %s49_s30, %s13282_s6  ;;  %p13288_p8 = scmp.lt.s32.totalorder %s13282_s6, %s13282_s6 }
  0x32   :  { %p13289_p9 = por %p13288_p8, %p13287_p7 }
  0x34   :  { %p13290_p10 = pnand %p13289_p9, %p13283_p6 }
  0x36   :  { %13293 = shalt.err (!%p13290_p10)
}
  0x37   :  { %54 = dma.hbm_to_vmem [thread:$0]  %s17879_s3, 40960, %s49_s30, [#allocation5], %s13368_s4, %s13368_s4, %s13369_s26  }
  0x38   :  { %s13302_s14 = scalar_lea.vmem %s71_s11, 32768  ;;  %p13307_p12 = scmp.lt.s32.totalorder %s71_s11, %s71_s11 }
  0x39   :  { %p13303_p11 = scmp.ne.s32.totalorder %s71_s11, %s13302_s14  ;;  %p13308_p13 = scmp.lt.s32.totalorder %s13302_s14, %s13302_s14 }
  0x3b   :  { %p13309_p0 = por %p13308_p13, %p13307_p12 }
  0x3d   :  { %p13310_p1 = pnand %p13309_p0, %p13303_p11 }
  0x3f   :  { %13313 = shalt.err (!%p13310_p1)
}
  0x40   :  { %76 = dma.hbm_to_vmem [thread:$0]  %s17881_s5, 32768, %s71_s11, [#allocation8], %s13368_s4, %s13368_s4, %s13369_s26  }
  0x41   :  { %s13372_s16 = smov [#allocation12]  }
  0x42   :  { %s92_s17 = sshll.u32 %s13372_s16, 4  ;;  %s93_s17 = int_to_ptr.vmem [resolvable:$true] %s92_s17 }
  0x43   :  { %s13322_s18 = scalar_lea.vmem %s93_s17, 4096  ;;  %p13327_p3 = scmp.lt.s32.totalorder %s93_s17, %s93_s17 }
  0x44   :  { %p13323_p2 = scmp.ne.s32.totalorder %s93_s17, %s13322_s18  ;;  %p13328_p4 = scmp.lt.s32.totalorder %s13322_s18, %s13322_s18 }
  0x46   :  { %p13329_p5 = por %p13328_p4, %p13327_p3 }
  0x48   :  { %p13330_p6 = pnand %p13329_p5, %p13323_p2 }
  0x4a   :  { %13333 = shalt.err (!%p13330_p6)
}
  0x4b   :  { %s13373_s3 = smov 64   ;;  %s13374_s19 = smov 4  }
  0x4c   :  { %98 = dma.hbm_to_vmem [thread:$0]  %s17883_s7, 4096, %s93_s17, [#allocation11], %s13373_s3, %s13373_s3, %s13374_s19  }
  0x4d   :  { %s13375_s22 = smov [#allocation13]  }
  0x4e   :  { %s105_s23 = sshll.u32 %s13375_s22, 4  ;;  %s106_s23 = int_to_ptr.vmem [resolvable:$true] %s105_s23 }
  0x4f   :  { %s13342_s5 = scalar_lea.vmem %s106_s23, 16  ;;  %s13346_s2 = scalar_lea.vmem %s106_s23, 32 }
  0x50   :  { %p13343_p7 = scmp.ne.s32.totalorder %s106_s23, %s13342_s5  ;;  %p13347_p8 = scmp.lt.s32.totalorder %s106_s23, %s106_s23 }
  0x51   :  { %p13348_p9 = scmp.lt.s32.totalorder %s13346_s2, %s13342_s5 }
  0x53   :  { %p13349_p10 = por %p13348_p9, %p13347_p8 }
  0x55   :  { %p13350_p11 = pnand %p13349_p10, %p13343_p7 }
  0x57   :  { %13353 = shalt.err (!%p13350_p11)
}
  0x58   :  { %108 = dma.hbm_to_vmem [thread:$0]  %s17884_s8, 16, %s106_s23, [#allocation14]  }
  0x59   :  { %13354 = dma.done.wait [#allocation3], 5120  }
  0x5a   :  { %13355 = vsyncadd [#allocation3], 4294962176 }
  0x5b   :  { %13356 = dma.done.wait [#allocation5], 40992  }
  0x5c   :  { %13357 = vsyncadd [#allocation5], 4294926304 }
  0x5d   :  { %13358 = dma.done.wait [#allocation8], 32800  }
  0x5e   :  { %13359 = vsyncadd [#allocation8], 4294934496 }
  0x5f   :  { %13360 = dma.done.wait [#allocation11], 4160  }
  0x60   :  { %13361 = vsyncadd [#allocation11], 4294963136 }
  0x61   :  { %13362 = dma.done.wait [#allocation14], 16  }
  0x62   :  { %13363 = vsyncadd [#allocation14], 4294967280  ;;  %v17886_v0 = vmov 0   ;;  %vm477_vm0 = vcmask 1045504   ;;  %v12116_v5 = vld [vmem:[#allocation2 + $0x44] ss:$16 sps:$4 sm:$0xff]  }
  0x63   :  { %522 = vmatprep.mubr.bf16.mxu0 %v17886_v0  ;;  %795 = vmatprep.mubr.bf16.mxu1 %v17886_v0  ;;  %v12110_v1 = vld [vmem:[#allocation2 + $0x64] ss:$16 sps:$4 sm:$0x3f]   ;;  %v12112_v2 = vld [vmem:[#allocation2 + $0x6c] ss:$16 sps:$4 sm:$0x3f]  }
  0x64   :  { %10922 = vmatprep.subr.msk.bf16.mxu0 %vm477_vm0, %v12110_v1  ;;  %v12114_v3 = vld [vmem:[#allocation2 + $0x60] ss:$16 sps:$4 sm:$0x3f]   ;;  %v12115_v4 = vld [vmem:[#allocation2 + $0x68] ss:$16 sps:$4 sm:$0x3f]   ;;  %10947 = vmatprep.subr.msk.bf16.mxu1 %vm477_vm0, %v12112_v2 }
  0x65   :  { %v479_v6 = vsel %vm477_vm0, %v12114_v3, 0  ;;  %v485_v7 = vsel %vm477_vm0, %v12115_v4, 0  ;;  %v12118_v8 = vld [vmem:[#allocation2 + $0x4c] ss:$16 sps:$4 sm:$0xff]   ;;  %v12120_v9 = vld [vmem:[#allocation2 + $0x40] ss:$16 sps:$4 sm:$0xff]  }
  0x66   :  { %503 = vmatpush1.bf16.msra.mxu0 %v479_v6  ;;  %776 = vmatpush1.bf16.msra.mxu1 %v485_v7  ;;  %v12121_v10 = vld [vmem:[#allocation2 + $0x48] ss:$16 sps:$4 sm:$0xff]   ;;  %vm404_vm1 = vcmask 228352   ;;  %v12123_v11 = vld [vmem:[#allocation2 + $0x24] ss:$16 sps:$4 sm:$0x3f]  }
  0x67   :  { %504 = vmatprep.subr.bf16.mxu0 %v12116_v5  ;;  %777 = vmatprep.subr.bf16.mxu1 %v12118_v8  ;;  %v12122_v12 = vld [vmem:[%s17876_s0 + $0x8] sm:$0xff]   ;;  %v12127_v14 = vld [vmem:[#allocation2 + $0x20] ss:$16 sps:$4 sm:$0x3f]   ;;  %v12130_v19 = vld [vmem:[%s17876_s0 + $0x18] sm:$0xff]  }
  0x68   :  { %v12125_v13 = vld [vmem:[#allocation2 + $0x2c] ss:$16 sps:$4 sm:$0x3f]   ;;  %v12128_v15 = vld [vmem:[#allocation2 + $0x28] ss:$16 sps:$4 sm:$0x3f]  }
  0x69   :  { %v1265_v16 = vsel %vm477_vm0, %v12127_v14, 0  ;;  %v1271_v17 = vsel %vm477_vm0, %v12128_v15, 0  ;;  %v12129_v18 = vld [vmem:[%s17876_s0 + $0x10] sm:$0xff]   ;;  %v12144_v22 = vld [vmem:[#allocation2 + $0x8] ss:$16 sps:$4 sm:$0xff]   ;;  %v12131_v24 = vld [vmem:[%s17876_s0 + $0x20] sm:$0xff]  }
  0x6a   :  { %505 = vmatpush1.bf16.msra.mxu0 %v12120_v9  ;;  %778 = vmatpush1.bf16.msra.mxu1 %v12121_v10  ;;  %v12141_v20 = vld [vmem:[#allocation2] ss:$16 sps:$4 sm:$0xff]   ;;  %v12143_v21 = vld [vmem:[#allocation2 + $0x4] ss:$16 sps:$4 sm:$0xff]   ;;  %v12146_v23 = vld [vmem:[#allocation2 + $0xc] ss:$16 sps:$4 sm:$0xff]  }
  0x6b   :  { %11004 = vmatprep.subr.msk.bf16.mxu0 %vm477_vm0, %v12123_v11  ;;  %11029 = vmatprep.subr.msk.bf16.mxu1 %vm477_vm0, %v12125_v13  ;;  %v12132_v25 = vld [vmem:[%s17876_s0 + $0x28] sm:$0xff]   ;;  %v12133_v26 = vld [vmem:[%s17876_s0 + $0x30] sm:$0xff]   ;;  %v12134_v27 = vld [vmem:[%s17876_s0 + $0x38] sm:$0xff]  }
  0x6c   :  { %v12135_v28 = vld [vmem:[%s17876_s0 + $0x40] sm:$0xff]   ;;  %v12136_v29 = vld [vmem:[%s17876_s0 + $0x48] sm:$0xff]   ;;  %v12137_v32 = vld [vmem:[%s17876_s0 + $0x50] sm:$0xff]  }
  0x6d   :  { %10923 = vmatmul.mubr.msk.bf16.vlgmr.msra.gmra.mxu0 %vm404_vm1, %v12122_v12  ;;  %10948 = vmatmul.mubr.msk.bf16.vlgmr.msra.gmra.mxu1 %vm404_vm1, %v12122_v12  ;;  %v12159_v30 = vld [vmem:[#allocation2 + $0xa4] ss:$16 sps:$4 sm:$0x3f]   ;;  %v12161_v31 = vld [vmem:[#allocation2 + $0xac] ss:$16 sps:$4 sm:$0x3f]  }
  0x6e   :  { %1289 = vmatpush1.bf16.msra.mxu0 %v1265_v16  ;;  %1562 = vmatpush1.bf16.msra.mxu1 %v1271_v17  ;;  %v12138_v33 = vld [vmem:[%s17876_s0 + $0x58] sm:$0xff]   ;;  %v12139_v34 = vld [vmem:[%s17876_s0 + $0x60] sm:$0xff]   ;;  %v12140_v35 = vld [vmem:[%s17876_s0 + $0x68] sm:$0xff]  }
  0x6f   :  { %532 = vmatprep.mubr.bf16.mxu0 %v17886_v0  ;;  %805 = vmatprep.mubr.bf16.mxu1 %v17886_v0  ;;  %v12147_v36 = vld [vmem:[%s17876_s0 + $0x70] sm:$0xff]   ;;  %v12148_v37 = vld [vmem:[%s17876_s0 + $0x78] sm:$0xff]   ;;  %v12149_v38 = vld [vmem:[%s17876_s0 + $0x80] sm:$0xff]  }
  0x70   :  { %1290 = vmatprep.subr.bf16.mxu0 %v12143_v21  ;;  %1563 = vmatprep.subr.bf16.mxu1 %v12146_v23  ;;  %v12150_v39 = vld [vmem:[%s17876_s0 + $0x88] sm:$0xff]   ;;  %v12151_v40 = vld [vmem:[%s17876_s0 + $0x90] sm:$0xff]   ;;  %v12152_v41 = vld [vmem:[%s17876_s0 + $0x98] sm:$0xff]  }
  0x71   :  { %v12153_v42 = vld [vmem:[%s17876_s0 + $0xa0] sm:$0xff]   ;;  %v12154_v43 = vld [vmem:[%s17876_s0 + $0xa8] sm:$0xff]   ;;  %v12155_v44 = vld [vmem:[%s17876_s0 + $0xb0] sm:$0xff]  }
  0x72   :  { %1291 = vmatpush1.bf16.msra.mxu0 %v12141_v20  ;;  %1564 = vmatpush1.bf16.msra.mxu1 %v12144_v22  ;;  %v12156_v45 = vld [vmem:[%s17876_s0 + $0xb8] sm:$0xff]   ;;  %v12157_v46 = vld [vmem:[%s17876_s0 + $0xc0] sm:$0xff]   ;;  %v12165_v60 = vld [vmem:[%s17876_s0 + $0x8] sm:$0xff]  }
  0x73   :  { %11134 = vmatprep.subr.msk.bf16.mxu0 %vm477_vm0, %v12159_v30  ;;  %11159 = vmatprep.subr.msk.bf16.mxu1 %vm477_vm0, %v12161_v31  ;;  %v12163_v47 = vld [vmem:[#allocation2 + $0xa0] ss:$16 sps:$4 sm:$0x3f]   ;;  %v12164_v48 = vld [vmem:[#allocation2 + $0xa8] ss:$16 sps:$4 sm:$0x3f]  }
  0x74   :  { %v12158_v49 = vld [vmem:[%s17876_s0] sm:$0xff]   ;;  %v2109_v51 = vsel %vm477_vm0, %v12163_v47, 0  ;;  %v2115_v52 = vsel %vm477_vm0, %v12164_v48, 0  ;;  %v12182_v53 = vld [vmem:[#allocation2 + $0x8c] ss:$16 sps:$4 sm:$0xff]   ;;  %v12166_v6 = vld [vmem:[%s17876_s0 + $0x10] sm:$0xff]  }
  0x75   :  { %10924 = vmatmul.mubr.msk.bf16.gmra.mxu0 %vm404_vm1, %v12129_v18  ;;  %10949 = vmatmul.mubr.msk.bf16.gmra.mxu1 %vm404_vm1, %v12129_v18  ;;  %v12179_v50 = vld [vmem:[#allocation2 + $0x84] ss:$16 sps:$4 sm:$0xff]   ;;  %v12177_v54 = vld [vmem:[#allocation2 + $0x80] ss:$16 sps:$4 sm:$0xff]   ;;  %v12180_v55 = vld [vmem:[#allocation2 + $0x88] ss:$16 sps:$4 sm:$0xff]  }
  0x76   :  { %542 = vmatprep.mubr.bf16.mxu0 %v17886_v0  ;;  %815 = vmatprep.mubr.bf16.mxu1 %v17886_v0  ;;  %v12167_v15 = vld [vmem:[%s17876_s0 + $0x18] sm:$0xff]  }
  0x7d   :  { %10925 = vmatmul.mubr.msk.bf16.gmra.mxu0 %vm404_vm1, %v12130_v19  ;;  %10950 = vmatmul.mubr.msk.bf16.gmra.mxu1 %vm404_vm1, %v12130_v19 }
  0x7e   :  { %552 = vmatprep.mubr.bf16.mxu0 %v17886_v0  ;;  %825 = vmatprep.mubr.bf16.mxu1 %v17886_v0 }
  0x85   :  { %10926 = vmatmul.mubr.msk.bf16.gmra.mxu0 %vm404_vm1, %v12131_v24  ;;  %10951 = vmatmul.mubr.msk.bf16.gmra.mxu1 %vm404_vm1, %v12131_v24  ;;  %v12168_v24 = vld [vmem:[%s17876_s0 + $0x20] sm:$0xff]  }
  0x86   :  { %562 = vmatprep.mubr.bf16.mxu0 %v17886_v0  ;;  %835 = vmatprep.mubr.bf16.mxu1 %v17886_v0 }
  0x8d   :  { %10927 = vmatmul.mubr.msk.bf16.gmra.mxu0 %vm404_vm1, %v12132_v25  ;;  %10952 = vmatmul.mubr.msk.bf16.gmra.mxu1 %vm404_vm1, %v12132_v25 }
  0x8e   :  { %572 = vmatprep.mubr.bf16.mxu0 %v17886_v0  ;;  %845 = vmatprep.mubr.bf16.mxu1 %v17886_v0 }
  0x95   :  { %10928 = vmatmul.mubr.msk.bf16.gmra.mxu0 %vm404_vm1, %v12133_v26  ;;  %10953 = vmatmul.mubr.msk.bf16.gmra.mxu1 %vm404_vm1, %v12133_v26 }
  0x96   :  { %582 = vmatprep.mubr.bf16.mxu0 %v17886_v0  ;;  %855 = vmatprep.mubr.bf16.mxu1 %v17886_v0 }
  0x9d   :  { %10929 = vmatmul.mubr.msk.bf16.gmra.mxu0 %vm404_vm1, %v12134_v27  ;;  %10954 = vmatmul.mubr.msk.bf16.gmra.mxu1 %vm404_vm1, %v12134_v27 }
  0x9e   :  { %592 = vmatprep.mubr.bf16.mxu0 %v17886_v0  ;;  %865 = vmatprep.mubr.bf16.mxu1 %v17886_v0 }
  0xa5   :  { %10930 = vmatmul.mubr.msk.bf16.gmra.mxu0 %vm404_vm1, %v12135_v28  ;;  %10955 = vmatmul.mubr.msk.bf16.gmra.mxu1 %vm404_vm1, %v12135_v28 }
  0xa6   :  { %602 = vmatprep.mubr.bf16.mxu0 %v17886_v0  ;;  %875 = vmatprep.mubr.bf16.mxu1 %v17886_v0 }
  0xad   :  { %10931 = vmatmul.mubr.msk.bf16.gmra.mxu0 %vm404_vm1, %v12136_v29  ;;  %10956 = vmatmul.mubr.msk.bf16.gmra.mxu1 %vm404_vm1, %v12136_v29 }
  0xae   :  { %612 = vmatprep.mubr.bf16.mxu0 %v17886_v0  ;;  %885 = vmatprep.mubr.bf16.mxu1 %v17886_v0 }
  0xb5   :  { %10932 = vmatmul.mubr.msk.bf16.gmra.mxu0 %vm404_vm1, %v12137_v32  ;;  %10957 = vmatmul.mubr.msk.bf16.gmra.mxu1 %vm404_vm1, %v12137_v32 }
  0xb6   :  { %622 = vmatprep.mubr.bf16.mxu0 %v17886_v0  ;;  %895 = vmatprep.mubr.bf16.mxu1 %v17886_v0 }
  0xbd   :  { %10933 = vmatmul.mubr.msk.bf16.gmra.mxu0 %vm404_vm1, %v12138_v33  ;;  %10958 = vmatmul.mubr.msk.bf16.gmra.mxu1 %vm404_vm1, %v12138_v33  ;;  %v12169_v33 = vld [vmem:[%s17876_s0 + $0x28] sm:$0xff]  }
  0xbe   :  { %632 = vmatprep.mubr.bf16.mxu0 %v17886_v0  ;;  %905 = vmatprep.mubr.bf16.mxu1 %v17886_v0 }
  0xc5   :  { %10934 = vmatmul.mubr.msk.bf16.gmra.mxu0 %vm404_vm1, %v12139_v34  ;;  %10959 = vmatmul.mubr.msk.bf16.gmra.mxu1 %vm404_vm1, %v12139_v34 }
  0xc6   :  { %642 = vmatprep.mubr.bf16.mxu0 %v17886_v0  ;;  %915 = vmatprep.mubr.bf16.mxu1 %v17886_v0 }
  0xcd   :  { %10935 = vmatmul.mubr.msk.bf16.gmra.mxu0 %vm404_vm1, %v12140_v35  ;;  %10960 = vmatmul.mubr.msk.bf16.gmra.mxu1 %vm404_vm1, %v12140_v35 }
  0xce   :  { %652 = vmatprep.mubr.bf16.mxu0 %v17886_v0  ;;  %925 = vmatprep.mubr.bf16.mxu1 %v17886_v0 }
  0xd5   :  { %10936 = vmatmul.mubr.msk.bf16.gmra.mxu0 %vm404_vm1, %v12147_v36  ;;  %10961 = vmatmul.mubr.msk.bf16.gmra.mxu1 %vm404_vm1, %v12147_v36 }
  0xd6   :  { %662 = vmatprep.mubr.bf16.mxu0 %v17886_v0  ;;  %935 = vmatprep.mubr.bf16.mxu1 %v17886_v0 }
  0xdd   :  { %10937 = vmatmul.mubr.msk.bf16.gmra.mxu0 %vm404_vm1, %v12148_v37  ;;  %10962 = vmatmul.mubr.msk.bf16.gmra.mxu1 %vm404_vm1, %v12148_v37 }
  0xde   :  { %672 = vmatprep.mubr.bf16.mxu0 %v17886_v0  ;;  %945 = vmatprep.mubr.bf16.mxu1 %v17886_v0 }
  0xe5   :  { %10938 = vmatmul.mubr.msk.bf16.gmra.mxu0 %vm404_vm1, %v12149_v38  ;;  %10963 = vmatmul.mubr.msk.bf16.gmra.mxu1 %vm404_vm1, %v12149_v38 }
  0xe6   :  { %682 = vmatprep.mubr.bf16.mxu0 %v17886_v0  ;;  %955 = vmatprep.mubr.bf16.mxu1 %v17886_v0 }
  0xed   :  { %10939 = vmatmul.mubr.msk.bf16.gmra.mxu0 %vm404_vm1, %v12150_v39  ;;  %10964 = vmatmul.mubr.msk.bf16.gmra.mxu1 %vm404_vm1, %v12150_v39 }
  0xee   :  { %692 = vmatprep.mubr.bf16.mxu0 %v17886_v0  ;;  %965 = vmatprep.mubr.bf16.mxu1 %v17886_v0 }
  0xf5   :  { %10940 = vmatmul.mubr.msk.bf16.gmra.mxu0 %vm404_vm1, %v12151_v40  ;;  %10965 = vmatmul.mubr.msk.bf16.gmra.mxu1 %vm404_vm1, %v12151_v40 }
  0xf6   :  { %702 = vmatprep.mubr.bf16.mxu0 %v17886_v0  ;;  %975 = vmatprep.mubr.bf16.mxu1 %v17886_v0 }
  0xfd   :  { %10941 = vmatmul.mubr.msk.bf16.gmra.mxu0 %vm404_vm1, %v12152_v41  ;;  %10966 = vmatmul.mubr.msk.bf16.gmra.mxu1 %vm404_vm1, %v12152_v41 }
  0xfe   :  { %712 = vmatprep.mubr.bf16.mxu0 %v17886_v0  ;;  %985 = vmatprep.mubr.bf16.mxu1 %v17886_v0 }
 0x105   :  { %10942 = vmatmul.mubr.msk.bf16.gmra.mxu0 %vm404_vm1, %v12153_v42  ;;  %10967 = vmatmul.mubr.msk.bf16.gmra.mxu1 %vm404_vm1, %v12153_v42  ;;  %v12170_v42 = vld [vmem:[%s17876_s0 + $0x30] sm:$0xff]  }
 0x106   :  { %722 = vmatprep.mubr.bf16.mxu0 %v17886_v0  ;;  %995 = vmatprep.mubr.bf16.mxu1 %v17886_v0 }
 0x10d   :  { %10943 = vmatmul.mubr.msk.bf16.gmra.mxu0 %vm404_vm1, %v12154_v43  ;;  %10968 = vmatmul.mubr.msk.bf16.gmra.mxu1 %vm404_vm1, %v12154_v43 }
 0x10e   :  { %732 = vmatprep.mubr.bf16.mxu0 %v17886_v0  ;;  %1005 = vmatprep.mubr.bf16.mxu1 %v17886_v0 }
 0x115   :  { %10944 = vmatmul.mubr.msk.bf16.gmra.mxu0 %vm404_vm1, %v12155_v44  ;;  %10969 = vmatmul.mubr.msk.bf16.gmra.mxu1 %vm404_vm1, %v12155_v44 }
 0x116   :  { %742 = vmatprep.mubr.bf16.mxu0 %v17886_v0  ;;  %1015 = vmatprep.mubr.bf16.mxu1 %v17886_v0 }
 0x11d   :  { %10945 = vmatmul.mubr.msk.bf16.gmra.mxu0 %vm404_vm1, %v12156_v45  ;;  %10970 = vmatmul.mubr.msk.bf16.gmra.mxu1 %vm404_vm1, %v12156_v45 }
 0x11e   :  { %752 = vmatprep.mubr.bf16.mxu0 %v17886_v0  ;;  %1025 = vmatprep.mubr.bf16.mxu1 %v17886_v0 }
 0x125   :  { %10946 = vmatmul.mubr.msk.bf16.gmra.mxu0 %vm404_vm1, %v12157_v46  ;;  %10971 = vmatmul.mubr.msk.bf16.gmra.mxu1 %vm404_vm1, %v12157_v46 }
 0x126   :  { %1308 = vmatprep.mubr.bf16.mxu0 %v17886_v0  ;;  %1581 = vmatprep.mubr.bf16.mxu1 %v17886_v0 }
 0x12d   :  { %v13636_v56 = vpop.f32.mrf.mxu0  ;;  %v13638_v57 = vpop.f32.mrf.mxu1  ;;  %11005 = vmatmul.mubr.msk.bf16.vlgmr.msra.gmra.mxu0 %vm404_vm1, %v12158_v49  ;;  %11030 = vmatmul.mubr.msk.bf16.vlgmr.msra.gmra.mxu1 %vm404_vm1, %v12158_v49 }
 0x12e   :  { %2133 = vmatpush1.bf16.msra.mxu0 %v2109_v51  ;;  %2406 = vmatpush1.bf16.msra.mxu1 %v2115_v52  ;;  %v12171_v51 = vld [vmem:[%s17876_s0 + $0x38] sm:$0xff]  }
 0x12f   :  { %v13642_v58 = vpop.f32.mrf.mxu0  ;;  %v13644_v59 = vpop.f32.mrf.mxu1  ;;  %1318 = vmatprep.mubr.bf16.mxu0 %v17886_v0  ;;  %1591 = vmatprep.mubr.bf16.mxu1 %v17886_v0 }
 0x130   :  { %2134 = vmatprep.subr.bf16.mxu0 %v12179_v50  ;;  %2407 = vmatprep.subr.bf16.mxu1 %v12182_v53 }
 0x131   :  { %v13651_v61 = vpop.f32.mrf.mxu0  ;;  %v13653_v62 = vpop.f32.mrf.mxu1 }
 0x132   :  { %2135 = vmatpush1.bf16.msra.mxu0 %v12177_v54  ;;  %2408 = vmatpush1.bf16.msra.mxu1 %v12180_v55 }
 0x133   :  { %v13655_v63 = vpop.f32.mrf.mxu0  ;;  %v13657_v1 = vpop.f32.mrf.mxu1 }
 0x135   :  { %v13659_v2 = vpop.f32.mrf.mxu0  ;;  %v13661_v3 = vpop.f32.mrf.mxu1  ;;  %11006 = vmatmul.mubr.msk.bf16.gmra.mxu0 %vm404_vm1, %v12165_v60  ;;  %11031 = vmatmul.mubr.msk.bf16.gmra.mxu1 %vm404_vm1, %v12165_v60 }
 0x136   :  { %1328 = vmatprep.mubr.bf16.mxu0 %v17886_v0  ;;  %1601 = vmatprep.mubr.bf16.mxu1 %v17886_v0 }
 0x137   :  { %v13667_v4 = vpop.f32.mrf.mxu0  ;;  %v13669_v5 = vpop.f32.mrf.mxu1 }
 0x139   :  { %v13674_v7 = vpop.f32.mrf.mxu0  ;;  %v13676_v8 = vpop.f32.mrf.mxu1 }
 0x13b   :  { %v13678_v9 = vpop.f32.mrf.mxu0  ;;  %v13680_v10 = vpop.f32.mrf.mxu1 }
 0x13d   :  { %v13682_v11 = vpop.f32.mrf.mxu0  ;;  %v13684_v12 = vpop.f32.mrf.mxu1  ;;  %11007 = vmatmul.mubr.msk.bf16.gmra.mxu0 %vm404_vm1, %v12166_v6  ;;  %11032 = vmatmul.mubr.msk.bf16.gmra.mxu1 %vm404_vm1, %v12166_v6 }
 0x13e   :  { %1338 = vmatprep.mubr.bf16.mxu0 %v17886_v0  ;;  %1611 = vmatprep.mubr.bf16.mxu1 %v17886_v0 }
 0x13f   :  { %v13690_v13 = vpop.f32.mrf.mxu0  ;;  %v13692_v14 = vpop.f32.mrf.mxu1 }
 0x141   :  { %v13697_v16 = vpop.f32.mrf.mxu0  ;;  %v13699_v17 = vpop.f32.mrf.mxu1 }
 0x143   :  { %v13701_v18 = vpop.f32.mrf.mxu0  ;;  %v13703_v19 = vpop.f32.mrf.mxu1 }
 0x145   :  { %v13705_v20 = vpop.f32.mrf.mxu0  ;;  %v13707_v21 = vpop.f32.mrf.mxu1  ;;  %11008 = vmatmul.mubr.msk.bf16.gmra.mxu0 %vm404_vm1, %v12167_v15  ;;  %11033 = vmatmul.mubr.msk.bf16.gmra.mxu1 %vm404_vm1, %v12167_v15 }
 0x146   :  { %17894 = vst [vmem:[#allocation20_spill] sm:$0xff] %v13707_v21  ;;  %1348 = vmatprep.mubr.bf16.mxu0 %v17886_v0  ;;  %1621 = vmatprep.mubr.bf16.mxu1 %v17886_v0 }
 0x147   :  { %v13713_v22 = vpop.f32.mrf.mxu0  ;;  %v13715_v23 = vpop.f32.mrf.mxu1 }
 0x148   :  { %17895 = vst [vmem:[#allocation21_spill] sm:$0xff] %v13713_v22  ;;  %17896 = vst [vmem:[#allocation22_spill] sm:$0xff] %v13715_v23  ;;  %v12251_v22 = vld [vmem:[#allocation2 + $0x104] ss:$16 sps:$4 sm:$0xff]  }
 0x149   :  { %v13720_v25 = vpop.f32.mrf.mxu0  ;;  %v13722_v26 = vpop.f32.mrf.mxu1 }
 0x14a   :  { %17897 = vst [vmem:[#allocation23_spill] sm:$0xff] %v13720_v25  ;;  %17898 = vst [vmem:[#allocation24_spill] sm:$0xff] %v13722_v26 }
 0x14b   :  { %v13724_v27 = vpop.f32.mrf.mxu0  ;;  %v13726_v28 = vpop.f32.mrf.mxu1 }
 0x14c   :  { %17899 = vst [vmem:[#allocation25_spill] sm:$0xff] %v13724_v27  ;;  %17900 = vst [vmem:[#allocation26_spill] sm:$0xff] %v13726_v28  ;;  %v12204_v28 = vld [vmem:[%s17876_s0 + $0x30] sm:$0xff]  }
 0x14d   :  { %v13728_v29 = vpop.f32.mrf.mxu0  ;;  %v13730_v30 = vpop.f32.mrf.mxu1  ;;  %11009 = vmatmul.mubr.msk.bf16.gmra.mxu0 %vm404_vm1, %v12168_v24  ;;  %11034 = vmatmul.mubr.msk.bf16.gmra.mxu1 %vm404_vm1, %v12168_v24 }
 0x14e   :  { %17901 = vst [vmem:[#allocation27_spill] sm:$0xff] %v13728_v29  ;;  %17902 = vst [vmem:[#allocation28_spill] sm:$0xff] %v13730_v30  ;;  %1358 = vmatprep.mubr.bf16.mxu0 %v17886_v0  ;;  %1631 = vmatprep.mubr.bf16.mxu1 %v17886_v0 }
 0x14f   :  { %v13736_v31 = vpop.f32.mrf.mxu0  ;;  %v13738_v32 = vpop.f32.mrf.mxu1 }
 0x150   :  { %17903 = vst [vmem:[#allocation29_spill] sm:$0xff] %v13736_v31  ;;  %17904 = vst [vmem:[#allocation30_spill] sm:$0xff] %v13738_v32 }
 0x151   :  { %v13743_v34 = vpop.f32.mrf.mxu0  ;;  %v13745_v35 = vpop.f32.mrf.mxu1 }
 0x152   :  { %17905 = vst [vmem:[#allocation31_spill] sm:$0xff] %v13743_v34  ;;  %17906 = vst [vmem:[#allocation32_spill] sm:$0xff] %v13745_v35 }
 0x153   :  { %v13747_v36 = vpop.f32.mrf.mxu0  ;;  %v13749_v37 = vpop.f32.mrf.mxu1 }
 0x154   :  { %17907 = vst [vmem:[#allocation33_spill] sm:$0xff] %v13747_v36  ;;  %17908 = vst [vmem:[#allocation34_spill] sm:$0xff] %v13749_v37  ;;  %v12203_v37 = vld [vmem:[%s17876_s0 + $0x28] sm:$0xff]  }
 0x155   :  { %v13751_v38 = vpop.f32.mrf.mxu0  ;;  %v13753_v39 = vpop.f32.mrf.mxu1  ;;  %11010 = vmatmul.mubr.msk.bf16.gmra.mxu0 %vm404_vm1, %v12169_v33  ;;  %11035 = vmatmul.mubr.msk.bf16.gmra.mxu1 %vm404_vm1, %v12169_v33  ;;  %v12172_v33 = vld [vmem:[%s17876_s0 + $0x40] sm:$0xff]  }
 0x156   :  { %17909 = vst [vmem:[#allocation35_spill] sm:$0xff] %v13751_v38  ;;  %17910 = vst [vmem:[#allocation36_spill] sm:$0xff] %v13753_v39  ;;  %1368 = vmatprep.mubr.bf16.mxu0 %v17886_v0  ;;  %1641 = vmatprep.mubr.bf16.mxu1 %v17886_v0 }
 0x157   :  { %v13759_v40 = vpop.f32.mrf.mxu0  ;;  %v13761_v41 = vpop.f32.mrf.mxu1 }
 0x158   :  { %17911 = vst [vmem:[#allocation37_spill] sm:$0xff] %v13759_v40  ;;  %17912 = vst [vmem:[#allocation38_spill] sm:$0xff] %v13761_v41 }
 0x159   :  { %v13766_v43 = vpop.f32.mrf.mxu0  ;;  %v13768_v44 = vpop.f32.mrf.mxu1 }
 0x15a   :  { %17913 = vst [vmem:[#allocation39_spill] sm:$0xff] %v13766_v43  ;;  %17914 = vst [vmem:[#allocation40_spill] sm:$0xff] %v13768_v44 }
 0x15b   :  { %v13770_v45 = vpop.f32.mrf.mxu0  ;;  %v13772_v46 = vpop.f32.mrf.mxu1 }
 0x15c   :  { %17915 = vst [vmem:[#allocation41_spill] sm:$0xff] %v13770_v45  ;;  %17916 = vst [vmem:[#allocation42_spill] sm:$0xff] %v13772_v46  ;;  %v12202_v46 = vld [vmem:[%s17876_s0 + $0x20] sm:$0xff]  }
 0x15d   :  { %v13774_v47 = vpop.f32.mrf.mxu0  ;;  %v13776_v48 = vpop.f32.mrf.mxu1  ;;  %11011 = vmatmul.mubr.msk.bf16.gmra.mxu0 %vm404_vm1, %v12170_v42  ;;  %11036 = vmatmul.mubr.msk.bf16.gmra.mxu1 %vm404_vm1, %v12170_v42 }
 0x15e   :  { %17917 = vst [vmem:[#allocation43_spill] sm:$0xff] %v13774_v47  ;;  %17918 = vst [vmem:[#allocation44_spill] sm:$0xff] %v13776_v48  ;;  %1378 = vmatprep.mubr.bf16.mxu0 %v17886_v0  ;;  %1651 = vmatprep.mubr.bf16.mxu1 %v17886_v0 }
 0x15f   :  { %v13782_v49 = vpop.f32.mrf.mxu0  ;;  %v13784_v50 = vpop.f32.mrf.mxu1 }
 0x160   :  { %17919 = vst [vmem:[#allocation45_spill] sm:$0xff] %v13782_v49  ;;  %17920 = vst [vmem:[#allocation46_spill] sm:$0xff] %v13784_v50 }
 0x161   :  { %v13789_v52 = vpop.f32.mrf.mxu0  ;;  %v13791_v53 = vpop.f32.mrf.mxu1 }
 0x162   :  { %17921 = vst [vmem:[#allocation47_spill] sm:$0xff] %v13789_v52  ;;  %17922 = vst [vmem:[#allocation48_spill] sm:$0xff] %v13791_v53  ;;  %v12215_v52 = vld [vmem:[#allocation2 + $0xc4] ss:$16 sps:$4 sm:$0xff]  }
 0x163   :  { %v13793_v54 = vpop.f32.mrf.mxu0  ;;  %v13795_v55 = vpop.f32.mrf.mxu1 }
 0x164   :  { %17923 = vst [vmem:[#allocation49_spill] sm:$0xff] %v13793_v54  ;;  %17924 = vst [vmem:[#allocation50_spill] sm:$0xff] %v13795_v55 }
 0x165   :  { %v13797_v60 = vpop.f32.mrf.mxu0  ;;  %v13799_v6 = vpop.f32.mrf.mxu1  ;;  %11012 = vmatmul.mubr.msk.bf16.gmra.mxu0 %vm404_vm1, %v12171_v51  ;;  %11037 = vmatmul.mubr.msk.bf16.gmra.mxu1 %vm404_vm1, %v12171_v51 }
 0x166   :  { %17925 = vst [vmem:[#allocation51_spill] sm:$0xff] %v13797_v60  ;;  %17926 = vst [vmem:[#allocation52_spill] sm:$0xff] %v13799_v6  ;;  %1388 = vmatprep.mubr.bf16.mxu0 %v17886_v0  ;;  %1661 = vmatprep.mubr.bf16.mxu1 %v17886_v0 }
 0x167   :  { %v13805_v15 = vpop.f32.mrf.mxu0  ;;  %v13807_v24 = vpop.f32.mrf.mxu1 }
 0x168   :  { %17927 = vst [vmem:[#allocation53_spill] sm:$0xff] %v13805_v15  ;;  %17928 = vst [vmem:[#allocation54_spill] sm:$0xff] %v13807_v24  ;;  %v12195_v24 = vld [vmem:[#allocation2 + $0xe4] ss:$16 sps:$4 sm:$0x3f]  }
 0x169   :  { %v13812_v42 = vpop.f32.mrf.mxu0  ;;  %v13814_v60 = vpop.f32.mrf.mxu1  ;;  %11264 = vmatprep.subr.msk.bf16.mxu0 %vm477_vm0, %v12195_v24 }
 0x16a   :  { %17929 = vst [vmem:[#allocation55_spill] sm:$0xff] %v13812_v42  ;;  %17930 = vst [vmem:[#allocation56_spill] sm:$0xff] %v13814_v60  ;;  %v12197_v42 = vld [vmem:[#allocation2 + $0xec] ss:$16 sps:$4 sm:$0x3f]  }
 0x16b   :  { %v13816_v6 = vpop.f32.mrf.mxu0  ;;  %v13818_v55 = vpop.f32.mrf.mxu1  ;;  %11289 = vmatprep.subr.msk.bf16.mxu1 %vm477_vm0, %v12197_v42 }
 0x16c   :  { %17931 = vst [vmem:[#allocation57_spill] sm:$0xff] %v13816_v6  ;;  %17932 = vst [vmem:[#allocation58_spill] sm:$0xff] %v13818_v55 }
 0x16d   :  { %v13820_v51 = vpop.f32.mrf.mxu0  ;;  %v13822_v54 = vpop.f32.mrf.mxu1  ;;  %11013 = vmatmul.mubr.msk.bf16.gmra.mxu0 %vm404_vm1, %v12172_v33  ;;  %11038 = vmatmul.mubr.msk.bf16.gmra.mxu1 %vm404_vm1, %v12172_v33 }
 0x16e   :  { %17933 = vst [vmem:[#allocation59_spill] sm:$0xff] %v13820_v51  ;;  %17934 = vst [vmem:[#allocation60_spill] sm:$0xff] %v13822_v54  ;;  %1398 = vmatprep.mubr.bf16.mxu0 %v17886_v0  ;;  %1671 = vmatprep.mubr.bf16.mxu1 %v17886_v0  ;;  %v12173_v51 = vld [vmem:[%s17876_s0 + $0x48] sm:$0xff]  }
 0x16f   :  { %v13828_v15 = vpop.f32.mrf.mxu0  ;;  %v13830_v60 = vpop.f32.mrf.mxu1 }
 0x170   :  { %17935 = vst [vmem:[#allocation61_spill] sm:$0xff] %v13828_v15  ;;  %17936 = vst [vmem:[#allocation62_spill] sm:$0xff] %v13830_v60  ;;  %v17943_v60 = vmov 0  }
 0x171   :  { %v13837_v54 = vpop.f32.mrf.mxu0  ;;  %v13839_v33 = vpop.f32.mrf.mxu1 }
 0x172   :  { %17937 = vst [vmem:[#allocation63_spill] sm:$0xff] %v13837_v54  ;;  %17938 = vst [vmem:[#allocation64_spill] sm:$0xff] %v13839_v33 }
 0x173   :  { %v13841_v55 = vpop.f32.mrf.mxu0  ;;  %v13843_v0 = vpop.f32.mrf.mxu1 }
 0x174   :  { %17939 = vst [vmem:[#allocation65_spill] sm:$0xff] %v13841_v55  ;;  %17940 = vst [vmem:[#allocation66_spill] sm:$0xff] %v13843_v0  ;;  %v12174_v0 = vld [vmem:[%s17876_s0 + $0x50] sm:$0xff]  }
 0x175   :  { %v13845_v6 = vpop.f32.mrf.mxu0  ;;  %v13847_v15 = vpop.f32.mrf.mxu1  ;;  %11014 = vmatmul.mubr.msk.bf16.gmra.mxu0 %vm404_vm1, %v12173_v51  ;;  %11039 = vmatmul.mubr.msk.bf16.gmra.mxu1 %vm404_vm1, %v12173_v51 }
 0x176   :  { %17941 = vst [vmem:[#allocation67_spill] sm:$0xff] %v13845_v6  ;;  %17942 = vst [vmem:[#allocation68_spill] sm:$0xff] %v13847_v15  ;;  %1408 = vmatprep.mubr.bf16.mxu0 %v17943_v60  ;;  %1681 = vmatprep.mubr.bf16.mxu1 %v17943_v60 }
 0x177   :  { %v13853_v24 = vpop.f32.mrf.mxu0  ;;  %v13855_v42 = vpop.f32.mrf.mxu1 }
 0x178   :  { %17944 = vst [vmem:[#allocation69_spill] sm:$0xff] %v13853_v24  ;;  %17945 = vst [vmem:[#allocation70_spill] sm:$0xff] %v13855_v42 }
 0x179   :  { %v13860_v55 = vpop.f32.mrf.mxu0  ;;  %v13862_v6 = vpop.f32.mrf.mxu1 }
 0x17a   :  { %17946 = vst [vmem:[#allocation71_spill] sm:$0xff] %v13860_v55  ;;  %17947 = vst [vmem:[#allocation72_spill] sm:$0xff] %v13862_v6 }
 0x17b   :  { %v13864_v15 = vpop.f32.mrf.mxu0  ;;  %v13866_v33 = vpop.f32.mrf.mxu1 }
 0x17c   :  { %17948 = vst [vmem:[#allocation73_spill] sm:$0xff] %v13864_v15  ;;  %17949 = vst [vmem:[#allocation74_spill] sm:$0xff] %v13866_v33  ;;  %v12175_v33 = vld [vmem:[%s17876_s0 + $0x58] sm:$0xff]  }
 0x17d   :  { %v13868_v51 = vpop.f32.mrf.mxu0  ;;  %v13870_v54 = vpop.f32.mrf.mxu1  ;;  %11015 = vmatmul.mubr.msk.bf16.gmra.mxu0 %vm404_vm1, %v12174_v0  ;;  %11040 = vmatmul.mubr.msk.bf16.gmra.mxu1 %vm404_vm1, %v12174_v0 }
 0x17e   :  { %17950 = vst [vmem:[#allocation75_spill] sm:$0xff] %v13868_v51  ;;  %17951 = vst [vmem:[#allocation76_spill] sm:$0xff] %v13870_v54  ;;  %1418 = vmatprep.mubr.bf16.mxu0 %v17943_v60  ;;  %1691 = vmatprep.mubr.bf16.mxu1 %v17943_v60 }
 0x17f   :  { %v13876_v42 = vpop.f32.mrf.mxu0  ;;  %v13878_v55 = vpop.f32.mrf.mxu1 }
 0x180   :  { %17952 = vst [vmem:[#allocation77_spill] sm:$0xff] %v13876_v42  ;;  %17953 = vst [vmem:[#allocation78_spill] sm:$0xff] %v13878_v55 }
 0x181   :  { %v13883_v15 = vpop.f32.mrf.mxu0  ;;  %v13885_v51 = vpop.f32.mrf.mxu1 }
 0x182   :  { %17954 = vst [vmem:[#allocation79_spill] sm:$0xff] %v13883_v15  ;;  %17955 = vst [vmem:[#allocation80_spill] sm:$0xff] %v13885_v51 }
 0x183   :  { %v13887_v54 = vpop.f32.mrf.mxu0  ;;  %v13889_v6 = vpop.f32.mrf.mxu1 }
 0x184   :  { %17956 = vst [vmem:[#allocation81_spill] sm:$0xff] %v13887_v54  ;;  %17957 = vst [vmem:[#allocation82_spill] sm:$0xff] %v13889_v6  ;;  %v12176_v6 = vld [vmem:[%s17876_s0 + $0x60] sm:$0xff]  }
 0x185   :  { %v13891_v0 = vpop.f32.mrf.mxu0  ;;  %v13893_v24 = vpop.f32.mrf.mxu1  ;;  %11016 = vmatmul.mubr.msk.bf16.gmra.mxu0 %vm404_vm1, %v12175_v33  ;;  %11041 = vmatmul.mubr.msk.bf16.gmra.mxu1 %vm404_vm1, %v12175_v33 }
 0x186   :  { %17958 = vst [vmem:[#allocation83_spill] sm:$0xff] %v13891_v0  ;;  %17959 = vst [vmem:[#allocation84_spill] sm:$0xff] %v13893_v24  ;;  %1428 = vmatprep.mubr.bf16.mxu0 %v17943_v60  ;;  %1701 = vmatprep.mubr.bf16.mxu1 %v17943_v60 }
 0x187   :  { %v13899_v55 = vpop.f32.mrf.mxu0  ;;  %v13901_v15 = vpop.f32.mrf.mxu1 }
 0x188   :  { %17960 = vst [vmem:[#allocation85_spill] sm:$0xff] %v13899_v55  ;;  %17961 = vst [vmem:[#allocation86_spill] sm:$0xff] %v13901_v15 }
 0x189   :  { %v13906_v54 = vpop.f32.mrf.mxu0  ;;  %v13908_v0 = vpop.f32.mrf.mxu1 }
 0x18a   :  { %17962 = vst [vmem:[#allocation87_spill] sm:$0xff] %v13906_v54  ;;  %17963 = vst [vmem:[#allocation88_spill] sm:$0xff] %v13908_v0 }
 0x18b   :  { %v13910_v24 = vpop.f32.mrf.mxu0  ;;  %v13912_v51 = vpop.f32.mrf.mxu1 }
 0x18c   :  { %17964 = vst [vmem:[#allocation89_spill] sm:$0xff] %v13910_v24  ;;  %17965 = vst [vmem:[#allocation90_spill] sm:$0xff] %v13912_v51  ;;  %v12183_v51 = vld [vmem:[%s17876_s0 + $0x68] sm:$0xff]  }
 0x18d   :  { %v13914_v33 = vpop.f32.mrf.mxu0  ;;  %v13916_v42 = vpop.f32.mrf.mxu1  ;;  %11017 = vmatmul.mubr.msk.bf16.gmra.mxu0 %vm404_vm1, %v12176_v6  ;;  %11042 = vmatmul.mubr.msk.bf16.gmra.mxu1 %vm404_vm1, %v12176_v6 }
 0x18e   :  { %17966 = vst [vmem:[#allocation91_spill] sm:$0xff] %v13914_v33  ;;  %17967 = vst [vmem:[#allocation92_spill] sm:$0xff] %v13916_v42  ;;  %1438 = vmatprep.mubr.bf16.mxu0 %v17943_v60  ;;  %1711 = vmatprep.mubr.bf16.mxu1 %v17943_v60 }
 0x18f   :  { %v13922_v15 = vpop.f32.mrf.mxu0  ;;  %v13924_v54 = vpop.f32.mrf.mxu1 }
 0x190   :  { %17968 = vst [vmem:[#allocation93_spill] sm:$0xff] %v13922_v15  ;;  %17969 = vst [vmem:[#allocation94_spill] sm:$0xff] %v13924_v54 }
 0x191   :  { %v13929_v24 = vpop.f32.mrf.mxu0  ;;  %v13931_v33 = vpop.f32.mrf.mxu1 }
 0x192   :  { %17970 = vst [vmem:[#allocation95_spill] sm:$0xff] %v13929_v24  ;;  %17971 = vst [vmem:[#allocation96_spill] sm:$0xff] %v13931_v33 }
 0x193   :  { %v13933_v42 = vpop.f32.mrf.mxu0  ;;  %v13935_v0 = vpop.f32.mrf.mxu1 }
 0x194   :  { %17972 = vst [vmem:[#allocation97_spill] sm:$0xff] %v13933_v42  ;;  %17973 = vst [vmem:[#allocation98_spill] sm:$0xff] %v13935_v0  ;;  %v12184_v0 = vld [vmem:[%s17876_s0 + $0x70] sm:$0xff]  }
 0x195   :  { %v13937_v6 = vpop.f32.mrf.mxu0  ;;  %v13939_v55 = vpop.f32.mrf.mxu1  ;;  %11018 = vmatmul.mubr.msk.bf16.gmra.mxu0 %vm404_vm1, %v12183_v51  ;;  %11043 = vmatmul.mubr.msk.bf16.gmra.mxu1 %vm404_vm1, %v12183_v51 }
 0x196   :  { %17974 = vst [vmem:[#allocation99_spill] sm:$0xff] %v13937_v6  ;;  %17975 = vst [vmem:[#allocation100_spill] sm:$0xff] %v13939_v55  ;;  %1448 = vmatprep.mubr.bf16.mxu0 %v17943_v60  ;;  %1721 = vmatprep.mubr.bf16.mxu1 %v17943_v60 }
 0x197   :  { %v13945_v54 = vpop.f32.mrf.mxu0  ;;  %v13947_v24 = vpop.f32.mrf.mxu1 }
 0x198   :  { %17976 = vst [vmem:[#allocation101_spill] sm:$0xff] %v13945_v54  ;;  %17977 = vst [vmem:[#allocation102_spill] sm:$0xff] %v13947_v24 }
 0x199   :  { %v13952_v42 = vpop.f32.mrf.mxu0  ;;  %v13954_v6 = vpop.f32.mrf.mxu1 }
 0x19a   :  { %17978 = vst [vmem:[#allocation103_spill] sm:$0xff] %v13952_v42  ;;  %17979 = vst [vmem:[#allocation104_spill] sm:$0xff] %v13954_v6 }
 0x19b   :  { %v13956_v55 = vpop.f32.mrf.mxu0  ;;  %v13958_v33 = vpop.f32.mrf.mxu1 }
 0x19c   :  { %17980 = vst [vmem:[#allocation105_spill] sm:$0xff] %v13956_v55  ;;  %17981 = vst [vmem:[#allocation106_spill] sm:$0xff] %v13958_v33  ;;  %v12185_v33 = vld [vmem:[%s17876_s0 + $0x78] sm:$0xff]  }
 0x19d   :  { %v13960_v51 = vpop.f32.mrf.mxu0  ;;  %v13962_v15 = vpop.f32.mrf.mxu1  ;;  %11019 = vmatmul.mubr.msk.bf16.gmra.mxu0 %vm404_vm1, %v12184_v0  ;;  %11044 = vmatmul.mubr.msk.bf16.gmra.mxu1 %vm404_vm1, %v12184_v0 }
 0x19e   :  { %17982 = vst [vmem:[#allocation107_spill] sm:$0xff] %v13960_v51  ;;  %17983 = vst [vmem:[#allocation108_spill] sm:$0xff] %v13962_v15  ;;  %1458 = vmatprep.mubr.bf16.mxu0 %v17943_v60  ;;  %1731 = vmatprep.mubr.bf16.mxu1 %v17943_v60 }
 0x19f   :  { %v13968_v24 = vpop.f32.mrf.mxu0  ;;  %v13970_v42 = vpop.f32.mrf.mxu1 }
 0x1a0   :  { %17984 = vst [vmem:[#allocation109_spill] sm:$0xff] %v13968_v24  ;;  %17985 = vst [vmem:[#allocation110_spill] sm:$0xff] %v13970_v42 }
 0x1a1   :  { %v13975_v55 = vpop.f32.mrf.mxu0  ;;  %v13977_v51 = vpop.f32.mrf.mxu1 }
 0x1a2   :  { %17986 = vst [vmem:[#allocation111_spill] sm:$0xff] %v13975_v55  ;;  %17987 = vst [vmem:[#allocation112_spill] sm:$0xff] %v13977_v51 }
 0x1a3   :  { %v13979_v15 = vpop.f32.mrf.mxu0  ;;  %v13981_v6 = vpop.f32.mrf.mxu1 }
 0x1a4   :  { %17988 = vst [vmem:[#allocation113_spill] sm:$0xff] %v13979_v15  ;;  %17989 = vst [vmem:[#allocation114_spill] sm:$0xff] %v13981_v6  ;;  %v12186_v6 = vld [vmem:[%s17876_s0 + $0x80] sm:$0xff]  }
 0x1a5   :  { %v13983_v0 = vpop.f32.mrf.mxu0  ;;  %v13985_v54 = vpop.f32.mrf.mxu1  ;;  %11020 = vmatmul.mubr.msk.bf16.gmra.mxu0 %vm404_vm1, %v12185_v33  ;;  %11045 = vmatmul.mubr.msk.bf16.gmra.mxu1 %vm404_vm1, %v12185_v33 }
 0x1a6   :  { %17990 = vst [vmem:[#allocation115_spill] sm:$0xff] %v13983_v0  ;;  %17991 = vst [vmem:[#allocation116_spill] sm:$0xff] %v13985_v54  ;;  %1468 = vmatprep.mubr.bf16.mxu0 %v17943_v60  ;;  %1741 = vmatprep.mubr.bf16.mxu1 %v17943_v60 }
 0x1a7   :  { %v13991_v42 = vpop.f32.mrf.mxu0  ;;  %v13993_v55 = vpop.f32.mrf.mxu1 }
 0x1a8   :  { %17992 = vst [vmem:[#allocation117_spill] sm:$0xff] %v13991_v42  ;;  %17993 = vst [vmem:[#allocation118_spill] sm:$0xff] %v13993_v55 }
 0x1a9   :  { %v13998_v15 = vpop.f32.mrf.mxu0  ;;  %v14000_v0 = vpop.f32.mrf.mxu1 }
 0x1aa   :  { %17994 = vst [vmem:[#allocation119_spill] sm:$0xff] %v13998_v15  ;;  %17995 = vst [vmem:[#allocation120_spill] sm:$0xff] %v14000_v0 }
 0x1ab   :  { %v14002_v54 = vpop.f32.mrf.mxu0  ;;  %v14004_v51 = vpop.f32.mrf.mxu1 }
 0x1ac   :  { %17996 = vst [vmem:[#allocation121_spill] sm:$0xff] %v14002_v54  ;;  %17997 = vst [vmem:[#allocation122_spill] sm:$0xff] %v14004_v51  ;;  %v12187_v51 = vld [vmem:[%s17876_s0 + $0x88] sm:$0xff]  }
 0x1ad   :  { %v14006_v33 = vpop.f32.mrf.mxu0  ;;  %v14008_v24 = vpop.f32.mrf.mxu1  ;;  %11021 = vmatmul.mubr.msk.bf16.gmra.mxu0 %vm404_vm1, %v12186_v6  ;;  %11046 = vmatmul.mubr.msk.bf16.gmra.mxu1 %vm404_vm1, %v12186_v6 }
 0x1ae   :  { %17998 = vst [vmem:[#allocation123_spill] sm:$0xff] %v14006_v33  ;;  %17999 = vst [vmem:[#allocation124_spill] sm:$0xff] %v14008_v24  ;;  %1478 = vmatprep.mubr.bf16.mxu0 %v17943_v60  ;;  %1751 = vmatprep.mubr.bf16.mxu1 %v17943_v60 }
 0x1af   :  { %v14014_v55 = vpop.f32.mrf.mxu0  ;;  %v14016_v15 = vpop.f32.mrf.mxu1 }
 0x1b0   :  { %18000 = vst [vmem:[#allocation125_spill] sm:$0xff] %v14014_v55  ;;  %18001 = vst [vmem:[#allocation126_spill] sm:$0xff] %v14016_v15 }
 0x1b1   :  { %v14021_v54 = vpop.f32.mrf.mxu0  ;;  %v14023_v33 = vpop.f32.mrf.mxu1 }
 0x1b2   :  { %18002 = vst [vmem:[#allocation127_spill] sm:$0xff] %v14021_v54  ;;  %18003 = vst [vmem:[#allocation128_spill] sm:$0xff] %v14023_v33 }
 0x1b3   :  { %v14025_v24 = vpop.f32.mrf.mxu0  ;;  %v14027_v0 = vpop.f32.mrf.mxu1 }
 0x1b4   :  { %18004 = vst [vmem:[#allocation129_spill] sm:$0xff] %v14025_v24  ;;  %18005 = vst [vmem:[#allocation130_spill] sm:$0xff] %v14027_v0 }
 0x1b5   :  { %v14029_v6 = vpop.f32.mrf.mxu0  ;;  %v14031_v42 = vpop.f32.mrf.mxu1  ;;  %11022 = vmatmul.mubr.msk.bf16.gmra.mxu0 %vm404_vm1, %v12187_v51  ;;  %11047 = vmatmul.mubr.msk.bf16.gmra.mxu1 %vm404_vm1, %v12187_v51 }
 0x1b6   :  { %18006 = vst [vmem:[#allocation131_spill] sm:$0xff] %v14029_v6  ;;  %18007 = vst [vmem:[#allocation132_spill] sm:$0xff] %v14031_v42  ;;  %1488 = vmatprep.mubr.bf16.mxu0 %v17943_v60  ;;  %1761 = vmatprep.mubr.bf16.mxu1 %v17943_v60  ;;  %v12188_v42 = vld [vmem:[%s17876_s0 + $0x90] sm:$0xff]  }
 0x1b7   :  { %v14037_v15 = vpop.f32.mrf.mxu0  ;;  %v14039_v54 = vpop.f32.mrf.mxu1 }
 0x1b8   :  { %18008 = vst [vmem:[#allocation133_spill] sm:$0xff] %v14037_v15  ;;  %18009 = vst [vmem:[#allocation134_spill] sm:$0xff] %v14039_v54 }
 0x1b9   :  { %v14041_v33 = vpop.f32.mrf.mxu0  ;;  %v14043_v24 = vpop.f32.mrf.mxu1 }
 0x1ba   :  { %18010 = vst [vmem:[#allocation135_spill] sm:$0xff] %v14041_v33  ;;  %18011 = vst [vmem:[#allocation136_spill] sm:$0xff] %v14043_v24 }
 0x1bb   :  { %v14048_v6 = vpop.f32.mrf.mxu0  ;;  %v14050_v0 = vpop.f32.mrf.mxu1 }
 0x1bc   :  { %18012 = vst [vmem:[#allocation137_spill] sm:$0xff] %v14048_v6  ;;  %18013 = vst [vmem:[#allocation138_spill] sm:$0xff] %v14050_v0 }
 0x1bd   :  { %v14052_v51 = vpop.f32.mrf.mxu0  ;;  %v14054_v55 = vpop.f32.mrf.mxu1  ;;  %11023 = vmatmul.mubr.msk.bf16.gmra.mxu0 %vm404_vm1, %v12188_v42  ;;  %11048 = vmatmul.mubr.msk.bf16.gmra.mxu1 %vm404_vm1, %v12188_v42 }
 0x1be   :  { %18014 = vst [vmem:[#allocation139_spill] sm:$0xff] %v14052_v51  ;;  %18015 = vst [vmem:[#allocation140_spill] sm:$0xff] %v14054_v55  ;;  %1498 = vmatprep.mubr.bf16.mxu0 %v17943_v60  ;;  %1771 = vmatprep.mubr.bf16.mxu1 %v17943_v60  ;;  %v12189_v55 = vld [vmem:[%s17876_s0 + $0x98] sm:$0xff]  }
 0x1bf   :  { %v14060_v24 = vpop.f32.mrf.mxu0  ;;  %v14062_v33 = vpop.f32.mrf.mxu1 }
 0x1c0   :  { %18016 = vst [vmem:[#allocation141_spill] sm:$0xff] %v14060_v24  ;;  %18017 = vst [vmem:[#allocation142_spill] sm:$0xff] %v14062_v33 }
 0x1c1   :  { %v14064_v54 = vpop.f32.mrf.mxu0  ;;  %v14066_v6 = vpop.f32.mrf.mxu1 }
 0x1c2   :  { %18018 = vst [vmem:[#allocation143_spill] sm:$0xff] %v14064_v54  ;;  %18019 = vst [vmem:[#allocation144_spill] sm:$0xff] %v14066_v6 }
 0x1c3   :  { %v14071_v51 = vpop.f32.mrf.mxu0  ;;  %v14073_v0 = vpop.f32.mrf.mxu1 }
 0x1c4   :  { %18020 = vst [vmem:[#allocation145_spill] sm:$0xff] %v14071_v51  ;;  %18021 = vst [vmem:[#allocation146_spill] sm:$0xff] %v14073_v0 }
 0x1c5   :  { %v14075_v42 = vpop.f32.mrf.mxu0  ;;  %v14077_v15 = vpop.f32.mrf.mxu1  ;;  %11024 = vmatmul.mubr.msk.bf16.gmra.mxu0 %vm404_vm1, %v12189_v55  ;;  %11049 = vmatmul.mubr.msk.bf16.gmra.mxu1 %vm404_vm1, %v12189_v55 }
 0x1c6   :  { %18022 = vst [vmem:[#allocation147_spill] sm:$0xff] %v14075_v42  ;;  %18023 = vst [vmem:[#allocation148_spill] sm:$0xff] %v14077_v15  ;;  %1508 = vmatprep.mubr.bf16.mxu0 %v17943_v60  ;;  %1781 = vmatprep.mubr.bf16.mxu1 %v17943_v60  ;;  %v12190_v15 = vld [vmem:[%s17876_s0 + $0xa0] sm:$0xff]  }
 0x1c7   :  { %v14083_v6 = vpop.f32.mrf.mxu0  ;;  %v14085_v54 = vpop.f32.mrf.mxu1 }
 0x1c8   :  { %18024 = vst [vmem:[#allocation149_spill] sm:$0xff] %v14083_v6  ;;  %18025 = vst [vmem:[#allocation150_spill] sm:$0xff] %v14085_v54 }
 0x1c9   :  { %v14087_v33 = vpop.f32.mrf.mxu0  ;;  %v14089_v51 = vpop.f32.mrf.mxu1 }
 0x1ca   :  { %18026 = vst [vmem:[#allocation151_spill] sm:$0xff] %v14087_v33  ;;  %18027 = vst [vmem:[#allocation152_spill] sm:$0xff] %v14089_v51 }
 0x1cb   :  { %v14094_v42 = vpop.f32.mrf.mxu0  ;;  %v14096_v0 = vpop.f32.mrf.mxu1 }
 0x1cc   :  { %18028 = vst [vmem:[#allocation153_spill] sm:$0xff] %v14094_v42  ;;  %18029 = vst [vmem:[#allocation154_spill] sm:$0xff] %v14096_v0 }
 0x1cd   :  { %v14098_v55 = vpop.f32.mrf.mxu0  ;;  %v14100_v24 = vpop.f32.mrf.mxu1  ;;  %11025 = vmatmul.mubr.msk.bf16.gmra.mxu0 %vm404_vm1, %v12190_v15  ;;  %11050 = vmatmul.mubr.msk.bf16.gmra.mxu1 %vm404_vm1, %v12190_v15 }
 0x1ce   :  { %18030 = vst [vmem:[#allocation155_spill] sm:$0xff] %v14098_v55  ;;  %18031 = vst [vmem:[#allocation156_spill] sm:$0xff] %v14100_v24  ;;  %1518 = vmatprep.mubr.bf16.mxu0 %v17943_v60  ;;  %1791 = vmatprep.mubr.bf16.mxu1 %v17943_v60  ;;  %v12191_v24 = vld [vmem:[%s17876_s0 + $0xa8] sm:$0xff]  }
 0x1cf   :  { %v14106_v51 = vpop.f32.mrf.mxu0  ;;  %v14108_v33 = vpop.f32.mrf.mxu1 }
 0x1d0   :  { %18032 = vst [vmem:[#allocation157_spill] sm:$0xff] %v14106_v51  ;;  %18033 = vst [vmem:[#allocation158_spill] sm:$0xff] %v14108_v33 }
 0x1d1   :  { %v14110_v54 = vpop.f32.mrf.mxu0  ;;  %v14112_v42 = vpop.f32.mrf.mxu1 }
 0x1d2   :  { %18034 = vst [vmem:[#allocation159_spill] sm:$0xff] %v14110_v54  ;;  %18035 = vst [vmem:[#allocation160_spill] sm:$0xff] %v14112_v42 }
 0x1d3   :  { %v14117_v55 = vpop.f32.mrf.mxu0  ;;  %v14119_v0 = vpop.f32.mrf.mxu1 }
 0x1d4   :  { %18036 = vst [vmem:[#allocation161_spill] sm:$0xff] %v14117_v55  ;;  %18037 = vst [vmem:[#allocation162_spill] sm:$0xff] %v14119_v0 }
 0x1d5   :  { %v14121_v15 = vpop.f32.mrf.mxu0  ;;  %v14123_v6 = vpop.f32.mrf.mxu1  ;;  %11026 = vmatmul.mubr.msk.bf16.gmra.mxu0 %vm404_vm1, %v12191_v24  ;;  %11051 = vmatmul.mubr.msk.bf16.gmra.mxu1 %vm404_vm1, %v12191_v24 }
 0x1d6   :  { %18038 = vst [vmem:[#allocation163_spill] sm:$0xff] %v14121_v15  ;;  %18039 = vst [vmem:[#allocation164_spill] sm:$0xff] %v14123_v6  ;;  %1528 = vmatprep.mubr.bf16.mxu0 %v17943_v60  ;;  %1801 = vmatprep.mubr.bf16.mxu1 %v17943_v60  ;;  %v12192_v6 = vld [vmem:[%s17876_s0 + $0xb0] sm:$0xff]  }
 0x1d7   :  { %v14129_v42 = vpop.f32.mrf.mxu0  ;;  %v14131_v54 = vpop.f32.mrf.mxu1 }
 0x1d8   :  { %18040 = vst [vmem:[#allocation165_spill] sm:$0xff] %v14129_v42  ;;  %18041 = vst [vmem:[#allocation166_spill] sm:$0xff] %v14131_v54 }
 0x1d9   :  { %v14133_v33 = vpop.f32.mrf.mxu0  ;;  %v14135_v55 = vpop.f32.mrf.mxu1 }
 0x1da   :  { %18042 = vst [vmem:[#allocation167_spill] sm:$0xff] %v14133_v33  ;;  %18043 = vst [vmem:[#allocation168_spill] sm:$0xff] %v14135_v55 }
 0x1db   :  { %v14140_v15 = vpop.f32.mrf.mxu0  ;;  %v14142_v0 = vpop.f32.mrf.mxu1 }
 0x1dc   :  { %18044 = vst [vmem:[#allocation169_spill] sm:$0xff] %v14140_v15  ;;  %18045 = vst [vmem:[#allocation170_spill] sm:$0xff] %v14142_v0 }
 0x1dd   :  { %v14144_v24 = vpop.f32.mrf.mxu0  ;;  %v14146_v51 = vpop.f32.mrf.mxu1  ;;  %11027 = vmatmul.mubr.msk.bf16.gmra.mxu0 %vm404_vm1, %v12192_v6  ;;  %11052 = vmatmul.mubr.msk.bf16.gmra.mxu1 %vm404_vm1, %v12192_v6 }
 0x1de   :  { %18046 = vst [vmem:[#allocation171_spill] sm:$0xff] %v14144_v24  ;;  %18047 = vst [vmem:[#allocation172_spill] sm:$0xff] %v14146_v51  ;;  %1538 = vmatprep.mubr.bf16.mxu0 %v17943_v60  ;;  %1811 = vmatprep.mubr.bf16.mxu1 %v17943_v60  ;;  %v12193_v51 = vld [vmem:[%s17876_s0 + $0xb8] sm:$0xff]  }
 0x1df   :  { %v14152_v55 = vpop.f32.mrf.mxu0  ;;  %v14154_v33 = vpop.f32.mrf.mxu1 }
 0x1e0   :  { %18048 = vst [vmem:[#allocation173_spill] sm:$0xff] %v14152_v55  ;;  %18049 = vst [vmem:[#allocation174_spill] sm:$0xff] %v14154_v33  ;;  %v12199_v33 = vld [vmem:[#allocation2 + $0xe0] ss:$16 sps:$4 sm:$0x3f]  }
 0x1e1   :  { %v14156_v54 = vpop.f32.mrf.mxu0  ;;  %v14158_v15 = vpop.f32.mrf.mxu1  ;;  %v3145_v53 = vsel %vm477_vm0, %v12199_v33, 0 }
 0x1e2   :  { %18050 = vst [vmem:[#allocation175_spill] sm:$0xff] %v14156_v54  ;;  %18051 = vst [vmem:[#allocation176_spill] sm:$0xff] %v14158_v15 }
 0x1e3   :  { %v14163_v24 = vpop.f32.mrf.mxu0  ;;  %v14165_v0 = vpop.f32.mrf.mxu1 }
 0x1e4   :  { %18052 = vst [vmem:[#allocation177_spill] sm:$0xff] %v14163_v24  ;;  %18053 = vst [vmem:[#allocation178_spill] sm:$0xff] %v14165_v0  ;;  %v12200_v24 = vld [vmem:[#allocation2 + $0xe8] ss:$16 sps:$4 sm:$0x3f]  }
 0x1e5   :  { %v14167_v6 = vpop.f32.mrf.mxu0  ;;  %v14169_v42 = vpop.f32.mrf.mxu1  ;;  %11028 = vmatmul.mubr.msk.bf16.gmra.mxu0 %vm404_vm1, %v12193_v51  ;;  %11053 = vmatmul.mubr.msk.bf16.gmra.mxu1 %vm404_vm1, %v12193_v51 }
 0x1e6   :  { %18054 = vst [vmem:[#allocation179_spill] sm:$0xff] %v14167_v6  ;;  %18055 = vst [vmem:[#allocation180_spill] sm:$0xff] %v14169_v42  ;;  %2152 = vmatprep.mubr.bf16.mxu0 %v17943_v60  ;;  %2425 = vmatprep.mubr.bf16.mxu1 %v17943_v60  ;;  %v12194_v42 = vld [vmem:[%s17876_s0 + $0x10] sm:$0xff]  }
 0x1e7   :  { %v14175_v15 = vpop.f32.mrf.mxu0  ;;  %v14177_v54 = vpop.f32.mrf.mxu1 }
 0x1e8   :  { %18056 = vst [vmem:[#allocation181_spill] sm:$0xff] %v14175_v15  ;;  %18057 = vst [vmem:[#allocation182_spill] sm:$0xff] %v14177_v54  ;;  %v3151_v15 = vsel %vm477_vm0, %v12200_v24, 0  ;;  %v12218_v54 = vld [vmem:[#allocation2 + $0xcc] ss:$16 sps:$4 sm:$0xff]  }
 0x1e9   :  { %v14179_v55 = vpop.f32.mrf.mxu0  ;;  %v14181_v0 = vpop.f32.mrf.mxu1 }
 0x1ea   :  { %18058 = vst [vmem:[#allocation183_spill] sm:$0xff] %v14179_v55  ;;  %18059 = vst [vmem:[#allocation184_spill] sm:$0xff] %v14181_v0  ;;  %v12213_v0 = vld [vmem:[#allocation2 + $0xc0] ss:$16 sps:$4 sm:$0xff]  }
 0x1eb   :  { %v14186_v6 = vpop.f32.mrf.mxu0  ;;  %v14188_v51 = vpop.f32.mrf.mxu1 }
 0x1ec   :  { %18060 = vst [vmem:[#allocation185_spill] sm:$0xff] %v14186_v6  ;;  %18061 = vst [vmem:[#allocation186_spill] sm:$0xff] %v14188_v51  ;;  %v12216_v6 = vld [vmem:[#allocation2 + $0xc8] ss:$16 sps:$4 sm:$0xff]  }
 0x1ed   :  { %v14192_v50 = vpop.f32.mrf.mxu0  ;;  %v14194_v49 = vpop.f32.mrf.mxu1  ;;  %11135 = vmatmul.mubr.msk.bf16.vlgmr.msra.gmra.mxu0 %vm404_vm1, %v12194_v42  ;;  %11160 = vmatmul.mubr.msk.bf16.vlgmr.msra.gmra.mxu1 %vm404_vm1, %v12194_v42 }
 0x1ee   :  { %3169 = vmatpush1.bf16.msra.mxu0 %v3145_v53  ;;  %3442 = vmatpush1.bf16.msra.mxu1 %v3151_v15  ;;  %v12201_v53 = vld [vmem:[%s17876_s0 + $0x18] sm:$0xff]  }
 0x1ef   :  { %v14198_v55 = vpop.f32.mrf.mxu0  ;;  %v14200_v51 = vpop.f32.mrf.mxu1  ;;  %2162 = vmatprep.mubr.bf16.mxu0 %v17943_v60  ;;  %2435 = vmatprep.mubr.bf16.mxu1 %v17943_v60 }
 0x1f0   :  { %3170 = vmatprep.subr.bf16.mxu0 %v12215_v52  ;;  %3443 = vmatprep.subr.bf16.mxu1 %v12218_v54 }
 0x1f1   :  { %v14204_v33 = vpop.f32.mrf.mxu0  ;;  %v14206_v24 = vpop.f32.mrf.mxu1 }
 0x1f2   :  { %3171 = vmatpush1.bf16.msra.mxu0 %v12213_v0  ;;  %3444 = vmatpush1.bf16.msra.mxu1 %v12216_v6 }
 0x1f3   :  { %v14211_v42 = vpop.f32.mrf.mxu0  ;;  %v14213_v15 = vpop.f32.mrf.mxu1 }
 0x1f5   :  { %v14215_v48 = vpop.f32.mrf.mxu0  ;;  %v14217_v47 = vpop.f32.mrf.mxu1  ;;  %11136 = vmatmul.mubr.msk.bf16.gmra.mxu0 %vm404_vm1, %v12201_v53  ;;  %11161 = vmatmul.mubr.msk.bf16.gmra.mxu1 %vm404_vm1, %v12201_v53 }
 0x1f6   :  { %2172 = vmatprep.mubr.bf16.mxu0 %v17943_v60  ;;  %2445 = vmatprep.mubr.bf16.mxu1 %v17943_v60 }
 0x1f7   :  { %v14223_v52 = vpop.f32.mrf.mxu0  ;;  %v14225_v54 = vpop.f32.mrf.mxu1 }
 0x1f9   :  { %v14227_v0 = vpop.f32.mrf.mxu0  ;;  %v14229_v6 = vpop.f32.mrf.mxu1 }
 0x1fb   :  { %v14234_v45 = vpop.f32.mrf.mxu0  ;;  %v14236_v44 = vpop.f32.mrf.mxu1 }
 0x1fd   :  { %v14238_v53 = vpop.f32.mrf.mxu0  ;;  %v14240_v43 = vpop.f32.mrf.mxu1  ;;  %11137 = vmatmul.mubr.msk.bf16.gmra.mxu0 %vm404_vm1, %v12202_v46  ;;  %11162 = vmatmul.mubr.msk.bf16.gmra.mxu1 %vm404_vm1, %v12202_v46 }
 0x1fe   :  { %2182 = vmatprep.mubr.bf16.mxu0 %v17943_v60  ;;  %2455 = vmatprep.mubr.bf16.mxu1 %v17943_v60 }
 0x1ff   :  { %v14246_v41 = vpop.f32.mrf.mxu0  ;;  %v14248_v40 = vpop.f32.mrf.mxu1 }
 0x201   :  { %v14250_v39 = vpop.f32.mrf.mxu0  ;;  %v14252_v38 = vpop.f32.mrf.mxu1 }
 0x203   :  { %v14257_v36 = vpop.f32.mrf.mxu0  ;;  %v14259_v35 = vpop.f32.mrf.mxu1 }
 0x205   :  { %v14261_v46 = vpop.f32.mrf.mxu0  ;;  %v14263_v34 = vpop.f32.mrf.mxu1  ;;  %11138 = vmatmul.mubr.msk.bf16.gmra.mxu0 %vm404_vm1, %v12203_v37  ;;  %11163 = vmatmul.mubr.msk.bf16.gmra.mxu1 %vm404_vm1, %v12203_v37 }
 0x206   :  { %18062 = vst [vmem:[#allocation187_spill] sm:$0xff] %v14261_v46  ;;  %18063 = vst [vmem:[#allocation188_spill] sm:$0xff] %v14263_v34  ;;  %2192 = vmatprep.mubr.bf16.mxu0 %v17943_v60  ;;  %2465 = vmatprep.mubr.bf16.mxu1 %v17943_v60  ;;  %v1313_v34 = vadd.f32 %v14198_v55, %v13642_v58  ;;  %v1315_v58 = vadd.f32 %v14204_v33, %v13651_v61  ;;  %v12237_v33 = vld [vmem:[%s17876_s0 + $0x20] sm:$0xff]  }
 0x207   :  { %v14269_v32 = vpop.f32.mrf.mxu0  ;;  %v14271_v31 = vpop.f32.mrf.mxu1 }
 0x208   :  { %18064 = vst [vmem:[#allocation189_spill] sm:$0xff] %v14269_v32  ;;  %18065 = vst [vmem:[#allocation190_spill] sm:$0xff] %v14271_v31 }
 0x209   :  { %v14273_v30 = vpop.f32.mrf.mxu0  ;;  %v14275_v29 = vpop.f32.mrf.mxu1 }
 0x20a   :  { %18066 = vst [vmem:[#allocation191_spill] sm:$0xff] %v14273_v30  ;;  %18067 = vst [vmem:[#allocation192_spill] sm:$0xff] %v14275_v29 }
 0x20b   :  { %v14280_v27 = vpop.f32.mrf.mxu0  ;;  %v14282_v26 = vpop.f32.mrf.mxu1 }
 0x20c   :  { %18068 = vst [vmem:[#allocation193_spill] sm:$0xff] %v14280_v27  ;;  %18069 = vst [vmem:[#allocation194_spill] sm:$0xff] %v14282_v26 }
 0x20d   :  { %v14284_v37 = vpop.f32.mrf.mxu0  ;;  %v14286_v25 = vpop.f32.mrf.mxu1  ;;  %11139 = vmatmul.mubr.msk.bf16.gmra.mxu0 %vm404_vm1, %v12204_v28  ;;  %11164 = vmatmul.mubr.msk.bf16.gmra.mxu1 %vm404_vm1, %v12204_v28 }
 0x20e   :  { %18070 = vst [vmem:[#allocation195_spill] sm:$0xff] %v14284_v37  ;;  %18071 = vst [vmem:[#allocation196_spill] sm:$0xff] %v14286_v25  ;;  %2202 = vmatprep.mubr.bf16.mxu0 %v17943_v60  ;;  %2475 = vmatprep.mubr.bf16.mxu1 %v17943_v60  ;;  %v12205_v25 = vld [vmem:[%s17876_s0 + $0x38] sm:$0xff]  }
 0x20f   :  { %v14292_v29 = vpop.f32.mrf.mxu0  ;;  %v14294_v30 = vpop.f32.mrf.mxu1 }
 0x210   :  { %18072 = vst [vmem:[#allocation197_spill] sm:$0xff] %v14292_v29  ;;  %18073 = vst [vmem:[#allocation198_spill] sm:$0xff] %v14294_v30 }
 0x211   :  { %v14296_v31 = vpop.f32.mrf.mxu0  ;;  %v14298_v27 = vpop.f32.mrf.mxu1 }
 0x212   :  { %18074 = vst [vmem:[#allocation199_spill] sm:$0xff] %v14296_v31  ;;  %18075 = vst [vmem:[#allocation200_spill] sm:$0xff] %v14298_v27 }
 0x213   :  { %v14303_v37 = vpop.f32.mrf.mxu0  ;;  %v14305_v26 = vpop.f32.mrf.mxu1 }
 0x214   :  { %18076 = vst [vmem:[#allocation201_spill] sm:$0xff] %v14303_v37  ;;  %18077 = vst [vmem:[#allocation202_spill] sm:$0xff] %v14305_v26 }
 0x215   :  { %v14307_v28 = vpop.f32.mrf.mxu0  ;;  %v14309_v23 = vpop.f32.mrf.mxu1  ;;  %11140 = vmatmul.mubr.msk.bf16.gmra.mxu0 %vm404_vm1, %v12205_v25  ;;  %11165 = vmatmul.mubr.msk.bf16.gmra.mxu1 %vm404_vm1, %v12205_v25 }
 0x216   :  { %18078 = vst [vmem:[#allocation203_spill] sm:$0xff] %v14307_v28  ;;  %18079 = vst [vmem:[#allocation204_spill] sm:$0xff] %v14309_v23  ;;  %2212 = vmatprep.mubr.bf16.mxu0 %v17943_v60  ;;  %2485 = vmatprep.mubr.bf16.mxu1 %v17943_v60  ;;  %v12206_v23 = vld [vmem:[%s17876_s0 + $0x40] sm:$0xff]  }
 0x217   :  { %v14315_v27 = vpop.f32.mrf.mxu0  ;;  %v14317_v31 = vpop.f32.mrf.mxu1 }
 0x218   :  { %18080 = vst [vmem:[#allocation205_spill] sm:$0xff] %v14315_v27  ;;  %18081 = vst [vmem:[#allocation206_spill] sm:$0xff] %v14317_v31 }
 0x219   :  { %v14319_v30 = vpop.f32.mrf.mxu0  ;;  %v14321_v37 = vpop.f32.mrf.mxu1 }
 0x21a   :  { %18082 = vst [vmem:[#allocation207_spill] sm:$0xff] %v14319_v30  ;;  %18083 = vst [vmem:[#allocation208_spill] sm:$0xff] %v14321_v37 }
 0x21b   :  { %v14326_v28 = vpop.f32.mrf.mxu0  ;;  %v14328_v26 = vpop.f32.mrf.mxu1 }
 0x21c   :  { %18084 = vst [vmem:[#allocation209_spill] sm:$0xff] %v14326_v28  ;;  %18085 = vst [vmem:[#allocation210_spill] sm:$0xff] %v14328_v26 }
 0x21d   :  { %v14330_v25 = vpop.f32.mrf.mxu0  ;;  %v14332_v29 = vpop.f32.mrf.mxu1  ;;  %11141 = vmatmul.mubr.msk.bf16.gmra.mxu0 %vm404_vm1, %v12206_v23  ;;  %11166 = vmatmul.mubr.msk.bf16.gmra.mxu1 %vm404_vm1, %v12206_v23 }
 0x21e   :  { %18086 = vst [vmem:[#allocation211_spill] sm:$0xff] %v14330_v25  ;;  %18087 = vst [vmem:[#allocation212_spill] sm:$0xff] %v14332_v29  ;;  %2222 = vmatprep.mubr.bf16.mxu0 %v17943_v60  ;;  %2495 = vmatprep.mubr.bf16.mxu1 %v17943_v60  ;;  %v12207_v29 = vld [vmem:[%s17876_s0 + $0x48] sm:$0xff]  }
 0x21f   :  { %v14338_v37 = vpop.f32.mrf.mxu0  ;;  %v14340_v30 = vpop.f32.mrf.mxu1 }
 0x220   :  { %18088 = vst [vmem:[#allocation213_spill] sm:$0xff] %v14338_v37  ;;  %18089 = vst [vmem:[#allocation214_spill] sm:$0xff] %v14340_v30 }
 0x221   :  { %v14342_v31 = vpop.f32.mrf.mxu0  ;;  %v14344_v28 = vpop.f32.mrf.mxu1 }
 0x222   :  { %18090 = vst [vmem:[#allocation215_spill] sm:$0xff] %v14342_v31  ;;  %18091 = vst [vmem:[#allocation216_spill] sm:$0xff] %v14344_v28 }
 0x223   :  { %v14349_v25 = vpop.f32.mrf.mxu0  ;;  %v14351_v26 = vpop.f32.mrf.mxu1 }
 0x224   :  { %18092 = vst [vmem:[#allocation217_spill] sm:$0xff] %v14349_v25  ;;  %18093 = vst [vmem:[#allocation218_spill] sm:$0xff] %v14351_v26 }
 0x225   :  { %v14353_v23 = vpop.f32.mrf.mxu0  ;;  %v14355_v27 = vpop.f32.mrf.mxu1  ;;  %11142 = vmatmul.mubr.msk.bf16.gmra.mxu0 %vm404_vm1, %v12207_v29  ;;  %11167 = vmatmul.mubr.msk.bf16.gmra.mxu1 %vm404_vm1, %v12207_v29 }
 0x226   :  { %18094 = vst [vmem:[#allocation219_spill] sm:$0xff] %v14353_v23  ;;  %18095 = vst [vmem:[#allocation220_spill] sm:$0xff] %v14355_v27  ;;  %2232 = vmatprep.mubr.bf16.mxu0 %v17943_v60  ;;  %2505 = vmatprep.mubr.bf16.mxu1 %v17943_v60  ;;  %v12208_v27 = vld [vmem:[%s17876_s0 + $0x50] sm:$0xff]  }
 0x227   :  { %v14361_v28 = vpop.f32.mrf.mxu0  ;;  %v14363_v31 = vpop.f32.mrf.mxu1 }
 0x228   :  { %18096 = vst [vmem:[#allocation221_spill] sm:$0xff] %v14361_v28  ;;  %18097 = vst [vmem:[#allocation222_spill] sm:$0xff] %v14363_v31 }
 0x229   :  { %v14365_v30 = vpop.f32.mrf.mxu0  ;;  %v14367_v25 = vpop.f32.mrf.mxu1 }
 0x22a   :  { %18098 = vst [vmem:[#allocation223_spill] sm:$0xff] %v14365_v30  ;;  %18099 = vst [vmem:[#allocation224_spill] sm:$0xff] %v14367_v25  ;;  %v12231_v25 = vld [vmem:[#allocation2 + $0x124] ss:$16 sps:$4 sm:$0x3f]  }
 0x22b   :  { %v14372_v23 = vpop.f32.mrf.mxu0  ;;  %v14374_v26 = vpop.f32.mrf.mxu1  ;;  %v12233_v30 = vld [vmem:[#allocation2 + $0x12c] ss:$16 sps:$4 sm:$0x3f]   ;;  %11394 = vmatprep.subr.msk.bf16.mxu0 %vm477_vm0, %v12231_v25 }
 0x22c   :  { %18100 = vst [vmem:[#allocation225_spill] sm:$0xff] %v14372_v23  ;;  %18101 = vst [vmem:[#allocation226_spill] sm:$0xff] %v14374_v26  ;;  %11419 = vmatprep.subr.msk.bf16.mxu1 %vm477_vm0, %v12233_v30 }
 0x22d   :  { %v14376_v29 = vpop.f32.mrf.mxu0  ;;  %v14378_v37 = vpop.f32.mrf.mxu1  ;;  %11143 = vmatmul.mubr.msk.bf16.gmra.mxu0 %vm404_vm1, %v12208_v27  ;;  %11168 = vmatmul.mubr.msk.bf16.gmra.mxu1 %vm404_vm1, %v12208_v27  ;;  %v12209_v27 = vld [vmem:[%s17876_s0 + $0x58] sm:$0xff]  }
 0x22e   :  { %18102 = vst [vmem:[#allocation227_spill] sm:$0xff] %v14376_v29  ;;  %18103 = vst [vmem:[#allocation228_spill] sm:$0xff] %v14378_v37  ;;  %2242 = vmatprep.mubr.bf16.mxu0 %v17943_v60  ;;  %2515 = vmatprep.mubr.bf16.mxu1 %v17943_v60 }
 0x22f   :  { %v14384_v31 = vpop.f32.mrf.mxu0  ;;  %v14386_v28 = vpop.f32.mrf.mxu1 }
 0x230   :  { %18104 = vst [vmem:[#allocation229_spill] sm:$0xff] %v14384_v31  ;;  %18105 = vst [vmem:[#allocation230_spill] sm:$0xff] %v14386_v28 }
 0x231   :  { %v14390_v29 = vpop.f32.mrf.mxu0  ;;  %v14392_v37 = vpop.f32.mrf.mxu1 }
 0x232   :  { %18106 = vst [vmem:[#allocation231_spill] sm:$0xff] %v14390_v29  ;;  %18107 = vst [vmem:[#allocation232_spill] sm:$0xff] %v14392_v37 }
 0x233   :  { %v14397_v26 = vpop.f32.mrf.mxu0  ;;  %v14399_v23 = vpop.f32.mrf.mxu1 }
 0x234   :  { %18108 = vst [vmem:[#allocation233_spill] sm:$0xff] %v14397_v26  ;;  %18109 = vst [vmem:[#allocation234_spill] sm:$0xff] %v14399_v23 }
 0x235   :  { %v14401_v32 = vpop.f32.mrf.mxu0  ;;  %v14403_v31 = vpop.f32.mrf.mxu1  ;;  %11144 = vmatmul.mubr.msk.bf16.gmra.mxu0 %vm404_vm1, %v12209_v27  ;;  %11169 = vmatmul.mubr.msk.bf16.gmra.mxu1 %vm404_vm1, %v12209_v27 }
 0x236   :  { %18110 = vst [vmem:[#allocation235_spill] sm:$0xff] %v14401_v32  ;;  %18111 = vst [vmem:[#allocation236_spill] sm:$0xff] %v14403_v31  ;;  %2252 = vmatprep.mubr.bf16.mxu0 %v17943_v60  ;;  %2525 = vmatprep.mubr.bf16.mxu1 %v17943_v60  ;;  %v12210_v31 = vld [vmem:[%s17876_s0 + $0x60] sm:$0xff]  }
 0x237   :  { %v14409_v30 = vpop.f32.mrf.mxu0  ;;  %v14411_v25 = vpop.f32.mrf.mxu1 }
 0x238   :  { %18112 = vst [vmem:[#allocation237_spill] sm:$0xff] %v14409_v30  ;;  %18113 = vst [vmem:[#allocation238_spill] sm:$0xff] %v14411_v25 }
 0x239   :  { %v14413_v37 = vpop.f32.mrf.mxu0  ;;  %v14415_v26 = vpop.f32.mrf.mxu1 }
 0x23a   :  { %18114 = vst [vmem:[#allocation239_spill] sm:$0xff] %v14413_v37  ;;  %18115 = vst [vmem:[#allocation240_spill] sm:$0xff] %v14415_v26 }
 0x23b   :  { %v14420_v32 = vpop.f32.mrf.mxu0  ;;  %v14422_v23 = vpop.f32.mrf.mxu1 }
 0x23c   :  { %18116 = vst [vmem:[#allocation241_spill] sm:$0xff] %v14420_v32  ;;  %18117 = vst [vmem:[#allocation242_spill] sm:$0xff] %v14422_v23 }
 0x23d   :  { %v14424_v27 = vpop.f32.mrf.mxu0  ;;  %v14426_v29 = vpop.f32.mrf.mxu1  ;;  %11145 = vmatmul.mubr.msk.bf16.gmra.mxu0 %vm404_vm1, %v12210_v31  ;;  %11170 = vmatmul.mubr.msk.bf16.gmra.mxu1 %vm404_vm1, %v12210_v31 }
 0x23e   :  { %18118 = vst [vmem:[#allocation243_spill] sm:$0xff] %v14424_v27  ;;  %18119 = vst [vmem:[#allocation244_spill] sm:$0xff] %v14426_v29  ;;  %2262 = vmatprep.mubr.bf16.mxu0 %v17943_v60  ;;  %2535 = vmatprep.mubr.bf16.mxu1 %v17943_v60  ;;  %v12211_v29 = vld [vmem:[%s17876_s0 + $0x68] sm:$0xff]  }
 0x23f   :  { %v14432_v26 = vpop.f32.mrf.mxu0  ;;  %v14434_v37 = vpop.f32.mrf.mxu1 }
 0x240   :  { %18120 = vst [vmem:[#allocation245_spill] sm:$0xff] %v14432_v26  ;;  %18121 = vst [vmem:[#allocation246_spill] sm:$0xff] %v14434_v37 }
 0x241   :  { %v14436_v25 = vpop.f32.mrf.mxu0  ;;  %v14438_v32 = vpop.f32.mrf.mxu1 }
 0x242   :  { %18122 = vst [vmem:[#allocation247_spill] sm:$0xff] %v14436_v25  ;;  %18123 = vst [vmem:[#allocation248_spill] sm:$0xff] %v14438_v32 }
 0x243   :  { %v14443_v27 = vpop.f32.mrf.mxu0  ;;  %v14445_v23 = vpop.f32.mrf.mxu1 }
 0x244   :  { %18124 = vst [vmem:[#allocation249_spill] sm:$0xff] %v14443_v27  ;;  %18125 = vst [vmem:[#allocation250_spill] sm:$0xff] %v14445_v23 }
 0x245   :  { %v14447_v31 = vpop.f32.mrf.mxu0  ;;  %v14449_v30 = vpop.f32.mrf.mxu1  ;;  %11146 = vmatmul.mubr.msk.bf16.gmra.mxu0 %vm404_vm1, %v12211_v29  ;;  %11171 = vmatmul.mubr.msk.bf16.gmra.mxu1 %vm404_vm1, %v12211_v29 }
 0x246   :  { %18126 = vst [vmem:[#allocation251_spill] sm:$0xff] %v14447_v31  ;;  %18127 = vst [vmem:[#allocation252_spill] sm:$0xff] %v14449_v30  ;;  %2272 = vmatprep.mubr.bf16.mxu0 %v17943_v60  ;;  %2545 = vmatprep.mubr.bf16.mxu1 %v17943_v60  ;;  %v12212_v30 = vld [vmem:[%s17876_s0 + $0x70] sm:$0xff]  }
 0x247   :  { %v14455_v32 = vpop.f32.mrf.mxu0  ;;  %v14457_v25 = vpop.f32.mrf.mxu1 }
 0x248   :  { %18128 = vst [vmem:[#allocation253_spill] sm:$0xff] %v14455_v32  ;;  %18129 = vst [vmem:[#allocation254_spill] sm:$0xff] %v14457_v25 }
 0x249   :  { %v14459_v37 = vpop.f32.mrf.mxu0  ;;  %v14461_v27 = vpop.f32.mrf.mxu1 }
 0x24a   :  { %18130 = vst [vmem:[#allocation255_spill] sm:$0xff] %v14459_v37  ;;  %18131 = vst [vmem:[#allocation256_spill] sm:$0xff] %v14461_v27 }
 0x24b   :  { %v14466_v31 = vpop.f32.mrf.mxu0  ;;  %v14468_v23 = vpop.f32.mrf.mxu1 }
 0x24c   :  { %18132 = vst [vmem:[#allocation257_spill] sm:$0xff] %v14466_v31  ;;  %18133 = vst [vmem:[#allocation258_spill] sm:$0xff] %v14468_v23 }
 0x24d   :  { %v14470_v29 = vpop.f32.mrf.mxu0  ;;  %v14472_v26 = vpop.f32.mrf.mxu1  ;;  %11147 = vmatmul.mubr.msk.bf16.gmra.mxu0 %vm404_vm1, %v12212_v30  ;;  %11172 = vmatmul.mubr.msk.bf16.gmra.mxu1 %vm404_vm1, %v12212_v30 }
 0x24e   :  { %18134 = vst [vmem:[#allocation259_spill] sm:$0xff] %v14470_v29  ;;  %18135 = vst [vmem:[#allocation260_spill] sm:$0xff] %v14472_v26  ;;  %2282 = vmatprep.mubr.bf16.mxu0 %v17943_v60  ;;  %2555 = vmatprep.mubr.bf16.mxu1 %v17943_v60  ;;  %v12219_v26 = vld [vmem:[%s17876_s0 + $0x78] sm:$0xff]  }
 0x24f   :  { %v14478_v27 = vpop.f32.mrf.mxu0  ;;  %v14480_v37 = vpop.f32.mrf.mxu1 }
 0x250   :  { %18136 = vst [vmem:[#allocation261_spill] sm:$0xff] %v14478_v27  ;;  %18137 = vst [vmem:[#allocation262_spill] sm:$0xff] %v14480_v37 }
 0x251   :  { %v14482_v25 = vpop.f32.mrf.mxu0  ;;  %v14484_v31 = vpop.f32.mrf.mxu1 }
 0x252   :  { %18138 = vst [vmem:[#allocation263_spill] sm:$0xff] %v14482_v25  ;;  %18139 = vst [vmem:[#allocation264_spill] sm:$0xff] %v14484_v31 }
 0x253   :  { %v14489_v29 = vpop.f32.mrf.mxu0  ;;  %v14491_v23 = vpop.f32.mrf.mxu1 }
 0x254   :  { %18140 = vst [vmem:[#allocation265_spill] sm:$0xff] %v14489_v29  ;;  %18141 = vst [vmem:[#allocation266_spill] sm:$0xff] %v14491_v23 }
 0x255   :  { %v14493_v30 = vpop.f32.mrf.mxu0  ;;  %v14495_v32 = vpop.f32.mrf.mxu1  ;;  %11148 = vmatmul.mubr.msk.bf16.gmra.mxu0 %vm404_vm1, %v12219_v26  ;;  %11173 = vmatmul.mubr.msk.bf16.gmra.mxu1 %vm404_vm1, %v12219_v26 }
 0x256   :  { %18142 = vst [vmem:[#allocation267_spill] sm:$0xff] %v14493_v30  ;;  %18143 = vst [vmem:[#allocation268_spill] sm:$0xff] %v14495_v32  ;;  %2292 = vmatprep.mubr.bf16.mxu0 %v17943_v60  ;;  %2565 = vmatprep.mubr.bf16.mxu1 %v17943_v60  ;;  %v12220_v32 = vld [vmem:[%s17876_s0 + $0x80] sm:$0xff]  }
 0x257   :  { %v14501_v31 = vpop.f32.mrf.mxu0  ;;  %v14503_v25 = vpop.f32.mrf.mxu1 }
 0x258   :  { %18144 = vst [vmem:[#allocation269_spill] sm:$0xff] %v14501_v31  ;;  %18145 = vst [vmem:[#allocation270_spill] sm:$0xff] %v14503_v25 }
 0x259   :  { %v14505_v37 = vpop.f32.mrf.mxu0  ;;  %v14507_v29 = vpop.f32.mrf.mxu1 }
 0x25a   :  { %18146 = vst [vmem:[#allocation271_spill] sm:$0xff] %v14505_v37  ;;  %18147 = vst [vmem:[#allocation272_spill] sm:$0xff] %v14507_v29 }
 0x25b   :  { %v14512_v30 = vpop.f32.mrf.mxu0  ;;  %v14514_v23 = vpop.f32.mrf.mxu1 }
 0x25c   :  { %18148 = vst [vmem:[#allocation273_spill] sm:$0xff] %v14512_v30  ;;  %18149 = vst [vmem:[#allocation274_spill] sm:$0xff] %v14514_v23 }
 0x25d   :  { %v14516_v26 = vpop.f32.mrf.mxu0  ;;  %v14518_v27 = vpop.f32.mrf.mxu1  ;;  %11149 = vmatmul.mubr.msk.bf16.gmra.mxu0 %vm404_vm1, %v12220_v32  ;;  %11174 = vmatmul.mubr.msk.bf16.gmra.mxu1 %vm404_vm1, %v12220_v32 }
 0x25e   :  { %18150 = vst [vmem:[#allocation275_spill] sm:$0xff] %v14516_v26  ;;  %18151 = vst [vmem:[#allocation276_spill] sm:$0xff] %v14518_v27  ;;  %2302 = vmatprep.mubr.bf16.mxu0 %v17943_v60  ;;  %2575 = vmatprep.mubr.bf16.mxu1 %v17943_v60  ;;  %v12221_v27 = vld [vmem:[%s17876_s0 + $0x88] sm:$0xff]  }
 0x25f   :  { %v14524_v29 = vpop.f32.mrf.mxu0  ;;  %v14526_v37 = vpop.f32.mrf.mxu1 }
 0x260   :  { %18152 = vst [vmem:[#allocation277_spill] sm:$0xff] %v14524_v29  ;;  %18153 = vst [vmem:[#allocation278_spill] sm:$0xff] %v14526_v37 }
 0x261   :  { %v14528_v25 = vpop.f32.mrf.mxu0  ;;  %v14530_v30 = vpop.f32.mrf.mxu1 }
 0x262   :  { %18154 = vst [vmem:[#allocation279_spill] sm:$0xff] %v14528_v25  ;;  %18155 = vst [vmem:[#allocation280_spill] sm:$0xff] %v14530_v30 }
 0x263   :  { %v14535_v26 = vpop.f32.mrf.mxu0  ;;  %v14537_v23 = vpop.f32.mrf.mxu1 }
 0x264   :  { %18156 = vst [vmem:[#allocation281_spill] sm:$0xff] %v14535_v26  ;;  %18157 = vst [vmem:[#allocation282_spill] sm:$0xff] %v14537_v23 }
 0x265   :  { %v14539_v32 = vpop.f32.mrf.mxu0  ;;  %v14541_v31 = vpop.f32.mrf.mxu1  ;;  %11150 = vmatmul.mubr.msk.bf16.gmra.mxu0 %vm404_vm1, %v12221_v27  ;;  %11175 = vmatmul.mubr.msk.bf16.gmra.mxu1 %vm404_vm1, %v12221_v27 }
 0x266   :  { %18158 = vst [vmem:[#allocation283_spill] sm:$0xff] %v14539_v32  ;;  %18159 = vst [vmem:[#allocation284_spill] sm:$0xff] %v14541_v31  ;;  %2312 = vmatprep.mubr.bf16.mxu0 %v17943_v60  ;;  %2585 = vmatprep.mubr.bf16.mxu1 %v17943_v60  ;;  %v12222_v31 = vld [vmem:[%s17876_s0 + $0x90] sm:$0xff]  }
 0x267   :  { %v14547_v30 = vpop.f32.mrf.mxu0  ;;  %v14549_v25 = vpop.f32.mrf.mxu1 }
 0x268   :  { %18160 = vst [vmem:[#allocation285_spill] sm:$0xff] %v14547_v30  ;;  %18161 = vst [vmem:[#allocation286_spill] sm:$0xff] %v14549_v25 }
 0x269   :  { %v14551_v37 = vpop.f32.mrf.mxu0  ;;  %v14553_v26 = vpop.f32.mrf.mxu1 }
 0x26a   :  { %18162 = vst [vmem:[#allocation287_spill] sm:$0xff] %v14551_v37  ;;  %18163 = vst [vmem:[#allocation288_spill] sm:$0xff] %v14553_v26 }
 0x26b   :  { %v14558_v32 = vpop.f32.mrf.mxu0  ;;  %v14560_v23 = vpop.f32.mrf.mxu1 }
 0x26c   :  { %18164 = vst [vmem:[#allocation289_spill] sm:$0xff] %v14558_v32  ;;  %18165 = vst [vmem:[#allocation290_spill] sm:$0xff] %v14560_v23 }
 0x26d   :  { %v14562_v27 = vpop.f32.mrf.mxu0  ;;  %v14564_v29 = vpop.f32.mrf.mxu1  ;;  %11151 = vmatmul.mubr.msk.bf16.gmra.mxu0 %vm404_vm1, %v12222_v31  ;;  %11176 = vmatmul.mubr.msk.bf16.gmra.mxu1 %vm404_vm1, %v12222_v31 }
 0x26e   :  { %18166 = vst [vmem:[#allocation291_spill] sm:$0xff] %v14562_v27  ;;  %18167 = vst [vmem:[#allocation292_spill] sm:$0xff] %v14564_v29  ;;  %2322 = vmatprep.mubr.bf16.mxu0 %v17943_v60  ;;  %2595 = vmatprep.mubr.bf16.mxu1 %v17943_v60  ;;  %v12223_v29 = vld [vmem:[%s17876_s0 + $0x98] sm:$0xff]  }
 0x26f   :  { %v14570_v26 = vpop.f32.mrf.mxu0  ;;  %v14572_v37 = vpop.f32.mrf.mxu1 }
 0x270   :  { %18168 = vst [vmem:[#allocation293_spill] sm:$0xff] %v14570_v26  ;;  %18169 = vst [vmem:[#allocation294_spill] sm:$0xff] %v14572_v37 }
 0x271   :  { %v14574_v25 = vpop.f32.mrf.mxu0  ;;  %v14576_v32 = vpop.f32.mrf.mxu1 }
 0x272   :  { %18170 = vst [vmem:[#allocation295_spill] sm:$0xff] %v14574_v25  ;;  %18171 = vst [vmem:[#allocation296_spill] sm:$0xff] %v14576_v32 }
 0x273   :  { %v14581_v27 = vpop.f32.mrf.mxu0  ;;  %v14583_v23 = vpop.f32.mrf.mxu1 }
 0x274   :  { %18172 = vst [vmem:[#allocation297_spill] sm:$0xff] %v14581_v27  ;;  %18173 = vst [vmem:[#allocation298_spill] sm:$0xff] %v14583_v23 }
 0x275   :  { %v14585_v31 = vpop.f32.mrf.mxu0  ;;  %v14587_v30 = vpop.f32.mrf.mxu1  ;;  %11152 = vmatmul.mubr.msk.bf16.gmra.mxu0 %vm404_vm1, %v12223_v29  ;;  %11177 = vmatmul.mubr.msk.bf16.gmra.mxu1 %vm404_vm1, %v12223_v29 }
 0x276   :  { %18174 = vst [vmem:[#allocation299_spill] sm:$0xff] %v14585_v31  ;;  %18175 = vst [vmem:[#allocation300_spill] sm:$0xff] %v14587_v30  ;;  %2332 = vmatprep.mubr.bf16.mxu0 %v17943_v60  ;;  %2605 = vmatprep.mubr.bf16.mxu1 %v17943_v60  ;;  %v12224_v30 = vld [vmem:[%s17876_s0 + $0xa0] sm:$0xff]  }
 0x277   :  { %v14593_v32 = vpop.f32.mrf.mxu0  ;;  %v14595_v25 = vpop.f32.mrf.mxu1 }
 0x278   :  { %18176 = vst [vmem:[#allocation301_spill] sm:$0xff] %v14593_v32  ;;  %18177 = vst [vmem:[#allocation302_spill] sm:$0xff] %v14595_v25 }
 0x279   :  { %v14597_v37 = vpop.f32.mrf.mxu0  ;;  %v14599_v27 = vpop.f32.mrf.mxu1 }
 0x27a   :  { %18178 = vst [vmem:[#allocation303_spill] sm:$0xff] %v14597_v37  ;;  %18179 = vst [vmem:[#allocation304_spill] sm:$0xff] %v14599_v27 }
 0x27b   :  { %v14604_v31 = vpop.f32.mrf.mxu0  ;;  %v14606_v23 = vpop.f32.mrf.mxu1 }
 0x27c   :  { %18180 = vst [vmem:[#allocation305_spill] sm:$0xff] %v14604_v31  ;;  %18181 = vst [vmem:[#allocation306_spill] sm:$0xff] %v14606_v23 }
 0x27d   :  { %v14608_v29 = vpop.f32.mrf.mxu0  ;;  %v14610_v26 = vpop.f32.mrf.mxu1  ;;  %11153 = vmatmul.mubr.msk.bf16.gmra.mxu0 %vm404_vm1, %v12224_v30  ;;  %11178 = vmatmul.mubr.msk.bf16.gmra.mxu1 %vm404_vm1, %v12224_v30 }
 0x27e   :  { %18182 = vst [vmem:[#allocation307_spill] sm:$0xff] %v14608_v29  ;;  %18183 = vst [vmem:[#allocation308_spill] sm:$0xff] %v14610_v26  ;;  %2342 = vmatprep.mubr.bf16.mxu0 %v17943_v60  ;;  %2615 = vmatprep.mubr.bf16.mxu1 %v17943_v60  ;;  %v12225_v26 = vld [vmem:[%s17876_s0 + $0xa8] sm:$0xff]  }
 0x27f   :  { %v14616_v27 = vpop.f32.mrf.mxu0  ;;  %v14618_v37 = vpop.f32.mrf.mxu1 }
 0x280   :  { %18184 = vst [vmem:[#allocation309_spill] sm:$0xff] %v14616_v27  ;;  %18185 = vst [vmem:[#allocation310_spill] sm:$0xff] %v14618_v37 }
 0x281   :  { %v14620_v25 = vpop.f32.mrf.mxu0  ;;  %v14622_v31 = vpop.f32.mrf.mxu1 }
 0x282   :  { %18186 = vst [vmem:[#allocation311_spill] sm:$0xff] %v14620_v25  ;;  %18187 = vst [vmem:[#allocation312_spill] sm:$0xff] %v14622_v31 }
 0x283   :  { %v14627_v29 = vpop.f32.mrf.mxu0  ;;  %v14629_v23 = vpop.f32.mrf.mxu1 }
 0x284   :  { %18188 = vst [vmem:[#allocation313_spill] sm:$0xff] %v14627_v29  ;;  %18189 = vst [vmem:[#allocation314_spill] sm:$0xff] %v14629_v23 }
 0x285   :  { %v14631_v30 = vpop.f32.mrf.mxu0  ;;  %v14633_v32 = vpop.f32.mrf.mxu1  ;;  %11154 = vmatmul.mubr.msk.bf16.gmra.mxu0 %vm404_vm1, %v12225_v26  ;;  %11179 = vmatmul.mubr.msk.bf16.gmra.mxu1 %vm404_vm1, %v12225_v26 }
 0x286   :  { %18190 = vst [vmem:[#allocation315_spill] sm:$0xff] %v14631_v30  ;;  %18191 = vst [vmem:[#allocation316_spill] sm:$0xff] %v14633_v32  ;;  %2352 = vmatprep.mubr.bf16.mxu0 %v17943_v60  ;;  %2625 = vmatprep.mubr.bf16.mxu1 %v17943_v60  ;;  %v12226_v32 = vld [vmem:[%s17876_s0 + $0xb0] sm:$0xff]  }
 0x287   :  { %v14639_v31 = vpop.f32.mrf.mxu0  ;;  %v14641_v25 = vpop.f32.mrf.mxu1 }
 0x288   :  { %18192 = vst [vmem:[#allocation317_spill] sm:$0xff] %v14639_v31  ;;  %18193 = vst [vmem:[#allocation318_spill] sm:$0xff] %v14641_v25 }
 0x289   :  { %v14643_v37 = vpop.f32.mrf.mxu0  ;;  %v14645_v29 = vpop.f32.mrf.mxu1 }
 0x28a   :  { %18194 = vst [vmem:[#allocation319_spill] sm:$0xff] %v14643_v37  ;;  %18195 = vst [vmem:[#allocation320_spill] sm:$0xff] %v14645_v29 }
 0x28b   :  { %v14650_v30 = vpop.f32.mrf.mxu0  ;;  %v14652_v23 = vpop.f32.mrf.mxu1 }
 0x28c   :  { %18196 = vst [vmem:[#allocation321_spill] sm:$0xff] %v14650_v30  ;;  %18197 = vst [vmem:[#allocation322_spill] sm:$0xff] %v14652_v23 }
 0x28d   :  { %v14654_v26 = vpop.f32.mrf.mxu0  ;;  %v14656_v27 = vpop.f32.mrf.mxu1  ;;  %11155 = vmatmul.mubr.msk.bf16.gmra.mxu0 %vm404_vm1, %v12226_v32  ;;  %11180 = vmatmul.mubr.msk.bf16.gmra.mxu1 %vm404_vm1, %v12226_v32 }
 0x28e   :  { %18198 = vst [vmem:[#allocation323_spill] sm:$0xff] %v14654_v26  ;;  %18199 = vst [vmem:[#allocation324_spill] sm:$0xff] %v14656_v27  ;;  %2362 = vmatprep.mubr.bf16.mxu0 %v17943_v60  ;;  %2635 = vmatprep.mubr.bf16.mxu1 %v17943_v60  ;;  %v12227_v27 = vld [vmem:[%s17876_s0 + $0xb8] sm:$0xff]  }
 0x28f   :  { %v14662_v29 = vpop.f32.mrf.mxu0  ;;  %v14664_v37 = vpop.f32.mrf.mxu1 }
 0x290   :  { %18200 = vst [vmem:[#allocation325_spill] sm:$0xff] %v14662_v29  ;;  %18201 = vst [vmem:[#allocation326_spill] sm:$0xff] %v14664_v37 }
 0x291   :  { %v14666_v25 = vpop.f32.mrf.mxu0  ;;  %v14668_v30 = vpop.f32.mrf.mxu1 }
 0x292   :  { %18202 = vst [vmem:[#allocation327_spill] sm:$0xff] %v14666_v25  ;;  %18203 = vst [vmem:[#allocation328_spill] sm:$0xff] %v14668_v30 }
 0x293   :  { %v14673_v26 = vpop.f32.mrf.mxu0  ;;  %v14675_v23 = vpop.f32.mrf.mxu1 }
 0x294   :  { %18204 = vst [vmem:[#allocation329_spill] sm:$0xff] %v14673_v26  ;;  %18205 = vst [vmem:[#allocation330_spill] sm:$0xff] %v14675_v23 }
 0x295   :  { %v14677_v32 = vpop.f32.mrf.mxu0  ;;  %v14679_v31 = vpop.f32.mrf.mxu1  ;;  %11156 = vmatmul.mubr.msk.bf16.gmra.mxu0 %vm404_vm1, %v12227_v27  ;;  %11181 = vmatmul.mubr.msk.bf16.gmra.mxu1 %vm404_vm1, %v12227_v27 }
 0x296   :  { %18206 = vst [vmem:[#allocation331_spill] sm:$0xff] %v14677_v32  ;;  %18207 = vst [vmem:[#allocation332_spill] sm:$0xff] %v14679_v31  ;;  %2372 = vmatprep.mubr.bf16.mxu0 %v17943_v60  ;;  %2645 = vmatprep.mubr.bf16.mxu1 %v17943_v60  ;;  %v12228_v31 = vld [vmem:[%s17876_s0 + $0xc0] sm:$0xff]  }
 0x297   :  { %v14685_v30 = vpop.f32.mrf.mxu0  ;;  %v14687_v25 = vpop.f32.mrf.mxu1 }
 0x298   :  { %18208 = vst [vmem:[#allocation333_spill] sm:$0xff] %v14685_v30  ;;  %18209 = vst [vmem:[#allocation334_spill] sm:$0xff] %v14687_v25 }
 0x299   :  { %v14689_v37 = vpop.f32.mrf.mxu0  ;;  %v14691_v26 = vpop.f32.mrf.mxu1 }
 0x29a   :  { %18210 = vst [vmem:[#allocation335_spill] sm:$0xff] %v14689_v37  ;;  %18211 = vst [vmem:[#allocation336_spill] sm:$0xff] %v14691_v26 }
 0x29b   :  { %v14696_v32 = vpop.f32.mrf.mxu0  ;;  %v14698_v23 = vpop.f32.mrf.mxu1 }
 0x29c   :  { %18212 = vst [vmem:[#allocation337_spill] sm:$0xff] %v14696_v32  ;;  %18213 = vst [vmem:[#allocation338_spill] sm:$0xff] %v14698_v23 }
 0x29d   :  { %v14700_v27 = vpop.f32.mrf.mxu0  ;;  %v14702_v29 = vpop.f32.mrf.mxu1  ;;  %11157 = vmatmul.mubr.msk.bf16.gmra.mxu0 %vm404_vm1, %v12228_v31  ;;  %11182 = vmatmul.mubr.msk.bf16.gmra.mxu1 %vm404_vm1, %v12228_v31 }
 0x29e   :  { %18214 = vst [vmem:[#allocation339_spill] sm:$0xff] %v14700_v27  ;;  %18215 = vst [vmem:[#allocation340_spill] sm:$0xff] %v14702_v29  ;;  %2382 = vmatprep.mubr.bf16.mxu0 %v17943_v60  ;;  %2655 = vmatprep.mubr.bf16.mxu1 %v17943_v60  ;;  %v12229_v29 = vld [vmem:[%s17876_s0 + $0xc8] sm:$0xff]  }
 0x29f   :  { %v14708_v26 = vpop.f32.mrf.mxu0  ;;  %v14710_v37 = vpop.f32.mrf.mxu1 }
 0x2a0   :  { %18216 = vst [vmem:[#allocation341_spill] sm:$0xff] %v14708_v26  ;;  %18217 = vst [vmem:[#allocation342_spill] sm:$0xff] %v14710_v37  ;;  %v12235_v37 = vld [vmem:[#allocation2 + $0x120] ss:$16 sps:$4 sm:$0x3f]  }
 0x2a1   :  { %v14712_v25 = vpop.f32.mrf.mxu0  ;;  %v14714_v32 = vpop.f32.mrf.mxu1  ;;  %v4181_v28 = vsel %vm477_vm0, %v12235_v37, 0  ;;  %v1586_v37 = vadd.f32 %v14200_v51, %v13644_v59  ;;  %v1588_v59 = vadd.f32 %v14206_v24, %v13653_v62  ;;  %v1594_v24 = vadd.f32 %v14217_v47, %v13661_v3 }
 0x2a2   :  { %18218 = vst [vmem:[#allocation343_spill] sm:$0xff] %v14712_v25  ;;  %18219 = vst [vmem:[#allocation344_spill] sm:$0xff] %v14714_v32 }
 0x2a3   :  { %v14719_v27 = vpop.f32.mrf.mxu0  ;;  %v14721_v23 = vpop.f32.mrf.mxu1 }
 0x2a4   :  { %18220 = vst [vmem:[#allocation345_spill] sm:$0xff] %v14719_v27  ;;  %18221 = vst [vmem:[#allocation346_spill] sm:$0xff] %v14721_v23  ;;  %v12236_v27 = vld [vmem:[#allocation2 + $0x128] ss:$16 sps:$4 sm:$0x3f]  }
 0x2a5   :  { %v14723_v31 = vpop.f32.mrf.mxu0  ;;  %v14725_v30 = vpop.f32.mrf.mxu1  ;;  %11158 = vmatmul.mubr.msk.bf16.gmra.mxu0 %vm404_vm1, %v12229_v29  ;;  %11183 = vmatmul.mubr.msk.bf16.gmra.mxu1 %vm404_vm1, %v12229_v29 }
 0x2a6   :  { %18222 = vst [vmem:[#allocation347_spill] sm:$0xff] %v14723_v31  ;;  %18223 = vst [vmem:[#allocation348_spill] sm:$0xff] %v14725_v30  ;;  %3188 = vmatprep.mubr.bf16.mxu0 %v17943_v60  ;;  %3461 = vmatprep.mubr.bf16.mxu1 %v17943_v60  ;;  %v12230_v30 = vld [vmem:[%s17876_s0 + $0x18] sm:$0xff]  }
 0x2a7   :  { %v14731_v32 = vpop.f32.mrf.mxu0  ;;  %v14733_v25 = vpop.f32.mrf.mxu1 }
 0x2a8   :  { %18224 = vst [vmem:[#allocation349_spill] sm:$0xff] %v14731_v32  ;;  %18225 = vst [vmem:[#allocation350_spill] sm:$0xff] %v14733_v25  ;;  %v4187_v32 = vsel %vm477_vm0, %v12236_v27, 0  ;;  %v1311_v25 = vadd.f32 %v14192_v50, %v13636_v56 }
 0x2a9   :  { %v14735_v26 = vpop.f32.mrf.mxu0  ;;  %v14737_v23 = vpop.f32.mrf.mxu1 }
 0x2aa   :  { %18226 = vst [vmem:[#allocation351_spill] sm:$0xff] %v14735_v26  ;;  %18227 = vst [vmem:[#allocation352_spill] sm:$0xff] %v14737_v23  ;;  %v1584_v26 = vadd.f32 %v14194_v49, %v13638_v57  ;;  %v12254_v23 = vld [vmem:[#allocation2 + $0x10c] ss:$16 sps:$4 sm:$0xff]   ;;  %v12249_v57 = vld [vmem:[#allocation2 + $0x100] ss:$16 sps:$4 sm:$0xff]  }
 0x2ab   :  { %v14742_v31 = vpop.f32.mrf.mxu0  ;;  %v14744_v29 = vpop.f32.mrf.mxu1  ;;  %v12252_v49 = vld [vmem:[#allocation2 + $0x108] ss:$16 sps:$4 sm:$0xff]  }
 0x2ad   :  { %v2154_v21 = vpop.f32.mrf.mxu0  ;;  %v2427_v46 = vpop.f32.mrf.mxu1  ;;  %11265 = vmatmul.mubr.msk.bf16.vlgmr.msra.gmra.mxu0 %vm404_vm1, %v12230_v30  ;;  %11290 = vmatmul.mubr.msk.bf16.vlgmr.msra.gmra.mxu1 %vm404_vm1, %v12230_v30 }
 0x2ae   :  { %v14758_v27 = vadd.f32 %v2154_v21, %v1311_v25  ;;  %v14760_v56 = vadd.f32 %v2427_v46, %v1584_v26  ;;  %4205 = vmatpush1.bf16.msra.mxu0 %v4181_v28  ;;  %4478 = vmatpush1.bf16.msra.mxu1 %v4187_v32  ;;  %v1317_v46 = vadd.f32 %v14211_v42, %v13655_v63 }
 0x2af   :  { %v2156_v50 = vpop.f32.mrf.mxu0  ;;  %v2429_v55 = vpop.f32.mrf.mxu1  ;;  %3198 = vmatprep.mubr.bf16.mxu0 %v17943_v60  ;;  %3471 = vmatprep.mubr.bf16.mxu1 %v17943_v60  ;;  %v1590_v25 = vadd.f32 %v14213_v15, %v13657_v1  ;;  %v1321_v63 = vadd.f32 %v14215_v48, %v13659_v2  ;;  %v1323_v1 = vadd.f32 %v14223_v52, %v13667_v4 }
 0x2b0   :  { %v14768_v21 = vadd.f32 %v2156_v50, %v1313_v34  ;;  %v14770_v51 = vadd.f32 %v2429_v55, %v1586_v37  ;;  %4206 = vmatprep.subr.bf16.mxu0 %v12251_v22  ;;  %4479 = vmatprep.subr.bf16.mxu1 %v12254_v23  ;;  %v1596_v32 = vadd.f32 %v14225_v54, %v13669_v5 }
 0x2b1   :  { %v2158_v28 = vpop.f32.mrf.mxu0  ;;  %v2431_v61 = vpop.f32.mrf.mxu1  ;;  %v1325_v4 = vadd.f32 %v14227_v0, %v13674_v7  ;;  %v1598_v52 = vadd.f32 %v14229_v6, %v13676_v8  ;;  %v1600_v50 = vadd.f32 %v14236_v44, %v13680_v10  ;;  %v1331_v55 = vadd.f32 %v14238_v53, %v13682_v11 }
 0x2b2   :  { %v14779_v30 = vadd.f32 %v2158_v28, %v1315_v58  ;;  %v14781_v62 = vadd.f32 %v2431_v61, %v1588_v59  ;;  %4207 = vmatpush1.bf16.msra.mxu0 %v12249_v57  ;;  %4480 = vmatpush1.bf16.msra.mxu1 %v12252_v49  ;;  %v12238_v49 = vld [vmem:[%s17876_s0 + $0x28] sm:$0xff]   ;;  %v1327_v58 = vadd.f32 %v14234_v45, %v13678_v9 }
 0x2b3   :  { %v2160_v22 = vpop.f32.mrf.mxu0  ;;  %v2433_v34 = vpop.f32.mrf.mxu1  ;;  %v1604_v59 = vadd.f32 %v14240_v43, %v13684_v12  ;;  %v1333_v9 = vadd.f32 %v14246_v41, %v13690_v13  ;;  %v1606_v45 = vadd.f32 %v14248_v40, %v13692_v14  ;;  %v1335_v13 = vadd.f32 %v14250_v39, %v13697_v16 }
 0x2b4   :  { %v14787_v42 = vadd.f32 %v2160_v22, %v1317_v46  ;;  %v14789_v23 = vadd.f32 %v2433_v34, %v1590_v25  ;;  %v1608_v41 = vadd.f32 %v14252_v38, %v13699_v17  ;;  %v12239_v25 = vld [vmem:[%s17876_s0 + $0x30] sm:$0xff]   ;;  %v1337_v22 = vadd.f32 %v14257_v36, %v13701_v18 }
 0x2b5   :  { %v2164_v15 = vpop.f32.mrf.mxu0  ;;  %v2437_v26 = vpop.f32.mrf.mxu1  ;;  %11266 = vmatmul.mubr.msk.bf16.gmra.mxu0 %vm404_vm1, %v12237_v33  ;;  %11291 = vmatmul.mubr.msk.bf16.gmra.mxu1 %vm404_vm1, %v12237_v33  ;;  %v1610_v34 = vadd.f32 %v14259_v35, %v13703_v19  ;;  %v18231_v18 = vld [vmem:[#allocation21_spill] sm:$0xff] }
 0x2b6   :  { %v14797_v2 = vadd.f32 %v2164_v15, %v1321_v63  ;;  %v14799_v48 = vadd.f32 %v2437_v26, %v1594_v24  ;;  %3208 = vmatprep.mubr.bf16.mxu0 %v17943_v60  ;;  %3481 = vmatprep.mubr.bf16.mxu1 %v17943_v60  ;;  %v18228_v63 = vld [vmem:[#allocation187_spill] sm:$0xff]  ;;  %v18230_v15 = vld [vmem:[#allocation188_spill] sm:$0xff]  ;;  %v18232_v36 = vld [vmem:[#allocation189_spill] sm:$0xff] }
 0x2b7   :  { %v2166_v3 = vpop.f32.mrf.mxu0  ;;  %v2439_v47 = vpop.f32.mrf.mxu1  ;;  %v1341_v24 = vadd.f32 %v18228_v63, %v13705_v20 }
 0x2b8   :  { %v14807_v37 = vadd.f32 %v2166_v3, %v1323_v1  ;;  %v14809_v57 = vadd.f32 %v2439_v47, %v1596_v32  ;;  %v18229_v1 = vld [vmem:[#allocation20_spill] sm:$0xff]  ;;  %v1343_v47 = vadd.f32 %v18232_v36, %v18231_v18 }
 0x2b9   :  { %v2168_v5 = vpop.f32.mrf.mxu0  ;;  %v2441_v54 = vpop.f32.mrf.mxu1  ;;  %v1614_v26 = vadd.f32 %v18230_v15, %v18229_v1  ;;  %v18244_v1 = vld [vmem:[#allocation195_spill] sm:$0xff]  ;;  %v18246_v18 = vld [vmem:[#allocation196_spill] sm:$0xff] }
 0x2ba   :  { %v14818_v7 = vadd.f32 %v2168_v5, %v1325_v4  ;;  %v14820_v0 = vadd.f32 %v2441_v54, %v1598_v52  ;;  %v18233_v4 = vld [vmem:[#allocation22_spill] sm:$0xff] }
 0x2bb   :  { %v2170_v8 = vpop.f32.mrf.mxu0  ;;  %v2443_v6 = vpop.f32.mrf.mxu1  ;;  %v18234_v52 = vld [vmem:[#allocation190_spill] sm:$0xff] }
 0x2bc   :  { %v14826_v46 = vadd.f32 %v2170_v8, %v1327_v58  ;;  %v14828_v28 = vadd.f32 %v2443_v6, %v1600_v50  ;;  %v1616_v5 = vadd.f32 %v18234_v52, %v18233_v4  ;;  %v18235_v50 = vld [vmem:[#allocation23_spill] sm:$0xff]  ;;  %v18248_v4 = vld [vmem:[#allocation197_spill] sm:$0xff] }
 0x2bd   :  { %v2174_v10 = vpop.f32.mrf.mxu0  ;;  %v2447_v44 = vpop.f32.mrf.mxu1  ;;  %11267 = vmatmul.mubr.msk.bf16.gmra.mxu0 %vm404_vm1, %v12238_v49  ;;  %11292 = vmatmul.mubr.msk.bf16.gmra.mxu1 %vm404_vm1, %v12238_v49  ;;  %v18236_v8 = vld [vmem:[#allocation191_spill] sm:$0xff] }
 0x2be   :  { %v14836_v11 = vadd.f32 %v2174_v10, %v1331_v55  ;;  %v14838_v53 = vadd.f32 %v2447_v44, %v1604_v59  ;;  %3218 = vmatprep.mubr.bf16.mxu0 %v17943_v60  ;;  %3491 = vmatprep.mubr.bf16.mxu1 %v17943_v60  ;;  %v1345_v6 = vadd.f32 %v18236_v8, %v18235_v50  ;;  %v18237_v55 = vld [vmem:[#allocation24_spill] sm:$0xff]  ;;  %v18250_v50 = vld [vmem:[#allocation198_spill] sm:$0xff] }
 0x2bf   :  { %v2176_v12 = vpop.f32.mrf.mxu0  ;;  %v2449_v43 = vpop.f32.mrf.mxu1  ;;  %v18238_v59 = vld [vmem:[#allocation192_spill] sm:$0xff] }
 0x2c0   :  { %v14846_v61 = vadd.f32 %v2176_v12, %v1333_v9  ;;  %v14848_v33 = vadd.f32 %v2449_v43, %v1606_v45  ;;  %v1618_v9 = vadd.f32 %v18238_v59, %v18237_v55  ;;  %v12240_v43 = vld [vmem:[%s17876_s0 + $0x38] sm:$0xff]  }
 0x2c1   :  { %v2178_v14 = vpop.f32.mrf.mxu0  ;;  %v2451_v40 = vpop.f32.mrf.mxu1 }
 0x2c2   :  { %v14857_v16 = vadd.f32 %v2178_v14, %v1335_v13  ;;  %v14859_v39 = vadd.f32 %v2451_v40, %v1608_v41  ;;  %v18239_v13 = vld [vmem:[#allocation25_spill] sm:$0xff]  ;;  %v18241_v40 = vld [vmem:[#allocation26_spill] sm:$0xff] }
 0x2c3   :  { %v2180_v17 = vpop.f32.mrf.mxu0  ;;  %v2453_v38 = vpop.f32.mrf.mxu1  ;;  %v18240_v41 = vld [vmem:[#allocation193_spill] sm:$0xff] }
 0x2c4   :  { %v14865_v32 = vadd.f32 %v2180_v17, %v1337_v22  ;;  %v14867_v3 = vadd.f32 %v2453_v38, %v1610_v34  ;;  %v1347_v14 = vadd.f32 %v18240_v41, %v18239_v13  ;;  %v18253_v41 = vld [vmem:[#allocation32_spill] sm:$0xff] }
 0x2c5   :  { %v2184_v19 = vpop.f32.mrf.mxu0  ;;  %v2457_v35 = vpop.f32.mrf.mxu1  ;;  %11268 = vmatmul.mubr.msk.bf16.gmra.mxu0 %vm404_vm1, %v12239_v25  ;;  %11293 = vmatmul.mubr.msk.bf16.gmra.mxu1 %vm404_vm1, %v12239_v25  ;;  %v18242_v25 = vld [vmem:[#allocation194_spill] sm:$0xff] }
 0x2c6   :  { %v14875_v20 = vadd.f32 %v2184_v19, %v1341_v24  ;;  %v14877_v54 = vadd.f32 %v2457_v35, %v1614_v26  ;;  %3228 = vmatprep.mubr.bf16.mxu0 %v17943_v60  ;;  %3501 = vmatprep.mubr.bf16.mxu1 %v17943_v60  ;;  %v1620_v22 = vadd.f32 %v18242_v25, %v18241_v40  ;;  %v18243_v24 = vld [vmem:[#allocation27_spill] sm:$0xff]  ;;  %v18245_v26 = vld [vmem:[#allocation28_spill] sm:$0xff]  ;;  %v18247_v35 = vld [vmem:[#allocation29_spill] sm:$0xff] }
 0x2c7   :  { %v2186_v49 = vpop.f32.mrf.mxu0  ;;  %v2459_v58 = vpop.f32.mrf.mxu1  ;;  %v1351_v15 = vadd.f32 %v18244_v1, %v18243_v24  ;;  %v1624_v36 = vadd.f32 %v18246_v18, %v18245_v26  ;;  %v1353_v52 = vadd.f32 %v18248_v4, %v18247_v35  ;;  %v18255_v24 = vld [vmem:[#allocation33_spill] sm:$0xff]  ;;  %v18257_v26 = vld [vmem:[#allocation34_spill] sm:$0xff] }
 0x2c8   :  { %v14885_v10 = vadd.f32 %v2186_v49, %v1343_v47  ;;  %v14887_v44 = vadd.f32 %v2459_v58, %v1616_v5  ;;  %v18249_v58 = vld [vmem:[#allocation30_spill] sm:$0xff]  ;;  %v18256_v1 = vld [vmem:[#allocation201_spill] sm:$0xff] }
 0x2c9   :  { %v2188_v45 = vpop.f32.mrf.mxu0  ;;  %v2461_v12 = vpop.f32.mrf.mxu1  ;;  %v1626_v8 = vadd.f32 %v18250_v50, %v18249_v58  ;;  %v18258_v18 = vld [vmem:[#allocation202_spill] sm:$0xff]  ;;  %v18261_v58 = vld [vmem:[#allocation203_spill] sm:$0xff] }
 0x2ca   :  { %v14896_v34 = vadd.f32 %v2188_v45, %v1345_v6  ;;  %v14898_v17 = vadd.f32 %v2461_v12, %v1618_v9  ;;  %v18251_v45 = vld [vmem:[#allocation31_spill] sm:$0xff] }
 0x2cb   :  { %v2190_v38 = vpop.f32.mrf.mxu0  ;;  %v2463_v63 = vpop.f32.mrf.mxu1  ;;  %v18252_v12 = vld [vmem:[#allocation199_spill] sm:$0xff] }
 0x2cc   :  { %v14904_v47 = vadd.f32 %v2190_v38, %v1347_v14  ;;  %v14906_v19 = vadd.f32 %v2463_v63, %v1620_v22  ;;  %v1355_v13 = vadd.f32 %v18252_v12, %v18251_v45  ;;  %v18254_v14 = vld [vmem:[#allocation200_spill] sm:$0xff]  ;;  %v12241_v63 = vld [vmem:[%s17876_s0 + $0x40] sm:$0xff]  }
 0x2cd   :  { %v2194_v5 = vpop.f32.mrf.mxu0  ;;  %v2467_v49 = vpop.f32.mrf.mxu1  ;;  %11269 = vmatmul.mubr.msk.bf16.gmra.mxu0 %vm404_vm1, %v12240_v43  ;;  %11294 = vmatmul.mubr.msk.bf16.gmra.mxu1 %vm404_vm1, %v12240_v43  ;;  %v1628_v40 = vadd.f32 %v18254_v14, %v18253_v41  ;;  %v18266_v41 = vld [vmem:[#allocation37_spill] sm:$0xff] }
 0x2ce   :  { %v14914_v6 = vadd.f32 %v2194_v5, %v1351_v15  ;;  %v14916_v55 = vadd.f32 %v2467_v49, %v1624_v36  ;;  %3238 = vmatprep.mubr.bf16.mxu0 %v17943_v60  ;;  %3511 = vmatprep.mubr.bf16.mxu1 %v17943_v60  ;;  %v1357_v15 = vadd.f32 %v18256_v1, %v18255_v24  ;;  %v18260_v49 = vld [vmem:[#allocation35_spill] sm:$0xff]  ;;  %v18267_v14 = vld [vmem:[#allocation205_spill] sm:$0xff] }
 0x2cf   :  { %v2196_v59 = vpop.f32.mrf.mxu0  ;;  %v2469_v9 = vpop.f32.mrf.mxu1  ;;  %v1630_v36 = vadd.f32 %v18258_v18, %v18257_v26  ;;  %v1361_v50 = vadd.f32 %v18261_v58, %v18260_v49  ;;  %v1363_v24 = vadd.f32 %v18267_v14, %v18266_v41  ;;  %v18274_v58 = vld [vmem:[#allocation40_spill] sm:$0xff] }
 0x2d0   :  { %v14924_v43 = vadd.f32 %v2196_v59, %v1353_v52  ;;  %v14926_v25 = vadd.f32 %v2469_v9, %v1626_v8  ;;  %v18262_v8 = vld [vmem:[#allocation36_spill] sm:$0xff] }
 0x2d1   :  { %v2198_v22 = vpop.f32.mrf.mxu0  ;;  %v2471_v38 = vpop.f32.mrf.mxu1  ;;  %v18263_v59 = vld [vmem:[#allocation204_spill] sm:$0xff] }
 0x2d2   :  { %v14935_v35 = vadd.f32 %v2198_v22, %v1355_v13  ;;  %v14937_v4 = vadd.f32 %v2471_v38, %v1628_v40  ;;  %v1634_v9 = vadd.f32 %v18263_v59, %v18262_v8  ;;  %v18268_v40 = vld [vmem:[#allocation38_spill] sm:$0xff]  ;;  %v18275_v8 = vld [vmem:[#allocation208_spill] sm:$0xff] }
 0x2d3   :  { %v2200_v52 = vpop.f32.mrf.mxu0  ;;  %v2473_v5 = vpop.f32.mrf.mxu1  ;;  %v18269_v22 = vld [vmem:[#allocation206_spill] sm:$0xff]  ;;  %v1638_v59 = vadd.f32 %v18275_v8, %v18274_v58  ;;  %v18286_v8 = vld [vmem:[#allocation44_spill] sm:$0xff] }
 0x2d4   :  { %18259 = vst [vmem:[#allocation187_spill] sm:$0xff] %v14937_v4  ;;  %v14943_v45 = vadd.f32 %v2200_v52, %v1357_v15  ;;  %v14945_v12 = vadd.f32 %v2473_v5, %v1630_v36  ;;  %v1636_v38 = vadd.f32 %v18269_v22, %v18268_v40  ;;  %v18272_v52 = vld [vmem:[#allocation39_spill] sm:$0xff]  ;;  %v18280_v22 = vld [vmem:[#allocation42_spill] sm:$0xff] }
 0x2d5   :  { %v2204_v1 = vpop.f32.mrf.mxu0  ;;  %v2477_v13 = vpop.f32.mrf.mxu1  ;;  %11270 = vmatmul.mubr.msk.bf16.gmra.mxu0 %vm404_vm1, %v12241_v63  ;;  %11295 = vmatmul.mubr.msk.bf16.gmra.mxu1 %vm404_vm1, %v12241_v63  ;;  %v18273_v5 = vld [vmem:[#allocation207_spill] sm:$0xff] }
 0x2d6   :  { %18264 = vst [vmem:[#allocation20_spill] sm:$0xff] %v14943_v45  ;;  %18265 = vst [vmem:[#allocation188_spill] sm:$0xff] %v14945_v12  ;;  %v14953_v26 = vadd.f32 %v2204_v1, %v1361_v50  ;;  %v14955_v18 = vadd.f32 %v2477_v13, %v1634_v9  ;;  %3248 = vmatprep.mubr.bf16.mxu0 %v17943_v60  ;;  %3521 = vmatprep.mubr.bf16.mxu1 %v17943_v60  ;;  %v12242_v9 = vld [vmem:[%s17876_s0 + $0x48] sm:$0xff]   ;;  %v18278_v1 = vld [vmem:[#allocation41_spill] sm:$0xff] }
 0x2d7   :  { %v2206_v15 = vpop.f32.mrf.mxu0  ;;  %v2479_v36 = vpop.f32.mrf.mxu1  ;;  %v1365_v49 = vadd.f32 %v18273_v5, %v18272_v52  ;;  %v18279_v13 = vld [vmem:[#allocation209_spill] sm:$0xff] }
 0x2d8   :  { %18270 = vst [vmem:[#allocation21_spill] sm:$0xff] %v14953_v26  ;;  %18271 = vst [vmem:[#allocation189_spill] sm:$0xff] %v14955_v18  ;;  %v14963_v63 = vadd.f32 %v2206_v15, %v1363_v24  ;;  %v14965_v41 = vadd.f32 %v2479_v36, %v1636_v38  ;;  %v1367_v40 = vadd.f32 %v18279_v13, %v18278_v1  ;;  %v18281_v18 = vld [vmem:[#allocation210_spill] sm:$0xff]  ;;  %v18284_v38 = vld [vmem:[#allocation43_spill] sm:$0xff] }
 0x2d9   :  { %v2208_v50 = vpop.f32.mrf.mxu0  ;;  %v2481_v14 = vpop.f32.mrf.mxu1  ;;  %v1640_v26 = vadd.f32 %v18281_v18, %v18280_v22  ;;  %v18285_v36 = vld [vmem:[#allocation211_spill] sm:$0xff]  ;;  %v18290_v1 = vld [vmem:[#allocation45_spill] sm:$0xff] }
 0x2da   :  { %18276 = vst [vmem:[#allocation22_spill] sm:$0xff] %v14963_v63  ;;  %18277 = vst [vmem:[#allocation190_spill] sm:$0xff] %v14965_v41  ;;  %v14974_v52 = vadd.f32 %v2208_v50, %v1365_v49  ;;  %v14976_v5 = vadd.f32 %v2481_v14, %v1638_v59  ;;  %v1371_v58 = vadd.f32 %v18285_v36, %v18284_v38  ;;  %v18287_v41 = vld [vmem:[#allocation212_spill] sm:$0xff]  ;;  %v18291_v13 = vld [vmem:[#allocation213_spill] sm:$0xff] }
 0x2db   :  { %v2210_v24 = vpop.f32.mrf.mxu0  ;;  %v2483_v15 = vpop.f32.mrf.mxu1  ;;  %v1644_v63 = vadd.f32 %v18287_v41, %v18286_v8  ;;  %v1373_v4 = vadd.f32 %v18291_v13, %v18290_v1  ;;  %v18292_v59 = vld [vmem:[#allocation46_spill] sm:$0xff]  ;;  %v18298_v36 = vld [vmem:[#allocation48_spill] sm:$0xff] }
 0x2dc   :  { %18282 = vst [vmem:[#allocation23_spill] sm:$0xff] %v14974_v52  ;;  %18283 = vst [vmem:[#allocation191_spill] sm:$0xff] %v14976_v5  ;;  %v14982_v12 = vadd.f32 %v2210_v24, %v1367_v40  ;;  %v14984_v45 = vadd.f32 %v2483_v15, %v1640_v26  ;;  %v18293_v50 = vld [vmem:[#allocation214_spill] sm:$0xff]  ;;  %v18296_v40 = vld [vmem:[#allocation47_spill] sm:$0xff] }
 0x2dd   :  { %v2214_v18 = vpop.f32.mrf.mxu0  ;;  %v2487_v49 = vpop.f32.mrf.mxu1  ;;  %11271 = vmatmul.mubr.msk.bf16.gmra.mxu0 %vm404_vm1, %v12242_v9  ;;  %11296 = vmatmul.mubr.msk.bf16.gmra.mxu1 %vm404_vm1, %v12242_v9  ;;  %v1646_v14 = vadd.f32 %v18293_v50, %v18292_v59  ;;  %v18297_v24 = vld [vmem:[#allocation215_spill] sm:$0xff]  ;;  %v18299_v8 = vld [vmem:[#allocation216_spill] sm:$0xff]  ;;  %v18303_v59 = vld [vmem:[#allocation217_spill] sm:$0xff] }
 0x2de   :  { %18288 = vst [vmem:[#allocation24_spill] sm:$0xff] %v14982_v12  ;;  %18289 = vst [vmem:[#allocation192_spill] sm:$0xff] %v14984_v45  ;;  %v14992_v22 = vadd.f32 %v2214_v18, %v1371_v58  ;;  %v14994_v38 = vadd.f32 %v2487_v49, %v1644_v63  ;;  %3258 = vmatprep.mubr.bf16.mxu0 %v17943_v60  ;;  %3531 = vmatprep.mubr.bf16.mxu1 %v17943_v60  ;;  %v12243_v63 = vld [vmem:[%s17876_s0 + $0x50] sm:$0xff]  }
 0x2df   :  { %v2216_v26 = vpop.f32.mrf.mxu0  ;;  %v2489_v41 = vpop.f32.mrf.mxu1  ;;  %v1375_v15 = vadd.f32 %v18297_v24, %v18296_v40  ;;  %v1648_v1 = vadd.f32 %v18299_v8, %v18298_v36  ;;  %v18302_v49 = vld [vmem:[#allocation49_spill] sm:$0xff]  ;;  %v18310_v8 = vld [vmem:[#allocation52_spill] sm:$0xff] }
 0x2e0   :  { %18294 = vst [vmem:[#allocation25_spill] sm:$0xff] %v14992_v22  ;;  %18295 = vst [vmem:[#allocation193_spill] sm:$0xff] %v14994_v38  ;;  %v15002_v9 = vadd.f32 %v2216_v26, %v1373_v4  ;;  %v15004_v13 = vadd.f32 %v2489_v41, %v1646_v14  ;;  %v1377_v50 = vadd.f32 %v18303_v59, %v18302_v49  ;;  %v18304_v38 = vld [vmem:[#allocation50_spill] sm:$0xff]  ;;  %v18308_v14 = vld [vmem:[#allocation51_spill] sm:$0xff] }
 0x2e1   :  { %v2218_v58 = vpop.f32.mrf.mxu0  ;;  %v2491_v18 = vpop.f32.mrf.mxu1  ;;  %v18305_v22 = vld [vmem:[#allocation218_spill] sm:$0xff]  ;;  %v18309_v41 = vld [vmem:[#allocation219_spill] sm:$0xff]  ;;  %v18314_v49 = vld [vmem:[#allocation53_spill] sm:$0xff] }
 0x2e2   :  { %18300 = vst [vmem:[#allocation26_spill] sm:$0xff] %v15002_v9  ;;  %18301 = vst [vmem:[#allocation194_spill] sm:$0xff] %v15004_v13  ;;  %v1650_v45 = vadd.f32 %v18305_v22, %v18304_v38  ;;  %v15013_v40 = vadd.f32 %v2218_v58, %v1375_v15  ;;  %v15015_v24 = vadd.f32 %v2491_v18, %v1648_v1  ;;  %v18311_v13 = vld [vmem:[#allocation220_spill] sm:$0xff]  ;;  %v18315_v59 = vld [vmem:[#allocation221_spill] sm:$0xff] }
 0x2e3   :  { %v2220_v4 = vpop.f32.mrf.mxu0  ;;  %v2493_v26 = vpop.f32.mrf.mxu1  ;;  %v1381_v36 = vadd.f32 %v18309_v41, %v18308_v14  ;;  %v1654_v9 = vadd.f32 %v18311_v13, %v18310_v8  ;;  %v1383_v52 = vadd.f32 %v18315_v59, %v18314_v49  ;;  %v18316_v15 = vld [vmem:[#allocation54_spill] sm:$0xff]  ;;  %v18322_v41 = vld [vmem:[#allocation56_spill] sm:$0xff] }
 0x2e4   :  { %18306 = vst [vmem:[#allocation27_spill] sm:$0xff] %v15013_v40  ;;  %18307 = vst [vmem:[#allocation195_spill] sm:$0xff] %v15015_v24  ;;  %v15021_v12 = vadd.f32 %v2220_v4, %v1377_v50  ;;  %v15023_v5 = vadd.f32 %v2493_v26, %v1650_v45  ;;  %v18317_v1 = vld [vmem:[#allocation222_spill] sm:$0xff]  ;;  %v18320_v50 = vld [vmem:[#allocation55_spill] sm:$0xff] }
 0x2e5   :  { %v2224_v22 = vpop.f32.mrf.mxu0  ;;  %v2497_v38 = vpop.f32.mrf.mxu1  ;;  %11272 = vmatmul.mubr.msk.bf16.gmra.mxu0 %vm404_vm1, %v12243_v63  ;;  %11297 = vmatmul.mubr.msk.bf16.gmra.mxu1 %vm404_vm1, %v12243_v63  ;;  %v1656_v58 = vadd.f32 %v18317_v1, %v18316_v15  ;;  %v18321_v4 = vld [vmem:[#allocation223_spill] sm:$0xff]  ;;  %v18323_v8 = vld [vmem:[#allocation224_spill] sm:$0xff]  ;;  %v18327_v15 = vld [vmem:[#allocation225_spill] sm:$0xff] }
 0x2e6   :  { %18312 = vst [vmem:[#allocation28_spill] sm:$0xff] %v15021_v12  ;;  %18313 = vst [vmem:[#allocation196_spill] sm:$0xff] %v15023_v5  ;;  %v15031_v18 = vadd.f32 %v2224_v22, %v1381_v36  ;;  %v15033_v14 = vadd.f32 %v2497_v38, %v1654_v9  ;;  %3268 = vmatprep.mubr.bf16.mxu0 %v17943_v60  ;;  %3541 = vmatprep.mubr.bf16.mxu1 %v17943_v60  ;;  %v12244_v9 = vld [vmem:[%s17876_s0 + $0x58] sm:$0xff]  }
 0x2e7   :  { %v2226_v45 = vpop.f32.mrf.mxu0  ;;  %v2499_v13 = vpop.f32.mrf.mxu1  ;;  %v1385_v26 = vadd.f32 %v18321_v4, %v18320_v50  ;;  %v1658_v49 = vadd.f32 %v18323_v8, %v18322_v41  ;;  %v18326_v38 = vld [vmem:[#allocation57_spill] sm:$0xff]  ;;  %v18334_v8 = vld [vmem:[#allocation60_spill] sm:$0xff] }
 0x2e8   :  { %18318 = vst [vmem:[#allocation29_spill] sm:$0xff] %v15031_v18  ;;  %18319 = vst [vmem:[#allocation197_spill] sm:$0xff] %v15033_v14  ;;  %v15041_v63 = vadd.f32 %v2226_v45, %v1383_v52  ;;  %v15043_v59 = vadd.f32 %v2499_v13, %v1656_v58  ;;  %v1387_v1 = vadd.f32 %v18327_v15, %v18326_v38  ;;  %v18328_v14 = vld [vmem:[#allocation58_spill] sm:$0xff]  ;;  %v18332_v58 = vld [vmem:[#allocation59_spill] sm:$0xff] }
 0x2e9   :  { %v2228_v36 = vpop.f32.mrf.mxu0  ;;  %v2501_v22 = vpop.f32.mrf.mxu1  ;;  %v18329_v18 = vld [vmem:[#allocation226_spill] sm:$0xff]  ;;  %v18333_v13 = vld [vmem:[#allocation227_spill] sm:$0xff]  ;;  %v18338_v38 = vld [vmem:[#allocation61_spill] sm:$0xff] }
 0x2ea   :  { %18324 = vst [vmem:[#allocation30_spill] sm:$0xff] %v15041_v63  ;;  %18325 = vst [vmem:[#allocation198_spill] sm:$0xff] %v15043_v59  ;;  %v1660_v5 = vadd.f32 %v18329_v18, %v18328_v14  ;;  %v15052_v50 = vadd.f32 %v2228_v36, %v1385_v26  ;;  %v15054_v4 = vadd.f32 %v2501_v22, %v1658_v49  ;;  %v18335_v59 = vld [vmem:[#allocation228_spill] sm:$0xff]  ;;  %v18339_v15 = vld [vmem:[#allocation229_spill] sm:$0xff] }
 0x2eb   :  { %v2230_v52 = vpop.f32.mrf.mxu0  ;;  %v2503_v45 = vpop.f32.mrf.mxu1  ;;  %v1391_v41 = vadd.f32 %v18333_v13, %v18332_v58  ;;  %v1664_v63 = vadd.f32 %v18335_v59, %v18334_v8  ;;  %v1393_v40 = vadd.f32 %v18339_v15, %v18338_v38  ;;  %v18340_v26 = vld [vmem:[#allocation62_spill] sm:$0xff]  ;;  %v18346_v13 = vld [vmem:[#allocation64_spill] sm:$0xff] }
 0x2ec   :  { %18330 = vst [vmem:[#allocation31_spill] sm:$0xff] %v15052_v50  ;;  %18331 = vst [vmem:[#allocation199_spill] sm:$0xff] %v15054_v4  ;;  %v15060_v12 = vadd.f32 %v2230_v52, %v1387_v1  ;;  %v15062_v24 = vadd.f32 %v2503_v45, %v1660_v5  ;;  %v18341_v49 = vld [vmem:[#allocation230_spill] sm:$0xff]  ;;  %v18344_v1 = vld [vmem:[#allocation63_spill] sm:$0xff] }
 0x2ed   :  { %v2234_v18 = vpop.f32.mrf.mxu0  ;;  %v2507_v14 = vpop.f32.mrf.mxu1  ;;  %11273 = vmatmul.mubr.msk.bf16.gmra.mxu0 %vm404_vm1, %v12244_v9  ;;  %11298 = vmatmul.mubr.msk.bf16.gmra.mxu1 %vm404_vm1, %v12244_v9  ;;  %v1666_v36 = vadd.f32 %v18341_v49, %v18340_v26  ;;  %v18345_v52 = vld [vmem:[#allocation231_spill] sm:$0xff]  ;;  %v18347_v8 = vld [vmem:[#allocation232_spill] sm:$0xff]  ;;  %v18351_v26 = vld [vmem:[#allocation233_spill] sm:$0xff] }
 0x2ee   :  { %18336 = vst [vmem:[#allocation32_spill] sm:$0xff] %v15060_v12  ;;  %18337 = vst [vmem:[#allocation200_spill] sm:$0xff] %v15062_v24  ;;  %v15070_v22 = vadd.f32 %v2234_v18, %v1391_v41  ;;  %v15072_v58 = vadd.f32 %v2507_v14, %v1664_v63  ;;  %3278 = vmatprep.mubr.bf16.mxu0 %v17943_v60  ;;  %3551 = vmatprep.mubr.bf16.mxu1 %v17943_v60  ;;  %v12245_v63 = vld [vmem:[%s17876_s0 + $0x60] sm:$0xff]   ;;  %v18350_v14 = vld [vmem:[#allocation65_spill] sm:$0xff] }
 0x2ef   :  { %v2236_v5 = vpop.f32.mrf.mxu0  ;;  %v2509_v59 = vpop.f32.mrf.mxu1  ;;  %v1395_v45 = vadd.f32 %v18345_v52, %v18344_v1  ;;  %v1668_v38 = vadd.f32 %v18347_v8, %v18346_v13  ;;  %v1397_v49 = vadd.f32 %v18351_v26, %v18350_v14  ;;  %v18358_v8 = vld [vmem:[#allocation68_spill] sm:$0xff]  ;;  %v18362_v14 = vld [vmem:[#allocation69_spill] sm:$0xff] }
 0x2f0   :  { %18342 = vst [vmem:[#allocation33_spill] sm:$0xff] %v15070_v22  ;;  %18343 = vst [vmem:[#allocation201_spill] sm:$0xff] %v15072_v58  ;;  %v15080_v9 = vadd.f32 %v2236_v5, %v1393_v40  ;;  %v15082_v15 = vadd.f32 %v2509_v59, %v1666_v36  ;;  %v18352_v58 = vld [vmem:[#allocation66_spill] sm:$0xff]  ;;  %v18356_v36 = vld [vmem:[#allocation67_spill] sm:$0xff] }
 0x2f1   :  { %v2238_v41 = vpop.f32.mrf.mxu0  ;;  %v2511_v18 = vpop.f32.mrf.mxu1  ;;  %v18353_v22 = vld [vmem:[#allocation234_spill] sm:$0xff]  ;;  %v18357_v59 = vld [vmem:[#allocation235_spill] sm:$0xff]  ;;  %v18363_v26 = vld [vmem:[#allocation237_spill] sm:$0xff] }
 0x2f2   :  { %18348 = vst [vmem:[#allocation34_spill] sm:$0xff] %v15080_v9  ;;  %18349 = vst [vmem:[#allocation202_spill] sm:$0xff] %v15082_v15  ;;  %v1670_v24 = vadd.f32 %v18353_v22, %v18352_v58  ;;  %v15091_v1 = vadd.f32 %v2238_v41, %v1395_v45  ;;  %v15093_v52 = vadd.f32 %v2511_v18, %v1668_v38  ;;  %v18359_v15 = vld [vmem:[#allocation236_spill] sm:$0xff]  ;;  %v18364_v45 = vld [vmem:[#allocation70_spill] sm:$0xff] }
 0x2f3   :  { %v2240_v40 = vpop.f32.mrf.mxu0  ;;  %v2513_v5 = vpop.f32.mrf.mxu1  ;;  %v1401_v13 = vadd.f32 %v18357_v59, %v18356_v36  ;;  %v1674_v9 = vadd.f32 %v18359_v15, %v18358_v8  ;;  %v1403_v50 = vadd.f32 %v18363_v26, %v18362_v14  ;;  %v18365_v38 = vld [vmem:[#allocation238_spill] sm:$0xff]  ;;  %v18370_v59 = vld [vmem:[#allocation72_spill] sm:$0xff] }
 0x2f4   :  { %18354 = vst [vmem:[#allocation35_spill] sm:$0xff] %v15091_v1  ;;  %18355 = vst [vmem:[#allocation203_spill] sm:$0xff] %v15093_v52  ;;  %v15099_v12 = vadd.f32 %v2240_v40, %v1397_v49  ;;  %v15101_v4 = vadd.f32 %v2513_v5, %v1670_v24  ;;  %v1676_v41 = vadd.f32 %v18365_v38, %v18364_v45  ;;  %v18368_v49 = vld [vmem:[#allocation71_spill] sm:$0xff]  ;;  %v18371_v8 = vld [vmem:[#allocation240_spill] sm:$0xff] }
 0x2f5   :  { %v2244_v22 = vpop.f32.mrf.mxu0  ;;  %v2517_v58 = vpop.f32.mrf.mxu1  ;;  %11274 = vmatmul.mubr.msk.bf16.gmra.mxu0 %vm404_vm1, %v12245_v63  ;;  %11299 = vmatmul.mubr.msk.bf16.gmra.mxu1 %vm404_vm1, %v12245_v63  ;;  %v18369_v40 = vld [vmem:[#allocation239_spill] sm:$0xff]  ;;  %v1678_v14 = vadd.f32 %v18371_v8, %v18370_v59  ;;  %v18375_v45 = vld [vmem:[#allocation241_spill] sm:$0xff]  ;;  %v18382_v8 = vld [vmem:[#allocation76_spill] sm:$0xff] }
 0x2f6   :  { %18360 = vst [vmem:[#allocation36_spill] sm:$0xff] %v15099_v12  ;;  %18361 = vst [vmem:[#allocation204_spill] sm:$0xff] %v15101_v4  ;;  %v15109_v18 = vadd.f32 %v2244_v22, %v1401_v13  ;;  %v15111_v36 = vadd.f32 %v2517_v58, %v1674_v9  ;;  %3288 = vmatprep.mubr.bf16.mxu0 %v17943_v60  ;;  %3561 = vmatprep.mubr.bf16.mxu1 %v17943_v60  ;;  %v12246_v9 = vld [vmem:[%s17876_s0 + $0x68] sm:$0xff]   ;;  %v18374_v58 = vld [vmem:[#allocation73_spill] sm:$0xff] }
 0x2f7   :  { %v2246_v24 = vpop.f32.mrf.mxu0  ;;  %v2519_v15 = vpop.f32.mrf.mxu1  ;;  %v1405_v5 = vadd.f32 %v18369_v40, %v18368_v49  ;;  %v1407_v38 = vadd.f32 %v18375_v45, %v18374_v58  ;;  %v18386_v58 = vld [vmem:[#allocation77_spill] sm:$0xff] }
 0x2f8   :  { %18366 = vst [vmem:[#allocation37_spill] sm:$0xff] %v15109_v18  ;;  %18367 = vst [vmem:[#allocation205_spill] sm:$0xff] %v15111_v36  ;;  %v15119_v63 = vadd.f32 %v2246_v24, %v1403_v50  ;;  %v15121_v26 = vadd.f32 %v2519_v15, %v1676_v41  ;;  %v18376_v36 = vld [vmem:[#allocation74_spill] sm:$0xff]  ;;  %v18380_v41 = vld [vmem:[#allocation75_spill] sm:$0xff] }
 0x2f9   :  { %v2248_v13 = vpop.f32.mrf.mxu0  ;;  %v2521_v22 = vpop.f32.mrf.mxu1  ;;  %v18377_v18 = vld [vmem:[#allocation242_spill] sm:$0xff]  ;;  %v18381_v15 = vld [vmem:[#allocation243_spill] sm:$0xff]  ;;  %v18387_v45 = vld [vmem:[#allocation245_spill] sm:$0xff] }
 0x2fa   :  { %18372 = vst [vmem:[#allocation38_spill] sm:$0xff] %v15119_v63  ;;  %18373 = vst [vmem:[#allocation206_spill] sm:$0xff] %v15121_v26  ;;  %v1680_v4 = vadd.f32 %v18377_v18, %v18376_v36  ;;  %v15130_v49 = vadd.f32 %v2248_v13, %v1405_v5  ;;  %v15132_v40 = vadd.f32 %v2521_v22, %v1678_v14  ;;  %v18383_v26 = vld [vmem:[#allocation244_spill] sm:$0xff]  ;;  %v18388_v5 = vld [vmem:[#allocation78_spill] sm:$0xff] }
 0x2fb   :  { %v2250_v50 = vpop.f32.mrf.mxu0  ;;  %v2523_v24 = vpop.f32.mrf.mxu1  ;;  %v1411_v59 = vadd.f32 %v18381_v15, %v18380_v41  ;;  %v1684_v63 = vadd.f32 %v18383_v26, %v18382_v8  ;;  %v1413_v1 = vadd.f32 %v18387_v45, %v18386_v58  ;;  %v18389_v14 = vld [vmem:[#allocation246_spill] sm:$0xff]  ;;  %v18394_v15 = vld [vmem:[#allocation80_spill] sm:$0xff] }
 0x2fc   :  { %18378 = vst [vmem:[#allocation39_spill] sm:$0xff] %v15130_v49  ;;  %18379 = vst [vmem:[#allocation207_spill] sm:$0xff] %v15132_v40  ;;  %v15138_v12 = vadd.f32 %v2250_v50, %v1407_v38  ;;  %v15140_v52 = vadd.f32 %v2523_v24, %v1680_v4  ;;  %v1686_v13 = vadd.f32 %v18389_v14, %v18388_v5  ;;  %v18392_v38 = vld [vmem:[#allocation79_spill] sm:$0xff]  ;;  %v18395_v8 = vld [vmem:[#allocation248_spill] sm:$0xff] }
 0x2fd   :  { %v2254_v18 = vpop.f32.mrf.mxu0  ;;  %v2527_v36 = vpop.f32.mrf.mxu1  ;;  %11275 = vmatmul.mubr.msk.bf16.gmra.mxu0 %vm404_vm1, %v12246_v9  ;;  %11300 = vmatmul.mubr.msk.bf16.gmra.mxu1 %vm404_vm1, %v12246_v9  ;;  %v18393_v50 = vld [vmem:[#allocation247_spill] sm:$0xff]  ;;  %v1688_v58 = vadd.f32 %v18395_v8, %v18394_v15  ;;  %v18399_v5 = vld [vmem:[#allocation249_spill] sm:$0xff]  ;;  %v18406_v8 = vld [vmem:[#allocation84_spill] sm:$0xff] }
 0x2fe   :  { %18384 = vst [vmem:[#allocation40_spill] sm:$0xff] %v15138_v12  ;;  %18385 = vst [vmem:[#allocation208_spill] sm:$0xff] %v15140_v52  ;;  %v15148_v22 = vadd.f32 %v2254_v18, %v1411_v59  ;;  %v15150_v41 = vadd.f32 %v2527_v36, %v1684_v63  ;;  %3298 = vmatprep.mubr.bf16.mxu0 %v17943_v60  ;;  %3571 = vmatprep.mubr.bf16.mxu1 %v17943_v60  ;;  %v12247_v63 = vld [vmem:[%s17876_s0 + $0x70] sm:$0xff]  }
 0x2ff   :  { %v2256_v4 = vpop.f32.mrf.mxu0  ;;  %v2529_v26 = vpop.f32.mrf.mxu1  ;;  %v1415_v24 = vadd.f32 %v18393_v50, %v18392_v38  ;;  %v18398_v36 = vld [vmem:[#allocation81_spill] sm:$0xff] }
 0x300   :  { %18390 = vst [vmem:[#allocation41_spill] sm:$0xff] %v15148_v22  ;;  %18391 = vst [vmem:[#allocation209_spill] sm:$0xff] %v15150_v41  ;;  %v15158_v9 = vadd.f32 %v2256_v4, %v1413_v1  ;;  %v15160_v45 = vadd.f32 %v2529_v26, %v1686_v13  ;;  %v1417_v14 = vadd.f32 %v18399_v5, %v18398_v36  ;;  %v18400_v41 = vld [vmem:[#allocation82_spill] sm:$0xff]  ;;  %v18404_v13 = vld [vmem:[#allocation83_spill] sm:$0xff] }
 0x301   :  { %v2258_v59 = vpop.f32.mrf.mxu0  ;;  %v2531_v18 = vpop.f32.mrf.mxu1  ;;  %v18401_v22 = vld [vmem:[#allocation250_spill] sm:$0xff]  ;;  %v18405_v26 = vld [vmem:[#allocation251_spill] sm:$0xff]  ;;  %v18410_v36 = vld [vmem:[#allocation85_spill] sm:$0xff] }
 0x302   :  { %18396 = vst [vmem:[#allocation42_spill] sm:$0xff] %v15158_v9  ;;  %18397 = vst [vmem:[#allocation210_spill] sm:$0xff] %v15160_v45  ;;  %v1690_v52 = vadd.f32 %v18401_v22, %v18400_v41  ;;  %v15169_v38 = vadd.f32 %v2258_v59, %v1415_v24  ;;  %v15171_v50 = vadd.f32 %v2531_v18, %v1688_v58  ;;  %v18407_v45 = vld [vmem:[#allocation252_spill] sm:$0xff]  ;;  %v18411_v5 = vld [vmem:[#allocation253_spill] sm:$0xff] }
 0x303   :  { %v2260_v1 = vpop.f32.mrf.mxu0  ;;  %v2533_v4 = vpop.f32.mrf.mxu1  ;;  %v1421_v15 = vadd.f32 %v18405_v26, %v18404_v13  ;;  %v1694_v9 = vadd.f32 %v18407_v45, %v18406_v8  ;;  %v1423_v49 = vadd.f32 %v18411_v5, %v18410_v36  ;;  %v18412_v24 = vld [vmem:[#allocation86_spill] sm:$0xff]  ;;  %v18418_v26 = vld [vmem:[#allocation88_spill] sm:$0xff] }
 0x304   :  { %18402 = vst [vmem:[#allocation43_spill] sm:$0xff] %v15169_v38  ;;  %18403 = vst [vmem:[#allocation211_spill] sm:$0xff] %v15171_v50  ;;  %v15177_v12 = vadd.f32 %v2260_v1, %v1417_v14  ;;  %v15179_v40 = vadd.f32 %v2533_v4, %v1690_v52  ;;  %v18413_v58 = vld [vmem:[#allocation254_spill] sm:$0xff]  ;;  %v18416_v14 = vld [vmem:[#allocation87_spill] sm:$0xff] }
 0x305   :  { %v2264_v22 = vpop.f32.mrf.mxu0  ;;  %v2537_v41 = vpop.f32.mrf.mxu1  ;;  %11276 = vmatmul.mubr.msk.bf16.gmra.mxu0 %vm404_vm1, %v12247_v63  ;;  %11301 = vmatmul.mubr.msk.bf16.gmra.mxu1 %vm404_vm1, %v12247_v63  ;;  %v1696_v59 = vadd.f32 %v18413_v58, %v18412_v24  ;;  %v18417_v1 = vld [vmem:[#allocation255_spill] sm:$0xff]  ;;  %v18419_v8 = vld [vmem:[#allocation256_spill] sm:$0xff]  ;;  %v18423_v24 = vld [vmem:[#allocation257_spill] sm:$0xff] }
 0x306   :  { %18408 = vst [vmem:[#allocation44_spill] sm:$0xff] %v15177_v12  ;;  %18409 = vst [vmem:[#allocation212_spill] sm:$0xff] %v15179_v40  ;;  %v15187_v18 = vadd.f32 %v2264_v22, %v1421_v15  ;;  %v15189_v13 = vadd.f32 %v2537_v41, %v1694_v9  ;;  %3308 = vmatprep.mubr.bf16.mxu0 %v17943_v60  ;;  %3581 = vmatprep.mubr.bf16.mxu1 %v17943_v60  ;;  %v12248_v9 = vld [vmem:[%s17876_s0 + $0x78] sm:$0xff]  }
 0x307   :  { %v2266_v52 = vpop.f32.mrf.mxu0  ;;  %v2539_v45 = vpop.f32.mrf.mxu1  ;;  %v1425_v4 = vadd.f32 %v18417_v1, %v18416_v14  ;;  %v1698_v36 = vadd.f32 %v18419_v8, %v18418_v26  ;;  %v18422_v41 = vld [vmem:[#allocation89_spill] sm:$0xff]  ;;  %v18430_v8 = vld [vmem:[#allocation92_spill] sm:$0xff] }
 0x308   :  { %18414 = vst [vmem:[#allocation45_spill] sm:$0xff] %v15187_v18  ;;  %18415 = vst [vmem:[#allocation213_spill] sm:$0xff] %v15189_v13  ;;  %v15197_v63 = vadd.f32 %v2266_v52, %v1423_v49  ;;  %v15199_v5 = vadd.f32 %v2539_v45, %v1696_v59  ;;  %v1427_v58 = vadd.f32 %v18423_v24, %v18422_v41  ;;  %v18424_v13 = vld [vmem:[#allocation90_spill] sm:$0xff]  ;;  %v18428_v59 = vld [vmem:[#allocation91_spill] sm:$0xff] }
 0x309   :  { %v2268_v15 = vpop.f32.mrf.mxu0  ;;  %v2541_v22 = vpop.f32.mrf.mxu1  ;;  %v18425_v18 = vld [vmem:[#allocation258_spill] sm:$0xff]  ;;  %v18429_v45 = vld [vmem:[#allocation259_spill] sm:$0xff]  ;;  %v18434_v41 = vld [vmem:[#allocation93_spill] sm:$0xff] }
 0x30a   :  { %18420 = vst [vmem:[#allocation46_spill] sm:$0xff] %v15197_v63  ;;  %18421 = vst [vmem:[#allocation214_spill] sm:$0xff] %v15199_v5  ;;  %v1700_v40 = vadd.f32 %v18425_v18, %v18424_v13  ;;  %v15208_v14 = vadd.f32 %v2268_v15, %v1425_v4  ;;  %v15210_v1 = vadd.f32 %v2541_v22, %v1698_v36  ;;  %v18431_v5 = vld [vmem:[#allocation260_spill] sm:$0xff]  ;;  %v18435_v24 = vld [vmem:[#allocation261_spill] sm:$0xff] }
 0x30b   :  { %v2270_v49 = vpop.f32.mrf.mxu0  ;;  %v2543_v52 = vpop.f32.mrf.mxu1  ;;  %v1431_v26 = vadd.f32 %v18429_v45, %v18428_v59  ;;  %v1704_v63 = vadd.f32 %v18431_v5, %v18430_v8  ;;  %v1433_v38 = vadd.f32 %v18435_v24, %v18434_v41  ;;  %v18436_v4 = vld [vmem:[#allocation94_spill] sm:$0xff]  ;;  %v18442_v45 = vld [vmem:[#allocation96_spill] sm:$0xff] }
 0x30c   :  { %18426 = vst [vmem:[#allocation47_spill] sm:$0xff] %v15208_v14  ;;  %18427 = vst [vmem:[#allocation215_spill] sm:$0xff] %v15210_v1  ;;  %v15216_v12 = vadd.f32 %v2270_v49, %v1427_v58  ;;  %v15218_v50 = vadd.f32 %v2543_v52, %v1700_v40  ;;  %v18437_v36 = vld [vmem:[#allocation262_spill] sm:$0xff]  ;;  %v18440_v58 = vld [vmem:[#allocation95_spill] sm:$0xff] }
 0x30d   :  { %v2274_v18 = vpop.f32.mrf.mxu0  ;;  %v2547_v13 = vpop.f32.mrf.mxu1  ;;  %11277 = vmatmul.mubr.msk.bf16.gmra.mxu0 %vm404_vm1, %v12248_v9  ;;  %11302 = vmatmul.mubr.msk.bf16.gmra.mxu1 %vm404_vm1, %v12248_v9  ;;  %v1706_v15 = vadd.f32 %v18437_v36, %v18436_v4  ;;  %v18441_v49 = vld [vmem:[#allocation263_spill] sm:$0xff]  ;;  %v18443_v8 = vld [vmem:[#allocation264_spill] sm:$0xff]  ;;  %v18447_v4 = vld [vmem:[#allocation265_spill] sm:$0xff] }
 0x30e   :  { %18432 = vst [vmem:[#allocation48_spill] sm:$0xff] %v15216_v12  ;;  %18433 = vst [vmem:[#allocation216_spill] sm:$0xff] %v15218_v50  ;;  %v15226_v22 = vadd.f32 %v2274_v18, %v1431_v26  ;;  %v15228_v59 = vadd.f32 %v2547_v13, %v1704_v63  ;;  %3318 = vmatprep.mubr.bf16.mxu0 %v17943_v60  ;;  %3591 = vmatprep.mubr.bf16.mxu1 %v17943_v60  ;;  %v12255_v63 = vld [vmem:[%s17876_s0 + $0x80] sm:$0xff]   ;;  %v18446_v13 = vld [vmem:[#allocation97_spill] sm:$0xff] }
 0x30f   :  { %v2276_v40 = vpop.f32.mrf.mxu0  ;;  %v2549_v5 = vpop.f32.mrf.mxu1  ;;  %v1435_v52 = vadd.f32 %v18441_v49, %v18440_v58  ;;  %v1708_v41 = vadd.f32 %v18443_v8, %v18442_v45  ;;  %v1437_v36 = vadd.f32 %v18447_v4, %v18446_v13  ;;  %v18454_v8 = vld [vmem:[#allocation100_spill] sm:$0xff]  ;;  %v18458_v13 = vld [vmem:[#allocation101_spill] sm:$0xff] }
 0x310   :  { %18438 = vst [vmem:[#allocation49_spill] sm:$0xff] %v15226_v22  ;;  %18439 = vst [vmem:[#allocation217_spill] sm:$0xff] %v15228_v59  ;;  %v15236_v9 = vadd.f32 %v2276_v40, %v1433_v38  ;;  %v15238_v24 = vadd.f32 %v2549_v5, %v1706_v15  ;;  %v18448_v59 = vld [vmem:[#allocation98_spill] sm:$0xff]  ;;  %v18452_v15 = vld [vmem:[#allocation99_spill] sm:$0xff] }
 0x311   :  { %v2278_v26 = vpop.f32.mrf.mxu0  ;;  %v2551_v18 = vpop.f32.mrf.mxu1  ;;  %v18449_v22 = vld [vmem:[#allocation266_spill] sm:$0xff]  ;;  %v18453_v5 = vld [vmem:[#allocation267_spill] sm:$0xff]  ;;  %v18459_v4 = vld [vmem:[#allocation269_spill] sm:$0xff] }
 0x312   :  { %18444 = vst [vmem:[#allocation50_spill] sm:$0xff] %v15236_v9  ;;  %18445 = vst [vmem:[#allocation218_spill] sm:$0xff] %v15238_v24  ;;  %v1710_v50 = vadd.f32 %v18449_v22, %v18448_v59  ;;  %v15247_v58 = vadd.f32 %v2278_v26, %v1435_v52  ;;  %v15249_v49 = vadd.f32 %v2551_v18, %v1708_v41  ;;  %v18455_v24 = vld [vmem:[#allocation268_spill] sm:$0xff]  ;;  %v18460_v52 = vld [vmem:[#allocation102_spill] sm:$0xff] }
 0x313   :  { %v2280_v38 = vpop.f32.mrf.mxu0  ;;  %v2553_v40 = vpop.f32.mrf.mxu1  ;;  %v1441_v45 = vadd.f32 %v18453_v5, %v18452_v15  ;;  %v1714_v9 = vadd.f32 %v18455_v24, %v18454_v8  ;;  %v1443_v14 = vadd.f32 %v18459_v4, %v18458_v13  ;;  %v18461_v41 = vld [vmem:[#allocation270_spill] sm:$0xff]  ;;  %v18466_v5 = vld [vmem:[#allocation104_spill] sm:$0xff] }
 0x314   :  { %18450 = vst [vmem:[#allocation51_spill] sm:$0xff] %v15247_v58  ;;  %18451 = vst [vmem:[#allocation219_spill] sm:$0xff] %v15249_v49  ;;  %v15255_v12 = vadd.f32 %v2280_v38, %v1437_v36  ;;  %v15257_v1 = vadd.f32 %v2553_v40, %v1710_v50  ;;  %v1716_v26 = vadd.f32 %v18461_v41, %v18460_v52  ;;  %v18464_v36 = vld [vmem:[#allocation103_spill] sm:$0xff]  ;;  %v18467_v8 = vld [vmem:[#allocation272_spill] sm:$0xff] }
 0x315   :  { %v2284_v22 = vpop.f32.mrf.mxu0  ;;  %v2557_v59 = vpop.f32.mrf.mxu1  ;;  %11278 = vmatmul.mubr.msk.bf16.gmra.mxu0 %vm404_vm1, %v12255_v63  ;;  %11303 = vmatmul.mubr.msk.bf16.gmra.mxu1 %vm404_vm1, %v12255_v63  ;;  %v18465_v38 = vld [vmem:[#allocation271_spill] sm:$0xff]  ;;  %v1718_v13 = vadd.f32 %v18467_v8, %v18466_v5  ;;  %v18471_v52 = vld [vmem:[#allocation273_spill] sm:$0xff]  ;;  %v18478_v8 = vld [vmem:[#allocation108_spill] sm:$0xff] }
 0x316   :  { %18456 = vst [vmem:[#allocation52_spill] sm:$0xff] %v15255_v12  ;;  %18457 = vst [vmem:[#allocation220_spill] sm:$0xff] %v15257_v1  ;;  %v15265_v18 = vadd.f32 %v2284_v22, %v1441_v45  ;;  %v15267_v15 = vadd.f32 %v2557_v59, %v1714_v9  ;;  %3328 = vmatprep.mubr.bf16.mxu0 %v17943_v60  ;;  %3601 = vmatprep.mubr.bf16.mxu1 %v17943_v60  ;;  %v12256_v9 = vld [vmem:[%s17876_s0 + $0x88] sm:$0xff]   ;;  %v18470_v59 = vld [vmem:[#allocation105_spill] sm:$0xff] }
 0x317   :  { %v2286_v50 = vpop.f32.mrf.mxu0  ;;  %v2559_v24 = vpop.f32.mrf.mxu1  ;;  %v1445_v40 = vadd.f32 %v18465_v38, %v18464_v36  ;;  %v1447_v41 = vadd.f32 %v18471_v52, %v18470_v59  ;;  %v18482_v59 = vld [vmem:[#allocation109_spill] sm:$0xff] }
 0x318   :  { %18462 = vst [vmem:[#allocation53_spill] sm:$0xff] %v15265_v18  ;;  %18463 = vst [vmem:[#allocation221_spill] sm:$0xff] %v15267_v15  ;;  %v15275_v63 = vadd.f32 %v2286_v50, %v1443_v14  ;;  %v15277_v4 = vadd.f32 %v2559_v24, %v1716_v26  ;;  %v18472_v15 = vld [vmem:[#allocation106_spill] sm:$0xff]  ;;  %v18476_v26 = vld [vmem:[#allocation107_spill] sm:$0xff] }
 0x319   :  { %v2288_v45 = vpop.f32.mrf.mxu0  ;;  %v2561_v22 = vpop.f32.mrf.mxu1  ;;  %v18473_v18 = vld [vmem:[#allocation274_spill] sm:$0xff]  ;;  %v18477_v24 = vld [vmem:[#allocation275_spill] sm:$0xff]  ;;  %v18483_v52 = vld [vmem:[#allocation277_spill] sm:$0xff] }
 0x31a   :  { %18468 = vst [vmem:[#allocation54_spill] sm:$0xff] %v15275_v63  ;;  %18469 = vst [vmem:[#allocation222_spill] sm:$0xff] %v15277_v4  ;;  %v1720_v1 = vadd.f32 %v18473_v18, %v18472_v15  ;;  %v15286_v36 = vadd.f32 %v2288_v45, %v1445_v40  ;;  %v15288_v38 = vadd.f32 %v2561_v22, %v1718_v13  ;;  %v18479_v4 = vld [vmem:[#allocation276_spill] sm:$0xff]  ;;  %v18484_v40 = vld [vmem:[#allocation110_spill] sm:$0xff] }
 0x31b   :  { %v2290_v14 = vpop.f32.mrf.mxu0  ;;  %v2563_v50 = vpop.f32.mrf.mxu1  ;;  %v1451_v5 = vadd.f32 %v18477_v24, %v18476_v26  ;;  %v1724_v63 = vadd.f32 %v18479_v4, %v18478_v8  ;;  %v1453_v58 = vadd.f32 %v18483_v52, %v18482_v59  ;;  %v18485_v13 = vld [vmem:[#allocation278_spill] sm:$0xff]  ;;  %v18490_v24 = vld [vmem:[#allocation112_spill] sm:$0xff] }
 0x31c   :  { %18474 = vst [vmem:[#allocation55_spill] sm:$0xff] %v15286_v36  ;;  %18475 = vst [vmem:[#allocation223_spill] sm:$0xff] %v15288_v38  ;;  %v15294_v12 = vadd.f32 %v2290_v14, %v1447_v41  ;;  %v15296_v49 = vadd.f32 %v2563_v50, %v1720_v1  ;;  %v1726_v45 = vadd.f32 %v18485_v13, %v18484_v40  ;;  %v18488_v41 = vld [vmem:[#allocation111_spill] sm:$0xff]  ;;  %v18491_v8 = vld [vmem:[#allocation280_spill] sm:$0xff] }
 0x31d   :  { %v2294_v18 = vpop.f32.mrf.mxu0  ;;  %v2567_v15 = vpop.f32.mrf.mxu1  ;;  %11279 = vmatmul.mubr.msk.bf16.gmra.mxu0 %vm404_vm1, %v12256_v9  ;;  %11304 = vmatmul.mubr.msk.bf16.gmra.mxu1 %vm404_vm1, %v12256_v9  ;;  %v18489_v14 = vld [vmem:[#allocation279_spill] sm:$0xff]  ;;  %v1728_v59 = vadd.f32 %v18491_v8, %v18490_v24  ;;  %v18495_v40 = vld [vmem:[#allocation281_spill] sm:$0xff]  ;;  %v18502_v8 = vld [vmem:[#allocation116_spill] sm:$0xff] }
 0x31e   :  { %18480 = vst [vmem:[#allocation56_spill] sm:$0xff] %v15294_v12  ;;  %18481 = vst [vmem:[#allocation224_spill] sm:$0xff] %v15296_v49  ;;  %v15304_v22 = vadd.f32 %v2294_v18, %v1451_v5  ;;  %v15306_v26 = vadd.f32 %v2567_v15, %v1724_v63  ;;  %3338 = vmatprep.mubr.bf16.mxu0 %v17943_v60  ;;  %3611 = vmatprep.mubr.bf16.mxu1 %v17943_v60  ;;  %v12257_v63 = vld [vmem:[%s17876_s0 + $0x90] sm:$0xff]  }
 0x31f   :  { %v2296_v1 = vpop.f32.mrf.mxu0  ;;  %v2569_v4 = vpop.f32.mrf.mxu1  ;;  %v1455_v50 = vadd.f32 %v18489_v14, %v18488_v41  ;;  %v18494_v15 = vld [vmem:[#allocation113_spill] sm:$0xff] }
 0x320   :  { %18486 = vst [vmem:[#allocation57_spill] sm:$0xff] %v15304_v22  ;;  %18487 = vst [vmem:[#allocation225_spill] sm:$0xff] %v15306_v26  ;;  %v15314_v9 = vadd.f32 %v2296_v1, %v1453_v58  ;;  %v15316_v52 = vadd.f32 %v2569_v4, %v1726_v45  ;;  %v1457_v13 = vadd.f32 %v18495_v40, %v18494_v15  ;;  %v18496_v26 = vld [vmem:[#allocation114_spill] sm:$0xff]  ;;  %v18500_v45 = vld [vmem:[#allocation115_spill] sm:$0xff] }
 0x321   :  { %v2298_v5 = vpop.f32.mrf.mxu0  ;;  %v2571_v18 = vpop.f32.mrf.mxu1  ;;  %v18497_v22 = vld [vmem:[#allocation282_spill] sm:$0xff]  ;;  %v18501_v4 = vld [vmem:[#allocation283_spill] sm:$0xff]  ;;  %v18506_v15 = vld [vmem:[#allocation117_spill] sm:$0xff] }
 0x322   :  { %18492 = vst [vmem:[#allocation58_spill] sm:$0xff] %v15314_v9  ;;  %18493 = vst [vmem:[#allocation226_spill] sm:$0xff] %v15316_v52  ;;  %v1730_v49 = vadd.f32 %v18497_v22, %v18496_v26  ;;  %v15325_v41 = vadd.f32 %v2298_v5, %v1455_v50  ;;  %v15327_v14 = vadd.f32 %v2571_v18, %v1728_v59  ;;  %v18503_v52 = vld [vmem:[#allocation284_spill] sm:$0xff]  ;;  %v18507_v40 = vld [vmem:[#allocation285_spill] sm:$0xff] }
 0x323   :  { %v2300_v58 = vpop.f32.mrf.mxu0  ;;  %v2573_v1 = vpop.f32.mrf.mxu1  ;;  %v1461_v24 = vadd.f32 %v18501_v4, %v18500_v45  ;;  %v1734_v9 = vadd.f32 %v18503_v52, %v18502_v8  ;;  %v1463_v36 = vadd.f32 %v18507_v40, %v18506_v15  ;;  %v18508_v50 = vld [vmem:[#allocation118_spill] sm:$0xff]  ;;  %v18514_v4 = vld [vmem:[#allocation120_spill] sm:$0xff] }
 0x324   :  { %18498 = vst [vmem:[#allocation59_spill] sm:$0xff] %v15325_v41  ;;  %18499 = vst [vmem:[#allocation227_spill] sm:$0xff] %v15327_v14  ;;  %v15333_v12 = vadd.f32 %v2300_v58, %v1457_v13  ;;  %v15335_v38 = vadd.f32 %v2573_v1, %v1730_v49  ;;  %v18509_v59 = vld [vmem:[#allocation286_spill] sm:$0xff]  ;;  %v18512_v13 = vld [vmem:[#allocation119_spill] sm:$0xff] }
 0x325   :  { %v2304_v22 = vpop.f32.mrf.mxu0  ;;  %v2577_v26 = vpop.f32.mrf.mxu1  ;;  %11280 = vmatmul.mubr.msk.bf16.gmra.mxu0 %vm404_vm1, %v12257_v63  ;;  %11305 = vmatmul.mubr.msk.bf16.gmra.mxu1 %vm404_vm1, %v12257_v63  ;;  %v1736_v5 = vadd.f32 %v18509_v59, %v18508_v50  ;;  %v18513_v58 = vld [vmem:[#allocation287_spill] sm:$0xff]  ;;  %v18515_v8 = vld [vmem:[#allocation288_spill] sm:$0xff]  ;;  %v18519_v50 = vld [vmem:[#allocation289_spill] sm:$0xff] }
 0x326   :  { %18504 = vst [vmem:[#allocation60_spill] sm:$0xff] %v15333_v12  ;;  %18505 = vst [vmem:[#allocation228_spill] sm:$0xff] %v15335_v38  ;;  %v15343_v18 = vadd.f32 %v2304_v22, %v1461_v24  ;;  %v15345_v45 = vadd.f32 %v2577_v26, %v1734_v9  ;;  %3348 = vmatprep.mubr.bf16.mxu0 %v17943_v60  ;;  %3621 = vmatprep.mubr.bf16.mxu1 %v17943_v60  ;;  %v12258_v9 = vld [vmem:[%s17876_s0 + $0x98] sm:$0xff]  }
 0x327   :  { %v2306_v49 = vpop.f32.mrf.mxu0  ;;  %v2579_v52 = vpop.f32.mrf.mxu1  ;;  %v1465_v1 = vadd.f32 %v18513_v58, %v18512_v13  ;;  %v1738_v15 = vadd.f32 %v18515_v8, %v18514_v4  ;;  %v18518_v26 = vld [vmem:[#allocation121_spill] sm:$0xff]  ;;  %v18526_v8 = vld [vmem:[#allocation124_spill] sm:$0xff] }
 0x328   :  { %18510 = vst [vmem:[#allocation61_spill] sm:$0xff] %v15343_v18  ;;  %18511 = vst [vmem:[#allocation229_spill] sm:$0xff] %v15345_v45  ;;  %v15353_v63 = vadd.f32 %v2306_v49, %v1463_v36  ;;  %v15355_v40 = vadd.f32 %v2579_v52, %v1736_v5  ;;  %v1467_v59 = vadd.f32 %v18519_v50, %v18518_v26  ;;  %v18520_v45 = vld [vmem:[#allocation122_spill] sm:$0xff]  ;;  %v18524_v5 = vld [vmem:[#allocation123_spill] sm:$0xff] }
 0x329   :  { %v2308_v24 = vpop.f32.mrf.mxu0  ;;  %v2581_v22 = vpop.f32.mrf.mxu1  ;;  %v18521_v18 = vld [vmem:[#allocation290_spill] sm:$0xff]  ;;  %v18525_v52 = vld [vmem:[#allocation291_spill] sm:$0xff]  ;;  %v18530_v26 = vld [vmem:[#allocation125_spill] sm:$0xff] }
 0x32a   :  { %18516 = vst [vmem:[#allocation62_spill] sm:$0xff] %v15353_v63  ;;  %18517 = vst [vmem:[#allocation230_spill] sm:$0xff] %v15355_v40  ;;  %v1740_v38 = vadd.f32 %v18521_v18, %v18520_v45  ;;  %v15364_v13 = vadd.f32 %v2308_v24, %v1465_v1  ;;  %v15366_v58 = vadd.f32 %v2581_v22, %v1738_v15  ;;  %v18527_v40 = vld [vmem:[#allocation292_spill] sm:$0xff]  ;;  %v18531_v50 = vld [vmem:[#allocation293_spill] sm:$0xff] }
 0x32b   :  { %v2310_v36 = vpop.f32.mrf.mxu0  ;;  %v2583_v49 = vpop.f32.mrf.mxu1  ;;  %v1471_v4 = vadd.f32 %v18525_v52, %v18524_v5  ;;  %v1744_v63 = vadd.f32 %v18527_v40, %v18526_v8  ;;  %v1473_v41 = vadd.f32 %v18531_v50, %v18530_v26  ;;  %v18532_v1 = vld [vmem:[#allocation126_spill] sm:$0xff]  ;;  %v18538_v52 = vld [vmem:[#allocation128_spill] sm:$0xff] }
 0x32c   :  { %18522 = vst [vmem:[#allocation63_spill] sm:$0xff] %v15364_v13  ;;  %18523 = vst [vmem:[#allocation231_spill] sm:$0xff] %v15366_v58  ;;  %v15372_v12 = vadd.f32 %v2310_v36, %v1467_v59  ;;  %v15374_v14 = vadd.f32 %v2583_v49, %v1740_v38  ;;  %v18533_v15 = vld [vmem:[#allocation294_spill] sm:$0xff]  ;;  %v18536_v59 = vld [vmem:[#allocation127_spill] sm:$0xff] }
 0x32d   :  { %v2314_v18 = vpop.f32.mrf.mxu0  ;;  %v2587_v45 = vpop.f32.mrf.mxu1  ;;  %11281 = vmatmul.mubr.msk.bf16.gmra.mxu0 %vm404_vm1, %v12258_v9  ;;  %11306 = vmatmul.mubr.msk.bf16.gmra.mxu1 %vm404_vm1, %v12258_v9  ;;  %v1746_v24 = vadd.f32 %v18533_v15, %v18532_v1  ;;  %v18537_v36 = vld [vmem:[#allocation295_spill] sm:$0xff]  ;;  %v18539_v8 = vld [vmem:[#allocation296_spill] sm:$0xff]  ;;  %v18543_v1 = vld [vmem:[#allocation297_spill] sm:$0xff] }
 0x32e   :  { %18528 = vst [vmem:[#allocation64_spill] sm:$0xff] %v15372_v12  ;;  %18529 = vst [vmem:[#allocation232_spill] sm:$0xff] %v15374_v14  ;;  %v15382_v22 = vadd.f32 %v2314_v18, %v1471_v4  ;;  %v15384_v5 = vadd.f32 %v2587_v45, %v1744_v63  ;;  %3358 = vmatprep.mubr.bf16.mxu0 %v17943_v60  ;;  %3631 = vmatprep.mubr.bf16.mxu1 %v17943_v60  ;;  %v12259_v63 = vld [vmem:[%s17876_s0 + $0xa0] sm:$0xff]   ;;  %v18542_v45 = vld [vmem:[#allocation129_spill] sm:$0xff] }
 0x32f   :  { %v2316_v38 = vpop.f32.mrf.mxu0  ;;  %v2589_v40 = vpop.f32.mrf.mxu1  ;;  %v1475_v49 = vadd.f32 %v18537_v36, %v18536_v59  ;;  %v1748_v26 = vadd.f32 %v18539_v8, %v18538_v52  ;;  %v1477_v15 = vadd.f32 %v18543_v1, %v18542_v45  ;;  %v18550_v8 = vld [vmem:[#allocation132_spill] sm:$0xff]  ;;  %v18554_v45 = vld [vmem:[#allocation133_spill] sm:$0xff] }
 0x330   :  { %18534 = vst [vmem:[#allocation65_spill] sm:$0xff] %v15382_v22  ;;  %18535 = vst [vmem:[#allocation233_spill] sm:$0xff] %v15384_v5  ;;  %v15392_v9 = vadd.f32 %v2316_v38, %v1473_v41  ;;  %v15394_v50 = vadd.f32 %v2589_v40, %v1746_v24  ;;  %v18544_v5 = vld [vmem:[#allocation130_spill] sm:$0xff]  ;;  %v18548_v24 = vld [vmem:[#allocation131_spill] sm:$0xff] }
 0x331   :  { %v2318_v4 = vpop.f32.mrf.mxu0  ;;  %v2591_v18 = vpop.f32.mrf.mxu1  ;;  %v18545_v22 = vld [vmem:[#allocation298_spill] sm:$0xff]  ;;  %v18549_v40 = vld [vmem:[#allocation299_spill] sm:$0xff]  ;;  %v18555_v1 = vld [vmem:[#allocation301_spill] sm:$0xff] }
 0x332   :  { %18540 = vst [vmem:[#allocation66_spill] sm:$0xff] %v15392_v9  ;;  %18541 = vst [vmem:[#allocation234_spill] sm:$0xff] %v15394_v50  ;;  %v1750_v14 = vadd.f32 %v18545_v22, %v18544_v5  ;;  %v15403_v59 = vadd.f32 %v2318_v4, %v1475_v49  ;;  %v15405_v36 = vadd.f32 %v2591_v18, %v1748_v26  ;;  %v18551_v50 = vld [vmem:[#allocation300_spill] sm:$0xff]  ;;  %v18556_v49 = vld [vmem:[#allocation134_spill] sm:$0xff] }
 0x333   :  { %v2320_v41 = vpop.f32.mrf.mxu0  ;;  %v2593_v38 = vpop.f32.mrf.mxu1  ;;  %v1481_v52 = vadd.f32 %v18549_v40, %v18548_v24  ;;  %v1754_v9 = vadd.f32 %v18551_v50, %v18550_v8  ;;  %v1483_v13 = vadd.f32 %v18555_v1, %v18554_v45  ;;  %v18557_v26 = vld [vmem:[#allocation302_spill] sm:$0xff]  ;;  %v18562_v40 = vld [vmem:[#allocation136_spill] sm:$0xff] }
 0x334   :  { %18546 = vst [vmem:[#allocation67_spill] sm:$0xff] %v15403_v59  ;;  %18547 = vst [vmem:[#allocation235_spill] sm:$0xff] %v15405_v36  ;;  %v15411_v12 = vadd.f32 %v2320_v41, %v1477_v15  ;;  %v15413_v58 = vadd.f32 %v2593_v38, %v1750_v14  ;;  %v1756_v4 = vadd.f32 %v18557_v26, %v18556_v49  ;;  %v18560_v15 = vld [vmem:[#allocation135_spill] sm:$0xff]  ;;  %v18563_v8 = vld [vmem:[#allocation304_spill] sm:$0xff] }
 0x335   :  { %v2324_v22 = vpop.f32.mrf.mxu0  ;;  %v2597_v5 = vpop.f32.mrf.mxu1  ;;  %11282 = vmatmul.mubr.msk.bf16.gmra.mxu0 %vm404_vm1, %v12259_v63  ;;  %11307 = vmatmul.mubr.msk.bf16.gmra.mxu1 %vm404_vm1, %v12259_v63  ;;  %v18561_v41 = vld [vmem:[#allocation303_spill] sm:$0xff]  ;;  %v1758_v45 = vadd.f32 %v18563_v8, %v18562_v40  ;;  %v18567_v49 = vld [vmem:[#allocation305_spill] sm:$0xff]  ;;  %v18574_v8 = vld [vmem:[#allocation140_spill] sm:$0xff] }
 0x336   :  { %18552 = vst [vmem:[#allocation68_spill] sm:$0xff] %v15411_v12  ;;  %18553 = vst [vmem:[#allocation236_spill] sm:$0xff] %v15413_v58  ;;  %v15421_v18 = vadd.f32 %v2324_v22, %v1481_v52  ;;  %v15423_v24 = vadd.f32 %v2597_v5, %v1754_v9  ;;  %3368 = vmatprep.mubr.bf16.mxu0 %v17943_v60  ;;  %3641 = vmatprep.mubr.bf16.mxu1 %v17943_v60  ;;  %v12260_v9 = vld [vmem:[%s17876_s0 + $0xa8] sm:$0xff]   ;;  %v18566_v5 = vld [vmem:[#allocation137_spill] sm:$0xff] }
 0x337   :  { %v2326_v14 = vpop.f32.mrf.mxu0  ;;  %v2599_v50 = vpop.f32.mrf.mxu1  ;;  %v1485_v38 = vadd.f32 %v18561_v41, %v18560_v15  ;;  %v1487_v26 = vadd.f32 %v18567_v49, %v18566_v5  ;;  %v18578_v5 = vld [vmem:[#allocation141_spill] sm:$0xff] }
 0x338   :  { %18558 = vst [vmem:[#allocation69_spill] sm:$0xff] %v15421_v18  ;;  %18559 = vst [vmem:[#allocation237_spill] sm:$0xff] %v15423_v24  ;;  %v15431_v63 = vadd.f32 %v2326_v14, %v1483_v13  ;;  %v15433_v1 = vadd.f32 %v2599_v50, %v1756_v4  ;;  %v18568_v24 = vld [vmem:[#allocation138_spill] sm:$0xff]  ;;  %v18572_v4 = vld [vmem:[#allocation139_spill] sm:$0xff] }
 0x339   :  { %v2328_v52 = vpop.f32.mrf.mxu0  ;;  %v2601_v22 = vpop.f32.mrf.mxu1  ;;  %v18569_v18 = vld [vmem:[#allocation306_spill] sm:$0xff]  ;;  %v18573_v50 = vld [vmem:[#allocation307_spill] sm:$0xff]  ;;  %v18579_v49 = vld [vmem:[#allocation309_spill] sm:$0xff] }
 0x33a   :  { %18564 = vst [vmem:[#allocation70_spill] sm:$0xff] %v15431_v63  ;;  %18565 = vst [vmem:[#allocation238_spill] sm:$0xff] %v15433_v1  ;;  %v1760_v58 = vadd.f32 %v18569_v18, %v18568_v24  ;;  %v15442_v15 = vadd.f32 %v2328_v52, %v1485_v38  ;;  %v15444_v41 = vadd.f32 %v2601_v22, %v1758_v45  ;;  %v18575_v1 = vld [vmem:[#allocation308_spill] sm:$0xff]  ;;  %v18580_v38 = vld [vmem:[#allocation142_spill] sm:$0xff] }
 0x33b   :  { %v2330_v13 = vpop.f32.mrf.mxu0  ;;  %v2603_v14 = vpop.f32.mrf.mxu1  ;;  %v1491_v40 = vadd.f32 %v18573_v50, %v18572_v4  ;;  %v1764_v63 = vadd.f32 %v18575_v1, %v18574_v8  ;;  %v1493_v59 = vadd.f32 %v18579_v49, %v18578_v5  ;;  %v18581_v45 = vld [vmem:[#allocation310_spill] sm:$0xff]  ;;  %v18586_v50 = vld [vmem:[#allocation144_spill] sm:$0xff] }
 0x33c   :  { %18570 = vst [vmem:[#allocation71_spill] sm:$0xff] %v15442_v15  ;;  %18571 = vst [vmem:[#allocation239_spill] sm:$0xff] %v15444_v41  ;;  %v15450_v12 = vadd.f32 %v2330_v13, %v1487_v26  ;;  %v15452_v36 = vadd.f32 %v2603_v14, %v1760_v58  ;;  %v1766_v52 = vadd.f32 %v18581_v45, %v18580_v38  ;;  %v18584_v26 = vld [vmem:[#allocation143_spill] sm:$0xff]  ;;  %v18587_v8 = vld [vmem:[#allocation312_spill] sm:$0xff] }
 0x33d   :  { %v2334_v18 = vpop.f32.mrf.mxu0  ;;  %v2607_v24 = vpop.f32.mrf.mxu1  ;;  %11283 = vmatmul.mubr.msk.bf16.gmra.mxu0 %vm404_vm1, %v12260_v9  ;;  %11308 = vmatmul.mubr.msk.bf16.gmra.mxu1 %vm404_vm1, %v12260_v9  ;;  %v18585_v13 = vld [vmem:[#allocation311_spill] sm:$0xff]  ;;  %v1768_v5 = vadd.f32 %v18587_v8, %v18586_v50  ;;  %v18591_v38 = vld [vmem:[#allocation313_spill] sm:$0xff]  ;;  %v18598_v8 = vld [vmem:[#allocation148_spill] sm:$0xff] }
 0x33e   :  { %18576 = vst [vmem:[#allocation72_spill] sm:$0xff] %v15450_v12  ;;  %18577 = vst [vmem:[#allocation240_spill] sm:$0xff] %v15452_v36  ;;  %v15460_v22 = vadd.f32 %v2334_v18, %v1491_v40  ;;  %v15462_v4 = vadd.f32 %v2607_v24, %v1764_v63  ;;  %3378 = vmatprep.mubr.bf16.mxu0 %v17943_v60  ;;  %3651 = vmatprep.mubr.bf16.mxu1 %v17943_v60  ;;  %v12261_v63 = vld [vmem:[%s17876_s0 + $0xb0] sm:$0xff]  }
 0x33f   :  { %v2336_v58 = vpop.f32.mrf.mxu0  ;;  %v2609_v1 = vpop.f32.mrf.mxu1  ;;  %v1495_v14 = vadd.f32 %v18585_v13, %v18584_v26  ;;  %v18590_v24 = vld [vmem:[#allocation145_spill] sm:$0xff] }
 0x340   :  { %18582 = vst [vmem:[#allocation73_spill] sm:$0xff] %v15460_v22  ;;  %18583 = vst [vmem:[#allocation241_spill] sm:$0xff] %v15462_v4  ;;  %v15470_v9 = vadd.f32 %v2336_v58, %v1493_v59  ;;  %v15472_v49 = vadd.f32 %v2609_v1, %v1766_v52  ;;  %v1497_v45 = vadd.f32 %v18591_v38, %v18590_v24  ;;  %v18592_v4 = vld [vmem:[#allocation146_spill] sm:$0xff]  ;;  %v18596_v52 = vld [vmem:[#allocation147_spill] sm:$0xff] }
 0x341   :  { %v2338_v40 = vpop.f32.mrf.mxu0  ;;  %v2611_v18 = vpop.f32.mrf.mxu1  ;;  %v18593_v22 = vld [vmem:[#allocation314_spill] sm:$0xff]  ;;  %v18597_v1 = vld [vmem:[#allocation315_spill] sm:$0xff]  ;;  %v18602_v24 = vld [vmem:[#allocation149_spill] sm:$0xff] }
 0x342   :  { %18588 = vst [vmem:[#allocation74_spill] sm:$0xff] %v15470_v9  ;;  %18589 = vst [vmem:[#allocation242_spill] sm:$0xff] %v15472_v49  ;;  %v1770_v36 = vadd.f32 %v18593_v22, %v18592_v4  ;;  %v15481_v26 = vadd.f32 %v2338_v40, %v1495_v14  ;;  %v15483_v13 = vadd.f32 %v2611_v18, %v1768_v5  ;;  %v18599_v49 = vld [vmem:[#allocation316_spill] sm:$0xff]  ;;  %v18603_v38 = vld [vmem:[#allocation317_spill] sm:$0xff] }
 0x343   :  { %v2340_v59 = vpop.f32.mrf.mxu0  ;;  %v2613_v58 = vpop.f32.mrf.mxu1  ;;  %v1501_v50 = vadd.f32 %v18597_v1, %v18596_v52  ;;  %v1774_v9 = vadd.f32 %v18599_v49, %v18598_v8  ;;  %v1503_v15 = vadd.f32 %v18603_v38, %v18602_v24  ;;  %v18604_v14 = vld [vmem:[#allocation150_spill] sm:$0xff]  ;;  %v18610_v1 = vld [vmem:[#allocation152_spill] sm:$0xff] }
 0x344   :  { %18594 = vst [vmem:[#allocation75_spill] sm:$0xff] %v15481_v26  ;;  %18595 = vst [vmem:[#allocation243_spill] sm:$0xff] %v15483_v13  ;;  %v15489_v12 = vadd.f32 %v2340_v59, %v1497_v45  ;;  %v15491_v41 = vadd.f32 %v2613_v58, %v1770_v36  ;;  %v18605_v5 = vld [vmem:[#allocation318_spill] sm:$0xff]  ;;  %v18608_v45 = vld [vmem:[#allocation151_spill] sm:$0xff] }
 0x345   :  { %v2344_v22 = vpop.f32.mrf.mxu0  ;;  %v2617_v4 = vpop.f32.mrf.mxu1  ;;  %11284 = vmatmul.mubr.msk.bf16.gmra.mxu0 %vm404_vm1, %v12261_v63  ;;  %11309 = vmatmul.mubr.msk.bf16.gmra.mxu1 %vm404_vm1, %v12261_v63  ;;  %v1776_v40 = vadd.f32 %v18605_v5, %v18604_v14  ;;  %v18609_v59 = vld [vmem:[#allocation319_spill] sm:$0xff]  ;;  %v18611_v8 = vld [vmem:[#allocation320_spill] sm:$0xff]  ;;  %v18615_v14 = vld [vmem:[#allocation321_spill] sm:$0xff] }
 0x346   :  { %18600 = vst [vmem:[#allocation76_spill] sm:$0xff] %v15489_v12  ;;  %18601 = vst [vmem:[#allocation244_spill] sm:$0xff] %v15491_v41  ;;  %v15499_v18 = vadd.f32 %v2344_v22, %v1501_v50  ;;  %v15501_v52 = vadd.f32 %v2617_v4, %v1774_v9  ;;  %3388 = vmatprep.mubr.bf16.mxu0 %v17943_v60  ;;  %3661 = vmatprep.mubr.bf16.mxu1 %v17943_v60  ;;  %v12262_v9 = vld [vmem:[%s17876_s0 + $0xb8] sm:$0xff]  }
 0x347   :  { %v2346_v36 = vpop.f32.mrf.mxu0  ;;  %v2619_v49 = vpop.f32.mrf.mxu1  ;;  %v1505_v58 = vadd.f32 %v18609_v59, %v18608_v45  ;;  %v1778_v24 = vadd.f32 %v18611_v8, %v18610_v1  ;;  %v18614_v4 = vld [vmem:[#allocation153_spill] sm:$0xff]  ;;  %v18622_v8 = vld [vmem:[#allocation156_spill] sm:$0xff] }
 0x348   :  { %18606 = vst [vmem:[#allocation77_spill] sm:$0xff] %v15499_v18  ;;  %18607 = vst [vmem:[#allocation245_spill] sm:$0xff] %v15501_v52  ;;  %v15509_v63 = vadd.f32 %v2346_v36, %v1503_v15  ;;  %v15511_v38 = vadd.f32 %v2619_v49, %v1776_v40  ;;  %v1507_v5 = vadd.f32 %v18615_v14, %v18614_v4  ;;  %v18616_v52 = vld [vmem:[#allocation154_spill] sm:$0xff]  ;;  %v18620_v40 = vld [vmem:[#allocation155_spill] sm:$0xff] }
 0x349   :  { %v2348_v50 = vpop.f32.mrf.mxu0  ;;  %v2621_v22 = vpop.f32.mrf.mxu1  ;;  %v18617_v18 = vld [vmem:[#allocation322_spill] sm:$0xff]  ;;  %v18621_v49 = vld [vmem:[#allocation323_spill] sm:$0xff]  ;;  %v18626_v4 = vld [vmem:[#allocation157_spill] sm:$0xff] }
 0x34a   :  { %18612 = vst [vmem:[#allocation78_spill] sm:$0xff] %v15509_v63  ;;  %18613 = vst [vmem:[#allocation246_spill] sm:$0xff] %v15511_v38  ;;  %v1780_v41 = vadd.f32 %v18617_v18, %v18616_v52  ;;  %v15520_v45 = vadd.f32 %v2348_v50, %v1505_v58  ;;  %v15522_v59 = vadd.f32 %v2621_v22, %v1778_v24  ;;  %v18623_v38 = vld [vmem:[#allocation324_spill] sm:$0xff]  ;;  %v18627_v14 = vld [vmem:[#allocation325_spill] sm:$0xff] }
 0x34b   :  { %v2350_v15 = vpop.f32.mrf.mxu0  ;;  %v2623_v36 = vpop.f32.mrf.mxu1  ;;  %v1511_v1 = vadd.f32 %v18621_v49, %v18620_v40  ;;  %v1784_v63 = vadd.f32 %v18623_v38, %v18622_v8  ;;  %v1513_v26 = vadd.f32 %v18627_v14, %v18626_v4  ;;  %v18628_v58 = vld [vmem:[#allocation158_spill] sm:$0xff]  ;;  %v18634_v49 = vld [vmem:[#allocation160_spill] sm:$0xff] }
 0x34c   :  { %18618 = vst [vmem:[#allocation79_spill] sm:$0xff] %v15520_v45  ;;  %18619 = vst [vmem:[#allocation247_spill] sm:$0xff] %v15522_v59  ;;  %v15528_v12 = vadd.f32 %v2350_v15, %v1507_v5  ;;  %v15530_v13 = vadd.f32 %v2623_v36, %v1780_v41  ;;  %v18629_v24 = vld [vmem:[#allocation326_spill] sm:$0xff]  ;;  %v18632_v5 = vld [vmem:[#allocation159_spill] sm:$0xff] }
 0x34d   :  { %v2354_v18 = vpop.f32.mrf.mxu0  ;;  %v2627_v52 = vpop.f32.mrf.mxu1  ;;  %11285 = vmatmul.mubr.msk.bf16.gmra.mxu0 %vm404_vm1, %v12262_v9  ;;  %11310 = vmatmul.mubr.msk.bf16.gmra.mxu1 %vm404_vm1, %v12262_v9  ;;  %v1786_v50 = vadd.f32 %v18629_v24, %v18628_v58  ;;  %v18633_v15 = vld [vmem:[#allocation327_spill] sm:$0xff]  ;;  %v18635_v8 = vld [vmem:[#allocation328_spill] sm:$0xff]  ;;  %v18639_v58 = vld [vmem:[#allocation329_spill] sm:$0xff] }
 0x34e   :  { %18624 = vst [vmem:[#allocation80_spill] sm:$0xff] %v15528_v12  ;;  %18625 = vst [vmem:[#allocation248_spill] sm:$0xff] %v15530_v13  ;;  %v15538_v22 = vadd.f32 %v2354_v18, %v1511_v1  ;;  %v15540_v40 = vadd.f32 %v2627_v52, %v1784_v63  ;;  %3398 = vmatprep.mubr.bf16.mxu0 %v17943_v60  ;;  %3671 = vmatprep.mubr.bf16.mxu1 %v17943_v60  ;;  %v12263_v63 = vld [vmem:[%s17876_s0 + $0xc0] sm:$0xff]   ;;  %v18638_v52 = vld [vmem:[#allocation161_spill] sm:$0xff] }
 0x34f   :  { %v2356_v41 = vpop.f32.mrf.mxu0  ;;  %v2629_v38 = vpop.f32.mrf.mxu1  ;;  %v1515_v36 = vadd.f32 %v18633_v15, %v18632_v5  ;;  %v1788_v4 = vadd.f32 %v18635_v8, %v18634_v49  ;;  %v1517_v24 = vadd.f32 %v18639_v58, %v18638_v52  ;;  %v18644_v49 = vld [vmem:[#allocation163_spill] sm:$0xff]  ;;  %v18647_v12 = vld [vmem:[#allocation332_spill] sm:$0xff]  ;;  %v18653_v58 = vld [vmem:[#allocation334_spill] sm:$0xff] }
 0x350   :  { %18630 = vst [vmem:[#allocation81_spill] sm:$0xff] %v15538_v22  ;;  %18631 = vst [vmem:[#allocation249_spill] sm:$0xff] %v15540_v40  ;;  %v15548_v9 = vadd.f32 %v2356_v41, %v1513_v26  ;;  %v15550_v14 = vadd.f32 %v2629_v38, %v1786_v50  ;;  %v18640_v40 = vld [vmem:[#allocation162_spill] sm:$0xff]  ;;  %v12281_v26 = vld [vmem:[#allocation6 + $0x2e4] ss:$16 sps:$4 sm:$0xff]  }
 0x351   :  { %v2358_v1 = vpop.f32.mrf.mxu0  ;;  %v2631_v18 = vpop.f32.mrf.mxu1  ;;  %v18641_v22 = vld [vmem:[#allocation330_spill] sm:$0xff]  ;;  %v18645_v8 = vld [vmem:[#allocation331_spill] sm:$0xff]  ;;  %5655 = vmatprep.subr.bf16.mxu0 %v12281_v26 }
 0x352   :  { %18636 = vst [vmem:[#allocation82_spill] sm:$0xff] %v15548_v9  ;;  %18637 = vst [vmem:[#allocation250_spill] sm:$0xff] %v15550_v14  ;;  %v1790_v13 = vadd.f32 %v18641_v22, %v18640_v40  ;;  %v15559_v5 = vadd.f32 %v2358_v1, %v1515_v36  ;;  %v15561_v15 = vadd.f32 %v2631_v18, %v1788_v4  ;;  %v12284_v38 = vld [vmem:[#allocation6 + $0x2ec] ss:$16 sps:$4 sm:$0xff]   ;;  %v18650_v22 = vld [vmem:[#allocation165_spill] sm:$0xff] }
 0x353   :  { %v2360_v41 = vpop.f32.mrf.mxu0  ;;  %v2633_v50 = vpop.f32.mrf.mxu1  ;;  %v1521_v14 = vadd.f32 %v18645_v8, %v18644_v49  ;;  %v18646_v9 = vld [vmem:[#allocation164_spill] sm:$0xff]  ;;  %v18651_v40 = vld [vmem:[#allocation333_spill] sm:$0xff]  ;;  %v18652_v18 = vld [vmem:[#allocation166_spill] sm:$0xff]  ;;  %5768 = vmatprep.subr.bf16.mxu1 %v12284_v38 }
 0x354   :  { %18642 = vst [vmem:[#allocation83_spill] sm:$0xff] %v15559_v5  ;;  %18643 = vst [vmem:[#allocation251_spill] sm:$0xff] %v15561_v15  ;;  %v1794_v59 = vadd.f32 %v18647_v12, %v18646_v9  ;;  %v15567_v45 = vadd.f32 %v2360_v41, %v1517_v24  ;;  %v15569_v52 = vadd.f32 %v2633_v50, %v1790_v13  ;;  %v18656_v24 = vld [vmem:[#allocation167_spill] sm:$0xff]  ;;  %v18658_v50 = vld [vmem:[#allocation168_spill] sm:$0xff] }
 0x355   :  { %v1523_v36 = vadd.f32 %v18651_v40, %v18650_v22  ;;  %v2364_v4 = vpop.f32.mrf.mxu0  ;;  %v2637_v1 = vpop.f32.mrf.mxu1  ;;  %11286 = vmatmul.mubr.msk.bf16.gmra.mxu0 %vm404_vm1, %v12263_v63  ;;  %11311 = vmatmul.mubr.msk.bf16.gmra.mxu1 %vm404_vm1, %v12263_v63  ;;  %v1796_v49 = vadd.f32 %v18653_v58, %v18652_v18  ;;  %v18657_v26 = vld [vmem:[#allocation335_spill] sm:$0xff]  ;;  %v18659_v22 = vld [vmem:[#allocation336_spill] sm:$0xff]  ;;  %v18663_v58 = vld [vmem:[#allocation337_spill] sm:$0xff] }
 0x356   :  { %18648 = vst [vmem:[#allocation84_spill] sm:$0xff] %v15567_v45  ;;  %18649 = vst [vmem:[#allocation252_spill] sm:$0xff] %v15569_v52  ;;  %v15577_v8 = vadd.f32 %v2364_v4, %v1521_v14  ;;  %v15579_v12 = vadd.f32 %v2637_v1, %v1794_v59  ;;  %3408 = vmatprep.mubr.bf16.mxu0 %v17943_v60  ;;  %3681 = vmatprep.mubr.bf16.mxu1 %v17943_v60  ;;  %v12264_v4 = vld [vmem:[%s17876_s0 + $0xc8] sm:$0xff]   ;;  %v18662_v1 = vld [vmem:[#allocation169_spill] sm:$0xff] }
 0x357   :  { %v2366_v13 = vpop.f32.mrf.mxu0  ;;  %v2639_v9 = vpop.f32.mrf.mxu1  ;;  %v1525_v41 = vadd.f32 %v18657_v26, %v18656_v24  ;;  %v1798_v63 = vadd.f32 %v18659_v22, %v18658_v50  ;;  %v1527_v52 = vadd.f32 %v18663_v58, %v18662_v1  ;;  %v18664_v38 = vld [vmem:[#allocation170_spill] sm:$0xff]  ;;  %v18670_v22 = vld [vmem:[#allocation172_spill] sm:$0xff]  ;;  %v18674_v1 = vld [vmem:[#allocation173_spill] sm:$0xff] }
 0x358   :  { %18654 = vst [vmem:[#allocation85_spill] sm:$0xff] %v15577_v8  ;;  %18655 = vst [vmem:[#allocation253_spill] sm:$0xff] %v15579_v12  ;;  %v15587_v40 = vadd.f32 %v2366_v13, %v1523_v36  ;;  %v15589_v18 = vadd.f32 %v2639_v9, %v1796_v49  ;;  %v18665_v45 = vld [vmem:[#allocation338_spill] sm:$0xff]  ;;  %v18668_v49 = vld [vmem:[#allocation171_spill] sm:$0xff] }
 0x359   :  { %v2368_v14 = vpop.f32.mrf.mxu0  ;;  %v2641_v59 = vpop.f32.mrf.mxu1  ;;  %v1800_v12 = vadd.f32 %v18665_v45, %v18664_v38  ;;  %v18669_v9 = vld [vmem:[#allocation339_spill] sm:$0xff]  ;;  %v18675_v58 = vld [vmem:[#allocation341_spill] sm:$0xff] }
 0x35a   :  { %18660 = vst [vmem:[#allocation86_spill] sm:$0xff] %v15587_v40  ;;  %18661 = vst [vmem:[#allocation254_spill] sm:$0xff] %v15589_v18  ;;  %v15598_v24 = vadd.f32 %v2368_v14, %v1525_v41  ;;  %v15600_v26 = vadd.f32 %v2641_v59, %v1798_v63  ;;  %v1531_v50 = vadd.f32 %v18669_v9, %v18668_v49  ;;  %v18671_v18 = vld [vmem:[#allocation340_spill] sm:$0xff]  ;;  %v18676_v63 = vld [vmem:[#allocation174_spill] sm:$0xff] }
 0x35b   :  { %v2370_v36 = vpop.f32.mrf.mxu0  ;;  %v2643_v13 = vpop.f32.mrf.mxu1  ;;  %v1804_v40 = vadd.f32 %v18671_v18, %v18670_v22  ;;  %v1533_v5 = vadd.f32 %v18675_v58, %v18674_v1  ;;  %v18677_v14 = vld [vmem:[#allocation342_spill] sm:$0xff]  ;;  %v18680_v18 = vld [vmem:[#allocation175_spill] sm:$0xff]  ;;  %v18682_v9 = vld [vmem:[#allocation176_spill] sm:$0xff] }
 0x35c   :  { %18666 = vst [vmem:[#allocation87_spill] sm:$0xff] %v15598_v24  ;;  %18667 = vst [vmem:[#allocation255_spill] sm:$0xff] %v15600_v26  ;;  %v15606_v8 = vadd.f32 %v2370_v36, %v1527_v52  ;;  %v15608_v15 = vadd.f32 %v2643_v13, %v1800_v12  ;;  %v1806_v59 = vadd.f32 %v18677_v14, %v18676_v63  ;;  %v18681_v36 = vld [vmem:[#allocation343_spill] sm:$0xff]  ;;  %v18683_v22 = vld [vmem:[#allocation344_spill] sm:$0xff] }
 0x35d   :  { %v2374_v45 = vpop.f32.mrf.mxu0  ;;  %v2647_v41 = vpop.f32.mrf.mxu1  ;;  %11287 = vmatmul.mubr.msk.bf16.gmra.mxu0 %vm404_vm1, %v12264_v4  ;;  %11312 = vmatmul.mubr.msk.bf16.gmra.mxu1 %vm404_vm1, %v12264_v4  ;;  %v1535_v13 = vadd.f32 %v18681_v36, %v18680_v18  ;;  %v1808_v1 = vadd.f32 %v18683_v22, %v18682_v9  ;;  %v18687_v63 = vld [vmem:[#allocation345_spill] sm:$0xff]  ;;  %v18692_v22 = vld [vmem:[#allocation180_spill] sm:$0xff] }
 0x35e   :  { %18672 = vst [vmem:[#allocation88_spill] sm:$0xff] %v15606_v8  ;;  %18673 = vst [vmem:[#allocation256_spill] sm:$0xff] %v15608_v15  ;;  %v15616_v38 = vadd.f32 %v2374_v45, %v1531_v50  ;;  %v15618_v49 = vadd.f32 %v2647_v41, %v1804_v40  ;;  %3418 = vmatprep.mubr.bf16.mxu0 %v17943_v60  ;;  %3691 = vmatprep.mubr.bf16.mxu1 %v17943_v60  ;;  %v12265_v40 = vld [vmem:[%s17876_s0 + $0xd0] sm:$0xff]   ;;  %v18688_v15 = vld [vmem:[#allocation178_spill] sm:$0xff] }
 0x35f   :  { %v2376_v52 = vpop.f32.mrf.mxu0  ;;  %v2649_v12 = vpop.f32.mrf.mxu1  ;;  %v18686_v41 = vld [vmem:[#allocation177_spill] sm:$0xff]  ;;  %v18689_v8 = vld [vmem:[#allocation346_spill] sm:$0xff] }
 0x360   :  { %18678 = vst [vmem:[#allocation89_spill] sm:$0xff] %v15616_v38  ;;  %18679 = vst [vmem:[#allocation257_spill] sm:$0xff] %v15618_v49  ;;  %v15626_v4 = vadd.f32 %v2376_v52, %v1533_v5  ;;  %v15628_v58 = vadd.f32 %v2649_v12, %v1806_v59  ;;  %v1537_v14 = vadd.f32 %v18687_v63, %v18686_v41  ;;  %v18690_v59 = vld [vmem:[#allocation179_spill] sm:$0xff]  ;;  %v18696_v41 = vld [vmem:[#allocation181_spill] sm:$0xff] }
 0x361   :  { %v2378_v50 = vpop.f32.mrf.mxu0  ;;  %v2651_v45 = vpop.f32.mrf.mxu1  ;;  %v1810_v49 = vadd.f32 %v18689_v8, %v18688_v15  ;;  %v18691_v12 = vld [vmem:[#allocation347_spill] sm:$0xff]  ;;  %v18697_v63 = vld [vmem:[#allocation349_spill] sm:$0xff] }
 0x362   :  { %18684 = vst [vmem:[#allocation90_spill] sm:$0xff] %v15626_v4  ;;  %18685 = vst [vmem:[#allocation258_spill] sm:$0xff] %v15628_v58  ;;  %v15637_v18 = vadd.f32 %v2378_v50, %v1535_v13  ;;  %v15639_v36 = vadd.f32 %v2651_v45, %v1808_v1  ;;  %v1541_v9 = vadd.f32 %v18691_v12, %v18690_v59  ;;  %v18693_v58 = vld [vmem:[#allocation348_spill] sm:$0xff]  ;;  %v18698_v13 = vld [vmem:[#allocation182_spill] sm:$0xff] }
 0x363   :  { %v2380_v5 = vpop.f32.mrf.mxu0  ;;  %v2653_v52 = vpop.f32.mrf.mxu1  ;;  %v1814_v4 = vadd.f32 %v18693_v58, %v18692_v22  ;;  %v1543_v24 = vadd.f32 %v18697_v63, %v18696_v41  ;;  %v18699_v1 = vld [vmem:[#allocation350_spill] sm:$0xff]  ;;  %v18703_v12 = vld [vmem:[#allocation184_spill] sm:$0xff] }
 0x364   :  { %v15645_v38 = vadd.f32 %v2380_v5, %v1537_v14  ;;  %v15647_v26 = vadd.f32 %v2653_v52, %v1810_v49  ;;  %v1816_v50 = vadd.f32 %v18699_v1, %v18698_v13  ;;  %v18701_v14 = vld [vmem:[#allocation183_spill] sm:$0xff]  ;;  %v18704_v22 = vld [vmem:[#allocation352_spill] sm:$0xff]  ;;  %v18708_v1 = vld [vmem:[#allocation186_spill] sm:$0xff] }
 0x365   :  { %v2384_v15 = vpop.f32.mrf.mxu0  ;;  %v2657_v8 = vpop.f32.mrf.mxu1  ;;  %11288 = vmatmul.mubr.msk.bf16.gmra.mxu0 %vm404_vm1, %v12265_v40  ;;  %11313 = vmatmul.mubr.msk.bf16.gmra.mxu1 %vm404_vm1, %v12265_v40  ;;  %v18702_v5 = vld [vmem:[#allocation351_spill] sm:$0xff]  ;;  %v1818_v41 = vadd.f32 %v18704_v22, %v18703_v12 }
 0x366   :  { %18694 = vst [vmem:[#allocation91_spill] sm:$0xff] %v15645_v38  ;;  %18695 = vst [vmem:[#allocation259_spill] sm:$0xff] %v15647_v26  ;;  %v15655_v45 = vadd.f32 %v2384_v15, %v1541_v9  ;;  %v15657_v59 = vadd.f32 %v2657_v8, %v1814_v4  ;;  %4224 = vmatprep.mubr.bf16.mxu0 %v17943_v60  ;;  %4497 = vmatprep.mubr.bf16.mxu1 %v17943_v60  ;;  %v12266_v4 = vld [vmem:[%s17876_s0 + $0x20] sm:$0xff]   ;;  %v18707_v8 = vld [vmem:[#allocation185_spill] sm:$0xff] }
 0x367   :  { %v2386_v49 = vpop.f32.mrf.mxu0  ;;  %v2659_v58 = vpop.f32.mrf.mxu1  ;;  %v1545_v52 = vadd.f32 %v18702_v5, %v18701_v14  ;;  %v1547_v13 = vadd.f32 %v14742_v31, %v18707_v8  ;;  %v1820_v26 = vadd.f32 %v14744_v29, %v18708_v1  ;;  %v12289_v38 = vld [vmem:[#allocation6 + $0x2c4] ss:$16 sps:$4 sm:$0xff]  }
 0x368   :  { %18700 = vst [vmem:[#allocation92_spill] sm:$0xff] %v15657_v59  ;;  %v15665_v40 = vadd.f32 %v2386_v49, %v1543_v24  ;;  %v15667_v63 = vadd.f32 %v2659_v58, %v1816_v50  ;;  %v12279_v50 = vld [vmem:[#allocation6 + $0x2e0] ss:$16 sps:$4 sm:$0xff]   ;;  %v12282_v58 = vld [vmem:[#allocation6 + $0x2e8] ss:$16 sps:$4 sm:$0xff]  }
 0x369   :  { %v2388_v9 = vpop.f32.mrf.mxu0  ;;  %v2661_v15 = vpop.f32.mrf.mxu1  ;;  %v12267_v8 = vld [vmem:[%s17876_s0 + $0x28] sm:$0xff]  }
 0x36a   :  { %18705 = vst [vmem:[#allocation260_spill] sm:$0xff] %v15665_v40  ;;  %18706 = vst [vmem:[#allocation93_spill] sm:$0xff] %v15667_v63  ;;  %v15676_v14 = vadd.f32 %v2388_v9, %v1545_v52  ;;  %v15678_v5 = vadd.f32 %v2661_v15, %v1818_v41  ;;  %v12292_v63 = vld [vmem:[#allocation6 + $0x2cc] ss:$16 sps:$4 sm:$0xff]   ;;  %v12287_v41 = vld [vmem:[#allocation6 + $0x2c0] ss:$16 sps:$4 sm:$0xff]  }
 0x36b   :  { %v2390_v24 = vpop.f32.mrf.mxu0  ;;  %v2663_v49 = vpop.f32.mrf.mxu1  ;;  %v12290_v9 = vld [vmem:[#allocation6 + $0x2c8] ss:$16 sps:$4 sm:$0xff]  }
 0x36c   :  { %v15680_v12 = vadd.f32 %v2390_v24, %v1547_v13  ;;  %v15682_v22 = vadd.f32 %v2663_v49, %v1820_v26 }
 0x36d   :  { %v3190_v40 = vpop.f32.mrf.mxu0  ;;  %v3463_v59 = vpop.f32.mrf.mxu1  ;;  %11395 = vmatmul.mubr.msk.bf16.vlgmr.msra.gmra.mxu0 %vm404_vm1, %v12266_v4  ;;  %11420 = vmatmul.mubr.msk.bf16.vlgmr.msra.gmra.mxu1 %vm404_vm1, %v12266_v4 }
 0x36e   :  { %18709 = vst [vmem:[#allocation261_spill] sm:$0xff] %v15680_v12  ;;  %18710 = vst [vmem:[#allocation94_spill] sm:$0xff] %v15682_v22  ;;  %v15687_v31 = vadd.f32 %v3190_v40, %v14758_v27  ;;  %v15690_v29 = vadd.f32 %v3463_v59, %v14760_v56  ;;  %4234 = vmatprep.mubr.bf16.mxu0 %v17943_v60  ;;  %4507 = vmatprep.mubr.bf16.mxu1 %v17943_v60  ;;  %v12296_v27 = vld [vmem:[#allocation6 + $0x2a4] ss:$16 sps:$4 sm:$0xff]   ;;  %v12299_v56 = vld [vmem:[#allocation6 + $0x2ac] ss:$16 sps:$4 sm:$0xff]  }
 0x36f   :  { %v3192_v26 = vpop.f32.mrf.mxu0  ;;  %v3465_v52 = vpop.f32.mrf.mxu1  ;;  %5656 = vmatpush1.bf16.msra.mxu0 %v12279_v50  ;;  %5769 = vmatpush1.bf16.msra.mxu1 %v12282_v58 }
 0x370   :  { %v15695_v15 = vadd.f32 %v3192_v26, %v14768_v21  ;;  %v15698_v4 = vadd.f32 %v3465_v52, %v14770_v51  ;;  %5657 = vmatprep.subr.bf16.mxu0 %v12289_v38  ;;  %5770 = vmatprep.subr.bf16.mxu1 %v12292_v63  ;;  %v12294_v51 = vld [vmem:[#allocation6 + $0x2a0] ss:$16 sps:$4 sm:$0xff]   ;;  %v12297_v38 = vld [vmem:[#allocation6 + $0x2a8] ss:$16 sps:$4 sm:$0xff]  }
 0x371   :  { %v3194_v59 = vpop.f32.mrf.mxu0  ;;  %v3467_v40 = vpop.f32.mrf.mxu1  ;;  %v12302_v52 = vld [vmem:[#allocation6 + $0x280] ss:$16 sps:$4 sm:$0xff]  }
 0x372   :  { %v15704_v13 = vadd.f32 %v3194_v59, %v14779_v30  ;;  %v15707_v1 = vadd.f32 %v3467_v40, %v14781_v62  ;;  %v12268_v59 = vld [vmem:[%s17876_s0 + $0x30] sm:$0xff]  }
 0x373   :  { %v3196_v21 = vpop.f32.mrf.mxu0  ;;  %v3469_v24 = vpop.f32.mrf.mxu1  ;;  %5658 = vmatpush1.bf16.msra.mxu0 %v12287_v41  ;;  %5771 = vmatpush1.bf16.msra.mxu1 %v12290_v9  ;;  %v12305_v41 = vld [vmem:[#allocation6 + $0x288] ss:$16 sps:$4 sm:$0xff]   ;;  %v12307_v9 = vld [vmem:[#allocation6 + $0x28c] ss:$16 sps:$4 sm:$0xff]  }
 0x374   :  { %v15710_v63 = vadd.f32 %v3196_v21, %v14787_v42  ;;  %v15713_v49 = vadd.f32 %v3469_v24, %v14789_v23  ;;  %5659 = vmatprep.subr.bf16.mxu0 %v12296_v27  ;;  %5772 = vmatprep.subr.bf16.mxu1 %v12299_v56  ;;  %v12304_v42 = vld [vmem:[#allocation6 + $0x284] ss:$16 sps:$4 sm:$0xff]  }
 0x375   :  { %v3200_v50 = vpop.f32.mrf.mxu0  ;;  %v3473_v30 = vpop.f32.mrf.mxu1  ;;  %11396 = vmatmul.mubr.msk.bf16.gmra.mxu0 %vm404_vm1, %v12267_v8  ;;  %11421 = vmatmul.mubr.msk.bf16.gmra.mxu1 %vm404_vm1, %v12267_v8 }
 0x376   :  { %v15718_v62 = vadd.f32 %v3200_v50, %v14797_v2  ;;  %v15721_v58 = vadd.f32 %v3473_v30, %v14799_v48  ;;  %4244 = vmatprep.mubr.bf16.mxu0 %v17943_v60  ;;  %4517 = vmatprep.mubr.bf16.mxu1 %v17943_v60 }
 0x377   :  { %v3202_v23 = vpop.f32.mrf.mxu0  ;;  %v3475_v26 = vpop.f32.mrf.mxu1  ;;  %5660 = vmatpush1.bf16.msra.mxu0 %v12294_v51  ;;  %5773 = vmatpush1.bf16.msra.mxu1 %v12297_v38 }
 0x378   :  { %v15726_v27 = vadd.f32 %v3202_v23, %v14807_v37  ;;  %v15729_v2 = vadd.f32 %v3475_v26, %v14809_v57  ;;  %5661 = vmatprep.subr.bf16.mxu0 %v12304_v42  ;;  %5774 = vmatprep.subr.bf16.mxu1 %v12307_v9 }
 0x379   :  { %v3204_v48 = vpop.f32.mrf.mxu0  ;;  %v3477_v56 = vpop.f32.mrf.mxu1 }
 0x37a   :  { %v15735_v40 = vadd.f32 %v3204_v48, %v14818_v7  ;;  %v15738_v8 = vadd.f32 %v3477_v56, %v14820_v0  ;;  %v12314_v48 = vld [vmem:[#allocation6 + $0x26c] ss:$16 sps:$4 sm:$0xff]  }
 0x37b   :  { %v3206_v21 = vpop.f32.mrf.mxu0  ;;  %v3479_v37 = vpop.f32.mrf.mxu1  ;;  %5662 = vmatpush1.bf16.msra.mxu0 %v12302_v52  ;;  %5775 = vmatpush1.bf16.msra.mxu1 %v12305_v41  ;;  %v12311_v52 = vld [vmem:[#allocation6 + $0x264] ss:$16 sps:$4 sm:$0xff]  }
 0x37c   :  { %v15741_v57 = vadd.f32 %v3206_v21, %v14826_v46  ;;  %v15744_v24 = vadd.f32 %v3479_v37, %v14828_v28  ;;  %5663 = vmatprep.subr.bf16.mxu0 %v12311_v52  ;;  %5776 = vmatprep.subr.bf16.mxu1 %v12314_v48 }
 0x37d   :  { %v3210_v51 = vpop.f32.mrf.mxu0  ;;  %v3483_v38 = vpop.f32.mrf.mxu1  ;;  %11397 = vmatmul.mubr.msk.bf16.gmra.mxu0 %vm404_vm1, %v12268_v59  ;;  %11422 = vmatmul.mubr.msk.bf16.gmra.mxu1 %vm404_vm1, %v12268_v59  ;;  %v12312_v59 = vld [vmem:[#allocation6 + $0x268] ss:$16 sps:$4 sm:$0xff]  }
 0x37e   :  { %v15749_v7 = vadd.f32 %v3210_v51, %v14836_v11  ;;  %v15752_v0 = vadd.f32 %v3483_v38, %v14838_v53  ;;  %4254 = vmatprep.mubr.bf16.mxu0 %v17943_v60  ;;  %4527 = vmatprep.mubr.bf16.mxu1 %v17943_v60  ;;  %v12269_v11 = vld [vmem:[%s17876_s0 + $0x38] sm:$0xff]  }
 0x37f   :  { %v3212_v46 = vpop.f32.mrf.mxu0  ;;  %v3485_v50 = vpop.f32.mrf.mxu1  ;;  %5777 = vmatpush1.bf16.msra.mxu1 %v12312_v59  ;;  %v12322_v59 = vld [vmem:[#allocation6 + $0x24c] ss:$16 sps:$4 sm:$0xff]  }
 0x380   :  { %v15757_v28 = vadd.f32 %v3212_v46, %v14846_v61  ;;  %v15760_v30 = vadd.f32 %v3485_v50, %v14848_v33  ;;  %v12309_v61 = vld [vmem:[#allocation6 + $0x260] ss:$16 sps:$4 sm:$0xff]   ;;  %5778 = vmatprep.subr.bf16.mxu1 %v12322_v59 }
 0x381   :  { %v3214_v42 = vpop.f32.mrf.mxu0  ;;  %v3487_v23 = vpop.f32.mrf.mxu1  ;;  %5664 = vmatpush1.bf16.msra.mxu0 %v12309_v61 }
 0x382   :  { %v15766_v53 = vadd.f32 %v3214_v42, %v14857_v16  ;;  %v15769_v26 = vadd.f32 %v3487_v23, %v14859_v39 }
 0x383   :  { %v3216_v41 = vpop.f32.mrf.mxu0  ;;  %v3489_v9 = vpop.f32.mrf.mxu1 }
 0x384   :  { %v15772_v33 = vadd.f32 %v3216_v41, %v14865_v32  ;;  %v15775_v56 = vadd.f32 %v3489_v9, %v14867_v3  ;;  %v12319_v9 = vld [vmem:[#allocation6 + $0x244] ss:$16 sps:$4 sm:$0xff]  }
 0x385   :  { %v3220_v21 = vpop.f32.mrf.mxu0  ;;  %v3493_v37 = vpop.f32.mrf.mxu1  ;;  %11398 = vmatmul.mubr.msk.bf16.gmra.mxu0 %vm404_vm1, %v12269_v11  ;;  %11423 = vmatmul.mubr.msk.bf16.gmra.mxu1 %vm404_vm1, %v12269_v11 }
 0x386   :  { %v15780_v16 = vadd.f32 %v3220_v21, %v14875_v20  ;;  %v15783_v39 = vadd.f32 %v3493_v37, %v14877_v54  ;;  %4264 = vmatprep.mubr.bf16.mxu0 %v17943_v60  ;;  %4537 = vmatprep.mubr.bf16.mxu1 %v17943_v60  ;;  %v12270_v54 = vld [vmem:[%s17876_s0 + $0x40] sm:$0xff]  }
 0x387   :  { %v3222_v32 = vpop.f32.mrf.mxu0  ;;  %v3495_v3 = vpop.f32.mrf.mxu1  ;;  %5665 = vmatprep.subr.bf16.mxu0 %v12319_v9 }
 0x388   :  { %v15788_v51 = vadd.f32 %v3222_v32, %v14885_v10  ;;  %v15791_v38 = vadd.f32 %v3495_v3, %v14887_v44  ;;  %v12271_v32 = vld [vmem:[%s17876_s0 + $0x48] sm:$0xff]  }
 0x389   :  { %v3224_v20 = vpop.f32.mrf.mxu0  ;;  %v3497_v46 = vpop.f32.mrf.mxu1 }
 0x38a   :  { %v15797_v50 = vadd.f32 %v3224_v20, %v14896_v34  ;;  %v15800_v42 = vadd.f32 %v3497_v46, %v14898_v17  ;;  %v18711_v20 = vld [vmem:[#allocation187_spill] sm:$0xff] }
 0x38b   :  { %v3226_v23 = vpop.f32.mrf.mxu0  ;;  %v3499_v11 = vpop.f32.mrf.mxu1 }
 0x38c   :  { %v15803_v10 = vadd.f32 %v3226_v23, %v14904_v47  ;;  %v15806_v44 = vadd.f32 %v3499_v11, %v14906_v19  ;;  %v12317_v47 = vld [vmem:[#allocation6 + $0x240] ss:$16 sps:$4 sm:$0xff]   ;;  %v12320_v19 = vld [vmem:[#allocation6 + $0x248] ss:$16 sps:$4 sm:$0xff]  }
 0x38d   :  { %v3230_v52 = vpop.f32.mrf.mxu0  ;;  %v3503_v41 = vpop.f32.mrf.mxu1  ;;  %11399 = vmatmul.mubr.msk.bf16.gmra.mxu0 %vm404_vm1, %v12270_v54  ;;  %11424 = vmatmul.mubr.msk.bf16.gmra.mxu1 %vm404_vm1, %v12270_v54  ;;  %v18714_v11 = vld [vmem:[#allocation188_spill] sm:$0xff] }
 0x38e   :  { %v15811_v34 = vadd.f32 %v3230_v52, %v14914_v6  ;;  %v15814_v17 = vadd.f32 %v3503_v41, %v14916_v55  ;;  %4274 = vmatprep.mubr.bf16.mxu0 %v17943_v60  ;;  %4547 = vmatprep.mubr.bf16.mxu1 %v17943_v60 }
 0x38f   :  { %v3232_v61 = vpop.f32.mrf.mxu0  ;;  %v3505_v48 = vpop.f32.mrf.mxu1  ;;  %5666 = vmatpush1.bf16.msra.mxu0 %v12317_v47  ;;  %5779 = vmatpush1.bf16.msra.mxu1 %v12320_v19 }
 0x390   :  { %v15819_v21 = vadd.f32 %v3232_v61, %v14924_v43  ;;  %v15822_v37 = vadd.f32 %v3505_v48, %v14926_v25  ;;  %v18712_v25 = vld [vmem:[#allocation20_spill] sm:$0xff]  ;;  %v18718_v61 = vld [vmem:[#allocation189_spill] sm:$0xff] }
 0x391   :  { %v3234_v6 = vpop.f32.mrf.mxu0  ;;  %v3507_v55 = vpop.f32.mrf.mxu1 }
 0x392   :  { %v15828_v3 = vadd.f32 %v3234_v6, %v14935_v35  ;;  %v15831_v46 = vadd.f32 %v3507_v55, %v18711_v20  ;;  %v18716_v35 = vld [vmem:[#allocation21_spill] sm:$0xff]  ;;  %v18720_v6 = vld [vmem:[#allocation22_spill] sm:$0xff] }
 0x393   :  { %v3236_v43 = vpop.f32.mrf.mxu0  ;;  %v3509_v54 = vpop.f32.mrf.mxu1  ;;  %v18722_v20 = vld [vmem:[#allocation190_spill] sm:$0xff] }
 0x394   :  { %v15834_v23 = vadd.f32 %v3236_v43, %v18712_v25  ;;  %v15837_v52 = vadd.f32 %v3509_v54, %v18714_v11  ;;  %v12272_v25 = vld [vmem:[%s17876_s0 + $0x50] sm:$0xff]   ;;  %v18724_v11 = vld [vmem:[#allocation23_spill] sm:$0xff] }
 0x395   :  { %v3240_v41 = vpop.f32.mrf.mxu0  ;;  %v3513_v9 = vpop.f32.mrf.mxu1  ;;  %11400 = vmatmul.mubr.msk.bf16.gmra.mxu0 %vm404_vm1, %v12271_v32  ;;  %11425 = vmatmul.mubr.msk.bf16.gmra.mxu1 %vm404_vm1, %v12271_v32 }
 0x396   :  { %18713 = vst [vmem:[#allocation262_spill] sm:$0xff] %v15834_v23  ;;  %18715 = vst [vmem:[#allocation95_spill] sm:$0xff] %v15837_v52  ;;  %v15842_v47 = vadd.f32 %v3240_v41, %v18716_v35  ;;  %v15845_v48 = vadd.f32 %v3513_v9, %v18718_v61  ;;  %4284 = vmatprep.mubr.bf16.mxu0 %v17943_v60  ;;  %4557 = vmatprep.mubr.bf16.mxu1 %v17943_v60  ;;  %v18726_v9 = vld [vmem:[#allocation191_spill] sm:$0xff] }
 0x397   :  { %v3242_v19 = vpop.f32.mrf.mxu0  ;;  %v3515_v59 = vpop.f32.mrf.mxu1  ;;  %v12326_v61 = vld [vmem:[#allocation6 + $0x224] ss:$16 sps:$4 sm:$0xff]  }
 0x398   :  { %18717 = vst [vmem:[#allocation263_spill] sm:$0xff] %v15842_v47  ;;  %18719 = vst [vmem:[#allocation96_spill] sm:$0xff] %v15845_v48  ;;  %v15850_v55 = vadd.f32 %v3242_v19, %v18720_v6  ;;  %v15853_v43 = vadd.f32 %v3515_v59, %v18722_v20  ;;  %v12324_v19 = vld [vmem:[#allocation6 + $0x220] ss:$16 sps:$4 sm:$0xff]   ;;  %v12329_v6 = vld [vmem:[#allocation6 + $0x22c] ss:$16 sps:$4 sm:$0xff]   ;;  %5667 = vmatprep.subr.bf16.mxu0 %v12326_v61 }
 0x399   :  { %v3244_v54 = vpop.f32.mrf.mxu0  ;;  %v3517_v32 = vpop.f32.mrf.mxu1  ;;  %v18730_v20 = vld [vmem:[#allocation192_spill] sm:$0xff]  ;;  %5780 = vmatprep.subr.bf16.mxu1 %v12329_v6  ;;  %5668 = vmatpush1.bf16.msra.mxu0 %v12324_v19 }
 0x39a   :  { %18721 = vst [vmem:[#allocation264_spill] sm:$0xff] %v15850_v55  ;;  %18723 = vst [vmem:[#allocation97_spill] sm:$0xff] %v15853_v43  ;;  %v15859_v41 = vadd.f32 %v3244_v54, %v18724_v11  ;;  %v15862_v35 = vadd.f32 %v3517_v32, %v18726_v9  ;;  %v18728_v55 = vld [vmem:[#allocation24_spill] sm:$0xff]  ;;  %v18732_v54 = vld [vmem:[#allocation25_spill] sm:$0xff] }
 0x39b   :  { %v3246_v22 = vpop.f32.mrf.mxu0  ;;  %v3519_v12 = vpop.f32.mrf.mxu1  ;;  %v12327_v48 = vld [vmem:[#allocation6 + $0x228] ss:$16 sps:$4 sm:$0xff]   ;;  %v18734_v11 = vld [vmem:[#allocation193_spill] sm:$0xff] }
 0x39c   :  { %18725 = vst [vmem:[#allocation265_spill] sm:$0xff] %v15859_v41  ;;  %18727 = vst [vmem:[#allocation98_spill] sm:$0xff] %v15862_v35  ;;  %v15865_v59 = vadd.f32 %v3246_v22, %v18728_v55  ;;  %v15868_v43 = vadd.f32 %v3519_v12, %v18730_v20  ;;  %v18736_v55 = vld [vmem:[#allocation26_spill] sm:$0xff]  ;;  %5781 = vmatpush1.bf16.msra.mxu1 %v12327_v48 }
 0x39d   :  { %v3250_v47 = vpop.f32.mrf.mxu0  ;;  %v3523_v52 = vpop.f32.mrf.mxu1  ;;  %11401 = vmatmul.mubr.msk.bf16.gmra.mxu0 %vm404_vm1, %v12272_v25  ;;  %11426 = vmatmul.mubr.msk.bf16.gmra.mxu1 %vm404_vm1, %v12272_v25  ;;  %v18738_v20 = vld [vmem:[#allocation194_spill] sm:$0xff] }
 0x39e   :  { %18729 = vst [vmem:[#allocation266_spill] sm:$0xff] %v15865_v59  ;;  %18731 = vst [vmem:[#allocation99_spill] sm:$0xff] %v15868_v43  ;;  %v15873_v32 = vadd.f32 %v3250_v47, %v18732_v54  ;;  %v15876_v9 = vadd.f32 %v3523_v52, %v18734_v11  ;;  %4294 = vmatprep.mubr.bf16.mxu0 %v17943_v60  ;;  %4567 = vmatprep.mubr.bf16.mxu1 %v17943_v60  ;;  %v12273_v52 = vld [vmem:[%s17876_s0 + $0x58] sm:$0xff]   ;;  %v18740_v54 = vld [vmem:[#allocation27_spill] sm:$0xff] }
 0x39f   :  { %v3252_v12 = vpop.f32.mrf.mxu0  ;;  %v3525_v22 = vpop.f32.mrf.mxu1  ;;  %v12361_v41 = vld [vmem:[#allocation6 + $0x38c] ss:$16 sps:$4 sm:$0xff]  }
 0x3a0   :  { %18733 = vst [vmem:[#allocation267_spill] sm:$0xff] %v15873_v32  ;;  %18735 = vst [vmem:[#allocation100_spill] sm:$0xff] %v15876_v9  ;;  %v15881_v61 = vadd.f32 %v3252_v12, %v18736_v55  ;;  %v15884_v43 = vadd.f32 %v3525_v22, %v18738_v20  ;;  %v18742_v9 = vld [vmem:[#allocation195_spill] sm:$0xff]  ;;  %v18744_v12 = vld [vmem:[#allocation28_spill] sm:$0xff] }
 0x3a1   :  { %v3254_v47 = vpop.f32.mrf.mxu0  ;;  %v3527_v25 = vpop.f32.mrf.mxu1  ;;  %v18746_v22 = vld [vmem:[#allocation196_spill] sm:$0xff] }
 0x3a2   :  { %18737 = vst [vmem:[#allocation268_spill] sm:$0xff] %v15881_v61  ;;  %18739 = vst [vmem:[#allocation101_spill] sm:$0xff] %v15884_v43  ;;  %v15890_v11 = vadd.f32 %v3254_v47, %v18740_v54  ;;  %v15893_v32 = vadd.f32 %v3527_v25, %v18742_v9  ;;  %v18748_v61 = vld [vmem:[#allocation29_spill] sm:$0xff] }
 0x3a3   :  { %v3256_v19 = vpop.f32.mrf.mxu0  ;;  %v3529_v6 = vpop.f32.mrf.mxu1  ;;  %v18750_v54 = vld [vmem:[#allocation197_spill] sm:$0xff] }
 0x3a4   :  { %18741 = vst [vmem:[#allocation269_spill] sm:$0xff] %v15890_v11  ;;  %18743 = vst [vmem:[#allocation102_spill] sm:$0xff] %v15893_v32  ;;  %v15896_v55 = vadd.f32 %v3256_v19, %v18744_v12  ;;  %v15899_v20 = vadd.f32 %v3529_v6, %v18746_v22  ;;  %v12332_v25 = vld [vmem:[#allocation6 + $0x200] ss:$16 sps:$4 sm:$0xff]   ;;  %v12334_v19 = vld [vmem:[#allocation6 + $0x204] ss:$16 sps:$4 sm:$0xff]  }
 0x3a5   :  { %v3260_v48 = vpop.f32.mrf.mxu0  ;;  %v3533_v43 = vpop.f32.mrf.mxu1  ;;  %11402 = vmatmul.mubr.msk.bf16.gmra.mxu0 %vm404_vm1, %v12273_v52  ;;  %11427 = vmatmul.mubr.msk.bf16.gmra.mxu1 %vm404_vm1, %v12273_v52  ;;  %v12335_v6 = vld [vmem:[#allocation6 + $0x208] ss:$16 sps:$4 sm:$0xff]  }
 0x3a6   :  { %18745 = vst [vmem:[#allocation270_spill] sm:$0xff] %v15896_v55  ;;  %18747 = vst [vmem:[#allocation103_spill] sm:$0xff] %v15899_v20  ;;  %v15904_v47 = vadd.f32 %v3260_v48, %v18748_v61  ;;  %v15907_v9 = vadd.f32 %v3533_v43, %v18750_v54  ;;  %4304 = vmatprep.mubr.bf16.mxu0 %v17943_v60  ;;  %4577 = vmatprep.mubr.bf16.mxu1 %v17943_v60  ;;  %v12337_v20 = vld [vmem:[#allocation6 + $0x20c] ss:$16 sps:$4 sm:$0xff]   ;;  %v18756_v54 = vld [vmem:[#allocation31_spill] sm:$0xff] }
 0x3a7   :  { %v3262_v12 = vpop.f32.mrf.mxu0  ;;  %v3535_v22 = vpop.f32.mrf.mxu1  ;;  %v18752_v55 = vld [vmem:[#allocation30_spill] sm:$0xff]  ;;  %5669 = vmatprep.subr.bf16.mxu0 %v12334_v19  ;;  %5782 = vmatprep.subr.bf16.mxu1 %v12337_v20  ;;  %v18762_v19 = vld [vmem:[#allocation200_spill] sm:$0xff]  ;;  %v18764_v20 = vld [vmem:[#allocation33_spill] sm:$0xff] }
 0x3a8   :  { %18749 = vst [vmem:[#allocation271_spill] sm:$0xff] %v15904_v47  ;;  %18751 = vst [vmem:[#allocation104_spill] sm:$0xff] %v15907_v9  ;;  %v15912_v32 = vadd.f32 %v3262_v12, %v18752_v55  ;;  %v18754_v52 = vld [vmem:[#allocation198_spill] sm:$0xff]  ;;  %5670 = vmatpush1.bf16.msra.mxu0 %v12332_v25  ;;  %v18758_v47 = vld [vmem:[#allocation199_spill] sm:$0xff]  ;;  %5783 = vmatpush1.bf16.msra.mxu1 %v12335_v6 }
 0x3a9   :  { %v15915_v11 = vadd.f32 %v3535_v22, %v18754_v52  ;;  %v3264_v61 = vpop.f32.mrf.mxu0  ;;  %v3537_v43 = vpop.f32.mrf.mxu1  ;;  %v12274_v48 = vld [vmem:[%s17876_s0 + $0x60] sm:$0xff]   ;;  %v18760_v22 = vld [vmem:[#allocation32_spill] sm:$0xff] }
 0x3aa   :  { %18753 = vst [vmem:[#allocation272_spill] sm:$0xff] %v15912_v32  ;;  %v15921_v9 = vadd.f32 %v3264_v61, %v18756_v54  ;;  %v15924_v59 = vadd.f32 %v3537_v43, %v18758_v47  ;;  %v18766_v47 = vld [vmem:[#allocation201_spill] sm:$0xff]  ;;  %v18768_v54 = vld [vmem:[#allocation34_spill] sm:$0xff] }
 0x3ab   :  { %18755 = vst [vmem:[#allocation105_spill] sm:$0xff] %v15915_v11  ;;  %v3266_v55 = vpop.f32.mrf.mxu0  ;;  %v3539_v12 = vpop.f32.mrf.mxu1 }
 0x3ac   :  { %18757 = vst [vmem:[#allocation273_spill] sm:$0xff] %v15921_v9  ;;  %18759 = vst [vmem:[#allocation106_spill] sm:$0xff] %v15924_v59  ;;  %v15927_v52 = vadd.f32 %v3266_v55, %v18760_v22  ;;  %v15930_v11 = vadd.f32 %v3539_v12, %v18762_v19  ;;  %v18770_v12 = vld [vmem:[#allocation202_spill] sm:$0xff] }
 0x3ad   :  { %v3270_v32 = vpop.f32.mrf.mxu0  ;;  %v3543_v35 = vpop.f32.mrf.mxu1  ;;  %11403 = vmatmul.mubr.msk.bf16.gmra.mxu0 %vm404_vm1, %v12274_v48  ;;  %11428 = vmatmul.mubr.msk.bf16.gmra.mxu1 %vm404_vm1, %v12274_v48 }
 0x3ae   :  { %18761 = vst [vmem:[#allocation274_spill] sm:$0xff] %v15927_v52  ;;  %18763 = vst [vmem:[#allocation107_spill] sm:$0xff] %v15930_v11  ;;  %v15935_v25 = vadd.f32 %v3270_v32, %v18764_v20  ;;  %v15938_v61 = vadd.f32 %v3543_v35, %v18766_v47  ;;  %4314 = vmatprep.mubr.bf16.mxu0 %v17943_v60  ;;  %4587 = vmatprep.mubr.bf16.mxu1 %v17943_v60  ;;  %v12275_v32 = vld [vmem:[%s17876_s0 + $0x68] sm:$0xff]  }
 0x3af   :  { %v3272_v6 = vpop.f32.mrf.mxu0  ;;  %v3545_v43 = vpop.f32.mrf.mxu1  ;;  %v18772_v35 = vld [vmem:[#allocation35_spill] sm:$0xff]  ;;  %v18776_v52 = vld [vmem:[#allocation36_spill] sm:$0xff] }
 0x3b0   :  { %18765 = vst [vmem:[#allocation275_spill] sm:$0xff] %v15935_v25  ;;  %18767 = vst [vmem:[#allocation108_spill] sm:$0xff] %v15938_v61  ;;  %v15943_v55 = vadd.f32 %v3272_v6, %v18768_v54  ;;  %v15946_v22 = vadd.f32 %v3545_v43, %v18770_v12  ;;  %v18774_v47 = vld [vmem:[#allocation203_spill] sm:$0xff]  ;;  %v18778_v54 = vld [vmem:[#allocation204_spill] sm:$0xff] }
 0x3b1   :  { %v3274_v19 = vpop.f32.mrf.mxu0  ;;  %v3547_v48 = vpop.f32.mrf.mxu1  ;;  %v12338_v12 = vld [vmem:[#allocation6 + $0x3e0] ss:$16 sps:$4 sm:$0xff]  }
 0x3b2   :  { %18769 = vst [vmem:[#allocation276_spill] sm:$0xff] %v15943_v55  ;;  %18771 = vst [vmem:[#allocation109_spill] sm:$0xff] %v15946_v22  ;;  %v15952_v20 = vadd.f32 %v3274_v19, %v18772_v35  ;;  %v15955_v61 = vadd.f32 %v3547_v48, %v18774_v47  ;;  %v12340_v22 = vld [vmem:[#allocation6 + $0x3e4] ss:$16 sps:$4 sm:$0xff]   ;;  %v12341_v55 = vld [vmem:[#allocation6 + $0x3e8] ss:$16 sps:$4 sm:$0xff]  }
 0x3b3   :  { %v3276_v25 = vpop.f32.mrf.mxu0  ;;  %v3549_v11 = vpop.f32.mrf.mxu1  ;;  %v12343_v19 = vld [vmem:[#allocation6 + $0x3ec] ss:$16 sps:$4 sm:$0xff]   ;;  %v18780_v48 = vld [vmem:[#allocation37_spill] sm:$0xff]  ;;  %5671 = vmatprep.subr.bf16.mxu0 %v12340_v22 }
 0x3b4   :  { %18773 = vst [vmem:[#allocation277_spill] sm:$0xff] %v15952_v20  ;;  %18775 = vst [vmem:[#allocation110_spill] sm:$0xff] %v15955_v61  ;;  %v15958_v6 = vadd.f32 %v3276_v25, %v18776_v52  ;;  %v15961_v43 = vadd.f32 %v3549_v11, %v18778_v54  ;;  %v18782_v47 = vld [vmem:[#allocation205_spill] sm:$0xff]  ;;  %5784 = vmatprep.subr.bf16.mxu1 %v12343_v19  ;;  %v18784_v25 = vld [vmem:[#allocation38_spill] sm:$0xff]  ;;  %5672 = vmatpush2.bf16.msra.mxu0 %v12338_v12 }
 0x3b5   :  { %v3280_v59 = vpop.f32.mrf.mxu0  ;;  %v3553_v9 = vpop.f32.mrf.mxu1  ;;  %11404 = vmatmul.mubr.msk.bf16.gmra.mxu0 %vm404_vm1, %v12275_v32  ;;  %11429 = vmatmul.mubr.msk.bf16.gmra.mxu1 %vm404_vm1, %v12275_v32  ;;  %v12358_v20 = vld [vmem:[#allocation6 + $0x384] ss:$16 sps:$4 sm:$0xff]  }
 0x3b6   :  { %18777 = vst [vmem:[#allocation278_spill] sm:$0xff] %v15958_v6  ;;  %18779 = vst [vmem:[#allocation111_spill] sm:$0xff] %v15961_v43  ;;  %v15966_v35 = vadd.f32 %v3280_v59, %v18780_v48  ;;  %v15969_v61 = vadd.f32 %v3553_v9, %v18782_v47  ;;  %4324 = vmatprep.mubr.bf16.mxu0 %v17943_v60  ;;  %4597 = vmatprep.mubr.bf16.mxu1 %v17943_v60  ;;  %v18786_v43 = vld [vmem:[#allocation206_spill] sm:$0xff]  ;;  %v12276_v9 = vld [vmem:[%s17876_s0 + $0x70] sm:$0xff]  }
 0x3b7   :  { %v3282_v11 = vpop.f32.mrf.mxu0  ;;  %v3555_v52 = vpop.f32.mrf.mxu1  ;;  %5785 = vmatpush2.bf16.msra.mxu1 %v12341_v55  ;;  %v18788_v47 = vld [vmem:[#allocation39_spill] sm:$0xff] }
 0x3b8   :  { %18781 = vst [vmem:[#allocation279_spill] sm:$0xff] %v15966_v35  ;;  %18783 = vst [vmem:[#allocation112_spill] sm:$0xff] %v15969_v61  ;;  %v15974_v54 = vadd.f32 %v3282_v11, %v18784_v25  ;;  %v15977_v32 = vadd.f32 %v3555_v52, %v18786_v43  ;;  %v18790_v35 = vld [vmem:[#allocation207_spill] sm:$0xff]  ;;  %v18792_v25 = vld [vmem:[#allocation40_spill] sm:$0xff] }
 0x3b9   :  { %v3284_v59 = vpop.f32.mrf.mxu0  ;;  %v3557_v48 = vpop.f32.mrf.mxu1  ;;  %v18794_v43 = vld [vmem:[#allocation208_spill] sm:$0xff]  ;;  %v12346_v55 = vld [vmem:[#allocation6 + $0x3c4] ss:$16 sps:$4 sm:$0xff]  }
 0x3ba   :  { %18785 = vst [vmem:[#allocation280_spill] sm:$0xff] %v15974_v54  ;;  %18787 = vst [vmem:[#allocation113_spill] sm:$0xff] %v15977_v32  ;;  %v15983_v61 = vadd.f32 %v3284_v59, %v18788_v47  ;;  %v15986_v22 = vadd.f32 %v3557_v48, %v18790_v35  ;;  %v12349_v52 = vld [vmem:[#allocation6 + $0x3cc] ss:$16 sps:$4 sm:$0xff]   ;;  %v12344_v59 = vld [vmem:[#allocation6 + $0x3c0] ss:$16 sps:$4 sm:$0xff]   ;;  %5673 = vmatprep.subr.bf16.mxu0 %v12346_v55 }
 0x3bb   :  { %v3286_v19 = vpop.f32.mrf.mxu0  ;;  %v3559_v11 = vpop.f32.mrf.mxu1  ;;  %v12347_v47 = vld [vmem:[#allocation6 + $0x3c8] ss:$16 sps:$4 sm:$0xff]   ;;  %v18796_v35 = vld [vmem:[#allocation41_spill] sm:$0xff]  ;;  %5786 = vmatprep.subr.bf16.mxu1 %v12349_v52  ;;  %5674 = vmatpush2.bf16.msra.mxu0 %v12344_v59  ;;  %v18804_v55 = vld [vmem:[#allocation43_spill] sm:$0xff] }
 0x3bc   :  { %18789 = vst [vmem:[#allocation281_spill] sm:$0xff] %v15983_v61  ;;  %18791 = vst [vmem:[#allocation114_spill] sm:$0xff] %v15986_v22  ;;  %v15989_v54 = vadd.f32 %v3286_v19, %v18792_v25  ;;  %v15992_v12 = vadd.f32 %v3559_v11, %v18794_v43  ;;  %v18798_v22 = vld [vmem:[#allocation209_spill] sm:$0xff]  ;;  %v18800_v25 = vld [vmem:[#allocation42_spill] sm:$0xff]  ;;  %5787 = vmatpush2.bf16.msra.mxu1 %v12347_v47 }
 0x3bd   :  { %v3290_v32 = vpop.f32.mrf.mxu0  ;;  %v3563_v6 = vpop.f32.mrf.mxu1  ;;  %11405 = vmatmul.mubr.msk.bf16.gmra.mxu0 %vm404_vm1, %v12276_v9  ;;  %11430 = vmatmul.mubr.msk.bf16.gmra.mxu1 %vm404_vm1, %v12276_v9  ;;  %v18802_v9 = vld [vmem:[#allocation210_spill] sm:$0xff] }
 0x3be   :  { %18793 = vst [vmem:[#allocation282_spill] sm:$0xff] %v15989_v54  ;;  %18795 = vst [vmem:[#allocation115_spill] sm:$0xff] %v15992_v12  ;;  %v15997_v48 = vadd.f32 %v3290_v32, %v18796_v35  ;;  %v16000_v61 = vadd.f32 %v3563_v6, %v18798_v22  ;;  %4334 = vmatprep.mubr.bf16.mxu0 %v17943_v60  ;;  %4607 = vmatprep.mubr.bf16.mxu1 %v17943_v60  ;;  %v12352_v32 = vld [vmem:[#allocation6 + $0x3a4] ss:$16 sps:$4 sm:$0xff]   ;;  %v12355_v35 = vld [vmem:[#allocation6 + $0x3ac] ss:$16 sps:$4 sm:$0xff]  }
 0x3bf   :  { %v3292_v19 = vpop.f32.mrf.mxu0  ;;  %v3565_v11 = vpop.f32.mrf.mxu1  ;;  %v12353_v54 = vld [vmem:[#allocation6 + $0x3a8] ss:$16 sps:$4 sm:$0xff]   ;;  %5675 = vmatprep.subr.bf16.mxu0 %v12352_v32  ;;  %5788 = vmatprep.subr.bf16.mxu1 %v12355_v35  ;;  %v12356_v32 = vld [vmem:[#allocation6 + $0x380] ss:$16 sps:$4 sm:$0xff]  }
 0x3c0   :  { %18797 = vst [vmem:[#allocation283_spill] sm:$0xff] %v15997_v48  ;;  %18799 = vst [vmem:[#allocation116_spill] sm:$0xff] %v16000_v61  ;;  %v16005_v43 = vadd.f32 %v3292_v19, %v18800_v25  ;;  %v16008_v12 = vadd.f32 %v3565_v11, %v18802_v9  ;;  %v12277_v61 = vld [vmem:[%s17876_s0 + $0x78] sm:$0xff]   ;;  %v12350_v48 = vld [vmem:[#allocation6 + $0x3a0] ss:$16 sps:$4 sm:$0xff]   ;;  %5789 = vmatpush2.bf16.msra.mxu1 %v12353_v54 }
 0x3c1   :  { %v3294_v6 = vpop.f32.mrf.mxu0  ;;  %v3567_v22 = vpop.f32.mrf.mxu1  ;;  %v18806_v19 = vld [vmem:[#allocation211_spill] sm:$0xff]  ;;  %v18808_v11 = vld [vmem:[#allocation44_spill] sm:$0xff]  ;;  %5676 = vmatpush2.bf16.msra.mxu0 %v12350_v48  ;;  %5790 = vmatprep.subr.bf16.mxu1 %v12361_v41  ;;  %v18816_v48 = vld [vmem:[#allocation46_spill] sm:$0xff] }
 0x3c2   :  { %18801 = vst [vmem:[#allocation284_spill] sm:$0xff] %v16005_v43  ;;  %18803 = vst [vmem:[#allocation117_spill] sm:$0xff] %v16008_v12  ;;  %v16014_v52 = vadd.f32 %v3294_v6, %v18804_v55  ;;  %v16017_v25 = vadd.f32 %v3567_v22, %v18806_v19  ;;  %v18810_v12 = vld [vmem:[#allocation212_spill] sm:$0xff]  ;;  %v18812_v22 = vld [vmem:[#allocation45_spill] sm:$0xff]  ;;  %5677 = vmatprep.subr.bf16.mxu0 %v12358_v20 }
 0x3c3   :  { %v3296_v59 = vpop.f32.mrf.mxu0  ;;  %v3569_v47 = vpop.f32.mrf.mxu1  ;;  %v12359_v35 = vld [vmem:[#allocation6 + $0x388] ss:$16 sps:$4 sm:$0xff]   ;;  %v18814_v19 = vld [vmem:[#allocation213_spill] sm:$0xff]  ;;  %v18820_v20 = vld [vmem:[#allocation47_spill] sm:$0xff] }
 0x3c4   :  { %18805 = vst [vmem:[#allocation285_spill] sm:$0xff] %v16014_v52  ;;  %18807 = vst [vmem:[#allocation118_spill] sm:$0xff] %v16017_v25  ;;  %v16020_v9 = vadd.f32 %v3296_v59, %v18808_v11  ;;  %v16023_v43 = vadd.f32 %v3569_v47, %v18810_v12  ;;  %5791 = vmatpush2.bf16.msra.mxu1 %v12359_v35  ;;  %v12373_v25 = vld [vmem:[#allocation6 + $0x34c] ss:$16 sps:$4 sm:$0xff]  }
 0x3c5   :  { %v3300_v23 = vpop.f32.mrf.mxu0  ;;  %v3573_v6 = vpop.f32.mrf.mxu1  ;;  %11406 = vmatmul.mubr.msk.bf16.gmra.mxu0 %vm404_vm1, %v12277_v61  ;;  %11431 = vmatmul.mubr.msk.bf16.gmra.mxu1 %vm404_vm1, %v12277_v61  ;;  %v18818_v61 = vld [vmem:[#allocation214_spill] sm:$0xff] }
 0x3c6   :  { %18809 = vst [vmem:[#allocation286_spill] sm:$0xff] %v16020_v9  ;;  %18811 = vst [vmem:[#allocation119_spill] sm:$0xff] %v16023_v43  ;;  %v16028_v55 = vadd.f32 %v3300_v23, %v18812_v22  ;;  %v16031_v59 = vadd.f32 %v3573_v6, %v18814_v19  ;;  %4344 = vmatprep.mubr.bf16.mxu0 %v17943_v60  ;;  %4617 = vmatprep.mubr.bf16.mxu1 %v17943_v60  ;;  %v12364_v23 = vld [vmem:[#allocation6 + $0x364] ss:$16 sps:$4 sm:$0xff]   ;;  %v12367_v22 = vld [vmem:[#allocation6 + $0x36c] ss:$16 sps:$4 sm:$0xff]  }
 0x3c7   :  { %v3302_v54 = vpop.f32.mrf.mxu0  ;;  %v3575_v12 = vpop.f32.mrf.mxu1  ;;  %5678 = vmatpush2.bf16.msra.mxu0 %v12356_v32  ;;  %v12365_v43 = vld [vmem:[#allocation6 + $0x368] ss:$16 sps:$4 sm:$0xff]   ;;  %5792 = vmatprep.subr.bf16.mxu1 %v12367_v22  ;;  %v12370_v9 = vld [vmem:[#allocation6 + $0x344] ss:$16 sps:$4 sm:$0xff]  }
 0x3c8   :  { %18813 = vst [vmem:[#allocation287_spill] sm:$0xff] %v16028_v55  ;;  %18815 = vst [vmem:[#allocation120_spill] sm:$0xff] %v16031_v59  ;;  %v16036_v47 = vadd.f32 %v3302_v54, %v18816_v48  ;;  %v16039_v11 = vadd.f32 %v3575_v12, %v18818_v61  ;;  %v12278_v59 = vld [vmem:[%s17876_s0 + $0x80] sm:$0xff]   ;;  %5679 = vmatprep.subr.bf16.mxu0 %v12364_v23  ;;  %v18824_v12 = vld [vmem:[#allocation48_spill] sm:$0xff]  ;;  %5793 = vmatpush2.bf16.msra.mxu1 %v12365_v43 }
 0x3c9   :  { %v3304_v6 = vpop.f32.mrf.mxu0  ;;  %v3577_v19 = vpop.f32.mrf.mxu1  ;;  %v12362_v55 = vld [vmem:[#allocation6 + $0x360] ss:$16 sps:$4 sm:$0xff]   ;;  %v12371_v22 = vld [vmem:[#allocation6 + $0x348] ss:$16 sps:$4 sm:$0xff]   ;;  %5794 = vmatprep.subr.bf16.mxu1 %v12373_v25 }
 0x3ca   :  { %18817 = vst [vmem:[#allocation288_spill] sm:$0xff] %v16036_v47  ;;  %18819 = vst [vmem:[#allocation121_spill] sm:$0xff] %v16039_v11  ;;  %v16045_v41 = vadd.f32 %v3304_v6, %v18820_v20  ;;  %v18822_v54 = vld [vmem:[#allocation215_spill] sm:$0xff]  ;;  %v18826_v11 = vld [vmem:[#allocation216_spill] sm:$0xff] }
 0x3cb   :  { %v16048_v48 = vadd.f32 %v3577_v19, %v18822_v54  ;;  %v3306_v32 = vpop.f32.mrf.mxu0  ;;  %v3579_v35 = vpop.f32.mrf.mxu1  ;;  %5680 = vmatpush2.bf16.msra.mxu0 %v12362_v55  ;;  %v12368_v23 = vld [vmem:[#allocation6 + $0x340] ss:$16 sps:$4 sm:$0xff]  }
 0x3cc   :  { %18821 = vst [vmem:[#allocation289_spill] sm:$0xff] %v16045_v41  ;;  %v16051_v61 = vadd.f32 %v3306_v32, %v18824_v12  ;;  %v16054_v47 = vadd.f32 %v3579_v35, %v18826_v11  ;;  %v18828_v19 = vld [vmem:[#allocation49_spill] sm:$0xff]  ;;  %5681 = vmatprep.subr.bf16.mxu0 %v12370_v9  ;;  %v18832_v11 = vld [vmem:[#allocation50_spill] sm:$0xff]  ;;  %5795 = vmatpush2.bf16.msra.mxu1 %v12371_v22  ;;  %v18836_v9 = vld [vmem:[#allocation51_spill] sm:$0xff] }
 0x3cd   :  { %18823 = vst [vmem:[#allocation122_spill] sm:$0xff] %v16048_v48  ;;  %v3310_v52 = vpop.f32.mrf.mxu0  ;;  %v3583_v6 = vpop.f32.mrf.mxu1  ;;  %11407 = vmatmul.mubr.msk.bf16.gmra.mxu0 %vm404_vm1, %v12278_v59  ;;  %11432 = vmatmul.mubr.msk.bf16.gmra.mxu1 %vm404_vm1, %v12278_v59  ;;  %v18830_v54 = vld [vmem:[#allocation217_spill] sm:$0xff]  ;;  %v18834_v59 = vld [vmem:[#allocation218_spill] sm:$0xff] }
 0x3ce   :  { %18825 = vst [vmem:[#allocation290_spill] sm:$0xff] %v16051_v61  ;;  %18827 = vst [vmem:[#allocation123_spill] sm:$0xff] %v16054_v47  ;;  %v16059_v20 = vadd.f32 %v3310_v52, %v18828_v19  ;;  %v16062_v32 = vadd.f32 %v3583_v6, %v18830_v54  ;;  %4354 = vmatprep.mubr.bf16.mxu0 %v17943_v60  ;;  %4627 = vmatprep.mubr.bf16.mxu1 %v17943_v60  ;;  %v12376_v52 = vld [vmem:[#allocation6 + $0x324] ss:$16 sps:$4 sm:$0xff]   ;;  %v12379_v19 = vld [vmem:[#allocation6 + $0x32c] ss:$16 sps:$4 sm:$0xff]  }
 0x3cf   :  { %v3312_v43 = vpop.f32.mrf.mxu0  ;;  %v3585_v55 = vpop.f32.mrf.mxu1  ;;  %5682 = vmatpush2.bf16.msra.mxu0 %v12368_v23  ;;  %v12377_v47 = vld [vmem:[#allocation6 + $0x328] ss:$16 sps:$4 sm:$0xff]   ;;  %5796 = vmatprep.subr.bf16.mxu1 %v12379_v19  ;;  %v12382_v61 = vld [vmem:[#allocation6 + $0x304] ss:$16 sps:$4 sm:$0xff]   ;;  %v12385_v48 = vld [vmem:[#allocation6 + $0x30c] ss:$16 sps:$4 sm:$0xff]  }
 0x3d0   :  { %18829 = vst [vmem:[#allocation291_spill] sm:$0xff] %v16059_v20  ;;  %18831 = vst [vmem:[#allocation124_spill] sm:$0xff] %v16062_v32  ;;  %v16067_v35 = vadd.f32 %v3312_v43, %v18832_v11  ;;  %v16070_v12 = vadd.f32 %v3585_v55, %v18834_v59  ;;  %v12285_v32 = vld [vmem:[%s17876_s0 + $0x88] sm:$0xff]   ;;  %v12374_v20 = vld [vmem:[#allocation6 + $0x320] ss:$16 sps:$4 sm:$0xff]   ;;  %5683 = vmatprep.subr.bf16.mxu0 %v12376_v52  ;;  %5797 = vmatpush2.bf16.msra.mxu1 %v12377_v47 }
 0x3d1   :  { %v3314_v6 = vpop.f32.mrf.mxu0  ;;  %v3587_v54 = vpop.f32.mrf.mxu1  ;;  %v18837_v43 = vld [vmem:[#allocation219_spill] sm:$0xff]  ;;  %v18838_v55 = vld [vmem:[#allocation52_spill] sm:$0xff]  ;;  %5798 = vmatprep.subr.bf16.mxu1 %v12385_v48 }
 0x3d2   :  { %18833 = vst [vmem:[#allocation292_spill] sm:$0xff] %v16067_v35  ;;  %18835 = vst [vmem:[#allocation125_spill] sm:$0xff] %v16070_v12  ;;  %v16076_v25 = vadd.f32 %v3314_v6, %v18836_v9  ;;  %v16079_v11 = vadd.f32 %v3587_v54, %v18837_v43  ;;  %v18839_v12 = vld [vmem:[#allocation220_spill] sm:$0xff]  ;;  %v12380_v52 = vld [vmem:[#allocation6 + $0x300] ss:$16 sps:$4 sm:$0xff]  }
 0x3d3   :  { %v3316_v23 = vpop.f32.mrf.mxu0  ;;  %v3589_v22 = vpop.f32.mrf.mxu1  ;;  %5684 = vmatpush2.bf16.msra.mxu0 %v12374_v20  ;;  %v12383_v19 = vld [vmem:[#allocation6 + $0x308] ss:$16 sps:$4 sm:$0xff]   ;;  %v18840_v54 = vld [vmem:[#allocation53_spill] sm:$0xff] }
 0x3d4   :  { %v16082_v59 = vadd.f32 %v3316_v23, %v18838_v55  ;;  %v16085_v35 = vadd.f32 %v3589_v22, %v18839_v12  ;;  %v18842_v43 = vld [vmem:[#allocation221_spill] sm:$0xff]  ;;  %5685 = vmatprep.subr.bf16.mxu0 %v12382_v61  ;;  %v18844_v12 = vld [vmem:[#allocation54_spill] sm:$0xff]  ;;  %5799 = vmatpush2.bf16.msra.mxu1 %v12383_v19 }
 0x3d5   :  { %v3320_v41 = vpop.f32.mrf.mxu0  ;;  %v3593_v6 = vpop.f32.mrf.mxu1  ;;  %11408 = vmatmul.mubr.msk.bf16.gmra.mxu0 %vm404_vm1, %v12285_v32  ;;  %11433 = vmatmul.mubr.msk.bf16.gmra.mxu1 %vm404_vm1, %v12285_v32  ;;  %v18846_v32 = vld [vmem:[#allocation222_spill] sm:$0xff] }
 0x3d6   :  { %v16090_v9 = vadd.f32 %v3320_v41, %v18840_v54  ;;  %v16093_v23 = vadd.f32 %v3593_v6, %v18842_v43  ;;  %4364 = vmatprep.mubr.bf16.mxu0 %v17943_v60  ;;  %4637 = vmatprep.mubr.bf16.mxu1 %v17943_v60  ;;  %v12286_v6 = vld [vmem:[%s17876_s0 + $0x90] sm:$0xff]   ;;  %v18848_v43 = vld [vmem:[#allocation55_spill] sm:$0xff] }
 0x3d7   :  { %v3322_v47 = vpop.f32.mrf.mxu0  ;;  %v3595_v20 = vpop.f32.mrf.mxu1  ;;  %5686 = vmatpush2.bf16.msra.mxu0 %v12380_v52 }
 0x3d8   :  { %18841 = vst [vmem:[#allocation293_spill] sm:$0xff] %v16090_v9  ;;  %18843 = vst [vmem:[#allocation126_spill] sm:$0xff] %v16093_v23  ;;  %v16098_v22 = vadd.f32 %v3322_v47, %v18844_v12  ;;  %v16101_v55 = vadd.f32 %v3595_v20, %v18846_v32  ;;  %v18850_v9 = vld [vmem:[#allocation223_spill] sm:$0xff]  ;;  %v18852_v12 = vld [vmem:[#allocation56_spill] sm:$0xff] }
 0x3d9   :  { %v3324_v41 = vpop.f32.mrf.mxu0  ;;  %v3597_v54 = vpop.f32.mrf.mxu1  ;;  %v18854_v20 = vld [vmem:[#allocation224_spill] sm:$0xff] }
 0x3da   :  { %18845 = vst [vmem:[#allocation294_spill] sm:$0xff] %v16098_v22  ;;  %18847 = vst [vmem:[#allocation127_spill] sm:$0xff] %v16101_v55  ;;  %v16107_v23 = vadd.f32 %v3324_v41, %v18848_v43  ;;  %v16110_v61 = vadd.f32 %v3597_v54, %v18850_v9  ;;  %v18856_v55 = vld [vmem:[#allocation57_spill] sm:$0xff] }
 0x3db   :  { %v3326_v48 = vpop.f32.mrf.mxu0  ;;  %v3599_v47 = vpop.f32.mrf.mxu1  ;;  %v18858_v43 = vld [vmem:[#allocation225_spill] sm:$0xff] }
 0x3dc   :  { %18849 = vst [vmem:[#allocation295_spill] sm:$0xff] %v16107_v23  ;;  %18851 = vst [vmem:[#allocation128_spill] sm:$0xff] %v16110_v61  ;;  %v16113_v22 = vadd.f32 %v3326_v48, %v18852_v12  ;;  %v16116_v52 = vadd.f32 %v3599_v47, %v18854_v20  ;;  %v18860_v47 = vld [vmem:[#allocation58_spill] sm:$0xff]  ;;  %v18868_v23 = vld [vmem:[#allocation60_spill] sm:$0xff] }
 0x3dd   :  { %v3330_v19 = vpop.f32.mrf.mxu0  ;;  %v3603_v32 = vpop.f32.mrf.mxu1  ;;  %11409 = vmatmul.mubr.msk.bf16.gmra.mxu0 %vm404_vm1, %v12286_v6  ;;  %11434 = vmatmul.mubr.msk.bf16.gmra.mxu1 %vm404_vm1, %v12286_v6  ;;  %v18862_v20 = vld [vmem:[#allocation226_spill] sm:$0xff] }
 0x3de   :  { %18853 = vst [vmem:[#allocation296_spill] sm:$0xff] %v16113_v22  ;;  %18855 = vst [vmem:[#allocation129_spill] sm:$0xff] %v16116_v52  ;;  %v16121_v41 = vadd.f32 %v3330_v19, %v18856_v55  ;;  %v16124_v9 = vadd.f32 %v3603_v32, %v18858_v43  ;;  %4374 = vmatprep.mubr.bf16.mxu0 %v17943_v60  ;;  %4647 = vmatprep.mubr.bf16.mxu1 %v17943_v60  ;;  %v12293_v55 = vld [vmem:[%s17876_s0 + $0x98] sm:$0xff]   ;;  %v18864_v19 = vld [vmem:[#allocation59_spill] sm:$0xff] }
 0x3df   :  { %v3332_v54 = vpop.f32.mrf.mxu0  ;;  %v3605_v48 = vpop.f32.mrf.mxu1  ;;  %v18866_v43 = vld [vmem:[#allocation227_spill] sm:$0xff] }
 0x3e0   :  { %18857 = vst [vmem:[#allocation297_spill] sm:$0xff] %v16121_v41  ;;  %18859 = vst [vmem:[#allocation130_spill] sm:$0xff] %v16124_v9  ;;  %v16129_v12 = vadd.f32 %v3332_v54, %v18860_v47  ;;  %v16132_v52 = vadd.f32 %v3605_v48, %v18862_v20  ;;  %v18870_v47 = vld [vmem:[#allocation228_spill] sm:$0xff] }
 0x3e1   :  { %v3334_v22 = vpop.f32.mrf.mxu0  ;;  %v3607_v6 = vpop.f32.mrf.mxu1 }
 0x3e2   :  { %18861 = vst [vmem:[#allocation298_spill] sm:$0xff] %v16129_v12  ;;  %18863 = vst [vmem:[#allocation131_spill] sm:$0xff] %v16132_v52  ;;  %v16138_v32 = vadd.f32 %v3334_v22, %v18864_v19  ;;  %v16141_v9 = vadd.f32 %v3607_v6, %v18866_v43  ;;  %v18872_v12 = vld [vmem:[#allocation61_spill] sm:$0xff] }
 0x3e3   :  { %v3336_v41 = vpop.f32.mrf.mxu0  ;;  %v3609_v61 = vpop.f32.mrf.mxu1  ;;  %v18874_v19 = vld [vmem:[#allocation229_spill] sm:$0xff] }
 0x3e4   :  { %18865 = vst [vmem:[#allocation299_spill] sm:$0xff] %v16138_v32  ;;  %18867 = vst [vmem:[#allocation132_spill] sm:$0xff] %v16141_v9  ;;  %v16144_v54 = vadd.f32 %v3336_v41, %v18868_v23  ;;  %v16147_v48 = vadd.f32 %v3609_v61, %v18870_v47  ;;  %v18876_v61 = vld [vmem:[#allocation62_spill] sm:$0xff]  ;;  %v18884_v32 = vld [vmem:[#allocation64_spill] sm:$0xff] }
 0x3e5   :  { %v3340_v20 = vpop.f32.mrf.mxu0  ;;  %v3613_v52 = vpop.f32.mrf.mxu1  ;;  %11410 = vmatmul.mubr.msk.bf16.gmra.mxu0 %vm404_vm1, %v12293_v55  ;;  %11435 = vmatmul.mubr.msk.bf16.gmra.mxu1 %vm404_vm1, %v12293_v55  ;;  %v18878_v47 = vld [vmem:[#allocation230_spill] sm:$0xff] }
 0x3e6   :  { %18869 = vst [vmem:[#allocation300_spill] sm:$0xff] %v16144_v54  ;;  %18871 = vst [vmem:[#allocation133_spill] sm:$0xff] %v16147_v48  ;;  %v16152_v22 = vadd.f32 %v3340_v20, %v18872_v12  ;;  %v16155_v6 = vadd.f32 %v3613_v52, %v18874_v19  ;;  %4384 = vmatprep.mubr.bf16.mxu0 %v17943_v60  ;;  %4657 = vmatprep.mubr.bf16.mxu1 %v17943_v60  ;;  %v12300_v12 = vld [vmem:[%s17876_s0 + $0xa0] sm:$0xff]  }
 0x3e7   :  { %v3342_v23 = vpop.f32.mrf.mxu0  ;;  %v3615_v41 = vpop.f32.mrf.mxu1  ;;  %v18880_v52 = vld [vmem:[#allocation63_spill] sm:$0xff] }
 0x3e8   :  { %18873 = vst [vmem:[#allocation301_spill] sm:$0xff] %v16152_v22  ;;  %18875 = vst [vmem:[#allocation134_spill] sm:$0xff] %v16155_v6  ;;  %v16160_v43 = vadd.f32 %v3342_v23, %v18876_v61  ;;  %v16163_v48 = vadd.f32 %v3615_v41, %v18878_v47  ;;  %v18882_v19 = vld [vmem:[#allocation231_spill] sm:$0xff]  ;;  %v18886_v61 = vld [vmem:[#allocation232_spill] sm:$0xff] }
 0x3e9   :  { %v3344_v54 = vpop.f32.mrf.mxu0  ;;  %v3617_v55 = vpop.f32.mrf.mxu1 }
 0x3ea   :  { %18877 = vst [vmem:[#allocation302_spill] sm:$0xff] %v16160_v43  ;;  %18879 = vst [vmem:[#allocation135_spill] sm:$0xff] %v16163_v48  ;;  %v16169_v20 = vadd.f32 %v3344_v54, %v18880_v52  ;;  %v16172_v6 = vadd.f32 %v3617_v55, %v18882_v19  ;;  %v18888_v43 = vld [vmem:[#allocation65_spill] sm:$0xff] }
 0x3eb   :  { %v3346_v22 = vpop.f32.mrf.mxu0  ;;  %v3619_v9 = vpop.f32.mrf.mxu1  ;;  %v18890_v52 = vld [vmem:[#allocation233_spill] sm:$0xff] }
 0x3ec   :  { %18881 = vst [vmem:[#allocation303_spill] sm:$0xff] %v16169_v20  ;;  %18883 = vst [vmem:[#allocation136_spill] sm:$0xff] %v16172_v6  ;;  %v16175_v23 = vadd.f32 %v3346_v22, %v18884_v32  ;;  %v16178_v41 = vadd.f32 %v3619_v9, %v18886_v61  ;;  %v18892_v9 = vld [vmem:[#allocation66_spill] sm:$0xff]  ;;  %v18900_v20 = vld [vmem:[#allocation68_spill] sm:$0xff] }
 0x3ed   :  { %v3350_v47 = vpop.f32.mrf.mxu0  ;;  %v3623_v48 = vpop.f32.mrf.mxu1  ;;  %11411 = vmatmul.mubr.msk.bf16.gmra.mxu0 %vm404_vm1, %v12300_v12  ;;  %11436 = vmatmul.mubr.msk.bf16.gmra.mxu1 %vm404_vm1, %v12300_v12  ;;  %v18894_v61 = vld [vmem:[#allocation234_spill] sm:$0xff] }
 0x3ee   :  { %18885 = vst [vmem:[#allocation304_spill] sm:$0xff] %v16175_v23  ;;  %18887 = vst [vmem:[#allocation137_spill] sm:$0xff] %v16178_v41  ;;  %v16183_v54 = vadd.f32 %v3350_v47, %v18888_v43  ;;  %v16186_v55 = vadd.f32 %v3623_v48, %v18890_v52  ;;  %4394 = vmatprep.mubr.bf16.mxu0 %v17943_v60  ;;  %4667 = vmatprep.mubr.bf16.mxu1 %v17943_v60  ;;  %v12301_v43 = vld [vmem:[%s17876_s0 + $0xa8] sm:$0xff]  }
 0x3ef   :  { %v3352_v32 = vpop.f32.mrf.mxu0  ;;  %v3625_v22 = vpop.f32.mrf.mxu1  ;;  %v18896_v48 = vld [vmem:[#allocation67_spill] sm:$0xff] }
 0x3f0   :  { %18889 = vst [vmem:[#allocation305_spill] sm:$0xff] %v16183_v54  ;;  %18891 = vst [vmem:[#allocation138_spill] sm:$0xff] %v16186_v55  ;;  %v16191_v19 = vadd.f32 %v3352_v32, %v18892_v9  ;;  %v16194_v41 = vadd.f32 %v3625_v22, %v18894_v61  ;;  %v18898_v52 = vld [vmem:[#allocation235_spill] sm:$0xff]  ;;  %v18902_v9 = vld [vmem:[#allocation236_spill] sm:$0xff] }
 0x3f1   :  { %v3354_v23 = vpop.f32.mrf.mxu0  ;;  %v3627_v12 = vpop.f32.mrf.mxu1 }
 0x3f2   :  { %18893 = vst [vmem:[#allocation306_spill] sm:$0xff] %v16191_v19  ;;  %18895 = vst [vmem:[#allocation139_spill] sm:$0xff] %v16194_v41  ;;  %v16200_v47 = vadd.f32 %v3354_v23, %v18896_v48  ;;  %v16203_v55 = vadd.f32 %v3627_v12, %v18898_v52  ;;  %v18904_v19 = vld [vmem:[#allocation69_spill] sm:$0xff] }
 0x3f3   :  { %v3356_v54 = vpop.f32.mrf.mxu0  ;;  %v3629_v6 = vpop.f32.mrf.mxu1  ;;  %v18906_v48 = vld [vmem:[#allocation237_spill] sm:$0xff] }
 0x3f4   :  { %18897 = vst [vmem:[#allocation307_spill] sm:$0xff] %v16200_v47  ;;  %18899 = vst [vmem:[#allocation140_spill] sm:$0xff] %v16203_v55  ;;  %v16206_v32 = vadd.f32 %v3356_v54, %v18900_v20  ;;  %v16209_v22 = vadd.f32 %v3629_v6, %v18902_v9  ;;  %v18908_v6 = vld [vmem:[#allocation70_spill] sm:$0xff]  ;;  %v18916_v47 = vld [vmem:[#allocation72_spill] sm:$0xff] }
 0x3f5   :  { %v3360_v61 = vpop.f32.mrf.mxu0  ;;  %v3633_v41 = vpop.f32.mrf.mxu1  ;;  %11412 = vmatmul.mubr.msk.bf16.gmra.mxu0 %vm404_vm1, %v12301_v43  ;;  %11437 = vmatmul.mubr.msk.bf16.gmra.mxu1 %vm404_vm1, %v12301_v43  ;;  %v18910_v9 = vld [vmem:[#allocation238_spill] sm:$0xff] }
 0x3f6   :  { %18901 = vst [vmem:[#allocation308_spill] sm:$0xff] %v16206_v32  ;;  %18903 = vst [vmem:[#allocation141_spill] sm:$0xff] %v16209_v22  ;;  %v16214_v23 = vadd.f32 %v3360_v61, %v18904_v19  ;;  %v16217_v12 = vadd.f32 %v3633_v41, %v18906_v48  ;;  %4404 = vmatprep.mubr.bf16.mxu0 %v17943_v60  ;;  %4677 = vmatprep.mubr.bf16.mxu1 %v17943_v60  ;;  %v12308_v19 = vld [vmem:[%s17876_s0 + $0xb0] sm:$0xff]   ;;  %v18912_v41 = vld [vmem:[#allocation71_spill] sm:$0xff] }
 0x3f7   :  { %v3362_v20 = vpop.f32.mrf.mxu0  ;;  %v3635_v54 = vpop.f32.mrf.mxu1  ;;  %v18914_v48 = vld [vmem:[#allocation239_spill] sm:$0xff] }
 0x3f8   :  { %18905 = vst [vmem:[#allocation309_spill] sm:$0xff] %v16214_v23  ;;  %18907 = vst [vmem:[#allocation142_spill] sm:$0xff] %v16217_v12  ;;  %v16222_v52 = vadd.f32 %v3362_v20, %v18908_v6  ;;  %v16225_v22 = vadd.f32 %v3635_v54, %v18910_v9  ;;  %v18918_v6 = vld [vmem:[#allocation240_spill] sm:$0xff] }
 0x3f9   :  { %v3364_v32 = vpop.f32.mrf.mxu0  ;;  %v3637_v43 = vpop.f32.mrf.mxu1 }
 0x3fa   :  { %18909 = vst [vmem:[#allocation310_spill] sm:$0xff] %v16222_v52  ;;  %18911 = vst [vmem:[#allocation143_spill] sm:$0xff] %v16225_v22  ;;  %v16231_v61 = vadd.f32 %v3364_v32, %v18912_v41  ;;  %v16234_v12 = vadd.f32 %v3637_v43, %v18914_v48  ;;  %v18920_v52 = vld [vmem:[#allocation73_spill] sm:$0xff] }
 0x3fb   :  { %v3366_v23 = vpop.f32.mrf.mxu0  ;;  %v3639_v55 = vpop.f32.mrf.mxu1  ;;  %v18922_v41 = vld [vmem:[#allocation241_spill] sm:$0xff] }
 0x3fc   :  { %18913 = vst [vmem:[#allocation311_spill] sm:$0xff] %v16231_v61  ;;  %18915 = vst [vmem:[#allocation144_spill] sm:$0xff] %v16234_v12  ;;  %v16237_v20 = vadd.f32 %v3366_v23, %v18916_v47  ;;  %v16240_v54 = vadd.f32 %v3639_v55, %v18918_v6  ;;  %v18924_v55 = vld [vmem:[#allocation74_spill] sm:$0xff]  ;;  %v18932_v61 = vld [vmem:[#allocation76_spill] sm:$0xff] }
 0x3fd   :  { %v3370_v9 = vpop.f32.mrf.mxu0  ;;  %v3643_v22 = vpop.f32.mrf.mxu1  ;;  %11413 = vmatmul.mubr.msk.bf16.gmra.mxu0 %vm404_vm1, %v12308_v19  ;;  %11438 = vmatmul.mubr.msk.bf16.gmra.mxu1 %vm404_vm1, %v12308_v19  ;;  %v18926_v6 = vld [vmem:[#allocation242_spill] sm:$0xff] }
 0x3fe   :  { %18917 = vst [vmem:[#allocation312_spill] sm:$0xff] %v16237_v20  ;;  %18919 = vst [vmem:[#allocation145_spill] sm:$0xff] %v16240_v54  ;;  %v16245_v32 = vadd.f32 %v3370_v9, %v18920_v52  ;;  %v16248_v43 = vadd.f32 %v3643_v22, %v18922_v41  ;;  %4414 = vmatprep.mubr.bf16.mxu0 %v17943_v60  ;;  %4687 = vmatprep.mubr.bf16.mxu1 %v17943_v60  ;;  %v12315_v52 = vld [vmem:[%s17876_s0 + $0xb8] sm:$0xff]   ;;  %v18928_v22 = vld [vmem:[#allocation75_spill] sm:$0xff] }
 0x3ff   :  { %v3372_v47 = vpop.f32.mrf.mxu0  ;;  %v3645_v23 = vpop.f32.mrf.mxu1  ;;  %v18930_v41 = vld [vmem:[#allocation243_spill] sm:$0xff] }
 0x400   :  { %18921 = vst [vmem:[#allocation313_spill] sm:$0xff] %v16245_v32  ;;  %18923 = vst [vmem:[#allocation146_spill] sm:$0xff] %v16248_v43  ;;  %v16253_v48 = vadd.f32 %v3372_v47, %v18924_v55  ;;  %v16256_v54 = vadd.f32 %v3645_v23, %v18926_v6  ;;  %v18934_v55 = vld [vmem:[#allocation244_spill] sm:$0xff] }
 0x401   :  { %v3374_v20 = vpop.f32.mrf.mxu0  ;;  %v3647_v19 = vpop.f32.mrf.mxu1 }
 0x402   :  { %18925 = vst [vmem:[#allocation314_spill] sm:$0xff] %v16253_v48  ;;  %18927 = vst [vmem:[#allocation147_spill] sm:$0xff] %v16256_v54  ;;  %v16262_v9 = vadd.f32 %v3374_v20, %v18928_v22  ;;  %v16265_v43 = vadd.f32 %v3647_v19, %v18930_v41  ;;  %v18936_v48 = vld [vmem:[#allocation77_spill] sm:$0xff] }
 0x403   :  { %v3376_v32 = vpop.f32.mrf.mxu0  ;;  %v3649_v12 = vpop.f32.mrf.mxu1  ;;  %v18938_v22 = vld [vmem:[#allocation245_spill] sm:$0xff] }
 0x404   :  { %18929 = vst [vmem:[#allocation315_spill] sm:$0xff] %v16262_v9  ;;  %18931 = vst [vmem:[#allocation148_spill] sm:$0xff] %v16265_v43  ;;  %v16268_v47 = vadd.f32 %v3376_v32, %v18932_v61  ;;  %v16271_v23 = vadd.f32 %v3649_v12, %v18934_v55  ;;  %v18940_v12 = vld [vmem:[#allocation78_spill] sm:$0xff]  ;;  %v18948_v9 = vld [vmem:[#allocation80_spill] sm:$0xff] }
 0x405   :  { %v3380_v6 = vpop.f32.mrf.mxu0  ;;  %v3653_v54 = vpop.f32.mrf.mxu1  ;;  %11414 = vmatmul.mubr.msk.bf16.gmra.mxu0 %vm404_vm1, %v12315_v52  ;;  %11439 = vmatmul.mubr.msk.bf16.gmra.mxu1 %vm404_vm1, %v12315_v52  ;;  %v18942_v55 = vld [vmem:[#allocation246_spill] sm:$0xff] }
 0x406   :  { %18933 = vst [vmem:[#allocation316_spill] sm:$0xff] %v16268_v47  ;;  %18935 = vst [vmem:[#allocation149_spill] sm:$0xff] %v16271_v23  ;;  %v16276_v20 = vadd.f32 %v3380_v6, %v18936_v48  ;;  %v16279_v19 = vadd.f32 %v3653_v54, %v18938_v22  ;;  %4424 = vmatprep.mubr.bf16.mxu0 %v17943_v60  ;;  %4697 = vmatprep.mubr.bf16.mxu1 %v17943_v60  ;;  %v12316_v48 = vld [vmem:[%s17876_s0 + $0xc0] sm:$0xff]  }
 0x407   :  { %v3382_v61 = vpop.f32.mrf.mxu0  ;;  %v3655_v32 = vpop.f32.mrf.mxu1  ;;  %v18944_v54 = vld [vmem:[#allocation79_spill] sm:$0xff] }
 0x408   :  { %18937 = vst [vmem:[#allocation317_spill] sm:$0xff] %v16276_v20  ;;  %18939 = vst [vmem:[#allocation150_spill] sm:$0xff] %v16279_v19  ;;  %v16284_v41 = vadd.f32 %v3382_v61, %v18940_v12  ;;  %v16287_v23 = vadd.f32 %v3655_v32, %v18942_v55  ;;  %v18946_v22 = vld [vmem:[#allocation247_spill] sm:$0xff]  ;;  %v18950_v12 = vld [vmem:[#allocation248_spill] sm:$0xff] }
 0x409   :  { %v3384_v47 = vpop.f32.mrf.mxu0  ;;  %v3657_v52 = vpop.f32.mrf.mxu1 }
 0x40a   :  { %18941 = vst [vmem:[#allocation318_spill] sm:$0xff] %v16284_v41  ;;  %18943 = vst [vmem:[#allocation151_spill] sm:$0xff] %v16287_v23  ;;  %v16293_v6 = vadd.f32 %v3384_v47, %v18944_v54  ;;  %v16296_v19 = vadd.f32 %v3657_v52, %v18946_v22  ;;  %v18952_v41 = vld [vmem:[#allocation81_spill] sm:$0xff] }
 0x40b   :  { %v3386_v20 = vpop.f32.mrf.mxu0  ;;  %v3659_v43 = vpop.f32.mrf.mxu1  ;;  %v18954_v54 = vld [vmem:[#allocation249_spill] sm:$0xff] }
 0x40c   :  { %18945 = vst [vmem:[#allocation319_spill] sm:$0xff] %v16293_v6  ;;  %18947 = vst [vmem:[#allocation152_spill] sm:$0xff] %v16296_v19  ;;  %v16299_v61 = vadd.f32 %v3386_v20, %v18948_v9  ;;  %v16302_v32 = vadd.f32 %v3659_v43, %v18950_v12  ;;  %v18956_v43 = vld [vmem:[#allocation82_spill] sm:$0xff] }
 0x40d   :  { %v3390_v55 = vpop.f32.mrf.mxu0  ;;  %v3663_v23 = vpop.f32.mrf.mxu1  ;;  %11415 = vmatmul.mubr.msk.bf16.gmra.mxu0 %vm404_vm1, %v12316_v48  ;;  %11440 = vmatmul.mubr.msk.bf16.gmra.mxu1 %vm404_vm1, %v12316_v48  ;;  %v18958_v12 = vld [vmem:[#allocation250_spill] sm:$0xff] }
 0x40e   :  { %18949 = vst [vmem:[#allocation320_spill] sm:$0xff] %v16299_v61  ;;  %18951 = vst [vmem:[#allocation153_spill] sm:$0xff] %v16302_v32  ;;  %v16307_v47 = vadd.f32 %v3390_v55, %v18952_v41  ;;  %v16310_v52 = vadd.f32 %v3663_v23, %v18954_v54  ;;  %4434 = vmatprep.mubr.bf16.mxu0 %v17943_v60  ;;  %4707 = vmatprep.mubr.bf16.mxu1 %v17943_v60  ;;  %v12323_v41 = vld [vmem:[%s17876_s0 + $0xc8] sm:$0xff]  }
 0x40f   :  { %v3392_v9 = vpop.f32.mrf.mxu0  ;;  %v3665_v20 = vpop.f32.mrf.mxu1  ;;  %v12388_v23 = vld [vmem:[#allocation6 + $0xe4] ss:$16 sps:$4 sm:$0xff]   ;;  %v12391_v55 = vld [vmem:[#allocation6 + $0xec] ss:$16 sps:$4 sm:$0xff]  }
 0x410   :  { %18953 = vst [vmem:[#allocation321_spill] sm:$0xff] %v16307_v47  ;;  %18955 = vst [vmem:[#allocation154_spill] sm:$0xff] %v16310_v52  ;;  %v16315_v22 = vadd.f32 %v3392_v9, %v18956_v43  ;;  %v16318_v32 = vadd.f32 %v3665_v20, %v18958_v12  ;;  %v18960_v54 = vld [vmem:[#allocation83_spill] sm:$0xff]  ;;  %6201 = vmatprep.subr.bf16.mxu0 %v12388_v23  ;;  %6314 = vmatprep.subr.bf16.mxu1 %v12391_v55  ;;  %v18965_v12 = vld [vmem:[#allocation85_spill] sm:$0xff] }
 0x411   :  { %v3394_v61 = vpop.f32.mrf.mxu0  ;;  %v3667_v48 = vpop.f32.mrf.mxu1  ;;  %v18962_v47 = vld [vmem:[#allocation251_spill] sm:$0xff]  ;;  %v18969_v23 = vld [vmem:[#allocation86_spill] sm:$0xff] }
 0x412   :  { %18957 = vst [vmem:[#allocation322_spill] sm:$0xff] %v16315_v22  ;;  %18959 = vst [vmem:[#allocation155_spill] sm:$0xff] %v16318_v32  ;;  %v16324_v52 = vadd.f32 %v3394_v61, %v18960_v54  ;;  %v16327_v19 = vadd.f32 %v3667_v48, %v18962_v47  ;;  %v18967_v61 = vld [vmem:[#allocation253_spill] sm:$0xff] }
 0x413   :  { %v16329_v6 = vpop.f32.mrf.mxu0  ;;  %v16331_v9 = vpop.f32.mrf.mxu1 }
 0x414   :  { %18961 = vst [vmem:[#allocation323_spill] sm:$0xff] %v16324_v52  ;;  %18963 = vst [vmem:[#allocation156_spill] sm:$0xff] %v16327_v19 }
 0x415   :  { %18964 = vst [vmem:[#allocation324_spill] sm:$0xff] %v16331_v9  ;;  %v3400_v20 = vpop.f32.mrf.mxu0  ;;  %v3673_v43 = vpop.f32.mrf.mxu1  ;;  %11416 = vmatmul.mubr.msk.bf16.gmra.mxu0 %vm404_vm1, %v12323_v41  ;;  %11441 = vmatmul.mubr.msk.bf16.gmra.mxu1 %vm404_vm1, %v12323_v41  ;;  %v18971_v9 = vld [vmem:[#allocation254_spill] sm:$0xff] }
 0x416   :  { %v16336_v32 = vadd.f32 %v3400_v20, %v18965_v12  ;;  %v16339_v54 = vadd.f32 %v3673_v43, %v18967_v61  ;;  %4444 = vmatprep.mubr.bf16.mxu0 %v17943_v60  ;;  %4717 = vmatprep.mubr.bf16.mxu1 %v17943_v60  ;;  %v12330_v20 = vld [vmem:[%s17876_s0 + $0xd0] sm:$0xff]   ;;  %v18973_v43 = vld [vmem:[#allocation87_spill] sm:$0xff] }
 0x417   :  { %v3402_v47 = vpop.f32.mrf.mxu0  ;;  %v3675_v48 = vpop.f32.mrf.mxu1  ;;  %v18974_v61 = vld [vmem:[#allocation255_spill] sm:$0xff] }
 0x418   :  { %18966 = vst [vmem:[#allocation157_spill] sm:$0xff] %v16336_v32  ;;  %18968 = vst [vmem:[#allocation325_spill] sm:$0xff] %v16339_v54  ;;  %v16344_v55 = vadd.f32 %v3402_v47, %v18969_v23  ;;  %v16347_v19 = vadd.f32 %v3675_v48, %v18971_v9  ;;  %v18978_v9 = vld [vmem:[#allocation89_spill] sm:$0xff] }
 0x419   :  { %v3404_v52 = vpop.f32.mrf.mxu0  ;;  %v3677_v41 = vpop.f32.mrf.mxu1 }
 0x41a   :  { %18970 = vst [vmem:[#allocation158_spill] sm:$0xff] %v16344_v55  ;;  %18972 = vst [vmem:[#allocation326_spill] sm:$0xff] %v16347_v19  ;;  %v16353_v12 = vadd.f32 %v3404_v52, %v18973_v43  ;;  %v16356_v54 = vadd.f32 %v3677_v41, %v18974_v61  ;;  %v18979_v19 = vld [vmem:[#allocation257_spill] sm:$0xff]  ;;  %v18981_v43 = vld [vmem:[#allocation90_spill] sm:$0xff] }
 0x41b   :  { %v16358_v32 = vpop.f32.mrf.mxu0  ;;  %v16360_v22 = vpop.f32.mrf.mxu1 }
 0x41c   :  { %18975 = vst [vmem:[#allocation159_spill] sm:$0xff] %v16356_v54  ;;  %18976 = vst [vmem:[#allocation327_spill] sm:$0xff] %v16358_v32 }
 0x41d   :  { %18977 = vst [vmem:[#allocation160_spill] sm:$0xff] %v16360_v22  ;;  %v3410_v47 = vpop.f32.mrf.mxu0  ;;  %v3683_v23 = vpop.f32.mrf.mxu1  ;;  %11417 = vmatmul.mubr.msk.bf16.gmra.mxu0 %vm404_vm1, %v12330_v20  ;;  %11442 = vmatmul.mubr.msk.bf16.gmra.mxu1 %vm404_vm1, %v12330_v20  ;;  %v18983_v22 = vld [vmem:[#allocation258_spill] sm:$0xff] }
 0x41e   :  { %v16365_v48 = vadd.f32 %v3410_v47, %v18978_v9  ;;  %v16368_v55 = vadd.f32 %v3683_v23, %v18979_v19  ;;  %4454 = vmatprep.mubr.bf16.mxu0 %v17943_v60  ;;  %4727 = vmatprep.mubr.bf16.mxu1 %v17943_v60  ;;  %v12331_v47 = vld [vmem:[%s17876_s0 + $0xd8] sm:$0xff]  }
 0x41f   :  { %v3412_v52 = vpop.f32.mrf.mxu0  ;;  %v3685_v41 = vpop.f32.mrf.mxu1 }
 0x420   :  { %18980 = vst [vmem:[#allocation328_spill] sm:$0xff] %v16368_v55  ;;  %v16373_v61 = vadd.f32 %v3412_v52, %v18981_v43  ;;  %v16376_v32 = vadd.f32 %v3685_v41, %v18983_v22  ;;  %v18988_v41 = vld [vmem:[#allocation92_spill] sm:$0xff] }
 0x421   :  { %v3414_v54 = vpop.f32.mrf.mxu0  ;;  %v3687_v20 = vpop.f32.mrf.mxu1 }
 0x422   :  { %18982 = vst [vmem:[#allocation161_spill] sm:$0xff] %v16373_v61  ;;  %18984 = vst [vmem:[#allocation329_spill] sm:$0xff] %v16376_v32  ;;  %v16382_v19 = vadd.f32 %v3414_v54, %v15637_v18  ;;  %v16385_v23 = vadd.f32 %v3687_v20, %v15639_v36  ;;  %v18990_v36 = vld [vmem:[#allocation260_spill] sm:$0xff] }
 0x423   :  { %v16387_v60 = vpop.f32.mrf.mxu0  ;;  %v16389_v9 = vpop.f32.mrf.mxu1 }
 0x424   :  { %18985 = vst [vmem:[#allocation162_spill] sm:$0xff] %v16382_v19  ;;  %18986 = vst [vmem:[#allocation330_spill] sm:$0xff] %v16385_v23  ;;  %v18992_v23 = vld [vmem:[#allocation93_spill] sm:$0xff] }
 0x425   :  { %18987 = vst [vmem:[#allocation163_spill] sm:$0xff] %v16389_v9  ;;  %v3420_v52 = vpop.f32.mrf.mxu0  ;;  %v3693_v43 = vpop.f32.mrf.mxu1  ;;  %11418 = vmatmul.mubr.msk.bf16.gmra.mxu0 %vm404_vm1, %v12331_v47  ;;  %11443 = vmatmul.mubr.msk.bf16.gmra.mxu1 %vm404_vm1, %v12331_v47 }
 0x426   :  { %v16394_v22 = vadd.f32 %v3420_v52, %v15655_v45  ;;  %v16397_v32 = vadd.f32 %v3693_v43, %v18988_v41 }
 0x427   :  { %v3422_v18 = vpop.f32.mrf.mxu0  ;;  %v3695_v54 = vpop.f32.mrf.mxu1 }
 0x428   :  { %18989 = vst [vmem:[#allocation331_spill] sm:$0xff] %v16397_v32  ;;  %v16400_v20 = vadd.f32 %v3422_v18, %v18990_v36  ;;  %v16403_v19 = vadd.f32 %v3695_v54, %v18992_v23  ;;  %v5076_v32 = vlaneseq }
 0x429   :  { %v3424_v61 = vpop.f32.mrf.mxu0  ;;  %v3697_v9 = vpop.f32.mrf.mxu1 }
 0x42a   :  { %18991 = vst [vmem:[#allocation164_spill] sm:$0xff] %v16400_v20  ;;  %18993 = vst [vmem:[#allocation332_spill] sm:$0xff] %v16403_v19  ;;  %v16406_v55 = vadd.f32 %v3424_v61, %v15676_v14  ;;  %v16409_v47 = vadd.f32 %v3697_v9, %v15678_v5 }
 0x42b   :  { %v16411_v45 = vpop.f32.mrf.mxu0  ;;  %v16413_v52 = vpop.f32.mrf.mxu1 }
 0x42c   :  { %18994 = vst [vmem:[#allocation165_spill] sm:$0xff] %v16406_v55  ;;  %18995 = vst [vmem:[#allocation333_spill] sm:$0xff] %v16409_v47  ;;  %v16419_v47 = vshrl.u32 %v5076_v32, 7 }
 0x42d   :  { %18996 = vst [vmem:[#allocation166_spill] sm:$0xff] %v16411_v45  ;;  %18997 = vst [vmem:[#allocation334_spill] sm:$0xff] %v16413_v52  ;;  %v4226_v43 = vpop.f32.mrf.mxu0  ;;  %v4499_v41 = vpop.f32.mrf.mxu1 }
 0x42e   :  { %v4738_v18 = vadd.f32 %v4226_v43, %v15687_v31  ;;  %v4740_v23 = vadd.f32 %v4499_v41, %v15690_v29  ;;  %18998 = vst [vmem:[#allocation167_spill] sm:$0xff] %v16419_v47 }
 0x42f   :  { %v4228_v54 = vpop.f32.mrf.mxu0  ;;  %v4501_v36 = vpop.f32.mrf.mxu1 }
 0x430   :  { %v4930_v19 = vmax.f32 %v4738_v18, %v4740_v23  ;;  %v4739_v14 = vadd.f32 %v4228_v54, %v15695_v15  ;;  %v4741_v61 = vadd.f32 %v4501_v36, %v15698_v4  ;;  %v16426_v4 = vsub.s32 0, %v16419_v47 }
 0x431   :  { %v4230_v5 = vpop.f32.mrf.mxu0  ;;  %v4503_v9 = vpop.f32.mrf.mxu1 }
 0x432   :  { %v4931_v45 = vmax.f32 %v4739_v14, %v4741_v61  ;;  %v4742_v52 = vadd.f32 %v4230_v5, %v15704_v13  ;;  %v4744_v55 = vadd.f32 %v4503_v9, %v15707_v1  ;;  %18999 = vst [vmem:[#allocation335_spill] sm:$0xff] %v16426_v4  ;;  %v5074_v13 = vld [vmem:[#allocation4] sm:$0x3]  ;;  %v16436_v61 = vsub.s32 1, %v16419_v47  ;;  %v12706_v47 = vld [vmem:[#allocation6 + $0x844] ss:$16 sps:$4 sm:$0xff]  }
 0x433   :  { %v4232_v20 = vpop.f32.mrf.mxu0  ;;  %v4505_v31 = vpop.f32.mrf.mxu1 }
 0x434   :  { %v4932_v43 = vmax.f32 %v4742_v52, %v4744_v55  ;;  %v4743_v29 = vadd.f32 %v4232_v20, %v15710_v63  ;;  %v4745_v41 = vadd.f32 %v4505_v31, %v15713_v49  ;;  %v16433_v49 = vrot.slane %v5074_v13, %v16426_v4  ;;  %19000 = vst [vmem:[#allocation168_spill] sm:$0xff] %v16436_v61 }
 0x435   :  { %v4236_v18 = vpop.f32.mrf.mxu0  ;;  %v4509_v15 = vpop.f32.mrf.mxu1 }
 0x436   :  { %v4933_v23 = vmax.f32 %v4743_v29, %v4745_v41  ;;  %v4746_v32 = vadd.f32 %v4236_v18, %v15718_v62  ;;  %v4748_v54 = vadd.f32 %v4509_v15, %v15721_v58 }
 0x437   :  { %v4238_v36 = vpop.f32.mrf.mxu0  ;;  %v4511_v1 = vpop.f32.mrf.mxu1 }
 0x438   :  { %v4934_v14 = vmax.f32 %v4746_v32, %v4748_v54  ;;  %v4747_v55 = vadd.f32 %v4238_v36, %v15726_v27  ;;  %v4749_v63 = vadd.f32 %v4511_v1, %v15729_v2  ;;  %v16444_v36 = vrot.slane %v5074_v13, %v16436_v61  ;;  %v12715_v61 = vld [vmem:[#allocation6 + $0x82c] ss:$16 sps:$4 sm:$0xff]  }
 0x439   :  { %v4240_v20 = vpop.f32.mrf.mxu0  ;;  %v4513_v52 = vpop.f32.mrf.mxu1 }
 0x43a   :  { %v5026_v5 = vmax.f32 %v4930_v19, %v4934_v14  ;;  %v4935_v62 = vmax.f32 %v4747_v55, %v4749_v63  ;;  %v4750_v58 = vadd.f32 %v4240_v20, %v15735_v40  ;;  %v4752_v9 = vadd.f32 %v4513_v52, %v15738_v8 }
 0x43b   :  { %v4242_v31 = vpop.f32.mrf.mxu0  ;;  %v4515_v29 = vpop.f32.mrf.mxu1 }
 0x43c   :  { %v5027_v41 = vmax.f32 %v4931_v45, %v4935_v62  ;;  %v4936_v27 = vmax.f32 %v4750_v58, %v4752_v9  ;;  %v4751_v2 = vadd.f32 %v4242_v31, %v15741_v57  ;;  %v5086_v18 = vadd.f32 %v16433_v49, %v5026_v5 }
 0x43d   :  { %v4753_v15 = vadd.f32 %v4515_v29, %v15744_v24  ;;  %v4246_v32 = vpop.f32.mrf.mxu0  ;;  %v4519_v54 = vpop.f32.mrf.mxu1 }
 0x43e   :  { %v5028_v19 = vmax.f32 %v4932_v43, %v4936_v27  ;;  %v4754_v40 = vadd.f32 %v4246_v32, %v15749_v7  ;;  %v4756_v8 = vadd.f32 %v4519_v54, %v15752_v0  ;;  %v5134_v20 = vmax.f32 %v5086_v18, 0.0 }
 0x43f   :  { %v4937_v1 = vmax.f32 %v4751_v2, %v4753_v15  ;;  %v4248_v14 = vpop.f32.mrf.mxu0  ;;  %v4521_v45 = vpop.f32.mrf.mxu1  ;;  %v5087_v43 = vadd.f32 %v16444_v36, %v5027_v41 }
 0x440   :  { %v5088_v55 = vadd.f32 %v16433_v49, %v5028_v19  ;;  %v4938_v57 = vmax.f32 %v4754_v40, %v4756_v8  ;;  %v4755_v63 = vadd.f32 %v4248_v14, %v15757_v28  ;;  %v4757_v24 = vadd.f32 %v4521_v45, %v15760_v30 }
 0x441   :  { %v5029_v52 = vmax.f32 %v4933_v23, %v4937_v1  ;;  %v4250_v5 = vpop.f32.mrf.mxu0  ;;  %v4523_v13 = vpop.f32.mrf.mxu1  ;;  %v5135_v41 = vmax.f32 %v5087_v43, 0.0 }
 0x442   :  { %v5136_v62 = vmax.f32 %v5088_v55, 0.0  ;;  %v4939_v7 = vmax.f32 %v4755_v63, %v4757_v24  ;;  %v4758_v0 = vadd.f32 %v4250_v5, %v15766_v53  ;;  %v4760_v58 = vadd.f32 %v4523_v13, %v15769_v26 }
 0x443   :  { %v4252_v9 = vpop.f32.mrf.mxu0  ;;  %v4525_v31 = vpop.f32.mrf.mxu1  ;;  %v5089_v29 = vadd.f32 %v16444_v36, %v5029_v52 }
 0x444   :  { %v16455_v27 = vpack.c.bf16 %v5136_v62, %v5134_v20  ;;  %v4940_v28 = vmax.f32 %v4758_v0, %v4760_v58  ;;  %v4759_v30 = vadd.f32 %v4252_v9, %v15772_v33  ;;  %v4761_v23 = vadd.f32 %v4525_v31, %v15775_v56 }
 0x445   :  { %v4256_v2 = vpop.f32.mrf.mxu0  ;;  %v4529_v18 = vpop.f32.mrf.mxu1  ;;  %v5137_v15 = vmax.f32 %v5089_v29, 0.0 }
 0x446   :  { %v4941_v32 = vmax.f32 %v4759_v30, %v4761_v23  ;;  %v4762_v53 = vadd.f32 %v4256_v2, %v15780_v16  ;;  %v4764_v26 = vadd.f32 %v4529_v18, %v15783_v39 }
 0x447   :  { %v4258_v54 = vpop.f32.mrf.mxu0  ;;  %v4531_v19 = vpop.f32.mrf.mxu1  ;;  %v16461_v40 = vpack.c.bf16 %v5137_v15, %v5135_v41 }
 0x448   :  { %v4942_v8 = vmax.f32 %v4762_v53, %v4764_v26  ;;  %v4763_v1 = vadd.f32 %v4258_v54, %v15788_v51  ;;  %v4765_v33 = vadd.f32 %v4531_v19, %v15791_v38  ;;  %v19001_v26 = vld [vmem:[#allocation262_spill] sm:$0xff] }
 0x449   :  { %v4260_v14 = vpop.f32.mrf.mxu0  ;;  %v4533_v56 = vpop.f32.mrf.mxu1 }
 0x44a   :  { %v5030_v45 = vmax.f32 %v4938_v57, %v4942_v8  ;;  %v4943_v55 = vmax.f32 %v4763_v1, %v4765_v33  ;;  %v4766_v63 = vadd.f32 %v4260_v14, %v15797_v50  ;;  %v4768_v24 = vadd.f32 %v4533_v56, %v15800_v42  ;;  %v19003_v56 = vld [vmem:[#allocation263_spill] sm:$0xff] }
 0x44b   :  { %v4262_v16 = vpop.f32.mrf.mxu0  ;;  %v4535_v20 = vpop.f32.mrf.mxu1 }
 0x44c   :  { %v5031_v39 = vmax.f32 %v4939_v7, %v4943_v55  ;;  %v4944_v52 = vmax.f32 %v4766_v63, %v4768_v24  ;;  %v4767_v5 = vadd.f32 %v4262_v16, %v15803_v10  ;;  %v5090_v13 = vadd.f32 %v16433_v49, %v5030_v45  ;;  %v19004_v45 = vld [vmem:[#allocation96_spill] sm:$0xff] }
 0x44d   :  { %v4769_v51 = vadd.f32 %v4535_v20, %v15806_v44  ;;  %v4266_v43 = vpop.f32.mrf.mxu0  ;;  %v4539_v38 = vpop.f32.mrf.mxu1  ;;  %v12386_v20 = vld [vmem:[#allocation6 + $0xe0] ss:$16 sps:$4 sm:$0xff]  }
 0x44e   :  { %v5032_v62 = vmax.f32 %v4940_v28, %v4944_v52  ;;  %v4770_v57 = vadd.f32 %v4266_v43, %v15811_v34  ;;  %v4772_v50 = vadd.f32 %v4539_v38, %v15814_v17  ;;  %v5138_v31 = vmax.f32 %v5090_v13, 0.0  ;;  %v19005_v52 = vld [vmem:[#allocation264_spill] sm:$0xff]  ;;  %v19006_v13 = vld [vmem:[#allocation97_spill] sm:$0xff] }
 0x44f   :  { %v4945_v0 = vmax.f32 %v4767_v5, %v4769_v51  ;;  %v4268_v58 = vpop.f32.mrf.mxu0  ;;  %v4541_v42 = vpop.f32.mrf.mxu1  ;;  %v5091_v29 = vadd.f32 %v16444_v36, %v5031_v39  ;;  %v12389_v43 = vld [vmem:[#allocation6 + $0xe8] ss:$16 sps:$4 sm:$0xff]  }
 0x450   :  { %v5092_v9 = vadd.f32 %v16433_v49, %v5032_v62  ;;  %v4771_v7 = vadd.f32 %v4268_v58, %v15819_v21  ;;  %v4773_v10 = vadd.f32 %v4541_v42, %v15822_v37  ;;  %v4946_v30 = vmax.f32 %v4770_v57, %v4772_v50  ;;  %v12394_v57 = vld [vmem:[#allocation6 + $0xc4] ss:$16 sps:$4 sm:$0xff]  }
 0x451   :  { %v5033_v44 = vmax.f32 %v4941_v32, %v4945_v0  ;;  %v4270_v23 = vpop.f32.mrf.mxu0  ;;  %v4543_v28 = vpop.f32.mrf.mxu1  ;;  %v19002_v32 = vld [vmem:[#allocation95_spill] sm:$0xff]  ;;  %v5139_v8 = vmax.f32 %v5091_v29, 0.0  ;;  %v12397_v0 = vld [vmem:[#allocation6 + $0xcc] ss:$16 sps:$4 sm:$0xff]   ;;  %v19007_v42 = vld [vmem:[#allocation265_spill] sm:$0xff] }
 0x452   :  { %v5140_v2 = vmax.f32 %v5092_v9, 0.0  ;;  %v4947_v34 = vmax.f32 %v4771_v7, %v4773_v10  ;;  %v4774_v18 = vadd.f32 %v4270_v23, %v15828_v3  ;;  %v4776_v17 = vadd.f32 %v4543_v28, %v15831_v46  ;;  %v19008_v7 = vld [vmem:[#allocation98_spill] sm:$0xff] }
 0x453   :  { %v5093_v41 = vadd.f32 %v16444_v36, %v5033_v44  ;;  %v4272_v15 = vpop.f32.mrf.mxu0  ;;  %v4545_v53 = vpop.f32.mrf.mxu1  ;;  %v12392_v44 = vld [vmem:[#allocation6 + $0xc0] ss:$16 sps:$4 sm:$0xff]  }
 0x454   :  { %v16479_v21 = vpack.c.bf16 %v5140_v2, %v5138_v31  ;;  %v4948_v37 = vmax.f32 %v4774_v18, %v4776_v17  ;;  %v16482_v54 = vadd.f32 %v4272_v15, %v19001_v26  ;;  %v4777_v19 = vadd.f32 %v4545_v53, %v19002_v32  ;;  %v19009_v2 = vld [vmem:[#allocation266_spill] sm:$0xff]  ;;  %v19010_v15 = vld [vmem:[#allocation99_spill] sm:$0xff] }
 0x455   :  { %v5141_v1 = vmax.f32 %v5093_v41, 0.0  ;;  %v4276_v33 = vpop.f32.mrf.mxu0  ;;  %v4549_v14 = vpop.f32.mrf.mxu1  ;;  %v12395_v17 = vld [vmem:[#allocation6 + $0xc8] ss:$16 sps:$4 sm:$0xff]   ;;  %v12403_v32 = vld [vmem:[#allocation6 + $0xac] ss:$16 sps:$4 sm:$0xff]  }
 0x456   :  { %v4949_v3 = vmax.f32 %v16482_v54, %v4777_v19  ;;  %v4778_v46 = vadd.f32 %v4276_v33, %v19003_v56  ;;  %v4780_v55 = vadd.f32 %v4549_v14, %v19004_v45  ;;  %v19012_v33 = vld [vmem:[#allocation100_spill] sm:$0xff]  ;;  %v12398_v45 = vld [vmem:[#allocation6 + $0xa0] ss:$16 sps:$4 sm:$0xff]  }
 0x457   :  { %v4278_v63 = vpop.f32.mrf.mxu0  ;;  %v4551_v24 = vpop.f32.mrf.mxu1  ;;  %v16488_v16 = vpack.c.bf16 %v5141_v1, %v5139_v8  ;;  %v19011_v8 = vld [vmem:[#allocation267_spill] sm:$0xff] }
 0x458   :  { %v4950_v39 = vmax.f32 %v4778_v46, %v4780_v55  ;;  %v4779_v5 = vadd.f32 %v4278_v63, %v19005_v52  ;;  %v4781_v51 = vadd.f32 %v4551_v24, %v19006_v13  ;;  %v19013_v63 = vld [vmem:[#allocation268_spill] sm:$0xff] }
 0x459   :  { %5687 = vmatprep.mubr.bf16.mxu0 %v16488_v16  ;;  %5800 = vmatprep.mubr.bf16.mxu1 %v16488_v16  ;;  %v4280_v38 = vpop.f32.mrf.mxu0  ;;  %v4553_v62 = vpop.f32.mrf.mxu1 }
 0x45a   :  { %v5034_v50 = vmax.f32 %v4946_v30, %v4950_v39  ;;  %v4951_v58 = vmax.f32 %v4779_v5, %v4781_v51  ;;  %v4782_v9 = vadd.f32 %v4280_v38, %v19007_v42  ;;  %v4784_v10 = vadd.f32 %v4553_v62, %v19008_v7  ;;  %5688 = vmatmul.mubr.bf16.vlgmr.msra.gmra.mxu0 %v16479_v21  ;;  %v12400_v30 = vld [vmem:[#allocation6 + $0xa4] ss:$16 sps:$4 sm:$0xff]  }
 0x45b   :  { %5801 = vmatmul.mubr.bf16.vlgmr.msra.gmra.mxu1 %v16479_v21  ;;  %v4282_v31 = vpop.f32.mrf.mxu0  ;;  %v4555_v29 = vpop.f32.mrf.mxu1  ;;  %6202 = vmatpush1.bf16.msra.mxu0 %v12386_v20  ;;  %v19014_v20 = vld [vmem:[#allocation101_spill] sm:$0xff] }
 0x45c   :  { %v5035_v23 = vmax.f32 %v4947_v34, %v4951_v58  ;;  %v4952_v28 = vmax.f32 %v4782_v9, %v4784_v10  ;;  %v4783_v18 = vadd.f32 %v4282_v31, %v19009_v2  ;;  %6315 = vmatpush1.bf16.msra.mxu1 %v12389_v43  ;;  %v5094_v41 = vadd.f32 %v16433_v49, %v5034_v50  ;;  %v12406_v62 = vld [vmem:[#allocation6 + $0x84] ss:$16 sps:$4 sm:$0xff]   ;;  %v19016_v9 = vld [vmem:[#allocation102_spill] sm:$0xff] }
 0x45d   :  { %v4785_v53 = vadd.f32 %v4555_v29, %v19010_v15  ;;  %v4286_v26 = vpop.f32.mrf.mxu0  ;;  %v4559_v54 = vpop.f32.mrf.mxu1  ;;  %6203 = vmatprep.subr.bf16.mxu0 %v12394_v57  ;;  %6316 = vmatprep.subr.bf16.mxu1 %v12397_v0  ;;  %v12409_v57 = vld [vmem:[#allocation6 + $0x8c] ss:$16 sps:$4 sm:$0xff]   ;;  %v19015_v58 = vld [vmem:[#allocation269_spill] sm:$0xff] }
 0x45e   :  { %v5036_v19 = vmax.f32 %v4948_v37, %v4952_v28  ;;  %v16502_v1 = vadd.f32 %v4286_v26, %v19011_v8  ;;  %v16505_v14 = vadd.f32 %v4559_v54, %v19012_v33  ;;  %v12401_v37 = vld [vmem:[#allocation6 + $0xa8] ss:$16 sps:$4 sm:$0xff]   ;;  %v5142_v52 = vmax.f32 %v5094_v41, 0.0  ;;  %v12404_v29 = vld [vmem:[#allocation6 + $0x80] ss:$16 sps:$4 sm:$0xff]  }
 0x45f   :  { %v4953_v34 = vmax.f32 %v4783_v18, %v4785_v53  ;;  %v4288_v56 = vpop.f32.mrf.mxu0  ;;  %v4561_v46 = vpop.f32.mrf.mxu1  ;;  %6204 = vmatpush1.bf16.msra.mxu0 %v12392_v44  ;;  %v5095_v5 = vadd.f32 %v16444_v36, %v5035_v23  ;;  %v19017_v28 = vld [vmem:[#allocation270_spill] sm:$0xff]  ;;  %v19018_v18 = vld [vmem:[#allocation103_spill] sm:$0xff] }
 0x460   :  { %v5096_v55 = vadd.f32 %v16433_v49, %v5036_v19  ;;  %v16509_v24 = vadd.f32 %v4288_v56, %v19013_v63  ;;  %v16512_v39 = vadd.f32 %v4561_v46, %v19014_v20  ;;  %6317 = vmatpush1.bf16.msra.mxu1 %v12395_v17  ;;  %6205 = vmatprep.subr.bf16.mxu0 %v12400_v30  ;;  %v12407_v30 = vld [vmem:[#allocation6 + $0x88] ss:$16 sps:$4 sm:$0xff]   ;;  %v12412_v41 = vld [vmem:[#allocation6 + $0x64] ss:$16 sps:$4 sm:$0xff]   ;;  %v12415_v46 = vld [vmem:[#allocation6 + $0x6c] ss:$16 sps:$4 sm:$0xff]  }
 0x461   :  { %v5037_v13 = vmax.f32 %v4949_v3, %v4953_v34  ;;  %v4954_v51 = vmax.f32 %v16502_v1, %v16505_v14  ;;  %v4290_v43 = vpop.f32.mrf.mxu0  ;;  %v4563_v38 = vpop.f32.mrf.mxu1  ;;  %6318 = vmatprep.subr.bf16.mxu1 %v12403_v32  ;;  %v5143_v15 = vmax.f32 %v5095_v5, 0.0  ;;  %v19019_v19 = vld [vmem:[#allocation271_spill] sm:$0xff]  ;;  %v19020_v1 = vld [vmem:[#allocation104_spill] sm:$0xff] }
 0x462   :  { %v5144_v0 = vmax.f32 %v5096_v55, 0.0  ;;  %v4955_v50 = vmax.f32 %v16509_v24, %v16512_v39  ;;  %v16520_v42 = vadd.f32 %v4290_v43, %v19015_v58  ;;  %v16523_v7 = vadd.f32 %v4563_v38, %v19016_v9  ;;  %v19021_v55 = vld [vmem:[#allocation272_spill] sm:$0xff]  ;;  %v19022_v24 = vld [vmem:[#allocation105_spill] sm:$0xff] }
 0x463   :  { %v5097_v3 = vadd.f32 %v16444_v36, %v5037_v13  ;;  %v4292_v10 = vpop.f32.mrf.mxu0  ;;  %v4565_v31 = vpop.f32.mrf.mxu1  ;;  %6206 = vmatpush1.bf16.msra.mxu0 %v12398_v45  ;;  %v12410_v39 = vld [vmem:[#allocation6 + $0x60] ss:$16 sps:$4 sm:$0xff]   ;;  %v12413_v5 = vld [vmem:[#allocation6 + $0x68] ss:$16 sps:$4 sm:$0xff]   ;;  %v12418_v13 = vld [vmem:[#allocation6 + $0x44] ss:$16 sps:$4 sm:$0xff]  }
 0x464   :  { %v16526_v44 = vpack.c.bf16 %v5144_v0, %v5142_v52  ;;  %v4956_v23 = vmax.f32 %v16520_v42, %v16523_v7  ;;  %v16531_v2 = vadd.f32 %v4292_v10, %v19017_v28  ;;  %v16534_v17 = vadd.f32 %v4565_v31, %v19018_v18  ;;  %6319 = vmatpush1.bf16.msra.mxu1 %v12401_v37  ;;  %v19024_v0 = vld [vmem:[#allocation106_spill] sm:$0xff]  ;;  %v12416_v28 = vld [vmem:[#allocation6 + $0x40] ss:$16 sps:$4 sm:$0xff]  }
 0x465   :  { %v5145_v53 = vmax.f32 %v5097_v3, 0.0  ;;  %v4296_v26 = vpop.f32.mrf.mxu0  ;;  %v4569_v54 = vpop.f32.mrf.mxu1  ;;  %6207 = vmatprep.subr.bf16.mxu0 %v12406_v62  ;;  %6320 = vmatprep.subr.bf16.mxu1 %v12409_v57  ;;  %v19023_v62 = vld [vmem:[#allocation273_spill] sm:$0xff]  ;;  %v12421_v42 = vld [vmem:[#allocation6 + $0x4c] ss:$16 sps:$4 sm:$0xff]  }
 0x466   :  { %v4957_v32 = vmax.f32 %v16531_v2, %v16534_v17  ;;  %v4794_v8 = vadd.f32 %v4296_v26, %v19019_v19  ;;  %v4796_v34 = vadd.f32 %v4569_v54, %v19020_v1  ;;  %v19025_v31 = vld [vmem:[#allocation274_spill] sm:$0xff]  ;;  %v19026_v2 = vld [vmem:[#allocation107_spill] sm:$0xff] }
 0x467   :  { %v16540_v33 = vpack.c.bf16 %v5145_v53, %v5143_v15  ;;  %v4298_v14 = vpop.f32.mrf.mxu0  ;;  %v4571_v56 = vpop.f32.mrf.mxu1  ;;  %6208 = vmatpush1.bf16.msra.mxu0 %v12404_v29  ;;  %v12424_v15 = vld [vmem:[#allocation6 + $0x24] ss:$16 sps:$4 sm:$0xff]  }
 0x468   :  { %v4958_v45 = vmax.f32 %v4794_v8, %v4796_v34  ;;  %v4795_v63 = vadd.f32 %v4298_v14, %v19021_v55  ;;  %v4797_v20 = vadd.f32 %v4571_v56, %v19022_v24  ;;  %6321 = vmatpush1.bf16.msra.mxu1 %v12407_v30  ;;  %6209 = vmatprep.subr.bf16.mxu0 %v12412_v41  ;;  %v12419_v41 = vld [vmem:[#allocation6 + $0x48] ss:$16 sps:$4 sm:$0xff]   ;;  %v19027_v26 = vld [vmem:[#allocation275_spill] sm:$0xff]  ;;  %v19030_v55 = vld [vmem:[#allocation109_spill] sm:$0xff] }
 0x469   :  { %5697 = vmatprep.mubr.bf16.mxu0 %v16540_v33  ;;  %5810 = vmatprep.mubr.bf16.mxu1 %v16540_v33  ;;  %v4300_v37 = vpop.f32.mrf.mxu0  ;;  %v4573_v52 = vpop.f32.mrf.mxu1  ;;  %v19028_v8 = vld [vmem:[#allocation108_spill] sm:$0xff] }
 0x46a   :  { %v5038_v43 = vmax.f32 %v4954_v51, %v4958_v45  ;;  %v4959_v38 = vmax.f32 %v4795_v63, %v4797_v20  ;;  %v4798_v57 = vadd.f32 %v4300_v37, %v19023_v62  ;;  %v4800_v58 = vadd.f32 %v4573_v52, %v19024_v0  ;;  %5698 = vmatmul.mubr.bf16.gmra.mxu0 %v16526_v44 }
 0x46b   :  { %5811 = vmatmul.mubr.bf16.gmra.mxu1 %v16526_v44  ;;  %v4302_v9 = vpop.f32.mrf.mxu0  ;;  %v4575_v7 = vpop.f32.mrf.mxu1  ;;  %6322 = vmatprep.subr.bf16.mxu1 %v12415_v46  ;;  %v19029_v46 = vld [vmem:[#allocation276_spill] sm:$0xff] }
 0x46c   :  { %v5039_v3 = vmax.f32 %v4955_v50, %v4959_v38  ;;  %v4960_v10 = vmax.f32 %v4798_v57, %v4800_v58  ;;  %v4799_v29 = vadd.f32 %v4302_v9, %v19025_v31  ;;  %6210 = vmatpush1.bf16.msra.mxu0 %v12410_v39  ;;  %v5098_v51 = vadd.f32 %v16433_v49, %v5038_v43  ;;  %v12427_v50 = vld [vmem:[#allocation6 + $0x2c] ss:$16 sps:$4 sm:$0xff]   ;;  %v12430_v43 = vld [vmem:[#allocation6 + $0x4] ss:$16 sps:$4 sm:$0xff]  }
 0x46d   :  { %v4801_v18 = vadd.f32 %v4575_v7, %v19026_v2  ;;  %v4306_v17 = vpop.f32.mrf.mxu0  ;;  %v4579_v30 = vpop.f32.mrf.mxu1  ;;  %6323 = vmatpush1.bf16.msra.mxu1 %v12413_v5  ;;  %6211 = vmatprep.subr.bf16.mxu0 %v12418_v13  ;;  %v12425_v13 = vld [vmem:[#allocation6 + $0x28] ss:$16 sps:$4 sm:$0xff]   ;;  %v19031_v57 = vld [vmem:[#allocation277_spill] sm:$0xff]  ;;  %v12433_v9 = vld [vmem:[#allocation6 + $0xc] ss:$16 sps:$4 sm:$0xff]  }
 0x46e   :  { %v5040_v53 = vmax.f32 %v4956_v23, %v4960_v10  ;;  %v16554_v54 = vadd.f32 %v4306_v17, %v19027_v26  ;;  %6324 = vmatprep.subr.bf16.mxu1 %v12421_v42  ;;  %v4804_v1 = vadd.f32 %v4579_v30, %v19028_v8  ;;  %v12422_v23 = vld [vmem:[#allocation6 + $0x20] ss:$16 sps:$4 sm:$0xff]   ;;  %v5146_v24 = vmax.f32 %v5098_v51, 0.0  ;;  %v19032_v58 = vld [vmem:[#allocation110_spill] sm:$0xff] }
 0x46f   :  { %v4961_v19 = vmax.f32 %v4799_v29, %v4801_v18  ;;  %v4308_v34 = vpop.f32.mrf.mxu0  ;;  %v4581_v14 = vpop.f32.mrf.mxu1  ;;  %v5099_v20 = vadd.f32 %v16444_v36, %v5039_v3  ;;  %v19033_v29 = vld [vmem:[#allocation278_spill] sm:$0xff]  ;;  %v19034_v51 = vld [vmem:[#allocation111_spill] sm:$0xff] }
 0x470   :  { %v5100_v56 = vadd.f32 %v16433_v49, %v5040_v53  ;;  %v16559_v45 = vadd.f32 %v4308_v34, %v19029_v46  ;;  %v16562_v63 = vadd.f32 %v4581_v14, %v19030_v55  ;;  %6212 = vmatpush1.bf16.msra.mxu0 %v12416_v28  ;;  %v4962_v37 = vmax.f32 %v16554_v54, %v4804_v1  ;;  %v12428_v18 = vld [vmem:[#allocation6] ss:$16 sps:$4 sm:$0xff]   ;;  %v12436_v14 = vld [vmem:[#allocation6 + $0x1e4] ss:$16 sps:$4 sm:$0xff]   ;;  %v19037_v46 = vld [vmem:[#allocation280_spill] sm:$0xff] }
 0x471   :  { %v5041_v39 = vmax.f32 %v4957_v32, %v4961_v19  ;;  %v4310_v52 = vpop.f32.mrf.mxu0  ;;  %v4583_v5 = vpop.f32.mrf.mxu1  ;;  %6325 = vmatpush1.bf16.msra.mxu1 %v12419_v41  ;;  %6213 = vmatprep.subr.bf16.mxu0 %v12424_v15  ;;  %v5147_v17 = vmax.f32 %v5099_v20, 0.0  ;;  %v19035_v26 = vld [vmem:[#allocation279_spill] sm:$0xff]  ;;  %v19038_v55 = vld [vmem:[#allocation113_spill] sm:$0xff] }
 0x472   :  { %v5148_v38 = vmax.f32 %v5100_v56, 0.0  ;;  %v4963_v62 = vmax.f32 %v16559_v45, %v16562_v63  ;;  %v4806_v0 = vadd.f32 %v4310_v52, %v19031_v57  ;;  %v4808_v42 = vadd.f32 %v4583_v5, %v19032_v58  ;;  %6326 = vmatprep.subr.bf16.mxu1 %v12427_v50  ;;  %v19036_v50 = vld [vmem:[#allocation112_spill] sm:$0xff]  ;;  %v19040_v57 = vld [vmem:[#allocation114_spill] sm:$0xff]  ;;  %v12442_v58 = vld [vmem:[#allocation6 + $0x1c4] ss:$16 sps:$4 sm:$0xff]  }
 0x473   :  { %v5101_v32 = vadd.f32 %v16444_v36, %v5041_v39  ;;  %v4312_v7 = vpop.f32.mrf.mxu0  ;;  %v4585_v3 = vpop.f32.mrf.mxu1  ;;  %v12434_v39 = vld [vmem:[#allocation6 + $0x1e0] ss:$16 sps:$4 sm:$0xff]   ;;  %v12439_v52 = vld [vmem:[#allocation6 + $0x1ec] ss:$16 sps:$4 sm:$0xff]  }
 0x474   :  { %v16571_v10 = vpack.c.bf16 %v5148_v38, %v5146_v24  ;;  %v4964_v31 = vmax.f32 %v4806_v0, %v4808_v42  ;;  %v16574_v28 = vadd.f32 %v4312_v7, %v19033_v29  ;;  %v16577_v2 = vadd.f32 %v4585_v3, %v19034_v51  ;;  %6214 = vmatpush1.bf16.msra.mxu0 %v12422_v23  ;;  %v12431_v23 = vld [vmem:[#allocation6 + $0x8] ss:$16 sps:$4 sm:$0xff]   ;;  %v19042_v51 = vld [vmem:[#allocation115_spill] sm:$0xff] }
 0x475   :  { %v5149_v30 = vmax.f32 %v5101_v32, 0.0  ;;  %v4316_v41 = vpop.f32.mrf.mxu0  ;;  %v4589_v15 = vpop.f32.mrf.mxu1  ;;  %6327 = vmatpush1.bf16.msra.mxu1 %v12425_v13  ;;  %6215 = vmatprep.subr.bf16.mxu0 %v12430_v43  ;;  %v19039_v43 = vld [vmem:[#allocation281_spill] sm:$0xff]  ;;  %v19041_v3 = vld [vmem:[#allocation282_spill] sm:$0xff] }
 0x476   :  { %v4965_v53 = vmax.f32 %v16574_v28, %v16577_v2  ;;  %v4810_v54 = vadd.f32 %v4316_v41, %v19035_v26  ;;  %v4812_v19 = vadd.f32 %v4589_v15, %v19036_v50  ;;  %6328 = vmatprep.subr.bf16.mxu1 %v12433_v9  ;;  %v12437_v28 = vld [vmem:[#allocation6 + $0x1e8] ss:$16 sps:$4 sm:$0xff]   ;;  %v12445_v41 = vld [vmem:[#allocation6 + $0x1cc] ss:$16 sps:$4 sm:$0xff]   ;;  %v19043_v26 = vld [vmem:[#allocation283_spill] sm:$0xff] }
 0x477   :  { %v16583_v8 = vpack.c.bf16 %v5149_v30, %v5147_v17  ;;  %v4318_v1 = vpop.f32.mrf.mxu0  ;;  %v4591_v34 = vpop.f32.mrf.mxu1  ;;  %v12440_v30 = vld [vmem:[#allocation6 + $0x1c0] ss:$16 sps:$4 sm:$0xff]  }
 0x478   :  { %v4966_v56 = vmax.f32 %v4810_v54, %v4812_v19  ;;  %v4811_v45 = vadd.f32 %v4318_v1, %v19037_v46  ;;  %v4813_v63 = vadd.f32 %v4591_v34, %v19038_v55  ;;  %6216 = vmatpush1.bf16.msra.mxu0 %v12428_v18  ;;  %v19044_v19 = vld [vmem:[#allocation116_spill] sm:$0xff]  ;;  %v19046_v55 = vld [vmem:[#allocation117_spill] sm:$0xff] }
 0x479   :  { %5707 = vmatprep.mubr.bf16.mxu0 %v16583_v8  ;;  %5820 = vmatprep.mubr.bf16.mxu1 %v16583_v8  ;;  %v4320_v24 = vpop.f32.mrf.mxu0  ;;  %v4593_v20 = vpop.f32.mrf.mxu1  ;;  %v19045_v46 = vld [vmem:[#allocation284_spill] sm:$0xff] }
 0x47a   :  { %v5042_v5 = vmax.f32 %v4962_v37, %v4966_v56  ;;  %v4967_v13 = vmax.f32 %v4811_v45, %v4813_v63  ;;  %v4814_v38 = vadd.f32 %v4320_v24, %v19039_v43  ;;  %v4816_v0 = vadd.f32 %v4593_v20, %v19040_v57  ;;  %5708 = vmatmul.mubr.bf16.gmra.mxu0 %v16571_v10  ;;  %v12451_v43 = vld [vmem:[#allocation6 + $0x1ac] ss:$16 sps:$4 sm:$0xff]  }
 0x47b   :  { %5821 = vmatmul.mubr.bf16.gmra.mxu1 %v16571_v10  ;;  %v4322_v42 = vpop.f32.mrf.mxu0  ;;  %v4595_v9 = vpop.f32.mrf.mxu1  ;;  %6217 = vmatprep.subr.bf16.mxu0 %v12436_v14 }
 0x47c   :  { %v5043_v32 = vmax.f32 %v4963_v62, %v4967_v13  ;;  %v4968_v7 = vmax.f32 %v4814_v38, %v4816_v0  ;;  %v4815_v29 = vadd.f32 %v4322_v42, %v19041_v3  ;;  %6329 = vmatpush1.bf16.msra.mxu1 %v12431_v23  ;;  %v5102_v37 = vadd.f32 %v16433_v49, %v5042_v5  ;;  %v12448_v62 = vld [vmem:[#allocation6 + $0x1a4] ss:$16 sps:$4 sm:$0xff]   ;;  %v12446_v13 = vld [vmem:[#allocation6 + $0x1a0] ss:$16 sps:$4 sm:$0xff]   ;;  %v19048_v42 = vld [vmem:[#allocation118_spill] sm:$0xff] }
 0x47d   :  { %v4817_v2 = vadd.f32 %v4595_v9, %v19042_v51  ;;  %v4326_v18 = vpop.f32.mrf.mxu0  ;;  %v4599_v17 = vpop.f32.mrf.mxu1  ;;  %6330 = vmatprep.subr.bf16.mxu1 %v12439_v52  ;;  %6218 = vmatpush2.bf16.msra.mxu0 %v12434_v39  ;;  %v19047_v0 = vld [vmem:[#allocation285_spill] sm:$0xff] }
 0x47e   :  { %v5044_v15 = vmax.f32 %v4964_v31, %v4968_v7  ;;  %v16597_v54 = vadd.f32 %v4326_v18, %v19043_v26  ;;  %6219 = vmatprep.subr.bf16.mxu0 %v12442_v58  ;;  %v4820_v1 = vadd.f32 %v4599_v17, %v19044_v19  ;;  %v12443_v31 = vld [vmem:[#allocation6 + $0x1c8] ss:$16 sps:$4 sm:$0xff]   ;;  %v5150_v23 = vmax.f32 %v5102_v37, 0.0  ;;  %v12454_v7 = vld [vmem:[#allocation6 + $0x184] ss:$16 sps:$4 sm:$0xff]  }
 0x47f   :  { %v4969_v50 = vmax.f32 %v4815_v29, %v4817_v2  ;;  %v4328_v34 = vpop.f32.mrf.mxu0  ;;  %v4601_v14 = vpop.f32.mrf.mxu1  ;;  %v5103_v24 = vadd.f32 %v16444_v36, %v5043_v32  ;;  %v19049_v37 = vld [vmem:[#allocation286_spill] sm:$0xff]  ;;  %v19050_v2 = vld [vmem:[#allocation119_spill] sm:$0xff]  ;;  %v19052_v19 = vld [vmem:[#allocation120_spill] sm:$0xff] }
 0x480   :  { %v5104_v56 = vadd.f32 %v16433_v49, %v5044_v15  ;;  %v16602_v45 = vadd.f32 %v4328_v34, %v19045_v46  ;;  %v16605_v63 = vadd.f32 %v4601_v14, %v19046_v55  ;;  %6331 = vmatpush2.bf16.msra.mxu1 %v12437_v28  ;;  %v4970_v39 = vmax.f32 %v16597_v54, %v4820_v1  ;;  %v12449_v17 = vld [vmem:[#allocation6 + $0x1a8] ss:$16 sps:$4 sm:$0xff]   ;;  %v12457_v46 = vld [vmem:[#allocation6 + $0x18c] ss:$16 sps:$4 sm:$0xff]  }
 0x481   :  { %v5045_v20 = vmax.f32 %v4965_v53, %v4969_v50  ;;  %v4330_v52 = vpop.f32.mrf.mxu0  ;;  %v4603_v5 = vpop.f32.mrf.mxu1  ;;  %6332 = vmatprep.subr.bf16.mxu1 %v12445_v41  ;;  %6220 = vmatpush2.bf16.msra.mxu0 %v12440_v30  ;;  %v5151_v30 = vmax.f32 %v5103_v24, 0.0  ;;  %v19053_v55 = vld [vmem:[#allocation288_spill] sm:$0xff]  ;;  %v12452_v24 = vld [vmem:[#allocation6 + $0x180] ss:$16 sps:$4 sm:$0xff]  }
 0x482   :  { %v5152_v38 = vmax.f32 %v5104_v56, 0.0  ;;  %v4971_v57 = vmax.f32 %v16602_v45, %v16605_v63  ;;  %v4822_v58 = vadd.f32 %v4330_v52, %v19047_v0  ;;  %v4824_v9 = vadd.f32 %v4603_v5, %v19048_v42  ;;  %6221 = vmatprep.subr.bf16.mxu0 %v12448_v62  ;;  %v19051_v62 = vld [vmem:[#allocation287_spill] sm:$0xff]  ;;  %v12455_v5 = vld [vmem:[#allocation6 + $0x188] ss:$16 sps:$4 sm:$0xff]   ;;  %v19055_v0 = vld [vmem:[#allocation289_spill] sm:$0xff] }
 0x483   :  { %v5105_v53 = vadd.f32 %v16444_v36, %v5045_v20  ;;  %v4332_v32 = vpop.f32.mrf.mxu0  ;;  %v4605_v3 = vpop.f32.mrf.mxu1  ;;  %v19056_v42 = vld [vmem:[#allocation122_spill] sm:$0xff] }
 0x484   :  { %v16614_v29 = vpack.c.bf16 %v5152_v38, %v5150_v23  ;;  %v4972_v28 = vmax.f32 %v4822_v58, %v4824_v9  ;;  %v16617_v51 = vadd.f32 %v4332_v32, %v19049_v37  ;;  %v16620_v18 = vadd.f32 %v4605_v3, %v19050_v2  ;;  %6333 = vmatpush2.bf16.msra.mxu1 %v12443_v31  ;;  %v19054_v31 = vld [vmem:[#allocation121_spill] sm:$0xff] }
 0x485   :  { %v5153_v41 = vmax.f32 %v5105_v53, 0.0  ;;  %v4336_v15 = vpop.f32.mrf.mxu0  ;;  %v4609_v26 = vpop.f32.mrf.mxu1  ;;  %6334 = vmatprep.subr.bf16.mxu1 %v12451_v43  ;;  %6222 = vmatpush2.bf16.msra.mxu0 %v12446_v13  ;;  %v12460_v13 = vld [vmem:[#allocation6 + $0x164] ss:$16 sps:$4 sm:$0xff]  }
 0x486   :  { %v4973_v54 = vmax.f32 %v16617_v51, %v16620_v18  ;;  %v4826_v50 = vadd.f32 %v4336_v15, %v19051_v62  ;;  %v4828_v1 = vadd.f32 %v4609_v26, %v19052_v19  ;;  %6223 = vmatprep.subr.bf16.mxu0 %v12454_v7  ;;  %v12463_v7 = vld [vmem:[#allocation6 + $0x16c] ss:$16 sps:$4 sm:$0xff]   ;;  %v12458_v18 = vld [vmem:[#allocation6 + $0x160] ss:$16 sps:$4 sm:$0xff]   ;;  %v12461_v26 = vld [vmem:[#allocation6 + $0x168] ss:$16 sps:$4 sm:$0xff]  }
 0x487   :  { %v16626_v34 = vpack.c.bf16 %v5153_v41, %v5151_v30  ;;  %v4338_v14 = vpop.f32.mrf.mxu0  ;;  %v4611_v56 = vpop.f32.mrf.mxu1  ;;  %v19057_v51 = vld [vmem:[#allocation290_spill] sm:$0xff]  ;;  %v12466_v62 = vld [vmem:[#allocation6 + $0x144] ss:$16 sps:$4 sm:$0xff]  }
 0x488   :  { %v4974_v45 = vmax.f32 %v4826_v50, %v4828_v1  ;;  %v4827_v63 = vadd.f32 %v4338_v14, %v19053_v55  ;;  %v4829_v23 = vadd.f32 %v4611_v56, %v19054_v31  ;;  %6335 = vmatpush2.bf16.msra.mxu1 %v12449_v17  ;;  %v19058_v17 = vld [vmem:[#allocation123_spill] sm:$0xff]  ;;  %v19060_v56 = vld [vmem:[#allocation124_spill] sm:$0xff] }
 0x489   :  { %5717 = vmatprep.mubr.bf16.mxu0 %v16626_v34  ;;  %5830 = vmatprep.mubr.bf16.mxu1 %v16626_v34  ;;  %v4340_v20 = vpop.f32.mrf.mxu0  ;;  %v4613_v52 = vpop.f32.mrf.mxu1  ;;  %v19059_v19 = vld [vmem:[#allocation291_spill] sm:$0xff]  ;;  %v19061_v31 = vld [vmem:[#allocation292_spill] sm:$0xff] }
 0x48a   :  { %v5046_v43 = vmax.f32 %v4970_v39, %v4974_v45  ;;  %v4975_v38 = vmax.f32 %v4827_v63, %v4829_v23  ;;  %v4830_v58 = vadd.f32 %v4340_v20, %v19055_v0  ;;  %v4832_v9 = vadd.f32 %v4613_v52, %v19056_v42  ;;  %5718 = vmatmul.mubr.bf16.gmra.mxu0 %v16614_v29  ;;  %v12472_v42 = vld [vmem:[#allocation6 + $0x124] ss:$16 sps:$4 sm:$0xff]  }
 0x48b   :  { %5831 = vmatmul.mubr.bf16.gmra.mxu1 %v16614_v29  ;;  %v4342_v53 = vpop.f32.mrf.mxu0  ;;  %v4615_v32 = vpop.f32.mrf.mxu1  ;;  %6336 = vmatprep.subr.bf16.mxu1 %v12457_v46 }
 0x48c   :  { %v5047_v3 = vmax.f32 %v4971_v57, %v4975_v38  ;;  %v4976_v37 = vmax.f32 %v4830_v58, %v4832_v9  ;;  %v4831_v2 = vadd.f32 %v4342_v53, %v19057_v51  ;;  %6224 = vmatpush2.bf16.msra.mxu0 %v12452_v24  ;;  %v5106_v39 = vadd.f32 %v16433_v49, %v5046_v43  ;;  %v12469_v57 = vld [vmem:[#allocation6 + $0x14c] ss:$16 sps:$4 sm:$0xff]   ;;  %v19062_v24 = vld [vmem:[#allocation125_spill] sm:$0xff]  ;;  %v12467_v58 = vld [vmem:[#allocation6 + $0x148] ss:$16 sps:$4 sm:$0xff]  }
 0x48d   :  { %v4833_v30 = vadd.f32 %v4615_v32, %v19058_v17  ;;  %v4346_v41 = vpop.f32.mrf.mxu0  ;;  %v4619_v15 = vpop.f32.mrf.mxu1  ;;  %6337 = vmatpush2.bf16.msra.mxu1 %v12455_v5  ;;  %6225 = vmatprep.subr.bf16.mxu0 %v12460_v13 }
 0x48e   :  { %v5048_v50 = vmax.f32 %v4972_v28, %v4976_v37  ;;  %v16640_v1 = vadd.f32 %v4346_v41, %v19059_v19  ;;  %6338 = vmatprep.subr.bf16.mxu1 %v12463_v7  ;;  %v4836_v46 = vadd.f32 %v4619_v15, %v19060_v56  ;;  %v12464_v28 = vld [vmem:[#allocation6 + $0x140] ss:$16 sps:$4 sm:$0xff]   ;;  %v5154_v52 = vmax.f32 %v5106_v39, 0.0  ;;  %v12475_v37 = vld [vmem:[#allocation6 + $0x12c] ss:$16 sps:$4 sm:$0xff]  }
 0x48f   :  { %v4977_v14 = vmax.f32 %v4831_v2, %v4833_v30  ;;  %v4348_v45 = vpop.f32.mrf.mxu0  ;;  %v4621_v55 = vpop.f32.mrf.mxu1  ;;  %v5107_v5 = vadd.f32 %v16444_v36, %v5047_v3  ;;  %v12470_v30 = vld [vmem:[#allocation6 + $0x120] ss:$16 sps:$4 sm:$0xff]   ;;  %v19064_v19 = vld [vmem:[#allocation126_spill] sm:$0xff] }
 0x490   :  { %v5108_v63 = vadd.f32 %v16433_v49, %v5048_v50  ;;  %v16645_v23 = vadd.f32 %v4348_v45, %v19061_v31  ;;  %v16648_v20 = vadd.f32 %v4621_v55, %v19062_v24  ;;  %6226 = vmatpush2.bf16.msra.mxu0 %v12458_v18  ;;  %v4978_v43 = vmax.f32 %v16640_v1, %v4836_v46  ;;  %v19065_v46 = vld [vmem:[#allocation294_spill] sm:$0xff]  ;;  %v19066_v55 = vld [vmem:[#allocation127_spill] sm:$0xff] }
 0x491   :  { %v5049_v13 = vmax.f32 %v4973_v54, %v4977_v14  ;;  %v4350_v38 = vpop.f32.mrf.mxu0  ;;  %v4623_v0 = vpop.f32.mrf.mxu1  ;;  %6339 = vmatpush2.bf16.msra.mxu1 %v12461_v26  ;;  %6227 = vmatprep.subr.bf16.mxu0 %v12466_v62  ;;  %v19063_v62 = vld [vmem:[#allocation293_spill] sm:$0xff]  ;;  %v12473_v31 = vld [vmem:[#allocation6 + $0x128] ss:$16 sps:$4 sm:$0xff]  }
 0x492   :  { %v5156_v9 = vmax.f32 %v5108_v63, 0.0  ;;  %v4979_v7 = vmax.f32 %v16645_v23, %v16648_v20  ;;  %v4838_v53 = vadd.f32 %v4350_v38, %v16076_v25  ;;  %v4840_v32 = vadd.f32 %v4623_v0, %v16079_v11  ;;  %6340 = vmatprep.subr.bf16.mxu1 %v12469_v57  ;;  %v12478_v14 = vld [vmem:[#allocation6 + $0x104] ss:$16 sps:$4 sm:$0xff]   ;;  %v12476_v20 = vld [vmem:[#allocation6 + $0x100] ss:$16 sps:$4 sm:$0xff]   ;;  %v19068_v0 = vld [vmem:[#allocation128_spill] sm:$0xff] }
 0x493   :  { %v5109_v54 = vadd.f32 %v16444_v36, %v5049_v13  ;;  %v4352_v3 = vpop.f32.mrf.mxu0  ;;  %v4625_v51 = vpop.f32.mrf.mxu1  ;;  %v5155_v25 = vmax.f32 %v5107_v5, 0.0  ;;  %v19067_v13 = vld [vmem:[#allocation295_spill] sm:$0xff] }
 0x494   :  { %v16657_v2 = vpack.c.bf16 %v5156_v9, %v5154_v52  ;;  %v4980_v18 = vmax.f32 %v4838_v53, %v4840_v32  ;;  %v16660_v39 = vadd.f32 %v4352_v3, %v16082_v59  ;;  %v16663_v17 = vadd.f32 %v4625_v51, %v16085_v35  ;;  %6228 = vmatpush2.bf16.msra.mxu0 %v12464_v28  ;;  %v12481_v28 = vld [vmem:[#allocation6 + $0x10c] ss:$16 sps:$4 sm:$0xff]   ;;  %v12479_v51 = vld [vmem:[#allocation6 + $0x108] ss:$16 sps:$4 sm:$0xff]  }
 0x495   :  { %v5157_v41 = vmax.f32 %v5109_v54, 0.0  ;;  %v4356_v11 = vpop.f32.mrf.mxu0  ;;  %v4629_v15 = vpop.f32.mrf.mxu1  ;;  %6341 = vmatpush2.bf16.msra.mxu1 %v12467_v58  ;;  %6229 = vmatprep.subr.bf16.mxu0 %v12472_v42  ;;  %v12484_v42 = vld [vmem:[#allocation6 + $0x4e4] ss:$16 sps:$4 sm:$0xff]   ;;  %v19069_v54 = vld [vmem:[#allocation296_spill] sm:$0xff] }
 0x496   :  { %v4981_v26 = vmax.f32 %v16660_v39, %v16663_v17  ;;  %v4842_v50 = vadd.f32 %v4356_v11, %v19063_v62  ;;  %v4844_v1 = vadd.f32 %v4629_v15, %v19064_v19  ;;  %6342 = vmatprep.subr.bf16.mxu1 %v12475_v37  ;;  %v19070_v39 = vld [vmem:[#allocation129_spill] sm:$0xff] }
 0x497   :  { %v16669_v59 = vpack.c.bf16 %v5157_v41, %v5155_v25  ;;  %v4358_v35 = vpop.f32.mrf.mxu0  ;;  %v4631_v57 = vpop.f32.mrf.mxu1  ;;  %v12487_v41 = vld [vmem:[#allocation6 + $0x4ec] ss:$16 sps:$4 sm:$0xff]   ;;  %v19071_v15 = vld [vmem:[#allocation297_spill] sm:$0xff] }
 0x498   :  { %v4982_v56 = vmax.f32 %v4842_v50, %v4844_v1  ;;  %v4843_v45 = vadd.f32 %v4358_v35, %v19065_v46  ;;  %v4845_v63 = vadd.f32 %v4631_v57, %v19066_v55  ;;  %6230 = vmatpush2.bf16.msra.mxu0 %v12470_v30  ;;  %v19074_v46 = vld [vmem:[#allocation131_spill] sm:$0xff] }
 0x499   :  { %5727 = vmatprep.mubr.bf16.mxu0 %v16669_v59  ;;  %5840 = vmatprep.mubr.bf16.mxu1 %v16669_v59  ;;  %v4360_v23 = vpop.f32.mrf.mxu0  ;;  %v4633_v24 = vpop.f32.mrf.mxu1 }
 0x49a   :  { %v5050_v52 = vmax.f32 %v4978_v43, %v4982_v56  ;;  %v4983_v5 = vmax.f32 %v4843_v45, %v4845_v63  ;;  %v4846_v38 = vadd.f32 %v4360_v23, %v19067_v13  ;;  %v4848_v58 = vadd.f32 %v4633_v24, %v19068_v0  ;;  %5728 = vmatmul.mubr.bf16.gmra.mxu0 %v16657_v2  ;;  %v19076_v13 = vld [vmem:[#allocation132_spill] sm:$0xff] }
 0x49b   :  { %5841 = vmatmul.mubr.bf16.gmra.mxu1 %v16657_v2  ;;  %v4362_v9 = vpop.f32.mrf.mxu0  ;;  %v4635_v53 = vpop.f32.mrf.mxu1  ;;  %6231 = vmatprep.subr.bf16.mxu0 %v12478_v14  ;;  %v19073_v14 = vld [vmem:[#allocation298_spill] sm:$0xff] }
 0x49c   :  { %v5051_v32 = vmax.f32 %v4979_v7, %v4983_v5  ;;  %v4984_v37 = vmax.f32 %v4846_v38, %v4848_v58  ;;  %v4847_v3 = vadd.f32 %v4362_v9, %v19069_v54  ;;  %6343 = vmatpush2.bf16.msra.mxu1 %v12473_v31  ;;  %v5110_v43 = vadd.f32 %v16433_v49, %v5050_v52  ;;  %v19072_v7 = vld [vmem:[#allocation130_spill] sm:$0xff]  ;;  %v19075_v52 = vld [vmem:[#allocation299_spill] sm:$0xff] }
 0x49d   :  { %v4849_v17 = vadd.f32 %v4635_v53, %v19070_v39  ;;  %v4366_v30 = vpop.f32.mrf.mxu0  ;;  %v4639_v25 = vpop.f32.mrf.mxu1  ;;  %6344 = vmatprep.subr.bf16.mxu1 %v12481_v28  ;;  %6232 = vmatpush2.bf16.msra.mxu0 %v12476_v20 }
 0x49e   :  { %v5052_v11 = vmax.f32 %v4980_v18, %v4984_v37  ;;  %v4850_v62 = vadd.f32 %v4366_v30, %v19071_v15  ;;  %6812 = vmatprep.subr.bf16.mxu0 %v12484_v42  ;;  %v4852_v19 = vadd.f32 %v4639_v25, %v19072_v7  ;;  %v5158_v55 = vmax.f32 %v5110_v43, 0.0  ;;  %v19077_v37 = vld [vmem:[#allocation300_spill] sm:$0xff]  ;;  %v19079_v30 = vld [vmem:[#allocation301_spill] sm:$0xff] }
 0x49f   :  { %v4985_v50 = vmax.f32 %v4847_v3, %v4849_v17  ;;  %v4368_v1 = vpop.f32.mrf.mxu0  ;;  %v4641_v35 = vpop.f32.mrf.mxu1  ;;  %v5111_v63 = vadd.f32 %v16444_v36, %v5051_v32 }
 0x4a0   :  { %v5112_v57 = vadd.f32 %v16433_v49, %v5052_v11  ;;  %v4851_v56 = vadd.f32 %v4368_v1, %v19073_v14  ;;  %v4853_v45 = vadd.f32 %v4641_v35, %v19074_v46  ;;  %6345 = vmatpush2.bf16.msra.mxu1 %v12479_v51  ;;  %v4986_v18 = vmax.f32 %v4850_v62, %v4852_v19  ;;  %v19081_v19 = vld [vmem:[#allocation302_spill] sm:$0xff]  ;;  %v19082_v35 = vld [vmem:[#allocation135_spill] sm:$0xff] }
 0x4a1   :  { %v5053_v31 = vmax.f32 %v4981_v26, %v4985_v50  ;;  %v4370_v23 = vpop.f32.mrf.mxu0  ;;  %v4643_v24 = vpop.f32.mrf.mxu1  ;;  %6925 = vmatprep.subr.bf16.mxu1 %v12487_v41  ;;  %v19078_v26 = vld [vmem:[#allocation133_spill] sm:$0xff]  ;;  %v5159_v3 = vmax.f32 %v5111_v63, 0.0  ;;  %v19080_v41 = vld [vmem:[#allocation134_spill] sm:$0xff] }
 0x4a2   :  { %v5160_v20 = vmax.f32 %v5112_v57, 0.0  ;;  %v4987_v28 = vmax.f32 %v4851_v56, %v4853_v45  ;;  %v4854_v5 = vadd.f32 %v4370_v23, %v19075_v52  ;;  %v4856_v38 = vadd.f32 %v4643_v24, %v19076_v13  ;;  %v19085_v13 = vld [vmem:[#allocation304_spill] sm:$0xff] }
 0x4a3   :  { %v5113_v0 = vadd.f32 %v16444_v36, %v5053_v31  ;;  %v4372_v58 = vpop.f32.mrf.mxu0  ;;  %v4645_v42 = vpop.f32.mrf.mxu1  ;;  %v19084_v31 = vld [vmem:[#allocation136_spill] sm:$0xff] }
 0x4a4   :  { %v16691_v9 = vpack.c.bf16 %v5160_v20, %v5158_v55  ;;  %v4988_v53 = vmax.f32 %v4854_v5, %v4856_v38  ;;  %v4855_v32 = vadd.f32 %v4372_v58, %v19077_v37  ;;  %v4857_v54 = vadd.f32 %v4645_v42, %v19078_v26  ;;  %v19083_v55 = vld [vmem:[#allocation303_spill] sm:$0xff]  ;;  %v19086_v58 = vld [vmem:[#allocation137_spill] sm:$0xff] }
 0x4a5   :  { %v5161_v51 = vmax.f32 %v5113_v0, 0.0  ;;  %v4376_v43 = vpop.f32.mrf.mxu0  ;;  %v4649_v39 = vpop.f32.mrf.mxu1  ;;  %v19087_v26 = vld [vmem:[#allocation305_spill] sm:$0xff] }
 0x4a6   :  { %v4989_v17 = vmax.f32 %v4855_v32, %v4857_v54  ;;  %v4858_v25 = vadd.f32 %v4376_v43, %v19079_v30  ;;  %v4860_v11 = vadd.f32 %v4649_v39, %v19080_v41 }
 0x4a7   :  { %v16697_v15 = vpack.c.bf16 %v5161_v51, %v5159_v3  ;;  %v4378_v62 = vpop.f32.mrf.mxu0  ;;  %v4651_v50 = vpop.f32.mrf.mxu1  ;;  %v19088_v51 = vld [vmem:[#allocation138_spill] sm:$0xff] }
 0x4a8   :  { %v4990_v7 = vmax.f32 %v4858_v25, %v4860_v11  ;;  %v4859_v1 = vadd.f32 %v4378_v62, %v19081_v19  ;;  %v4861_v57 = vadd.f32 %v4651_v50, %v19082_v35  ;;  %v19090_v11 = vld [vmem:[#allocation139_spill] sm:$0xff] }
 0x4a9   :  { %5737 = vmatprep.mubr.bf16.mxu0 %v16697_v15  ;;  %5850 = vmatprep.mubr.bf16.mxu1 %v16697_v15  ;;  %v4380_v14 = vpop.f32.mrf.mxu0  ;;  %v4653_v56 = vpop.f32.mrf.mxu1 }
 0x4aa   :  { %v5054_v46 = vmax.f32 %v4986_v18, %v4990_v7  ;;  %v4991_v45 = vmax.f32 %v4859_v1, %v4861_v57  ;;  %v4862_v63 = vadd.f32 %v4380_v14, %v19083_v55  ;;  %v4864_v23 = vadd.f32 %v4653_v56, %v19084_v31  ;;  %5738 = vmatmul.mubr.bf16.gmra.mxu0 %v16691_v9  ;;  %v19091_v56 = vld [vmem:[#allocation307_spill] sm:$0xff] }
 0x4ab   :  { %5851 = vmatmul.mubr.bf16.gmra.mxu1 %v16691_v9  ;;  %v4382_v24 = vpop.f32.mrf.mxu0  ;;  %v4655_v20 = vpop.f32.mrf.mxu1 }
 0x4ac   :  { %v5055_v52 = vmax.f32 %v4987_v28, %v4991_v45  ;;  %v4992_v5 = vmax.f32 %v4862_v63, %v4864_v23  ;;  %v4863_v38 = vadd.f32 %v4382_v24, %v19085_v13  ;;  %v5114_v0 = vadd.f32 %v16433_v49, %v5054_v46  ;;  %v19089_v28 = vld [vmem:[#allocation306_spill] sm:$0xff]  ;;  %v19092_v45 = vld [vmem:[#allocation140_spill] sm:$0xff] }
 0x4ad   :  { %v4865_v42 = vadd.f32 %v4655_v20, %v19086_v58  ;;  %v4386_v18 = vpop.f32.mrf.mxu0  ;;  %v4659_v37 = vpop.f32.mrf.mxu1 }
 0x4ae   :  { %v5056_v32 = vmax.f32 %v4988_v53, %v4992_v5  ;;  %v4866_v54 = vadd.f32 %v4386_v18, %v19087_v26  ;;  %v4868_v43 = vadd.f32 %v4659_v37, %v19088_v51  ;;  %v5162_v50 = vmax.f32 %v5114_v0, 0.0  ;;  %v19093_v5 = vld [vmem:[#allocation308_spill] sm:$0xff]  ;;  %v19095_v37 = vld [vmem:[#allocation309_spill] sm:$0xff]  ;;  %v19096_v26 = vld [vmem:[#allocation142_spill] sm:$0xff] }
 0x4af   :  { %v4993_v3 = vmax.f32 %v4863_v38, %v4865_v42  ;;  %v4388_v39 = vpop.f32.mrf.mxu0  ;;  %v4661_v30 = vpop.f32.mrf.mxu1  ;;  %v5115_v7 = vadd.f32 %v16444_v36, %v5055_v52  ;;  %v19094_v52 = vld [vmem:[#allocation141_spill] sm:$0xff] }
 0x4b0   :  { %v5116_v25 = vadd.f32 %v16433_v49, %v5056_v32  ;;  %v4867_v41 = vadd.f32 %v4388_v39, %v19089_v28  ;;  %v4869_v62 = vadd.f32 %v4661_v30, %v19090_v11  ;;  %v4994_v1 = vmax.f32 %v4866_v54, %v4868_v43  ;;  %v19097_v30 = vld [vmem:[#allocation310_spill] sm:$0xff]  ;;  %v19098_v28 = vld [vmem:[#allocation143_spill] sm:$0xff] }
 0x4b1   :  { %v5057_v19 = vmax.f32 %v4989_v17, %v4993_v3  ;;  %v4390_v35 = vpop.f32.mrf.mxu0  ;;  %v4663_v53 = vpop.f32.mrf.mxu1  ;;  %v5163_v38 = vmax.f32 %v5115_v7, 0.0 }
 0x4b2   :  { %v5164_v57 = vmax.f32 %v5116_v25, 0.0  ;;  %v4995_v14 = vmax.f32 %v4867_v41, %v4869_v62  ;;  %v4870_v46 = vadd.f32 %v4390_v35, %v19091_v56  ;;  %v4872_v55 = vadd.f32 %v4663_v53, %v19092_v45  ;;  %v19100_v53 = vld [vmem:[#allocation144_spill] sm:$0xff] }
 0x4b3   :  { %v5117_v63 = vadd.f32 %v16444_v36, %v5057_v19  ;;  %v4392_v31 = vpop.f32.mrf.mxu0  ;;  %v4665_v23 = vpop.f32.mrf.mxu1  ;;  %v19099_v19 = vld [vmem:[#allocation311_spill] sm:$0xff] }
 0x4b4   :  { %v16719_v24 = vpack.c.bf16 %v5164_v57, %v5162_v50  ;;  %v4996_v20 = vmax.f32 %v4870_v46, %v4872_v55  ;;  %v4871_v13 = vadd.f32 %v4392_v31, %v19093_v5  ;;  %v4873_v17 = vadd.f32 %v4665_v23, %v19094_v52  ;;  %v19102_v5 = vld [vmem:[#allocation145_spill] sm:$0xff] }
 0x4b5   :  { %v5165_v0 = vmax.f32 %v5117_v63, 0.0  ;;  %v4396_v58 = vpop.f32.mrf.mxu0  ;;  %v4669_v42 = vpop.f32.mrf.mxu1  ;;  %v19101_v63 = vld [vmem:[#allocation312_spill] sm:$0xff] }
 0x4b6   :  { %v4997_v18 = vmax.f32 %v4871_v13, %v4873_v17  ;;  %v4874_v32 = vadd.f32 %v4396_v58, %v19095_v37  ;;  %v4876_v54 = vadd.f32 %v4669_v42, %v19096_v26  ;;  %v19104_v42 = vld [vmem:[#allocation146_spill] sm:$0xff] }
 0x4b7   :  { %v16725_v3 = vpack.c.bf16 %v5165_v0, %v5163_v38  ;;  %v4398_v51 = vpop.f32.mrf.mxu0  ;;  %v4671_v43 = vpop.f32.mrf.mxu1  ;;  %v19103_v38 = vld [vmem:[#allocation313_spill] sm:$0xff] }
 0x4b8   :  { %v4998_v39 = vmax.f32 %v4874_v32, %v4876_v54  ;;  %v4875_v25 = vadd.f32 %v4398_v51, %v19097_v30  ;;  %v4877_v41 = vadd.f32 %v4671_v43, %v19098_v28  ;;  %v19106_v43 = vld [vmem:[#allocation147_spill] sm:$0xff] }
 0x4b9   :  { %5747 = vmatprep.mubr.bf16.mxu0 %v16725_v3  ;;  %5860 = vmatprep.mubr.bf16.mxu1 %v16725_v3  ;;  %v4400_v11 = vpop.f32.mrf.mxu0  ;;  %v4673_v62 = vpop.f32.mrf.mxu1 }
 0x4ba   :  { %v5058_v50 = vmax.f32 %v4994_v1, %v4998_v39  ;;  %v4999_v7 = vmax.f32 %v4875_v25, %v4877_v41  ;;  %v4878_v35 = vadd.f32 %v4400_v11, %v19099_v19  ;;  %v4880_v57 = vadd.f32 %v4673_v62, %v19100_v53  ;;  %5748 = vmatmul.mubr.bf16.gmra.mxu0 %v16719_v24 }
 0x4bb   :  { %5861 = vmatmul.mubr.bf16.gmra.mxu1 %v16719_v24  ;;  %v4402_v56 = vpop.f32.mrf.mxu0  ;;  %v4675_v46 = vpop.f32.mrf.mxu1 }
 0x4bc   :  { %v5059_v45 = vmax.f32 %v4995_v14, %v4999_v7  ;;  %v5000_v55 = vmax.f32 %v4878_v35, %v4880_v57  ;;  %v4879_v31 = vadd.f32 %v4402_v56, %v19101_v63  ;;  %v5118_v23 = vadd.f32 %v16433_v49, %v5058_v50  ;;  %v19105_v14 = vld [vmem:[#allocation314_spill] sm:$0xff]  ;;  %v19107_v7 = vld [vmem:[#allocation315_spill] sm:$0xff]  ;;  %v19108_v35 = vld [vmem:[#allocation148_spill] sm:$0xff] }
 0x4bd   :  { %v4881_v13 = vadd.f32 %v4675_v46, %v19102_v5  ;;  %v4406_v1 = vpop.f32.mrf.mxu0  ;;  %v4679_v52 = vpop.f32.mrf.mxu1 }
 0x4be   :  { %v5060_v17 = vmax.f32 %v4996_v20, %v5000_v55  ;;  %v4882_v0 = vadd.f32 %v4406_v1, %v19103_v38  ;;  %v4884_v37 = vadd.f32 %v4679_v52, %v19104_v42  ;;  %v5166_v30 = vmax.f32 %v5118_v23, 0.0  ;;  %v19111_v38 = vld [vmem:[#allocation317_spill] sm:$0xff] }
 0x4bf   :  { %v5001_v58 = vmax.f32 %v4879_v31, %v4881_v13  ;;  %v4408_v32 = vpop.f32.mrf.mxu0  ;;  %v4681_v26 = vpop.f32.mrf.mxu1  ;;  %v5119_v25 = vadd.f32 %v16444_v36, %v5059_v45  ;;  %v19109_v31 = vld [vmem:[#allocation316_spill] sm:$0xff]  ;;  %v19110_v45 = vld [vmem:[#allocation149_spill] sm:$0xff] }
 0x4c0   :  { %v5120_v54 = vadd.f32 %v16433_v49, %v5060_v17  ;;  %v4883_v51 = vadd.f32 %v4408_v32, %v19105_v14  ;;  %v4885_v39 = vadd.f32 %v4681_v26, %v19106_v43  ;;  %v5002_v41 = vmax.f32 %v4882_v0, %v4884_v37  ;;  %v19113_v14 = vld [vmem:[#allocation318_spill] sm:$0xff]  ;;  %v19114_v43 = vld [vmem:[#allocation151_spill] sm:$0xff] }
 0x4c1   :  { %v5061_v28 = vmax.f32 %v4997_v18, %v5001_v58  ;;  %v4410_v11 = vpop.f32.mrf.mxu0  ;;  %v4683_v20 = vpop.f32.mrf.mxu1  ;;  %v5167_v5 = vmax.f32 %v5119_v25, 0.0  ;;  %v19112_v58 = vld [vmem:[#allocation150_spill] sm:$0xff] }
 0x4c2   :  { %v5168_v62 = vmax.f32 %v5120_v54, 0.0  ;;  %v5003_v50 = vmax.f32 %v4883_v51, %v4885_v39  ;;  %v4886_v19 = vadd.f32 %v4410_v11, %v19107_v7  ;;  %v4888_v53 = vadd.f32 %v4683_v20, %v19108_v35  ;;  %v19115_v20 = vld [vmem:[#allocation319_spill] sm:$0xff]  ;;  %v19116_v7 = vld [vmem:[#allocation152_spill] sm:$0xff] }
 0x4c3   :  { %v5121_v57 = vadd.f32 %v16444_v36, %v5061_v28  ;;  %v4412_v56 = vpop.f32.mrf.mxu0  ;;  %v4685_v46 = vpop.f32.mrf.mxu1 }
 0x4c4   :  { %v16747_v55 = vpack.c.bf16 %v5168_v62, %v5166_v30  ;;  %v5004_v63 = vmax.f32 %v4886_v19, %v4888_v53  ;;  %v4887_v23 = vadd.f32 %v4412_v56, %v19109_v31  ;;  %v4889_v18 = vadd.f32 %v4685_v46, %v19110_v45  ;;  %v19117_v46 = vld [vmem:[#allocation320_spill] sm:$0xff] }
 0x4c5   :  { %v5169_v13 = vmax.f32 %v5121_v57, 0.0  ;;  %v4416_v1 = vpop.f32.mrf.mxu0  ;;  %v4689_v52 = vpop.f32.mrf.mxu1 }
 0x4c6   :  { %v5005_v17 = vmax.f32 %v4887_v23, %v4889_v18  ;;  %v4890_v0 = vadd.f32 %v4416_v1, %v19111_v38  ;;  %v4892_v42 = vadd.f32 %v4689_v52, %v19112_v58  ;;  %v19118_v23 = vld [vmem:[#allocation153_spill] sm:$0xff] }
 0x4c7   :  { %v16753_v37 = vpack.c.bf16 %v5169_v13, %v5167_v5  ;;  %v4418_v32 = vpop.f32.mrf.mxu0  ;;  %v4691_v26 = vpop.f32.mrf.mxu1  ;;  %v19119_v1 = vld [vmem:[#allocation321_spill] sm:$0xff] }
 0x4c8   :  { %v5006_v54 = vmax.f32 %v4890_v0, %v4892_v42  ;;  %v4891_v51 = vadd.f32 %v4418_v32, %v19113_v14  ;;  %v4893_v39 = vadd.f32 %v4691_v26, %v19114_v43  ;;  %v19120_v0 = vld [vmem:[#allocation154_spill] sm:$0xff]  ;;  %v19121_v32 = vld [vmem:[#allocation84_spill] sm:$0xff] }
 0x4c9   :  { %5757 = vmatprep.mubr.bf16.mxu0 %v16753_v37  ;;  %5870 = vmatprep.mubr.bf16.mxu1 %v16753_v37  ;;  %v4420_v30 = vpop.f32.mrf.mxu0  ;;  %v4693_v25 = vpop.f32.mrf.mxu1 }
 0x4ca   :  { %v5062_v28 = vmax.f32 %v5002_v41, %v5006_v54  ;;  %v5007_v11 = vmax.f32 %v4891_v51, %v4893_v39  ;;  %v4894_v62 = vadd.f32 %v4420_v30, %v19115_v20  ;;  %v4896_v19 = vadd.f32 %v4693_v25, %v19116_v7  ;;  %5758 = vmatmul.mubr.bf16.gmra.mxu0 %v16747_v55  ;;  %v19122_v54 = vld [vmem:[#allocation322_spill] sm:$0xff]  ;;  %v19123_v51 = vld [vmem:[#allocation155_spill] sm:$0xff] }
 0x4cb   :  { %5871 = vmatmul.mubr.bf16.gmra.mxu1 %v16747_v55  ;;  %6233 = vmatprep.mubr.bf16.mxu0 %v16461_v40  ;;  %v4422_v35 = vpop.f32.mrf.mxu0  ;;  %v4695_v53 = vpop.f32.mrf.mxu1  ;;  %v12490_v7 = vld [vmem:[#allocation6 + $0x4c4] ss:$16 sps:$4 sm:$0xff]  }
 0x4cc   :  { %v5063_v57 = vmax.f32 %v5003_v50, %v5007_v11  ;;  %v5008_v56 = vmax.f32 %v4894_v62, %v4896_v19  ;;  %6346 = vmatprep.mubr.bf16.mxu1 %v16461_v40  ;;  %v4895_v31 = vadd.f32 %v4422_v35, %v19117_v46  ;;  %v5122_v41 = vadd.f32 %v16433_v49, %v5062_v28  ;;  %v12485_v62 = vld [vmem:[#allocation6 + $0x4e8] ss:$16 sps:$4 sm:$0xff]   ;;  %v19124_v35 = vld [vmem:[#allocation323_spill] sm:$0xff] }
 0x4cd   :  { %v4897_v45 = vadd.f32 %v4695_v53, %v19118_v23  ;;  %v4426_v18 = vpop.f32.mrf.mxu0  ;;  %v4699_v5 = vpop.f32.mrf.mxu1  ;;  %v3867_v40 = vadd.f32 %v16329_v6, %v19121_v32  ;;  %v12496_v32 = vld [vmem:[#allocation6 + $0x4a4] ss:$16 sps:$4 sm:$0xff]  }
 0x4ce   :  { %v5064_v13 = vmax.f32 %v5004_v63, %v5008_v56  ;;  %v16769_v52 = vadd.f32 %v4426_v18, %v19119_v1  ;;  %v4900_v58 = vadd.f32 %v4699_v5, %v19120_v0  ;;  %v12482_v63 = vld [vmem:[#allocation6 + $0x4e0] ss:$16 sps:$4 sm:$0xff]   ;;  %v5170_v39 = vmax.f32 %v5122_v41, 0.0  ;;  %v19125_v56 = vld [vmem:[#allocation156_spill] sm:$0xff] }
 0x4cf   :  { %v5009_v38 = vmax.f32 %v4895_v31, %v4897_v45  ;;  %v4428_v42 = vpop.f32.mrf.mxu0  ;;  %v4701_v50 = vpop.f32.mrf.mxu1  ;;  %v5123_v30 = vadd.f32 %v16444_v36, %v5063_v57  ;;  %v12493_v57 = vld [vmem:[#allocation6 + $0x4cc] ss:$16 sps:$4 sm:$0xff]  }
 0x4d0   :  { %v5124_v26 = vadd.f32 %v16433_v49, %v5064_v13  ;;  %v16776_v14 = vadd.f32 %v4428_v42, %v19122_v54  ;;  %v16779_v43 = vadd.f32 %v4701_v50, %v19123_v51  ;;  %v5010_v28 = vmax.f32 %v16769_v52, %v4900_v58  ;;  %v19127_v31 = vld [vmem:[#allocation324_spill] sm:$0xff]  ;;  %v12488_v52 = vld [vmem:[#allocation6 + $0x4c0] ss:$16 sps:$4 sm:$0xff]  }
 0x4d1   :  { %v5065_v25 = vmax.f32 %v5005_v17, %v5009_v38  ;;  %v4430_v11 = vpop.f32.mrf.mxu0  ;;  %v4703_v20 = vpop.f32.mrf.mxu1  ;;  %v19126_v17 = vld [vmem:[#allocation252_spill] sm:$0xff]  ;;  %v5171_v38 = vmax.f32 %v5123_v30, 0.0 }
 0x4d2   :  { %v5172_v6 = vmax.f32 %v5124_v26, 0.0  ;;  %v5011_v19 = vmax.f32 %v16776_v14, %v16779_v43  ;;  %v16786_v53 = vadd.f32 %v4430_v11, %v19124_v35  ;;  %v16789_v46 = vadd.f32 %v4703_v20, %v19125_v56  ;;  %6234 = vmatmul.mubr.bf16.vlgmr.msra.gmra.mxu0 %v16455_v27  ;;  %v12491_v50 = vld [vmem:[#allocation6 + $0x4c8] ss:$16 sps:$4 sm:$0xff]   ;;  %v19128_v26 = vld [vmem:[#allocation157_spill] sm:$0xff] }
 0x4d3   :  { %v3869_v41 = vadd.f32 %v19127_v31, %v19126_v17  ;;  %v5125_v23 = vadd.f32 %v16444_v36, %v5065_v25  ;;  %6347 = vmatmul.mubr.bf16.vlgmr.msra.gmra.mxu1 %v16455_v27  ;;  %6243 = vmatprep.mubr.bf16.mxu0 %v16488_v16  ;;  %v4432_v45 = vpop.f32.mrf.mxu0  ;;  %v4705_v18 = vpop.f32.mrf.mxu1  ;;  %v19129_v14 = vld [vmem:[#allocation325_spill] sm:$0xff]  ;;  %v19130_v25 = vld [vmem:[#allocation158_spill] sm:$0xff]  ;;  %v19132_v17 = vld [vmem:[#allocation159_spill] sm:$0xff] }
 0x4d4   :  { %v16797_v5 = vpack.c.bf16 %v5172_v6, %v5170_v39  ;;  %v5012_v13 = vmax.f32 %v16786_v53, %v16789_v46  ;;  %6356 = vmatprep.mubr.bf16.mxu1 %v16488_v16  ;;  %6813 = vmatpush1.bf16.msra.mxu0 %v12482_v63  ;;  %v16802_v1 = vadd.f32 %v4432_v45, %v3867_v40  ;;  %v12499_v39 = vld [vmem:[#allocation6 + $0x4ac] ss:$16 sps:$4 sm:$0xff]   ;;  %v12494_v35 = vld [vmem:[#allocation6 + $0x4a0] ss:$16 sps:$4 sm:$0xff]   ;;  %v12497_v53 = vld [vmem:[#allocation6 + $0x4a8] ss:$16 sps:$4 sm:$0xff]  }
 0x4d5   :  { %v5173_v0 = vmax.f32 %v5125_v23, 0.0  ;;  %6926 = vmatpush1.bf16.msra.mxu1 %v12485_v62  ;;  %v16804_v58 = vadd.f32 %v4705_v18, %v3869_v41  ;;  %v4436_v27 = vpop.f32.mrf.mxu0  ;;  %v4709_v42 = vpop.f32.mrf.mxu1  ;;  %6814 = vmatprep.subr.bf16.mxu0 %v12490_v7  ;;  %v19131_v20 = vld [vmem:[#allocation326_spill] sm:$0xff]  ;;  %v12502_v41 = vld [vmem:[#allocation6 + $0x484] ss:$16 sps:$4 sm:$0xff]   ;;  %v19133_v45 = vld [vmem:[#allocation88_spill] sm:$0xff] }
 0x4d6   :  { %v4906_v54 = vadd.f32 %v4436_v27, %v19128_v26  ;;  %v4908_v51 = vadd.f32 %v4709_v42, %v19129_v14  ;;  %6927 = vmatprep.subr.bf16.mxu1 %v12493_v57  ;;  %v12505_v23 = vld [vmem:[#allocation6 + $0x48c] ss:$16 sps:$4 sm:$0xff]   ;;  %v19134_v18 = vld [vmem:[#allocation327_spill] sm:$0xff]  ;;  %v12503_v14 = vld [vmem:[#allocation6 + $0x488] ss:$16 sps:$4 sm:$0xff]  }
 0x4d7   :  { %v16808_v16 = vpack.c.bf16 %v5173_v0, %v5171_v38  ;;  %v5013_v40 = vmax.f32 %v16802_v1, %v16804_v58  ;;  %v4438_v43 = vpop.f32.mrf.mxu0  ;;  %v4711_v63 = vpop.f32.mrf.mxu1  ;;  %v3875_v1 = vadd.f32 %v19134_v18, %v19133_v45  ;;  %v19136_v38 = vld [vmem:[#allocation160_spill] sm:$0xff]  ;;  %v12506_v45 = vld [vmem:[#allocation6 + $0x460] ss:$16 sps:$4 sm:$0xff]  }
 0x4d8   :  { %v5014_v30 = vmax.f32 %v4906_v54, %v4908_v51  ;;  %6815 = vmatpush1.bf16.msra.mxu0 %v12488_v52  ;;  %v4907_v11 = vadd.f32 %v4438_v43, %v19130_v25  ;;  %v4909_v62 = vadd.f32 %v4711_v63, %v19131_v20  ;;  %v19135_v52 = vld [vmem:[#allocation256_spill] sm:$0xff]  ;;  %v12500_v54 = vld [vmem:[#allocation6 + $0x480] ss:$16 sps:$4 sm:$0xff]  }
 0x4d9   :  { %6928 = vmatpush1.bf16.msra.mxu1 %v12491_v50  ;;  %v4440_v7 = vpop.f32.mrf.mxu0  ;;  %v4713_v6 = vpop.f32.mrf.mxu1  ;;  %6816 = vmatprep.subr.bf16.mxu0 %v12496_v32  ;;  %v3877_v0 = vadd.f32 %v19136_v38, %v19135_v52  ;;  %v19137_v43 = vld [vmem:[#allocation91_spill] sm:$0xff]  ;;  %v19138_v25 = vld [vmem:[#allocation328_spill] sm:$0xff]  ;;  %v19143_v38 = vld [vmem:[#allocation162_spill] sm:$0xff] }
 0x4da   :  { %v5066_v56 = vmax.f32 %v5010_v28, %v5014_v30  ;;  %v5015_v46 = vmax.f32 %v4907_v11, %v4909_v62  ;;  %v4910_v57 = vadd.f32 %v4440_v7, %v16353_v12  ;;  %v4912_v31 = vadd.f32 %v4713_v6, %v19132_v17  ;;  %6244 = vmatmul.mubr.bf16.gmra.mxu0 %v16479_v21  ;;  %v12511_v7 = vld [vmem:[#allocation6 + $0x46c] ss:$16 sps:$4 sm:$0xff]   ;;  %v19139_v6 = vld [vmem:[#allocation259_spill] sm:$0xff]  ;;  %v12509_v18 = vld [vmem:[#allocation6 + $0x468] ss:$16 sps:$4 sm:$0xff]  }
 0x4db   :  { %6357 = vmatmul.mubr.bf16.gmra.mxu1 %v16479_v21  ;;  %6929 = vmatprep.subr.bf16.mxu1 %v12499_v39  ;;  %v4442_v58 = vpop.f32.mrf.mxu0  ;;  %v4715_v28 = vpop.f32.mrf.mxu1  ;;  %v3883_v63 = vadd.f32 %v16387_v60, %v19137_v43 }
 0x4dc   :  { %v5067_v27 = vmax.f32 %v5011_v19, %v5015_v46  ;;  %v5016_v42 = vmax.f32 %v4910_v57, %v4912_v31  ;;  %6253 = vmatprep.mubr.bf16.mxu0 %v16540_v33  ;;  %6366 = vmatprep.mubr.bf16.mxu1 %v16540_v33  ;;  %v4911_v12 = vadd.f32 %v4442_v58, %v3875_v1  ;;  %v12508_v19 = vld [vmem:[#allocation6 + $0x464] ss:$16 sps:$4 sm:$0xff]   ;;  %v19144_v58 = vld [vmem:[#allocation330_spill] sm:$0xff] }
 0x4dd   :  { %6817 = vmatpush1.bf16.msra.mxu0 %v12494_v35  ;;  %6930 = vmatpush1.bf16.msra.mxu1 %v12497_v53  ;;  %v4913_v50 = vadd.f32 %v4715_v28, %v3877_v0  ;;  %v4446_v32 = vpop.f32.mrf.mxu0  ;;  %v4719_v26 = vpop.f32.mrf.mxu1  ;;  %v5126_v39 = vadd.f32 %v16433_v49, %v5066_v56  ;;  %v19141_v53 = vld [vmem:[#allocation161_spill] sm:$0xff] }
 0x4de   :  { %v5068_v51 = vmax.f32 %v5012_v13, %v5016_v42  ;;  %v16825_v21 = vadd.f32 %v4446_v32, %v16365_v48  ;;  %6818 = vmatprep.subr.bf16.mxu0 %v12502_v41  ;;  %6931 = vmatprep.subr.bf16.mxu1 %v12505_v23  ;;  %v16831_v11 = vadd.f32 %v4719_v26, %v19138_v25  ;;  %v19140_v13 = vld [vmem:[#allocation163_spill] sm:$0xff]  ;;  %v19142_v57 = vld [vmem:[#allocation329_spill] sm:$0xff] }
 0x4df   :  { %v5017_v30 = vmax.f32 %v4911_v12, %v4913_v50  ;;  %v4448_v20 = vpop.f32.mrf.mxu0  ;;  %v4721_v62 = vpop.f32.mrf.mxu1  ;;  %v3885_v35 = vadd.f32 %v19140_v13, %v19139_v6  ;;  %v5127_v60 = vadd.f32 %v16444_v36, %v5067_v27  ;;  %v12517_v27 = vld [vmem:[#allocation6 + $0x44c] ss:$16 sps:$4 sm:$0xff]   ;;  %v5174_v42 = vmax.f32 %v5126_v39, 0.0  ;;  %v12512_v39 = vld [vmem:[#allocation6 + $0x440] ss:$16 sps:$4 sm:$0xff]  }
 0x4e0   :  { %v5128_v48 = vadd.f32 %v16433_v49, %v5068_v51  ;;  %v16837_v46 = vadd.f32 %v4448_v20, %v19141_v53  ;;  %v16840_v17 = vadd.f32 %v4721_v62, %v19142_v57  ;;  %v5018_v31 = vmax.f32 %v16825_v21, %v16831_v11  ;;  %v19145_v62 = vld [vmem:[#allocation331_spill] sm:$0xff]  ;;  %v19146_v53 = vld [vmem:[#allocation164_spill] sm:$0xff] }
 0x4e1   :  { %v5069_v56 = vmax.f32 %v5013_v40, %v5017_v30  ;;  %6819 = vmatpush1.bf16.msra.mxu0 %v12500_v54  ;;  %6932 = vmatpush1.bf16.msra.mxu1 %v12503_v14  ;;  %v4450_v41 = vpop.f32.mrf.mxu0  ;;  %v4723_v23 = vpop.f32.mrf.mxu1  ;;  %v12514_v40 = vld [vmem:[#allocation6 + $0x444] ss:$16 sps:$4 sm:$0xff]   ;;  %v5175_v51 = vmax.f32 %v5127_v60, 0.0  ;;  %v12515_v30 = vld [vmem:[#allocation6 + $0x448] ss:$16 sps:$4 sm:$0xff]  }
 0x4e2   :  { %v5176_v1 = vmax.f32 %v5128_v48, 0.0  ;;  %v5019_v52 = vmax.f32 %v16837_v46, %v16840_v17  ;;  %v16848_v0 = vadd.f32 %v4450_v41, %v19143_v38  ;;  %v16851_v28 = vadd.f32 %v4723_v23, %v19144_v58  ;;  %6254 = vmatmul.mubr.bf16.gmra.mxu0 %v16526_v44  ;;  %6820 = vmatprep.subr.bf16.mxu0 %v12508_v19  ;;  %v12520_v13 = vld [vmem:[#allocation6 + $0x424] ss:$16 sps:$4 sm:$0xff]   ;;  %v19147_v57 = vld [vmem:[#allocation332_spill] sm:$0xff] }
 0x4e3   :  { %v5129_v12 = vadd.f32 %v16444_v36, %v5069_v56  ;;  %6367 = vmatmul.mubr.bf16.gmra.mxu1 %v16526_v44  ;;  %6933 = vmatprep.subr.bf16.mxu1 %v12511_v7  ;;  %v4452_v50 = vpop.f32.mrf.mxu0  ;;  %v4725_v32 = vpop.f32.mrf.mxu1  ;;  %v12523_v60 = vld [vmem:[#allocation6 + $0x42c] ss:$16 sps:$4 sm:$0xff]   ;;  %v19149_v38 = vld [vmem:[#allocation333_spill] sm:$0xff]  ;;  %v12521_v58 = vld [vmem:[#allocation6 + $0x428] ss:$16 sps:$4 sm:$0xff]  }
 0x4e4   :  { %v5020_v26 = vmax.f32 %v16848_v0, %v16851_v28  ;;  %6263 = vmatprep.mubr.bf16.mxu0 %v16583_v8  ;;  %6376 = vmatprep.mubr.bf16.mxu1 %v16583_v8  ;;  %v16860_v54 = vadd.f32 %v4452_v50, %v3883_v63  ;;  %v4921_v14 = vadd.f32 %v4725_v32, %v3885_v35  ;;  %v12526_v28 = vld [vmem:[#allocation6 + $0x404] ss:$16 sps:$4 sm:$0xff]   ;;  %v19153_v50 = vld [vmem:[#allocation334_spill] sm:$0xff] }
 0x4e5   :  { %v5177_v21 = vmax.f32 %v5129_v12, 0.0  ;;  %6821 = vmatpush1.bf16.msra.mxu0 %v12506_v45  ;;  %6934 = vmatpush1.bf16.msra.mxu1 %v12509_v18  ;;  %v4456_v19 = vpop.f32.mrf.mxu0  ;;  %v4729_v43 = vpop.f32.mrf.mxu1  ;;  %v16862_v25 = vpack.c.bf16 %v5176_v1, %v5174_v42  ;;  %v19148_v18 = vld [vmem:[#allocation165_spill] sm:$0xff]  ;;  %v19152_v12 = vld [vmem:[#allocation94_spill] sm:$0xff] }
 0x4e6   :  { %v5021_v11 = vmax.f32 %v16860_v54, %v4921_v14  ;;  %v4922_v20 = vadd.f32 %v4456_v19, %v16394_v22  ;;  %v4924_v7 = vadd.f32 %v4729_v43, %v19145_v62  ;;  %6822 = vmatprep.subr.bf16.mxu0 %v12514_v40  ;;  %6935 = vmatprep.subr.bf16.mxu1 %v12517_v27  ;;  %v12518_v22 = vld [vmem:[#allocation6 + $0x420] ss:$16 sps:$4 sm:$0xff]   ;;  %v19151_v27 = vld [vmem:[#allocation166_spill] sm:$0xff] }
 0x4e7   :  { %v4458_v63 = vpop.f32.mrf.mxu0  ;;  %v4731_v6 = vpop.f32.mrf.mxu1  ;;  %v16867_v35 = vpack.c.bf16 %v5177_v21, %v5175_v51  ;;  %v19150_v40 = vld [vmem:[#allocation261_spill] sm:$0xff]  ;;  %v3893_v32 = vadd.f32 %v19153_v50, %v19152_v12  ;;  %v12529_v14 = vld [vmem:[#allocation6 + $0x40c] ss:$16 sps:$4 sm:$0xff]   ;;  %v12527_v62 = vld [vmem:[#allocation6 + $0x408] ss:$16 sps:$4 sm:$0xff]  }
 0x4e8   :  { %v5022_v48 = vmax.f32 %v4922_v20, %v4924_v7  ;;  %v4923_v46 = vadd.f32 %v4458_v63, %v19146_v53  ;;  %v4925_v17 = vadd.f32 %v4731_v6, %v19147_v57  ;;  %v3891_v42 = vadd.f32 %v19151_v27, %v19150_v40  ;;  %v12532_v63 = vld [vmem:[#allocation6 + $0x5e4] ss:$16 sps:$4 sm:$0xff]   ;;  %v12535_v6 = vld [vmem:[#allocation6 + $0x5ec] ss:$16 sps:$4 sm:$0xff]   ;;  %v12551_v40 = vld [vmem:[#allocation6 + $0x588] ss:$16 sps:$4 sm:$0xff]  }
 0x4e9   :  { %6823 = vmatpush1.bf16.msra.mxu0 %v12512_v39  ;;  %6936 = vmatpush1.bf16.msra.mxu1 %v12515_v30  ;;  %v4460_v56 = vpop.f32.mrf.mxu0  ;;  %v4733_v41 = vpop.f32.mrf.mxu1  ;;  %v12524_v39 = vld [vmem:[#allocation6 + $0x400] ss:$16 sps:$4 sm:$0xff]   ;;  %v12556_v27 = vld [vmem:[#allocation6 + $0x564] ss:$16 sps:$4 sm:$0xff]   ;;  %v12557_v50 = vld [vmem:[#allocation6 + $0x568] ss:$16 sps:$4 sm:$0xff]  }
 0x4ea   :  { %v5070_v23 = vmax.f32 %v5018_v31, %v5022_v48  ;;  %v5023_v45 = vmax.f32 %v4923_v46, %v4925_v17  ;;  %v4926_v1 = vadd.f32 %v4460_v56, %v19148_v18  ;;  %v4928_v0 = vadd.f32 %v4733_v41, %v19149_v38  ;;  %6264 = vmatmul.mubr.bf16.gmra.mxu0 %v16571_v10  ;;  %v12530_v48 = vld [vmem:[#allocation6 + $0x5e0] ss:$16 sps:$4 sm:$0xff]   ;;  %v12538_v17 = vld [vmem:[#allocation6 + $0x5c4] ss:$16 sps:$4 sm:$0xff]   ;;  %v12545_v38 = vld [vmem:[#allocation6 + $0x5a8] ss:$16 sps:$4 sm:$0xff]  }
 0x4eb   :  { %6377 = vmatmul.mubr.bf16.gmra.mxu1 %v16571_v10  ;;  %6824 = vmatprep.subr.bf16.mxu0 %v12520_v13  ;;  %v4462_v54 = vpop.f32.mrf.mxu0  ;;  %v4735_v31 = vpop.f32.mrf.mxu1  ;;  %v12554_v12 = vld [vmem:[#allocation6 + $0x560] ss:$16 sps:$4 sm:$0xff]  }
 0x4ec   :  { %v5071_v51 = vmax.f32 %v5019_v52, %v5023_v45  ;;  %v5024_v21 = vmax.f32 %v4926_v1, %v4928_v0  ;;  %6937 = vmatprep.subr.bf16.mxu1 %v12523_v60  ;;  %6273 = vmatprep.mubr.bf16.mxu0 %v16626_v34  ;;  %v4927_v19 = vadd.f32 %v4462_v54, %v3891_v42  ;;  %v12541_v60 = vld [vmem:[#allocation6 + $0x5cc] ss:$16 sps:$4 sm:$0xff]   ;;  %v12544_v45 = vld [vmem:[#allocation6 + $0x5a4] ss:$16 sps:$4 sm:$0xff]  }
 0x4ed   :  { %6386 = vmatprep.mubr.bf16.mxu1 %v16626_v34  ;;  %6825 = vmatpush1.bf16.msra.mxu0 %v12518_v22  ;;  %v4929_v43 = vadd.f32 %v4735_v31, %v3893_v32  ;;  %v5130_v30 = vadd.f32 %v16433_v49, %v5070_v23  ;;  %v12539_v23 = vld [vmem:[#allocation6 + $0x5c8] ss:$16 sps:$4 sm:$0xff]   ;;  %v12547_v1 = vld [vmem:[#allocation6 + $0x5ac] ss:$16 sps:$4 sm:$0xff]   ;;  %v12550_v0 = vld [vmem:[#allocation6 + $0x584] ss:$16 sps:$4 sm:$0xff]  }
 0x4ee   :  { %v5072_v20 = vmax.f32 %v5020_v26, %v5024_v21  ;;  %6938 = vmatpush1.bf16.msra.mxu1 %v12521_v58  ;;  %6826 = vmatprep.subr.bf16.mxu0 %v12526_v28  ;;  %v5131_v53 = vadd.f32 %v16444_v36, %v5071_v51  ;;  %v12533_v26 = vld [vmem:[#allocation6 + $0x5e8] ss:$16 sps:$4 sm:$0xff]   ;;  %v12553_v58 = vld [vmem:[#allocation6 + $0x58c] ss:$16 sps:$4 sm:$0xff]   ;;  %v12548_v28 = vld [vmem:[#allocation6 + $0x580] ss:$16 sps:$4 sm:$0xff]  }
 0x4ef   :  { %v5025_v7 = vmax.f32 %v4927_v19, %v4929_v43  ;;  %6939 = vmatprep.subr.bf16.mxu1 %v12529_v14  ;;  %v5178_v46 = vmax.f32 %v5130_v30, 0.0  ;;  %v12559_v42 = vld [vmem:[#allocation6 + $0x56c] ss:$16 sps:$4 sm:$0xff]   ;;  %v12562_v32 = vld [vmem:[#allocation6 + $0x544] ss:$16 sps:$4 sm:$0xff]  }
 0x4f0   :  { %v5132_v52 = vadd.f32 %v16433_v49, %v5072_v20  ;;  %v5179_v41 = vmax.f32 %v5131_v53, 0.0  ;;  %v12565_v54 = vld [vmem:[#allocation6 + $0x54c] ss:$16 sps:$4 sm:$0xff]   ;;  %v12560_v31 = vld [vmem:[#allocation6 + $0x540] ss:$16 sps:$4 sm:$0xff]  }
 0x4f1   :  { %v5073_v13 = vmax.f32 %v5021_v11, %v5025_v7  ;;  %6827 = vmatpush1.bf16.msra.mxu0 %v12524_v39  ;;  %v12536_v11 = vld [vmem:[#allocation6 + $0x5c0] ss:$16 sps:$4 sm:$0xff]   ;;  %v12563_v14 = vld [vmem:[#allocation6 + $0x548] ss:$16 sps:$4 sm:$0xff]   ;;  %v12568_v51 = vld [vmem:[#allocation6 + $0x524] ss:$16 sps:$4 sm:$0xff]  }
 0x4f2   :  { %v5180_v57 = vmax.f32 %v5132_v52, 0.0  ;;  %6940 = vmatpush1.bf16.msra.mxu1 %v12527_v62  ;;  %6274 = vmatmul.mubr.bf16.gmra.mxu0 %v16614_v29  ;;  %v12571_v21 = vld [vmem:[#allocation6 + $0x52c] ss:$16 sps:$4 sm:$0xff]   ;;  %v12566_v19 = vld [vmem:[#allocation6 + $0x520] ss:$16 sps:$4 sm:$0xff]  }
 0x4f3   :  { %6387 = vmatmul.mubr.bf16.gmra.mxu1 %v16614_v29  ;;  %6828 = vmatprep.subr.bf16.mxu0 %v12532_v63  ;;  %v5133_v56 = vadd.f32 %v16444_v36, %v5073_v13  ;;  %v12542_v36 = vld [vmem:[#allocation6 + $0x5a0] ss:$16 sps:$4 sm:$0xff]   ;;  %v12569_v43 = vld [vmem:[#allocation6 + $0x528] ss:$16 sps:$4 sm:$0xff]   ;;  %v12574_v39 = vld [vmem:[#allocation6 + $0x504] ss:$16 sps:$4 sm:$0xff]  }
 0x4f4   :  { %6941 = vmatprep.subr.bf16.mxu1 %v12535_v6  ;;  %6283 = vmatprep.mubr.bf16.mxu0 %v16669_v59  ;;  %v16888_v49 = vpack.c.bf16 %v5180_v57, %v5178_v46  ;;  %v12577_v30 = vld [vmem:[#allocation6 + $0x50c] ss:$16 sps:$4 sm:$0xff]   ;;  %v12572_v20 = vld [vmem:[#allocation6 + $0x500] ss:$16 sps:$4 sm:$0xff]   ;;  %v12575_v62 = vld [vmem:[#allocation6 + $0x508] ss:$16 sps:$4 sm:$0xff]  }
 0x4f5   :  { %6396 = vmatprep.mubr.bf16.mxu1 %v16669_v59  ;;  %6829 = vmatpush2.bf16.msra.mxu0 %v12530_v48  ;;  %v5181_v22 = vmax.f32 %v5133_v56, 0.0  ;;  %v12580_v7 = vld [vmem:[#allocation6 + $0x6e4] ss:$16 sps:$4 sm:$0xff]   ;;  %v12583_v63 = vld [vmem:[#allocation6 + $0x6ec] ss:$16 sps:$4 sm:$0xff]  }
 0x4f6   :  { %6942 = vmatpush2.bf16.msra.mxu1 %v12533_v26  ;;  %6830 = vmatprep.subr.bf16.mxu0 %v12538_v17  ;;  %v12578_v52 = vld [vmem:[#allocation6 + $0x6e0] ss:$16 sps:$4 sm:$0xff]   ;;  %v12581_v6 = vld [vmem:[#allocation6 + $0x6e8] ss:$16 sps:$4 sm:$0xff]   ;;  %v12586_v13 = vld [vmem:[#allocation6 + $0x6c4] ss:$16 sps:$4 sm:$0xff]  }
 0x4f7   :  { %6943 = vmatprep.subr.bf16.mxu1 %v12541_v60  ;;  %v16891_v18 = vpack.c.bf16 %v5181_v22, %v5179_v41  ;;  %v12589_v48 = vld [vmem:[#allocation6 + $0x6cc] ss:$16 sps:$4 sm:$0xff]   ;;  %v12587_v53 = vld [vmem:[#allocation6 + $0x6c8] ss:$16 sps:$4 sm:$0xff]   ;;  %v12592_v46 = vld [vmem:[#allocation6 + $0x6a4] ss:$16 sps:$4 sm:$0xff]  }
 0x4f8   :  { %v12595_v57 = vld [vmem:[#allocation6 + $0x6ac] ss:$16 sps:$4 sm:$0xff]   ;;  %v12590_v26 = vld [vmem:[#allocation6 + $0x6a0] ss:$16 sps:$4 sm:$0xff]   ;;  %v12593_v17 = vld [vmem:[#allocation6 + $0x6a8] ss:$16 sps:$4 sm:$0xff]  }
 0x4f9   :  { %6831 = vmatpush2.bf16.msra.mxu0 %v12536_v11  ;;  %v12598_v60 = vld [vmem:[#allocation6 + $0x684] ss:$16 sps:$4 sm:$0xff]   ;;  %v12596_v56 = vld [vmem:[#allocation6 + $0x680] ss:$16 sps:$4 sm:$0xff]   ;;  %v12599_v11 = vld [vmem:[#allocation6 + $0x688] ss:$16 sps:$4 sm:$0xff]  }
 0x4fa   :  { %6944 = vmatpush2.bf16.msra.mxu1 %v12539_v23  ;;  %6284 = vmatmul.mubr.bf16.gmra.mxu0 %v16657_v2  ;;  %v12604_v41 = vld [vmem:[#allocation6 + $0x664] ss:$16 sps:$4 sm:$0xff]   ;;  %v12607_v22 = vld [vmem:[#allocation6 + $0x66c] ss:$16 sps:$4 sm:$0xff]   ;;  %v12602_v23 = vld [vmem:[#allocation6 + $0x660] ss:$16 sps:$4 sm:$0xff]  }
 0x4fb   :  { %6397 = vmatmul.mubr.bf16.gmra.mxu1 %v16657_v2  ;;  %6832 = vmatprep.subr.bf16.mxu0 %v12544_v45  ;;  %v12605_v45 = vld [vmem:[#allocation6 + $0x668] ss:$16 sps:$4 sm:$0xff]  }
 0x4fc   :  { %6945 = vmatprep.subr.bf16.mxu1 %v12547_v1  ;;  %6293 = vmatprep.mubr.bf16.mxu0 %v16697_v15  ;;  %v12610_v1 = vld [vmem:[#allocation6 + $0x644] ss:$16 sps:$4 sm:$0xff]  }
 0x4fd   :  { %6406 = vmatprep.mubr.bf16.mxu1 %v16697_v15  ;;  %6833 = vmatpush2.bf16.msra.mxu0 %v12542_v36  ;;  %v12613_v36 = vld [vmem:[#allocation6 + $0x64c] ss:$16 sps:$4 sm:$0xff]  }
 0x4fe   :  { %6946 = vmatpush2.bf16.msra.mxu1 %v12545_v38  ;;  %6834 = vmatprep.subr.bf16.mxu0 %v12550_v0  ;;  %v12608_v38 = vld [vmem:[#allocation6 + $0x640] ss:$16 sps:$4 sm:$0xff]   ;;  %v12611_v0 = vld [vmem:[#allocation6 + $0x648] ss:$16 sps:$4 sm:$0xff]  }
 0x4ff   :  { %6947 = vmatprep.subr.bf16.mxu1 %v12553_v58  ;;  %v12616_v58 = vld [vmem:[#allocation6 + $0x624] ss:$16 sps:$4 sm:$0xff]  }
 0x501   :  { %6835 = vmatpush2.bf16.msra.mxu0 %v12548_v28 }
 0x502   :  { %6948 = vmatpush2.bf16.msra.mxu1 %v12551_v40  ;;  %6294 = vmatmul.mubr.bf16.gmra.mxu0 %v16691_v9  ;;  %v12619_v40 = vld [vmem:[#allocation6 + $0x62c] ss:$16 sps:$4 sm:$0xff]  }
 0x503   :  { %6407 = vmatmul.mubr.bf16.gmra.mxu1 %v16691_v9  ;;  %6836 = vmatprep.subr.bf16.mxu0 %v12556_v27 }
 0x504   :  { %6949 = vmatprep.subr.bf16.mxu1 %v12559_v42  ;;  %6303 = vmatprep.mubr.bf16.mxu0 %v16725_v3  ;;  %v12614_v42 = vld [vmem:[#allocation6 + $0x620] ss:$16 sps:$4 sm:$0xff]  }
 0x505   :  { %6416 = vmatprep.mubr.bf16.mxu1 %v16725_v3  ;;  %6837 = vmatpush2.bf16.msra.mxu0 %v12554_v12  ;;  %v12617_v12 = vld [vmem:[#allocation6 + $0x628] ss:$16 sps:$4 sm:$0xff]  }
 0x506   :  { %6950 = vmatpush2.bf16.msra.mxu1 %v12557_v50  ;;  %6838 = vmatprep.subr.bf16.mxu0 %v12562_v32  ;;  %v12622_v50 = vld [vmem:[#allocation6 + $0x604] ss:$16 sps:$4 sm:$0xff]  }
 0x507   :  { %6951 = vmatprep.subr.bf16.mxu1 %v12565_v54  ;;  %v12625_v54 = vld [vmem:[#allocation6 + $0x60c] ss:$16 sps:$4 sm:$0xff]  }
 0x509   :  { %6839 = vmatpush2.bf16.msra.mxu0 %v12560_v31 }
 0x50a   :  { %6952 = vmatpush2.bf16.msra.mxu1 %v12563_v14  ;;  %6304 = vmatmul.mubr.bf16.gmra.mxu0 %v16719_v24  ;;  %v12620_v14 = vld [vmem:[#allocation6 + $0x600] ss:$16 sps:$4 sm:$0xff]  }
 0x50b   :  { %6417 = vmatmul.mubr.bf16.gmra.mxu1 %v16719_v24  ;;  %6840 = vmatprep.subr.bf16.mxu0 %v12568_v51  ;;  %v12623_v51 = vld [vmem:[#allocation6 + $0x608] ss:$16 sps:$4 sm:$0xff]  }
 0x50c   :  { %6953 = vmatprep.subr.bf16.mxu1 %v12571_v21  ;;  %6844 = vmatprep.mubr.bf16.mxu0 %v16540_v33  ;;  %v12628_v21 = vld [vmem:[#allocation6 + $0x7e4] ss:$16 sps:$4 sm:$0xff]  }
 0x50d   :  { %6841 = vmatpush2.bf16.msra.mxu0 %v12566_v19  ;;  %6957 = vmatprep.mubr.bf16.mxu1 %v16540_v33  ;;  %v12584_v33 = vld [vmem:[#allocation6 + $0x6c0] ss:$16 sps:$4 sm:$0xff]  }
 0x50e   :  { %6954 = vmatpush2.bf16.msra.mxu1 %v12569_v43  ;;  %6842 = vmatprep.subr.bf16.mxu0 %v12574_v39  ;;  %v12631_v43 = vld [vmem:[#allocation6 + $0x7ec] ss:$16 sps:$4 sm:$0xff]  }
 0x50f   :  { %6955 = vmatprep.subr.bf16.mxu1 %v12577_v30  ;;  %v12626_v30 = vld [vmem:[#allocation6 + $0x7e0] ss:$16 sps:$4 sm:$0xff]  }
 0x511   :  { %6843 = vmatpush2.bf16.msra.mxu0 %v12572_v20  ;;  %v12629_v20 = vld [vmem:[#allocation6 + $0x7e8] ss:$16 sps:$4 sm:$0xff]  }
 0x512   :  { %6956 = vmatpush2.bf16.msra.mxu1 %v12575_v62  ;;  %7487 = vmatprep.subr.bf16.mxu0 %v12580_v7  ;;  %v12634_v62 = vld [vmem:[#allocation6 + $0x7c4] ss:$16 sps:$4 sm:$0xff]  }
 0x513   :  { %7600 = vmatprep.subr.bf16.mxu1 %v12583_v63  ;;  %v12637_v63 = vld [vmem:[#allocation6 + $0x7cc] ss:$16 sps:$4 sm:$0xff]  }
 0x514   :  { %6845 = vmatmul.mubr.bf16.vlgmr.msra.gmra.mxu0 %v16526_v44 }
 0x515   :  { %6958 = vmatmul.mubr.bf16.vlgmr.msra.gmra.mxu1 %v16526_v44  ;;  %6854 = vmatprep.mubr.bf16.mxu0 %v16583_v8  ;;  %v12601_v44 = vld [vmem:[#allocation6 + $0x68c] ss:$16 sps:$4 sm:$0xff]  }
 0x516   :  { %6967 = vmatprep.mubr.bf16.mxu1 %v16583_v8  ;;  %7488 = vmatpush1.bf16.msra.mxu0 %v12578_v52 }
 0x517   :  { %7601 = vmatpush1.bf16.msra.mxu1 %v12581_v6  ;;  %7489 = vmatprep.subr.bf16.mxu0 %v12586_v13  ;;  %v12632_v13 = vld [vmem:[#allocation6 + $0x7c0] ss:$16 sps:$4 sm:$0xff]  }
 0x518   :  { %7602 = vmatprep.subr.bf16.mxu1 %v12589_v48 }
 0x51a   :  { %7490 = vmatpush1.bf16.msra.mxu0 %v12584_v33  ;;  %v16917_v28 = vpop.f32.mrf.mxu0  ;;  %v12635_v33 = vld [vmem:[#allocation6 + $0x7c8] ss:$16 sps:$4 sm:$0xff]  }
 0x51b   :  { %7603 = vmatpush1.bf16.msra.mxu1 %v12587_v53  ;;  %7491 = vmatprep.subr.bf16.mxu0 %v12592_v46  ;;  %v16919_v27 = vpop.f32.mrf.mxu1  ;;  %v12640_v53 = vld [vmem:[#allocation6 + $0x7a4] ss:$16 sps:$4 sm:$0xff]   ;;  %v12643_v46 = vld [vmem:[#allocation6 + $0x7ac] ss:$16 sps:$4 sm:$0xff]  }
 0x51c   :  { %6855 = vmatmul.mubr.bf16.gmra.mxu0 %v16571_v10  ;;  %7604 = vmatprep.subr.bf16.mxu1 %v12595_v57  ;;  %v16921_v32 = vpop.f32.mrf.mxu0 }
 0x51d   :  { %6968 = vmatmul.mubr.bf16.gmra.mxu1 %v16571_v10  ;;  %6864 = vmatprep.mubr.bf16.mxu0 %v16626_v34  ;;  %v16924_v31 = vpop.f32.mrf.mxu1 }
 0x51e   :  { %6977 = vmatprep.mubr.bf16.mxu1 %v16626_v34  ;;  %7492 = vmatpush1.bf16.msra.mxu0 %v12590_v26  ;;  %v16929_v19 = vpop.f32.mrf.mxu0  ;;  %v12638_v26 = vld [vmem:[#allocation6 + $0x7a0] ss:$16 sps:$4 sm:$0xff]  }
 0x51f   :  { %7605 = vmatpush1.bf16.msra.mxu1 %v12593_v17  ;;  %7493 = vmatprep.subr.bf16.mxu0 %v12598_v60  ;;  %v16931_v39 = vpop.f32.mrf.mxu1  ;;  %v12641_v60 = vld [vmem:[#allocation6 + $0x7a8] ss:$16 sps:$4 sm:$0xff]  }
 0x520   :  { %7606 = vmatprep.subr.bf16.mxu1 %v12601_v44  ;;  %v16933_v7 = vpop.f32.mrf.mxu0  ;;  %v12646_v44 = vld [vmem:[#allocation6 + $0x784] ss:$16 sps:$4 sm:$0xff]  }
 0x521   :  { %19154 = vst [vmem:[#allocation336_spill] sm:$0xff] %v16933_v7  ;;  %v16936_v52 = vpop.f32.mrf.mxu1  ;;  %v12718_v7 = vld [vmem:[#allocation6 + $0x804] ss:$16 sps:$4 sm:$0xff]  }
 0x522   :  { %7494 = vmatpush1.bf16.msra.mxu0 %v12596_v56  ;;  %19155 = vst [vmem:[#allocation169_spill] sm:$0xff] %v16936_v52  ;;  %v12649_v56 = vld [vmem:[#allocation6 + $0x78c] ss:$16 sps:$4 sm:$0xff]   ;;  %v12713_v52 = vld [vmem:[#allocation6 + $0x828] ss:$16 sps:$4 sm:$0xff]  }
 0x523   :  { %7607 = vmatpush1.bf16.msra.mxu1 %v12599_v11  ;;  %7495 = vmatprep.subr.bf16.mxu0 %v12604_v41  ;;  %v12644_v41 = vld [vmem:[#allocation6 + $0x780] ss:$16 sps:$4 sm:$0xff]  }
 0x524   :  { %6865 = vmatmul.mubr.bf16.gmra.mxu0 %v16614_v29  ;;  %7608 = vmatprep.subr.bf16.mxu1 %v12607_v22 }
 0x525   :  { %6978 = vmatmul.mubr.bf16.gmra.mxu1 %v16614_v29  ;;  %6874 = vmatprep.mubr.bf16.mxu0 %v16669_v59 }
 0x526   :  { %6987 = vmatprep.mubr.bf16.mxu1 %v16669_v59  ;;  %7496 = vmatpush1.bf16.msra.mxu0 %v12602_v23  ;;  %v12647_v23 = vld [vmem:[#allocation6 + $0x788] ss:$16 sps:$4 sm:$0xff]  }
 0x527   :  { %7609 = vmatpush1.bf16.msra.mxu1 %v12605_v45  ;;  %7497 = vmatprep.subr.bf16.mxu0 %v12610_v1  ;;  %v12652_v45 = vld [vmem:[#allocation6 + $0x764] ss:$16 sps:$4 sm:$0xff]   ;;  %v12655_v1 = vld [vmem:[#allocation6 + $0x76c] ss:$16 sps:$4 sm:$0xff]  }
 0x528   :  { %7610 = vmatprep.subr.bf16.mxu1 %v12613_v36 }
 0x52a   :  { %7498 = vmatpush1.bf16.msra.mxu0 %v12608_v38  ;;  %v16940_v6 = vpop.f32.mrf.mxu0  ;;  %v12650_v38 = vld [vmem:[#allocation6 + $0x760] ss:$16 sps:$4 sm:$0xff]  }
 0x52b   :  { %7611 = vmatpush1.bf16.msra.mxu1 %v12611_v0  ;;  %7499 = vmatprep.subr.bf16.mxu0 %v12616_v58  ;;  %v16943_v48 = vpop.f32.mrf.mxu1  ;;  %v12653_v58 = vld [vmem:[#allocation6 + $0x768] ss:$16 sps:$4 sm:$0xff]  }
 0x52c   :  { %6875 = vmatmul.mubr.bf16.gmra.mxu0 %v16657_v2  ;;  %7612 = vmatprep.subr.bf16.mxu1 %v12619_v40  ;;  %v16945_v57 = vpop.f32.mrf.mxu0  ;;  %v12658_v40 = vld [vmem:[#allocation6 + $0x744] ss:$16 sps:$4 sm:$0xff]  }
 0x52d   :  { %6988 = vmatmul.mubr.bf16.gmra.mxu1 %v16657_v2  ;;  %6884 = vmatprep.mubr.bf16.mxu0 %v16697_v15  ;;  %v16947_v17 = vpop.f32.mrf.mxu1 }
 0x52e   :  { %6997 = vmatprep.mubr.bf16.mxu1 %v16697_v15  ;;  %7500 = vmatpush1.bf16.msra.mxu0 %v12614_v42  ;;  %v16952_v11 = vpop.f32.mrf.mxu0 }
 0x52f   :  { %7613 = vmatpush1.bf16.msra.mxu1 %v12617_v12  ;;  %7501 = vmatprep.subr.bf16.mxu0 %v12622_v50  ;;  %v16955_v22 = vpop.f32.mrf.mxu1  ;;  %v12661_v12 = vld [vmem:[#allocation6 + $0x74c] ss:$16 sps:$4 sm:$0xff]  }
 0x530   :  { %7614 = vmatprep.subr.bf16.mxu1 %v12625_v54  ;;  %v16957_v36 = vpop.f32.mrf.mxu0  ;;  %v12656_v54 = vld [vmem:[#allocation6 + $0x740] ss:$16 sps:$4 sm:$0xff]  }
 0x531   :  { %v16959_v0 = vpop.f32.mrf.mxu1 }
 0x532   :  { %7502 = vmatpush1.bf16.msra.mxu0 %v12620_v14  ;;  %v12659_v14 = vld [vmem:[#allocation6 + $0x748] ss:$16 sps:$4 sm:$0xff]  }
 0x533   :  { %7615 = vmatpush1.bf16.msra.mxu1 %v12623_v51  ;;  %7503 = vmatprep.subr.bf16.mxu0 %v12628_v21  ;;  %v12664_v51 = vld [vmem:[#allocation6 + $0x724] ss:$16 sps:$4 sm:$0xff]  }
 0x534   :  { %6885 = vmatmul.mubr.bf16.gmra.mxu0 %v16691_v9  ;;  %7616 = vmatprep.subr.bf16.mxu1 %v12631_v43  ;;  %v12667_v43 = vld [vmem:[#allocation6 + $0x72c] ss:$16 sps:$4 sm:$0xff]  }
 0x535   :  { %6998 = vmatmul.mubr.bf16.gmra.mxu1 %v16691_v9  ;;  %6894 = vmatprep.mubr.bf16.mxu0 %v16725_v3 }
 0x536   :  { %7007 = vmatprep.mubr.bf16.mxu1 %v16725_v3  ;;  %7504 = vmatpush2.bf16.msra.mxu0 %v12626_v30 }
 0x537   :  { %7617 = vmatpush2.bf16.msra.mxu1 %v12629_v20  ;;  %7505 = vmatprep.subr.bf16.mxu0 %v12634_v62  ;;  %v12662_v20 = vld [vmem:[#allocation6 + $0x720] ss:$16 sps:$4 sm:$0xff]   ;;  %v12665_v62 = vld [vmem:[#allocation6 + $0x728] ss:$16 sps:$4 sm:$0xff]  }
 0x538   :  { %7618 = vmatprep.subr.bf16.mxu1 %v12637_v63  ;;  %v12670_v63 = vld [vmem:[#allocation6 + $0x704] ss:$16 sps:$4 sm:$0xff]  }
 0x53a   :  { %7506 = vmatpush2.bf16.msra.mxu0 %v12632_v13  ;;  %v16961_v42 = vpop.f32.mrf.mxu0 }
 0x53b   :  { %7619 = vmatpush2.bf16.msra.mxu1 %v12635_v33  ;;  %7507 = vmatprep.subr.bf16.mxu0 %v12640_v53  ;;  %v16964_v50 = vpop.f32.mrf.mxu1  ;;  %v12673_v33 = vld [vmem:[#allocation6 + $0x70c] ss:$16 sps:$4 sm:$0xff]  }
 0x53c   :  { %6895 = vmatmul.mubr.bf16.gmra.mxu0 %v16719_v24  ;;  %7620 = vmatprep.subr.bf16.mxu1 %v12643_v46  ;;  %v16969_v21 = vpop.f32.mrf.mxu0  ;;  %v12668_v46 = vld [vmem:[#allocation6 + $0x700] ss:$16 sps:$4 sm:$0xff]  }
 0x53d   :  { %7008 = vmatmul.mubr.bf16.gmra.mxu1 %v16719_v24  ;;  %6904 = vmatprep.mubr.bf16.mxu0 %v16753_v37  ;;  %v16971_v30 = vpop.f32.mrf.mxu1 }
 0x53e   :  { %7017 = vmatprep.mubr.bf16.mxu1 %v16753_v37  ;;  %7508 = vmatpush2.bf16.msra.mxu0 %v12638_v26  ;;  %v16973_v13 = vpop.f32.mrf.mxu0  ;;  %v12671_v26 = vld [vmem:[#allocation6 + $0x708] ss:$16 sps:$4 sm:$0xff]  }
 0x53f   :  { %7621 = vmatpush2.bf16.msra.mxu1 %v12641_v60  ;;  %7509 = vmatprep.subr.bf16.mxu0 %v12646_v44  ;;  %v16976_v53 = vpop.f32.mrf.mxu1  ;;  %v12676_v60 = vld [vmem:[#allocation6 + $0x8e4] ss:$16 sps:$4 sm:$0xff]  }
 0x540   :  { %7622 = vmatprep.subr.bf16.mxu1 %v12649_v56  ;;  %v16981_v44 = vpop.f32.mrf.mxu0  ;;  %v12679_v56 = vld [vmem:[#allocation6 + $0x8ec] ss:$16 sps:$4 sm:$0xff]  }
 0x541   :  { %19156 = vst [vmem:[#allocation337_spill] sm:$0xff] %v16981_v44 }
 0x542   :  { %7510 = vmatpush2.bf16.msra.mxu0 %v12644_v41  ;;  %v16983_v41 = vpop.f32.mrf.mxu1 }
 0x543   :  { %7623 = vmatpush2.bf16.msra.mxu1 %v12647_v23  ;;  %7511 = vmatprep.subr.bf16.mxu0 %v12652_v45  ;;  %19157 = vst [vmem:[#allocation170_spill] sm:$0xff] %v16983_v41 }
 0x544   :  { %6905 = vmatmul.mubr.bf16.gmra.mxu0 %v16747_v55  ;;  %7624 = vmatprep.subr.bf16.mxu1 %v12655_v1  ;;  %v12674_v1 = vld [vmem:[#allocation6 + $0x8e0] ss:$16 sps:$4 sm:$0xff]  }
 0x545   :  { %7018 = vmatmul.mubr.bf16.gmra.mxu1 %v16747_v55  ;;  %6914 = vmatprep.mubr.bf16.mxu0 %v16808_v16 }
 0x546   :  { %7027 = vmatprep.mubr.bf16.mxu1 %v16808_v16  ;;  %7512 = vmatpush2.bf16.msra.mxu0 %v12650_v38  ;;  %v12682_v38 = vld [vmem:[#allocation6 + $0x8c4] ss:$16 sps:$4 sm:$0xff]  }
 0x547   :  { %7625 = vmatpush2.bf16.msra.mxu1 %v12653_v58  ;;  %7513 = vmatprep.subr.bf16.mxu0 %v12658_v40  ;;  %v12685_v58 = vld [vmem:[#allocation6 + $0x8cc] ss:$16 sps:$4 sm:$0xff]  }
 0x548   :  { %7626 = vmatprep.subr.bf16.mxu1 %v12661_v12 }
 0x54a   :  { %7514 = vmatpush2.bf16.msra.mxu0 %v12656_v54  ;;  %v16985_v23 = vpop.f32.mrf.mxu0  ;;  %v12680_v54 = vld [vmem:[#allocation6 + $0x8c0] ss:$16 sps:$4 sm:$0xff]  }
 0x54b   :  { %7627 = vmatpush2.bf16.msra.mxu1 %v12659_v14  ;;  %7515 = vmatprep.subr.bf16.mxu0 %v12664_v51  ;;  %19158 = vst [vmem:[#allocation338_spill] sm:$0xff] %v16985_v23  ;;  %v16987_v45 = vpop.f32.mrf.mxu1  ;;  %v12683_v14 = vld [vmem:[#allocation6 + $0x8c8] ss:$16 sps:$4 sm:$0xff]   ;;  %v12688_v51 = vld [vmem:[#allocation6 + $0x8a4] ss:$16 sps:$4 sm:$0xff]  }
 0x54c   :  { %6915 = vmatmul.mubr.bf16.gmra.mxu0 %v16797_v5  ;;  %7628 = vmatprep.subr.bf16.mxu1 %v12667_v43  ;;  %19159 = vst [vmem:[#allocation171_spill] sm:$0xff] %v16987_v45  ;;  %v16990_v40 = vpop.f32.mrf.mxu0  ;;  %v12691_v43 = vld [vmem:[#allocation6 + $0x8ac] ss:$16 sps:$4 sm:$0xff]  }
 0x54d   :  { %7028 = vmatmul.mubr.bf16.gmra.mxu1 %v16797_v5  ;;  %7519 = vmatprep.mubr.bf16.mxu0 %v16583_v8  ;;  %19160 = vst [vmem:[#allocation339_spill] sm:$0xff] %v16990_v40  ;;  %v16994_v12 = vpop.f32.mrf.mxu1 }
 0x54e   :  { %7516 = vmatpush2.bf16.msra.mxu0 %v12662_v20  ;;  %7632 = vmatprep.mubr.bf16.mxu1 %v16583_v8  ;;  %v12677_v8 = vld [vmem:[#allocation6 + $0x8e8] ss:$16 sps:$4 sm:$0xff]   ;;  %19161 = vst [vmem:[#allocation172_spill] sm:$0xff] %v16994_v12  ;;  %v16997_v20 = vpop.f32.mrf.mxu0 }
 0x54f   :  { %7629 = vmatpush2.bf16.msra.mxu1 %v12665_v62  ;;  %7517 = vmatprep.subr.bf16.mxu0 %v12670_v63  ;;  %19162 = vst [vmem:[#allocation340_spill] sm:$0xff] %v16997_v20  ;;  %v16999_v62 = vpop.f32.mrf.mxu1  ;;  %v12689_v63 = vld [vmem:[#allocation6 + $0x8a8] ss:$16 sps:$4 sm:$0xff]  }
 0x550   :  { %7630 = vmatprep.subr.bf16.mxu1 %v12673_v33  ;;  %19163 = vst [vmem:[#allocation173_spill] sm:$0xff] %v16999_v62  ;;  %v12694_v33 = vld [vmem:[#allocation6 + $0x884] ss:$16 sps:$4 sm:$0xff]  }
 0x552   :  { %7518 = vmatpush2.bf16.msra.mxu0 %v12668_v46  ;;  %v12697_v46 = vld [vmem:[#allocation6 + $0x88c] ss:$16 sps:$4 sm:$0xff]  }
 0x553   :  { %7631 = vmatpush2.bf16.msra.mxu1 %v12671_v26  ;;  %8162 = vmatprep.subr.bf16.mxu0 %v12676_v60  ;;  %v17002_v26 = vpop.f32.mrf.mxu0  ;;  %v17006_v60 = vpop.f32.mrf.mxu1 }
 0x554   :  { %8275 = vmatprep.subr.bf16.mxu1 %v12679_v56  ;;  %19164 = vst [vmem:[#allocation341_spill] sm:$0xff] %v17002_v26  ;;  %19165 = vst [vmem:[#allocation174_spill] sm:$0xff] %v17006_v60  ;;  %v12692_v56 = vld [vmem:[#allocation6 + $0x880] ss:$16 sps:$4 sm:$0xff]  }
 0x555   :  { %7520 = vmatmul.mubr.bf16.vlgmr.msra.gmra.mxu0 %v16571_v10 }
 0x556   :  { %7633 = vmatmul.mubr.bf16.vlgmr.msra.gmra.mxu1 %v16571_v10  ;;  %7529 = vmatprep.mubr.bf16.mxu0 %v16626_v34  ;;  %v12686_v10 = vld [vmem:[#allocation6 + $0x8a0] ss:$16 sps:$4 sm:$0xff]  }
 0x557   :  { %7642 = vmatprep.mubr.bf16.mxu1 %v16626_v34  ;;  %8163 = vmatpush1.bf16.msra.mxu0 %v12674_v1 }
 0x558   :  { %8276 = vmatpush1.bf16.msra.mxu1 %v12677_v8  ;;  %8164 = vmatprep.subr.bf16.mxu0 %v12682_v38  ;;  %v12695_v8 = vld [vmem:[#allocation6 + $0x888] ss:$16 sps:$4 sm:$0xff]   ;;  %v12700_v38 = vld [vmem:[#allocation6 + $0x864] ss:$16 sps:$4 sm:$0xff]  }
 0x559   :  { %8277 = vmatprep.subr.bf16.mxu1 %v12685_v58 }
 0x55a   :  { %v17009_v1 = vpop.f32.mrf.mxu0 }
 0x55b   :  { %8165 = vmatpush1.bf16.msra.mxu0 %v12680_v54  ;;  %19166 = vst [vmem:[#allocation342_spill] sm:$0xff] %v17009_v1  ;;  %v17011_v58 = vpop.f32.mrf.mxu1  ;;  %v12703_v54 = vld [vmem:[#allocation6 + $0x86c] ss:$16 sps:$4 sm:$0xff]  }
 0x55c   :  { %8278 = vmatpush1.bf16.msra.mxu1 %v12683_v14  ;;  %8166 = vmatprep.subr.bf16.mxu0 %v12688_v51  ;;  %19167 = vst [vmem:[#allocation175_spill] sm:$0xff] %v17011_v58  ;;  %v12698_v14 = vld [vmem:[#allocation6 + $0x860] ss:$16 sps:$4 sm:$0xff]   ;;  %v17013_v51 = vpop.f32.mrf.mxu0 }
 0x55d   :  { %7530 = vmatmul.mubr.bf16.gmra.mxu0 %v16614_v29  ;;  %8279 = vmatprep.subr.bf16.mxu1 %v12691_v43  ;;  %19168 = vst [vmem:[#allocation343_spill] sm:$0xff] %v17013_v51  ;;  %v12701_v43 = vld [vmem:[#allocation6 + $0x868] ss:$16 sps:$4 sm:$0xff]  }
 0x55e   :  { %7643 = vmatmul.mubr.bf16.gmra.mxu1 %v16614_v29  ;;  %7539 = vmatprep.mubr.bf16.mxu0 %v16669_v59 }
 0x55f   :  { %7652 = vmatprep.mubr.bf16.mxu1 %v16669_v59  ;;  %8167 = vmatpush1.bf16.msra.mxu0 %v12686_v10  ;;  %v17015_v10 = vpop.f32.mrf.mxu1 }
 0x560   :  { %8280 = vmatpush1.bf16.msra.mxu1 %v12689_v63  ;;  %8168 = vmatprep.subr.bf16.mxu0 %v12694_v33  ;;  %19169 = vst [vmem:[#allocation176_spill] sm:$0xff] %v17015_v10  ;;  %v12709_v63 = vld [vmem:[#allocation6 + $0x84c] ss:$16 sps:$4 sm:$0xff]   ;;  %v12704_v33 = vld [vmem:[#allocation6 + $0x840] ss:$16 sps:$4 sm:$0xff]  }
 0x561   :  { %8281 = vmatprep.subr.bf16.mxu1 %v12697_v46  ;;  %v17021_v46 = vpop.f32.mrf.mxu0 }
 0x562   :  { %19170 = vst [vmem:[#allocation344_spill] sm:$0xff] %v17021_v46  ;;  %v12742_v46 = vld [vmem:[#allocation6 + $0x984] ss:$16 sps:$4 sm:$0xff]  }
 0x563   :  { %8169 = vmatpush1.bf16.msra.mxu0 %v12692_v56  ;;  %v12707_v56 = vld [vmem:[#allocation6 + $0x848] ss:$16 sps:$4 sm:$0xff]   ;;  %v17025_v4 = vpop.f32.mrf.mxu0 }
 0x564   :  { %8282 = vmatpush1.bf16.msra.mxu1 %v12695_v8  ;;  %8170 = vmatprep.subr.bf16.mxu0 %v12700_v38  ;;  %v12712_v8 = vld [vmem:[#allocation6 + $0x824] ss:$16 sps:$4 sm:$0xff]   ;;  %v17023_v38 = vpop.f32.mrf.mxu1  ;;  %19172 = vst [vmem:[#allocation345_spill] sm:$0xff] %v17025_v4 }
 0x565   :  { %7540 = vmatmul.mubr.bf16.gmra.mxu0 %v16657_v2  ;;  %8283 = vmatprep.subr.bf16.mxu1 %v12703_v54  ;;  %19171 = vst [vmem:[#allocation177_spill] sm:$0xff] %v17023_v38  ;;  %v12710_v54 = vld [vmem:[#allocation6 + $0x820] ss:$16 sps:$4 sm:$0xff]   ;;  %v12725_v38 = vld [vmem:[#allocation6 + $0x9e8] ss:$16 sps:$4 sm:$0xff]  }
 0x566   :  { %7653 = vmatmul.mubr.bf16.gmra.mxu1 %v16657_v2  ;;  %7549 = vmatprep.mubr.bf16.mxu0 %v16697_v15 }
 0x567   :  { %7662 = vmatprep.mubr.bf16.mxu1 %v16697_v15  ;;  %8171 = vmatpush1.bf16.msra.mxu0 %v12698_v14  ;;  %v17027_v14 = vpop.f32.mrf.mxu1 }
 0x568   :  { %8284 = vmatpush1.bf16.msra.mxu1 %v12701_v43  ;;  %8172 = vmatprep.subr.bf16.mxu0 %v12706_v47  ;;  %19173 = vst [vmem:[#allocation178_spill] sm:$0xff] %v17027_v14  ;;  %v12721_v47 = vld [vmem:[#allocation6 + $0x80c] ss:$16 sps:$4 sm:$0xff]  }
 0x569   :  { %8285 = vmatprep.subr.bf16.mxu1 %v12709_v63  ;;  %v12727_v14 = vld [vmem:[#allocation6 + $0x9ec] ss:$16 sps:$4 sm:$0xff]  }
 0x56a   :  { %v17030_v43 = vpop.f32.mrf.mxu0 }
 0x56b   :  { %8173 = vmatpush1.bf16.msra.mxu0 %v12704_v33  ;;  %19174 = vst [vmem:[#allocation346_spill] sm:$0xff] %v17030_v43  ;;  %v17034_v63 = vpop.f32.mrf.mxu1  ;;  %v12716_v33 = vld [vmem:[#allocation6 + $0x800] ss:$16 sps:$4 sm:$0xff]  }
 0x56c   :  { %8286 = vmatpush1.bf16.msra.mxu1 %v12707_v56  ;;  %8174 = vmatprep.subr.bf16.mxu0 %v12712_v8  ;;  %19175 = vst [vmem:[#allocation179_spill] sm:$0xff] %v17034_v63  ;;  %v12719_v56 = vld [vmem:[#allocation6 + $0x808] ss:$16 sps:$4 sm:$0xff]   ;;  %v12724_v8 = vld [vmem:[#allocation6 + $0x9e4] ss:$16 sps:$4 sm:$0xff]  }
 0x56d   :  { %7550 = vmatmul.mubr.bf16.gmra.mxu0 %v16691_v9  ;;  %8287 = vmatprep.subr.bf16.mxu1 %v12715_v61  ;;  %v17037_v61 = vpop.f32.mrf.mxu0  ;;  %v17039_v4 = vpop.f32.mrf.mxu1  ;;  %v12722_v43 = vld [vmem:[#allocation6 + $0x9e0] ss:$16 sps:$4 sm:$0xff]   ;;  %v12730_v63 = vld [vmem:[#allocation6 + $0x9c4] ss:$16 sps:$4 sm:$0xff]  }
 0x56e   :  { %7663 = vmatmul.mubr.bf16.gmra.mxu1 %v16691_v9  ;;  %7559 = vmatprep.mubr.bf16.mxu0 %v16725_v3  ;;  %19176 = vst [vmem:[#allocation347_spill] sm:$0xff] %v17037_v61  ;;  %19177 = vst [vmem:[#allocation180_spill] sm:$0xff] %v17039_v4 }
 0x56f   :  { %7672 = vmatprep.mubr.bf16.mxu1 %v16725_v3  ;;  %8175 = vmatpush1.bf16.msra.mxu0 %v12710_v54  ;;  %v12733_v54 = vld [vmem:[#allocation6 + $0x9cc] ss:$16 sps:$4 sm:$0xff]  }
 0x570   :  { %8288 = vmatpush1.bf16.msra.mxu1 %v12713_v52  ;;  %8176 = vmatprep.subr.bf16.mxu0 %v12718_v7  ;;  %v17042_v52 = vpop.f32.mrf.mxu0  ;;  %v17046_v7 = vpop.f32.mrf.mxu1 }
 0x571   :  { %8289 = vmatprep.subr.bf16.mxu1 %v12721_v47  ;;  %19178 = vst [vmem:[#allocation348_spill] sm:$0xff] %v17042_v52  ;;  %19179 = vst [vmem:[#allocation181_spill] sm:$0xff] %v17046_v7  ;;  %v12728_v47 = vld [vmem:[#allocation6 + $0x9c0] ss:$16 sps:$4 sm:$0xff]   ;;  %v12737_v7 = vld [vmem:[#allocation6 + $0x9a8] ss:$16 sps:$4 sm:$0xff]  }
 0x572   :  { %v17051_v4 = vpop.f32.mrf.mxu1  ;;  %v12734_v52 = vld [vmem:[#allocation6 + $0x9a0] ss:$16 sps:$4 sm:$0xff]  }
 0x573   :  { %8177 = vmatpush1.bf16.msra.mxu0 %v12716_v33  ;;  %v12731_v33 = vld [vmem:[#allocation6 + $0x9c8] ss:$16 sps:$4 sm:$0xff]   ;;  %19181 = vst [vmem:[#allocation182_spill] sm:$0xff] %v17051_v4  ;;  %v12751_v4 = vld [vmem:[#allocation6 + $0x96c] ss:$16 sps:$4 sm:$0xff]  }
 0x574   :  { %8290 = vmatpush1.bf16.msra.mxu1 %v12719_v56  ;;  %8178 = vmatprep.subr.bf16.mxu0 %v12724_v8  ;;  %v12736_v56 = vld [vmem:[#allocation6 + $0x9a4] ss:$16 sps:$4 sm:$0xff]   ;;  %v12739_v8 = vld [vmem:[#allocation6 + $0x9ac] ss:$16 sps:$4 sm:$0xff]  }
 0x575   :  { %7560 = vmatmul.mubr.bf16.gmra.mxu0 %v16719_v24  ;;  %8291 = vmatprep.subr.bf16.mxu1 %v12727_v14  ;;  %v17049_v14 = vpop.f32.mrf.mxu0 }
 0x576   :  { %7673 = vmatmul.mubr.bf16.gmra.mxu1 %v16719_v24  ;;  %7569 = vmatprep.mubr.bf16.mxu0 %v16753_v37  ;;  %19180 = vst [vmem:[#allocation349_spill] sm:$0xff] %v17049_v14 }
 0x577   :  { %7682 = vmatprep.mubr.bf16.mxu1 %v16753_v37  ;;  %8179 = vmatpush2.bf16.msra.mxu0 %v12722_v43 }
 0x578   :  { %8292 = vmatpush2.bf16.msra.mxu1 %v12725_v38  ;;  %8180 = vmatprep.subr.bf16.mxu0 %v12730_v63  ;;  %v12745_v38 = vld [vmem:[#allocation6 + $0x98c] ss:$16 sps:$4 sm:$0xff]   ;;  %v12740_v63 = vld [vmem:[#allocation6 + $0x980] ss:$16 sps:$4 sm:$0xff]  }
 0x579   :  { %8293 = vmatprep.subr.bf16.mxu1 %v12733_v54 }
 0x57a   :  { %v17053_v61 = vpop.f32.mrf.mxu0 }
 0x57b   :  { %8181 = vmatpush2.bf16.msra.mxu0 %v12728_v47  ;;  %19182 = vst [vmem:[#allocation350_spill] sm:$0xff] %v17053_v61  ;;  %v17055_v43 = vpop.f32.mrf.mxu1  ;;  %v12743_v47 = vld [vmem:[#allocation6 + $0x988] ss:$16 sps:$4 sm:$0xff]   ;;  %v12754_v61 = vld [vmem:[#allocation6 + $0x944] ss:$16 sps:$4 sm:$0xff]  }
 0x57c   :  { %8294 = vmatpush2.bf16.msra.mxu1 %v12731_v33  ;;  %8182 = vmatprep.subr.bf16.mxu0 %v12736_v56  ;;  %19183 = vst [vmem:[#allocation183_spill] sm:$0xff] %v17055_v43  ;;  %v17061_v54 = vpop.f32.mrf.mxu0  ;;  %v12748_v33 = vld [vmem:[#allocation6 + $0x964] ss:$16 sps:$4 sm:$0xff]   ;;  %v12749_v43 = vld [vmem:[#allocation6 + $0x968] ss:$16 sps:$4 sm:$0xff]  }
 0x57d   :  { %7570 = vmatmul.mubr.bf16.gmra.mxu0 %v16747_v55  ;;  %8295 = vmatprep.subr.bf16.mxu1 %v12739_v8  ;;  %19184 = vst [vmem:[#allocation351_spill] sm:$0xff] %v17061_v54  ;;  %v17063_v56 = vpop.f32.mrf.mxu1  ;;  %v12746_v8 = vld [vmem:[#allocation6 + $0x960] ss:$16 sps:$4 sm:$0xff]  }
 0x57e   :  { %7683 = vmatmul.mubr.bf16.gmra.mxu1 %v16747_v55  ;;  %7579 = vmatprep.mubr.bf16.mxu0 %v16808_v16  ;;  %19185 = vst [vmem:[#allocation184_spill] sm:$0xff] %v17063_v56  ;;  %v17065_v14 = vpop.f32.mrf.mxu0  ;;  %v12758_v56 = vld [vmem:[#allocation6 + $0x920] ss:$16 sps:$4 sm:$0xff]  }
 0x57f   :  { %7692 = vmatprep.mubr.bf16.mxu1 %v16808_v16  ;;  %8183 = vmatpush2.bf16.msra.mxu0 %v12734_v52  ;;  %19186 = vst [vmem:[#allocation352_spill] sm:$0xff] %v17065_v14  ;;  %v17067_v52 = vpop.f32.mrf.mxu1 }
 0x580   :  { %8296 = vmatpush2.bf16.msra.mxu1 %v12737_v7  ;;  %8184 = vmatprep.subr.bf16.mxu0 %v12742_v46  ;;  %19187 = vst [vmem:[#allocation185_spill] sm:$0xff] %v17067_v52  ;;  %v12757_v46 = vld [vmem:[#allocation6 + $0x94c] ss:$16 sps:$4 sm:$0xff]   ;;  %v12752_v7 = vld [vmem:[#allocation6 + $0x940] ss:$16 sps:$4 sm:$0xff]  }
 0x581   :  { %8297 = vmatprep.subr.bf16.mxu1 %v12745_v38  ;;  %v17073_v38 = vpop.f32.mrf.mxu0  ;;  %v12763_v52 = vld [vmem:[#allocation6 + $0x92c] ss:$16 sps:$4 sm:$0xff]  }
 0x582   :  { %19188 = vst [vmem:[#allocation186_spill] sm:$0xff] %v17073_v38  ;;  %v12766_v38 = vld [vmem:[#allocation6 + $0x904] ss:$16 sps:$4 sm:$0xff]  }
 0x583   :  { %8185 = vmatpush2.bf16.msra.mxu0 %v12740_v63  ;;  %v12755_v63 = vld [vmem:[#allocation6 + $0x948] ss:$16 sps:$4 sm:$0xff]  }
 0x584   :  { %8298 = vmatpush2.bf16.msra.mxu1 %v12743_v47  ;;  %8186 = vmatprep.subr.bf16.mxu0 %v12748_v33  ;;  %v12760_v47 = vld [vmem:[#allocation6 + $0x924] ss:$16 sps:$4 sm:$0xff]   ;;  %v17075_v33 = vpop.f32.mrf.mxu1 }
 0x585   :  { %7580 = vmatmul.mubr.bf16.gmra.mxu0 %v16797_v5  ;;  %8299 = vmatprep.subr.bf16.mxu1 %v12751_v4  ;;  %19189 = vst [vmem:[#allocation187_spill] sm:$0xff] %v17075_v33 }
 0x586   :  { %7693 = vmatmul.mubr.bf16.gmra.mxu1 %v16797_v5  ;;  %7589 = vmatprep.mubr.bf16.mxu0 %v16867_v35 }
 0x587   :  { %7702 = vmatprep.mubr.bf16.mxu1 %v16867_v35  ;;  %8187 = vmatpush2.bf16.msra.mxu0 %v12746_v8  ;;  %v12761_v8 = vld [vmem:[#allocation6 + $0x928] ss:$16 sps:$4 sm:$0xff]  }
 0x588   :  { %8300 = vmatpush2.bf16.msra.mxu1 %v12749_v43  ;;  %8188 = vmatprep.subr.bf16.mxu0 %v12754_v61  ;;  %v12769_v43 = vld [vmem:[#allocation6 + $0x90c] ss:$16 sps:$4 sm:$0xff]  }
 0x589   :  { %8301 = vmatprep.subr.bf16.mxu1 %v12757_v46 }
 0x58a   :  { %v17077_v4 = vpop.f32.mrf.mxu0 }
 0x58b   :  { %8189 = vmatpush2.bf16.msra.mxu0 %v12752_v7  ;;  %v17079_v14 = vpop.f32.mrf.mxu1 }
 0x58c   :  { %8302 = vmatpush2.bf16.msra.mxu1 %v12755_v63  ;;  %8190 = vmatprep.subr.bf16.mxu0 %v12760_v47  ;;  %v17081_v54 = vpop.f32.mrf.mxu0  ;;  %v12764_v63 = vld [vmem:[#allocation6 + $0x900] ss:$16 sps:$4 sm:$0xff]   ;;  %v12767_v47 = vld [vmem:[#allocation6 + $0x908] ss:$16 sps:$4 sm:$0xff]  }
 0x58d   :  { %7590 = vmatmul.mubr.bf16.gmra.mxu0 %v16862_v25  ;;  %8303 = vmatprep.subr.bf16.mxu1 %v12763_v52  ;;  %v17084_v61 = vpop.f32.mrf.mxu1 }
 0x58e   :  { %7703 = vmatmul.mubr.bf16.gmra.mxu1 %v16862_v25  ;;  %8194 = vmatprep.mubr.bf16.mxu0 %v16626_v34  ;;  %v17088_v46 = vpop.f32.mrf.mxu0 }
 0x58f   :  { %8191 = vmatpush2.bf16.msra.mxu0 %v12758_v56  ;;  %8307 = vmatprep.mubr.bf16.mxu1 %v16626_v34  ;;  %v17091_v7 = vpop.f32.mrf.mxu1 }
 0x590   :  { %8304 = vmatpush2.bf16.msra.mxu1 %v12761_v8  ;;  %8192 = vmatprep.subr.bf16.mxu0 %v12766_v38  ;;  %v17093_v33 = vpop.f32.mrf.mxu0 }
 0x591   :  { %19190 = vst [vmem:[#allocation20_spill] sm:$0xff] %v17093_v33  ;;  %8305 = vmatprep.subr.bf16.mxu1 %v12769_v43  ;;  %v17095_v52 = vpop.f32.mrf.mxu1 }
 0x592   :  { %19191 = vst [vmem:[#allocation188_spill] sm:$0xff] %v17095_v52  ;;  %v17097_v10 = vpop.f32.mrf.mxu0 }
 0x593   :  { %8193 = vmatpush2.bf16.msra.mxu0 %v12764_v63  ;;  %v17099_v51 = vpop.f32.mrf.mxu1 }
 0x594   :  { %8306 = vmatpush2.bf16.msra.mxu1 %v12767_v47  ;;  %v17101_v56 = vpop.f32.mrf.mxu0 }
 0x595   :  { %v17103_v34 = vpop.f32.mrf.mxu1 }
 0x596   :  { %8195 = vmatmul.mubr.bf16.vlgmr.msra.gmra.mxu0 %v16614_v29  ;;  %v17106_v8 = vpop.f32.mrf.mxu0 }
 0x597   :  { %8308 = vmatmul.mubr.bf16.vlgmr.msra.gmra.mxu1 %v16614_v29  ;;  %8204 = vmatprep.mubr.bf16.mxu0 %v16669_v59  ;;  %v17110_v38 = vpop.f32.mrf.mxu1 }
 0x598   :  { %8317 = vmatprep.mubr.bf16.mxu1 %v16669_v59  ;;  %v17113_v43 = vpop.f32.mrf.mxu0 }
 0x599   :  { %19192 = vst [vmem:[#allocation21_spill] sm:$0xff] %v17113_v43  ;;  %v17115_v63 = vpop.f32.mrf.mxu1 }
 0x59a   :  { %19193 = vst [vmem:[#allocation189_spill] sm:$0xff] %v17115_v63  ;;  %v17117_v47 = vpop.f32.mrf.mxu0 }
 0x59b   :  { %v17119_v52 = vpop.f32.mrf.mxu1 }
 0x59c   :  { %v17121_v33 = vpop.f32.mrf.mxu0 }
 0x59d   :  { %v17123_v58 = vpop.f32.mrf.mxu1 }
 0x59e   :  { %8205 = vmatmul.mubr.bf16.gmra.mxu0 %v16657_v2  ;;  %v17126_v29 = vpop.f32.mrf.mxu0 }
 0x59f   :  { %8318 = vmatmul.mubr.bf16.gmra.mxu1 %v16657_v2  ;;  %8214 = vmatprep.mubr.bf16.mxu0 %v16697_v15  ;;  %v17130_v59 = vpop.f32.mrf.mxu1 }
 0x5a0   :  { %8327 = vmatprep.mubr.bf16.mxu1 %v16697_v15  ;;  %v17133_v63 = vpop.f32.mrf.mxu0 }
 0x5a1   :  { %v17135_v43 = vpop.f32.mrf.mxu1 }
 0x5a2   :  { %v17137_v1 = vpop.f32.mrf.mxu0 }
 0x5a3   :  { %v17139_v60 = vpop.f32.mrf.mxu1 }
 0x5a4   :  { %v17141_v26 = vpop.f32.mrf.mxu0 }
 0x5a5   :  { %v17143_v62 = vpop.f32.mrf.mxu1 }
 0x5a6   :  { %8215 = vmatmul.mubr.bf16.gmra.mxu0 %v16691_v9  ;;  %v17146_v2 = vpop.f32.mrf.mxu0 }
 0x5a7   :  { %8328 = vmatmul.mubr.bf16.gmra.mxu1 %v16691_v9  ;;  %8224 = vmatprep.mubr.bf16.mxu0 %v16725_v3  ;;  %v17150_v15 = vpop.f32.mrf.mxu1 }
 0x5a8   :  { %8337 = vmatprep.mubr.bf16.mxu1 %v16725_v3  ;;  %v17153_v20 = vpop.f32.mrf.mxu0 }
 0x5a9   :  { %19194 = vst [vmem:[#allocation22_spill] sm:$0xff] %v17153_v20  ;;  %v17155_v12 = vpop.f32.mrf.mxu1 }
 0x5aa   :  { %19195 = vst [vmem:[#allocation190_spill] sm:$0xff] %v17155_v12  ;;  %v17157_v40 = vpop.f32.mrf.mxu0 }
 0x5ab   :  { %19196 = vst [vmem:[#allocation23_spill] sm:$0xff] %v17157_v40  ;;  %v17159_v45 = vpop.f32.mrf.mxu1  ;;  %v12772_v40 = vld [vmem:[#allocation9 + $0xe4] ss:$16 sps:$4 sm:$0xff]  }
 0x5ac   :  { %19197 = vst [vmem:[#allocation191_spill] sm:$0xff] %v17159_v45  ;;  %v17161_v23 = vpop.f32.mrf.mxu0  ;;  %10110 = vmatprep.subr.bf16.mxu0 %v12772_v40  ;;  %v12778_v40 = vld [vmem:[#allocation9 + $0xa4] ss:$16 sps:$4 sm:$0xff]  }
 0x5ad   :  { %19198 = vst [vmem:[#allocation24_spill] sm:$0xff] %v17161_v23  ;;  %v17163_v41 = vpop.f32.mrf.mxu1  ;;  %v12770_v23 = vld [vmem:[#allocation9 + $0xe0] ss:$16 sps:$4 sm:$0xff]  }
 0x5ae   :  { %19199 = vst [vmem:[#allocation192_spill] sm:$0xff] %v17163_v41  ;;  %8225 = vmatmul.mubr.bf16.gmra.mxu0 %v16719_v24  ;;  %v17166_v9 = vpop.f32.mrf.mxu0 }
 0x5af   :  { %19200 = vst [vmem:[#allocation25_spill] sm:$0xff] %v17166_v9  ;;  %8338 = vmatmul.mubr.bf16.gmra.mxu1 %v16719_v24  ;;  %8234 = vmatprep.mubr.bf16.mxu0 %v16753_v37  ;;  %v17170_v3 = vpop.f32.mrf.mxu1  ;;  %v12775_v24 = vld [vmem:[#allocation9 + $0xc4] ss:$16 sps:$4 sm:$0xff]  }
 0x5b0   :  { %19201 = vst [vmem:[#allocation193_spill] sm:$0xff] %v17170_v3  ;;  %8347 = vmatprep.mubr.bf16.mxu1 %v16753_v37  ;;  %v17173_v12 = vpop.f32.mrf.mxu0  ;;  %10111 = vmatpush1.bf16.msra.mxu0 %v12770_v23  ;;  %v12773_v3 = vld [vmem:[#allocation9 + $0xc0] ss:$16 sps:$4 sm:$0xff]  }
 0x5b1   :  { %v17175_v45 = vpop.f32.mrf.mxu1  ;;  %10112 = vmatprep.subr.bf16.mxu0 %v12775_v24 }
 0x5b2   :  { %19202 = vst [vmem:[#allocation26_spill] sm:$0xff] %v17175_v45  ;;  %v17177_v20 = vpop.f32.mrf.mxu0 }
 0x5b3   :  { %19203 = vst [vmem:[#allocation194_spill] sm:$0xff] %v17177_v20  ;;  %v17179_v41 = vpop.f32.mrf.mxu1 }
 0x5b4   :  { %19204 = vst [vmem:[#allocation27_spill] sm:$0xff] %v17179_v41  ;;  %v17181_v9 = vpop.f32.mrf.mxu0  ;;  %10113 = vmatpush1.bf16.msra.mxu0 %v12773_v3 }
 0x5b5   :  { %19205 = vst [vmem:[#allocation195_spill] sm:$0xff] %v17181_v9  ;;  %v17183_v44 = vpop.f32.mrf.mxu1  ;;  %10114 = vmatprep.subr.bf16.mxu0 %v12778_v40 }
 0x5b6   :  { %19206 = vst [vmem:[#allocation28_spill] sm:$0xff] %v17183_v44  ;;  %8235 = vmatmul.mubr.bf16.gmra.mxu0 %v16747_v55  ;;  %v17186_v37 = vpop.f32.mrf.mxu0  ;;  %v12776_v44 = vld [vmem:[#allocation9 + $0xa0] ss:$16 sps:$4 sm:$0xff]  }
 0x5b7   :  { %19207 = vst [vmem:[#allocation196_spill] sm:$0xff] %v17186_v37  ;;  %8348 = vmatmul.mubr.bf16.gmra.mxu1 %v16747_v55  ;;  %8244 = vmatprep.mubr.bf16.mxu0 %v16808_v16  ;;  %v17190_v20 = vpop.f32.mrf.mxu1  ;;  %v12781_v55 = vld [vmem:[#allocation9 + $0x84] ss:$16 sps:$4 sm:$0xff]  }
 0x5b8   :  { %19208 = vst [vmem:[#allocation29_spill] sm:$0xff] %v17190_v20  ;;  %8357 = vmatprep.mubr.bf16.mxu1 %v16808_v16  ;;  %v17193_v23 = vpop.f32.mrf.mxu0  ;;  %10115 = vmatpush1.bf16.msra.mxu0 %v12776_v44  ;;  %v12779_v20 = vld [vmem:[#allocation9 + $0x80] ss:$16 sps:$4 sm:$0xff]   ;;  %v12784_v44 = vld [vmem:[#allocation9 + $0x64] ss:$16 sps:$4 sm:$0xff]  }
 0x5b9   :  { %19209 = vst [vmem:[#allocation197_spill] sm:$0xff] %v17193_v23  ;;  %v17195_v9 = vpop.f32.mrf.mxu1  ;;  %10116 = vmatprep.subr.bf16.mxu0 %v12781_v55 }
 0x5ba   :  { %19210 = vst [vmem:[#allocation30_spill] sm:$0xff] %v17195_v9  ;;  %v17197_v41 = vpop.f32.mrf.mxu0  ;;  %v12787_v9 = vld [vmem:[#allocation9 + $0x2e4] ss:$16 sps:$4 sm:$0xff]  }
 0x5bb   :  { %v17199_v37 = vpop.f32.mrf.mxu1  ;;  %10153 = vmatprep.subr.bf16.mxu1 %v12787_v9 }
 0x5bc   :  { %19211 = vst [vmem:[#allocation198_spill] sm:$0xff] %v17199_v37  ;;  %v17201_v24 = vpop.f32.mrf.mxu0  ;;  %10117 = vmatpush1.bf16.msra.mxu0 %v12779_v20  ;;  %v12788_v20 = vld [vmem:[#allocation9 + $0x40] ss:$16 sps:$4 sm:$0xff]  }
 0x5bd   :  { %19212 = vst [vmem:[#allocation31_spill] sm:$0xff] %v17201_v24  ;;  %v17203_v45 = vpop.f32.mrf.mxu1  ;;  %v12785_v24 = vld [vmem:[#allocation9 + $0x2e0] ss:$16 sps:$4 sm:$0xff]   ;;  %10118 = vmatprep.subr.bf16.mxu0 %v12784_v44  ;;  %v12799_v44 = vld [vmem:[#allocation9 + $0x2a4] ss:$16 sps:$4 sm:$0xff]  }
 0x5be   :  { %19213 = vst [vmem:[#allocation199_spill] sm:$0xff] %v17203_v45  ;;  %8245 = vmatmul.mubr.bf16.gmra.mxu0 %v16797_v5  ;;  %v17206_v16 = vpop.f32.mrf.mxu0  ;;  %v12782_v45 = vld [vmem:[#allocation9 + $0x60] ss:$16 sps:$4 sm:$0xff]   ;;  %10154 = vmatpush1.bf16.msra.mxu1 %v12785_v24  ;;  %v12796_v24 = vld [vmem:[#allocation9 + $0x24] ss:$16 sps:$4 sm:$0xff]  }
 0x5bf   :  { %19214 = vst [vmem:[#allocation32_spill] sm:$0xff] %v17206_v16  ;;  %8358 = vmatmul.mubr.bf16.gmra.mxu1 %v16797_v5  ;;  %8254 = vmatprep.mubr.bf16.mxu0 %v16867_v35  ;;  %v17210_v3 = vpop.f32.mrf.mxu1  ;;  %v12791_v16 = vld [vmem:[#allocation9 + $0x2c0] ss:$16 sps:$4 sm:$0xff]  }
 0x5c0   :  { %19215 = vst [vmem:[#allocation200_spill] sm:$0xff] %v17210_v3  ;;  %8367 = vmatprep.mubr.bf16.mxu1 %v16867_v35  ;;  %v17213_v40 = vpop.f32.mrf.mxu0  ;;  %10119 = vmatpush1.bf16.msra.mxu0 %v12782_v45  ;;  %v12790_v35 = vld [vmem:[#allocation9 + $0x44] ss:$16 sps:$4 sm:$0xff]  }
 0x5c1   :  { %19216 = vst [vmem:[#allocation33_spill] sm:$0xff] %v17213_v40  ;;  %v17215_v23 = vpop.f32.mrf.mxu1  ;;  %v12793_v3 = vld [vmem:[#allocation9 + $0x2c4] ss:$16 sps:$4 sm:$0xff]   ;;  %10120 = vmatprep.subr.bf16.mxu0 %v12790_v35 }
 0x5c2   :  { %19217 = vst [vmem:[#allocation201_spill] sm:$0xff] %v17215_v23  ;;  %v17217_v37 = vpop.f32.mrf.mxu0  ;;  %10155 = vmatprep.subr.bf16.mxu1 %v12793_v3  ;;  %v12802_v3 = vld [vmem:[#allocation9 + $0x4] ss:$16 sps:$4 sm:$0xff]  }
 0x5c3   :  { %19218 = vst [vmem:[#allocation34_spill] sm:$0xff] %v17217_v37  ;;  %v17219_v5 = vpop.f32.mrf.mxu1  ;;  %10156 = vmatpush1.bf16.msra.mxu1 %v12791_v16  ;;  %v12800_v16 = vld [vmem:[#allocation9] ss:$16 sps:$4 sm:$0xff]  }
 0x5c4   :  { %19219 = vst [vmem:[#allocation202_spill] sm:$0xff] %v17219_v5  ;;  %v17221_v55 = vpop.f32.mrf.mxu0  ;;  %10121 = vmatpush1.bf16.msra.mxu0 %v12788_v20  ;;  %10157 = vmatprep.subr.bf16.mxu1 %v12799_v44  ;;  %v12805_v5 = vld [vmem:[#allocation9 + $0x284] ss:$16 sps:$4 sm:$0xff]  }
 0x5c5   :  { %19220 = vst [vmem:[#allocation35_spill] sm:$0xff] %v17221_v55  ;;  %v17223_v40 = vpop.f32.mrf.mxu1  ;;  %v12794_v55 = vld [vmem:[#allocation9 + $0x20] ss:$16 sps:$4 sm:$0xff]   ;;  %10122 = vmatprep.subr.bf16.mxu0 %v12796_v24 }
 0x5c6   :  { %19221 = vst [vmem:[#allocation203_spill] sm:$0xff] %v17223_v40  ;;  %8255 = vmatmul.mubr.bf16.gmra.mxu0 %v16862_v25  ;;  %v17226_v23 = vpop.f32.mrf.mxu0 }
 0x5c7   :  { %19222 = vst [vmem:[#allocation36_spill] sm:$0xff] %v17226_v23  ;;  %8368 = vmatmul.mubr.bf16.gmra.mxu1 %v16862_v25  ;;  %8264 = vmatprep.mubr.bf16.mxu0 %v16891_v18  ;;  %v17230_v9 = vpop.f32.mrf.mxu1  ;;  %v12797_v23 = vld [vmem:[#allocation9 + $0x2a0] ss:$16 sps:$4 sm:$0xff]  }
 0x5c8   :  { %19223 = vst [vmem:[#allocation204_spill] sm:$0xff] %v17230_v9  ;;  %8377 = vmatprep.mubr.bf16.mxu1 %v16891_v18  ;;  %v17233_v45 = vpop.f32.mrf.mxu0  ;;  %10123 = vmatpush1.bf16.msra.mxu0 %v12794_v55  ;;  %v12808_v55 = vld [vmem:[#allocation9 + $0x1e4] ss:$16 sps:$4 sm:$0xff]  }
 0x5c9   :  { %19224 = vst [vmem:[#allocation37_spill] sm:$0xff] %v17233_v45  ;;  %v17235_v40 = vpop.f32.mrf.mxu1  ;;  %10158 = vmatpush1.bf16.msra.mxu1 %v12797_v23  ;;  %10124 = vmatprep.subr.bf16.mxu0 %v12802_v3  ;;  %v12817_v3 = vld [vmem:[#allocation9 + $0x244] ss:$16 sps:$4 sm:$0xff]  }
 0x5ca   :  { %19225 = vst [vmem:[#allocation205_spill] sm:$0xff] %v17235_v40  ;;  %v6305_v35 = vpop.f32.mrf.mxu0  ;;  %v12803_v40 = vld [vmem:[#allocation9 + $0x280] ss:$16 sps:$4 sm:$0xff]   ;;  %10159 = vmatprep.subr.bf16.mxu1 %v12805_v5  ;;  %v12814_v5 = vld [vmem:[#allocation9 + $0x1c4] ss:$16 sps:$4 sm:$0xff]  }
 0x5cb   :  { %v17238_v25 = vadd.f32 %v6305_v35, %v17077_v4  ;;  %v6418_v9 = vpop.f32.mrf.mxu1  ;;  %v12809_v35 = vld [vmem:[#allocation9 + $0x260] ss:$16 sps:$4 sm:$0xff]  }
 0x5cc   :  { %v17241_v18 = vadd.f32 %v6418_v9, %v17079_v14  ;;  %v6307_v45 = vpop.f32.mrf.mxu0  ;;  %10125 = vmatpush1.bf16.msra.mxu0 %v12800_v16 }
 0x5cd   :  { %v17244_v37 = vadd.f32 %v6307_v45, %v17081_v54  ;;  %v6420_v20 = vpop.f32.mrf.mxu1  ;;  %v12811_v45 = vld [vmem:[#allocation9 + $0x264] ss:$16 sps:$4 sm:$0xff]   ;;  %10160 = vmatpush1.bf16.msra.mxu1 %v12803_v40  ;;  %10126 = vmatprep.subr.bf16.mxu0 %v12808_v55  ;;  %v12812_v40 = vld [vmem:[#allocation9 + $0x1c0] ss:$16 sps:$4 sm:$0xff]   ;;  %v6351_v55 = vadd.f32 %v17103_v34, %v16924_v31 }
 0x5ce   :  { %8265 = vmatmul.mubr.bf16.gmra.mxu0 %v16888_v49  ;;  %v17248_v4 = vadd.f32 %v6420_v20, %v17084_v61  ;;  %v6309_v24 = vpop.f32.mrf.mxu0  ;;  %v12806_v61 = vld [vmem:[#allocation9 + $0x1e0] ss:$16 sps:$4 sm:$0xff]   ;;  %10161 = vmatprep.subr.bf16.mxu1 %v12811_v45  ;;  %v6238_v20 = vadd.f32 %v17101_v56, %v16921_v32  ;;  %v6353_v56 = vadd.f32 %v17110_v38, %v16931_v39 }
 0x5cf   :  { %8378 = vmatmul.mubr.bf16.gmra.mxu1 %v16888_v49  ;;  %v17252_v14 = vadd.f32 %v6309_v24, %v17088_v46  ;;  %v6422_v9 = vpop.f32.mrf.mxu1  ;;  %v6236_v49 = vadd.f32 %v17097_v10, %v16917_v28  ;;  %v6349_v46 = vadd.f32 %v17099_v51, %v16919_v27  ;;  %v6240_v27 = vadd.f32 %v17106_v8, %v16929_v19 }
 0x5d0   :  { %v17255_v54 = vadd.f32 %v6422_v9, %v17091_v7  ;;  %v17257_v23 = vpop.f32.mrf.mxu0  ;;  %10127 = vmatpush2.bf16.msra.mxu0 %v12806_v61  ;;  %v12815_v9 = vld [vmem:[#allocation9 + $0x240] ss:$16 sps:$4 sm:$0xff]   ;;  %v6246_v39 = vadd.f32 %v17117_v47, %v16940_v6  ;;  %v6359_v38 = vadd.f32 %v17119_v52, %v16943_v48  ;;  %v6361_v6 = vadd.f32 %v17123_v58, %v16947_v17 }
 0x5d1   :  { %v17259_v44 = vpop.f32.mrf.mxu1  ;;  %10162 = vmatpush1.bf16.msra.mxu1 %v12809_v35  ;;  %10128 = vmatprep.subr.bf16.mxu0 %v12814_v5  ;;  %v12820_v35 = vld [vmem:[#allocation9 + $0x1a4] ss:$16 sps:$4 sm:$0xff]   ;;  %v6250_v48 = vadd.f32 %v17126_v29, %v16952_v11  ;;  %v6252_v17 = vadd.f32 %v17133_v63, %v16957_v36  ;;  %v12830_v11 = vld [vmem:[#allocation9 + $0x160] ss:$16 sps:$4 sm:$0xff]   ;;  %v6369_v63 = vadd.f32 %v17139_v60, %v16964_v50 }
 0x5d2   :  { %10163 = vmatprep.subr.bf16.mxu1 %v12817_v3  ;;  %v12833_v29 = vld [vmem:[#allocation9 + $0x3e0] ss:$16 sps:$4 sm:$0xff]   ;;  %v6260_v60 = vadd.f32 %v17146_v2, %v16973_v13 }
 0x5d3   :  { %v12842_v13 = vld [vmem:[#allocation9 + $0x120] ss:$16 sps:$4 sm:$0xff]  }
 0x5d4   :  { %v6846_v7 = vpop.f32.mrf.mxu0  ;;  %10129 = vmatpush2.bf16.msra.mxu0 %v12812_v40  ;;  %v6248_v40 = vadd.f32 %v17121_v33, %v16945_v57  ;;  %v6363_v33 = vadd.f32 %v17130_v59, %v16955_v22  ;;  %v6256_v59 = vadd.f32 %v17137_v1, %v16961_v42  ;;  %v12836_v42 = vld [vmem:[#allocation9 + $0x140] ss:$16 sps:$4 sm:$0xff]  }
 0x5d5   :  { %v17267_v24 = vadd.f32 %v6846_v7, %v6236_v49  ;;  %v6959_v16 = vpop.f32.mrf.mxu1  ;;  %v12823_v49 = vld [vmem:[#allocation9 + $0x224] ss:$16 sps:$4 sm:$0xff]   ;;  %10164 = vmatpush1.bf16.msra.mxu1 %v12815_v9  ;;  %v12821_v7 = vld [vmem:[#allocation9 + $0x220] ss:$16 sps:$4 sm:$0xff]   ;;  %10130 = vmatprep.subr.bf16.mxu0 %v12820_v35 }
 0x5d6   :  { %v17271_v28 = vadd.f32 %v6959_v16, %v6349_v46  ;;  %v6848_v10 = vpop.f32.mrf.mxu0  ;;  %v12818_v46 = vld [vmem:[#allocation9 + $0x1a0] ss:$16 sps:$4 sm:$0xff]   ;;  %10165 = vmatprep.subr.bf16.mxu1 %v12823_v49  ;;  %v12829_v16 = vld [vmem:[#allocation9 + $0x204] ss:$16 sps:$4 sm:$0xff]  }
 0x5d7   :  { %v17275_v51 = vadd.f32 %v6848_v10, %v6238_v20  ;;  %v6961_v32 = vpop.f32.mrf.mxu1  ;;  %v12826_v20 = vld [vmem:[#allocation9 + $0x184] ss:$16 sps:$4 sm:$0xff]   ;;  %v12824_v10 = vld [vmem:[#allocation9 + $0x180] ss:$16 sps:$4 sm:$0xff]  }
 0x5d8   :  { %v17279_v45 = vadd.f32 %v6961_v32, %v6351_v55  ;;  %v6850_v61 = vpop.f32.mrf.mxu0  ;;  %10131 = vmatpush2.bf16.msra.mxu0 %v12818_v46  ;;  %v12832_v35 = vld [vmem:[#allocation9 + $0x164] ss:$16 sps:$4 sm:$0xff]   ;;  %v6365_v46 = vadd.f32 %v17135_v43, %v16959_v0  ;;  %v6258_v0 = vadd.f32 %v17141_v26, %v16969_v21  ;;  %v12839_v1 = vld [vmem:[#allocation9 + $0x3c0] ss:$16 sps:$4 sm:$0xff]   ;;  %v6373_v26 = vadd.f32 %v17150_v15, %v16976_v53 }
 0x5d9   :  { %v17281_v31 = vadd.f32 %v6850_v61, %v6240_v27  ;;  %v6963_v34 = vpop.f32.mrf.mxu1  ;;  %10166 = vmatpush1.bf16.msra.mxu1 %v12821_v7  ;;  %v12827_v27 = vld [vmem:[#allocation9 + $0x200] ss:$16 sps:$4 sm:$0xff]   ;;  %10132 = vmatprep.subr.bf16.mxu0 %v12826_v20  ;;  %v12835_v49 = vld [vmem:[#allocation9 + $0x3e4] ss:$16 sps:$4 sm:$0xff]  }
 0x5da   :  { %v17283_v5 = vadd.f32 %v6963_v34, %v6353_v56  ;;  %v17285_v19 = vpop.f32.mrf.mxu0  ;;  %10167 = vmatprep.subr.bf16.mxu1 %v12829_v16  ;;  %v12838_v20 = vld [vmem:[#allocation9 + $0x144] ss:$16 sps:$4 sm:$0xff]   ;;  %v12845_v2 = vld [vmem:[#allocation9 + $0x3a0] ss:$16 sps:$4 sm:$0xff]  }
 0x5db   :  { %v17289_v8 = vpop.f32.mrf.mxu1  ;;  %v12841_v16 = vld [vmem:[#allocation9 + $0x3c4] ss:$16 sps:$4 sm:$0xff]  }
 0x5dc   :  { %v6856_v3 = vpop.f32.mrf.mxu0  ;;  %10133 = vmatpush2.bf16.msra.mxu0 %v12824_v10  ;;  %v19232_v15 = vld [vmem:[#allocation338_spill] sm:$0xff] }
 0x5dd   :  { %v17295_v9 = vadd.f32 %v6856_v3, %v6246_v39  ;;  %v6969_v55 = vpop.f32.mrf.mxu1  ;;  %10168 = vmatpush1.bf16.msra.mxu1 %v12827_v27  ;;  %10134 = vmatprep.subr.bf16.mxu0 %v12832_v35 }
 0x5de   :  { %v17299_v47 = vadd.f32 %v6969_v55, %v6359_v38  ;;  %v6858_v32 = vpop.f32.mrf.mxu0  ;;  %10169 = vmatprep.subr.bf16.mxu1 %v12835_v49  ;;  %v6371_v55 = vadd.f32 %v17143_v62, %v16971_v30  ;;  %v19228_v30 = vld [vmem:[#allocation337_spill] sm:$0xff]  ;;  %v19229_v62 = vld [vmem:[#allocation22_spill] sm:$0xff] }
 0x5df   :  { %v17303_v52 = vadd.f32 %v6858_v32, %v6248_v40  ;;  %v6971_v57 = vpop.f32.mrf.mxu1  ;;  %v19230_v49 = vld [vmem:[#allocation170_spill] sm:$0xff] }
 0x5e0   :  { %v17307_v56 = vadd.f32 %v6971_v57, %v6361_v6  ;;  %v6860_v61 = vpop.f32.mrf.mxu0  ;;  %10135 = vmatpush2.bf16.msra.mxu0 %v12830_v11  ;;  %v12847_v57 = vld [vmem:[#allocation9 + $0x3a4] ss:$16 sps:$4 sm:$0xff]  }
 0x5e1   :  { %v17311_v58 = vadd.f32 %v6860_v61, %v6250_v48  ;;  %v6973_v34 = vpop.f32.mrf.mxu1  ;;  %10170 = vmatpush2.bf16.msra.mxu1 %v12833_v29  ;;  %10136 = vmatprep.subr.bf16.mxu0 %v12838_v20  ;;  %v12844_v48 = vld [vmem:[#allocation9 + $0x124] ss:$16 sps:$4 sm:$0xff]  }
 0x5e2   :  { %v17315_v7 = vadd.f32 %v6973_v34, %v6363_v33  ;;  %v6862_v22 = vpop.f32.mrf.mxu0  ;;  %10171 = vmatprep.subr.bf16.mxu1 %v12841_v16  ;;  %v6262_v33 = vadd.f32 %v19229_v62, %v19228_v30  ;;  %v19233_v29 = vld [vmem:[#allocation23_spill] sm:$0xff] }
 0x5e3   :  { %v17319_v39 = vadd.f32 %v6862_v22, %v6252_v17  ;;  %v6975_v36 = vpop.f32.mrf.mxu1  ;;  %v19231_v17 = vld [vmem:[#allocation190_spill] sm:$0xff] }
 0x5e4   :  { %v17323_v38 = vadd.f32 %v6975_v36, %v6365_v46  ;;  %v6866_v3 = vpop.f32.mrf.mxu0  ;;  %10137 = vmatpush2.bf16.msra.mxu0 %v12836_v42  ;;  %v6375_v34 = vadd.f32 %v19231_v17, %v19230_v49  ;;  %v6266_v46 = vadd.f32 %v19233_v29, %v19232_v15  ;;  %v19234_v36 = vld [vmem:[#allocation171_spill] sm:$0xff]  ;;  %v19243_v15 = vld [vmem:[#allocation193_spill] sm:$0xff] }
 0x5e5   :  { %19226 = vst [vmem:[#allocation38_spill] sm:$0xff] %v17319_v39  ;;  %v17327_v43 = vadd.f32 %v6866_v3, %v6256_v59  ;;  %v6979_v40 = vpop.f32.mrf.mxu1  ;;  %10172 = vmatpush2.bf16.msra.mxu1 %v12839_v1  ;;  %10138 = vmatprep.subr.bf16.mxu0 %v12844_v48  ;;  %v19236_v42 = vld [vmem:[#allocation339_spill] sm:$0xff]  ;;  %v19237_v1 = vld [vmem:[#allocation24_spill] sm:$0xff] }
 0x5e6   :  { %19227 = vst [vmem:[#allocation206_spill] sm:$0xff] %v17323_v38  ;;  %v17331_v10 = vadd.f32 %v6979_v40, %v6369_v63  ;;  %v6868_v50 = vpop.f32.mrf.mxu0  ;;  %10173 = vmatprep.subr.bf16.mxu1 %v12847_v57  ;;  %v19235_v63 = vld [vmem:[#allocation191_spill] sm:$0xff]  ;;  %v19239_v48 = vld [vmem:[#allocation192_spill] sm:$0xff] }
 0x5e7   :  { %v17335_v27 = vadd.f32 %v6868_v50, %v6258_v0  ;;  %v6981_v21 = vpop.f32.mrf.mxu1  ;;  %v6379_v3 = vadd.f32 %v19235_v63, %v19234_v36  ;;  %v12850_v0 = vld [vmem:[#allocation9 + $0x104] ss:$16 sps:$4 sm:$0xff]  }
 0x5e8   :  { %v17339_v6 = vadd.f32 %v6981_v21, %v6371_v55  ;;  %v6870_v32 = vpop.f32.mrf.mxu0  ;;  %v12853_v40 = vld [vmem:[#allocation9 + $0x384] ss:$16 sps:$4 sm:$0xff]   ;;  %v6268_v55 = vadd.f32 %v19237_v1, %v19236_v42  ;;  %10139 = vmatpush2.bf16.msra.mxu0 %v12842_v13  ;;  %v12848_v21 = vld [vmem:[#allocation9 + $0x100] ss:$16 sps:$4 sm:$0xff]  }
 0x5e9   :  { %v17343_v61 = vadd.f32 %v6870_v32, %v6260_v60  ;;  %v6983_v35 = vpop.f32.mrf.mxu1  ;;  %10174 = vmatpush2.bf16.msra.mxu1 %v12845_v2  ;;  %v19238_v32 = vld [vmem:[#allocation172_spill] sm:$0xff]  ;;  %10140 = vmatprep.subr.bf16.mxu0 %v12850_v0  ;;  %v19245_v0 = vld [vmem:[#allocation174_spill] sm:$0xff] }
 0x5ea   :  { %v17347_v11 = vadd.f32 %v6983_v35, %v6373_v26  ;;  %v6872_v53 = vpop.f32.mrf.mxu0  ;;  %v12851_v26 = vld [vmem:[#allocation9 + $0x380] ss:$16 sps:$4 sm:$0xff]   ;;  %v6381_v57 = vadd.f32 %v19239_v48, %v19238_v32  ;;  %10175 = vmatprep.subr.bf16.mxu1 %v12853_v40  ;;  %v19246_v40 = vld [vmem:[#allocation26_spill] sm:$0xff]  ;;  %v19273_v39 = vld [vmem:[#allocation32_spill] sm:$0xff] }
 0x5eb   :  { %v17351_v22 = vadd.f32 %v6872_v53, %v6262_v33  ;;  %v6985_v59 = vpop.f32.mrf.mxu1  ;;  %v19240_v33 = vld [vmem:[#allocation340_spill] sm:$0xff]  ;;  %v19241_v35 = vld [vmem:[#allocation25_spill] sm:$0xff]  ;;  %v6385_v42 = vadd.f32 %v19246_v40, %v19245_v0  ;;  %v19247_v32 = vld [vmem:[#allocation342_spill] sm:$0xff] }
 0x5ec   :  { %v17355_v20 = vadd.f32 %v6985_v59, %v6375_v34  ;;  %v6876_v16 = vpop.f32.mrf.mxu0  ;;  %v6270_v49 = vadd.f32 %v19241_v35, %v19240_v33  ;;  %v19242_v53 = vld [vmem:[#allocation173_spill] sm:$0xff]  ;;  %10141 = vmatpush2.bf16.msra.mxu0 %v12848_v21  ;;  %v19248_v48 = vld [vmem:[#allocation194_spill] sm:$0xff]  ;;  %v19250_v33 = vld [vmem:[#allocation175_spill] sm:$0xff] }
 0x5ed   :  { %v17359_v50 = vadd.f32 %v6876_v16, %v6266_v46  ;;  %v6989_v60 = vpop.f32.mrf.mxu1  ;;  %v6383_v13 = vadd.f32 %v19243_v15, %v19242_v53  ;;  %v19244_v46 = vld [vmem:[#allocation341_spill] sm:$0xff]  ;;  %10176 = vmatpush2.bf16.msra.mxu1 %v12851_v26  ;;  %v19251_v21 = vld [vmem:[#allocation27_spill] sm:$0xff] }
 0x5ee   :  { %v17363_v30 = vadd.f32 %v6989_v60, %v6379_v3  ;;  %v6878_v62 = vpop.f32.mrf.mxu0  ;;  %v6272_v59 = vadd.f32 %v17173_v12, %v19244_v46  ;;  %v12856_v3 = vld [vmem:[#allocation9 + $0x364] ss:$16 sps:$4 sm:$0xff]   ;;  %v12854_v60 = vld [vmem:[#allocation9 + $0x360] ss:$16 sps:$4 sm:$0xff]   ;;  %v6389_v26 = vadd.f32 %v19251_v21, %v19250_v33 }
 0x5ef   :  { %v17367_v17 = vadd.f32 %v6878_v62, %v6268_v55  ;;  %v6991_v34 = vpop.f32.mrf.mxu1  ;;  %v12859_v16 = vld [vmem:[#allocation9 + $0x4e4] ss:$16 sps:$4 sm:$0xff]   ;;  %10177 = vmatprep.subr.bf16.mxu1 %v12856_v3 }
 0x5f0   :  { %v17371_v2 = vadd.f32 %v6991_v34, %v6381_v57  ;;  %v6880_v29 = vpop.f32.mrf.mxu0  ;;  %v6276_v57 = vadd.f32 %v19248_v48, %v19247_v32  ;;  %10196 = vmatprep.subr.bf16.mxu0 %v12859_v16  ;;  %v19253_v34 = vld [vmem:[#allocation343_spill] sm:$0xff]  ;;  %v19258_v32 = vld [vmem:[#allocation196_spill] sm:$0xff]  ;;  %v19259_v33 = vld [vmem:[#allocation177_spill] sm:$0xff] }
 0x5f1   :  { %v17375_v36 = vadd.f32 %v6880_v29, %v6270_v49  ;;  %v6993_v63 = vpop.f32.mrf.mxu1  ;;  %v19254_v53 = vld [vmem:[#allocation195_spill] sm:$0xff]  ;;  %10178 = vmatpush2.bf16.msra.mxu1 %v12854_v60 }
 0x5f2   :  { %v17379_v1 = vadd.f32 %v6993_v63, %v6383_v13  ;;  %v6882_v55 = vpop.f32.mrf.mxu0  ;;  %v6278_v15 = vadd.f32 %v19254_v53, %v19253_v34  ;;  %v12862_v46 = vld [vmem:[#allocation9 + $0x344] ss:$16 sps:$4 sm:$0xff]   ;;  %v12860_v16 = vld [vmem:[#allocation9 + $0x340] ss:$16 sps:$4 sm:$0xff]  }
 0x5f3   :  { %v17383_v62 = vadd.f32 %v6882_v55, %v6272_v59  ;;  %v6995_v12 = vpop.f32.mrf.mxu1  ;;  %v19255_v63 = vld [vmem:[#allocation176_spill] sm:$0xff]  ;;  %10179 = vmatprep.subr.bf16.mxu1 %v12862_v46 }
 0x5f4   :  { %v17387_v35 = vadd.f32 %v6995_v12, %v6385_v42  ;;  %v6886_v49 = vpop.f32.mrf.mxu0  ;;  %v19256_v59 = vld [vmem:[#allocation28_spill] sm:$0xff] }
 0x5f5   :  { %19249 = vst [vmem:[#allocation39_spill] sm:$0xff] %v17383_v62  ;;  %v17391_v13 = vadd.f32 %v6886_v49, %v6276_v57  ;;  %v6999_v29 = vpop.f32.mrf.mxu1  ;;  %v6391_v0 = vadd.f32 %v19256_v59, %v19255_v63  ;;  %v19257_v55 = vld [vmem:[#allocation344_spill] sm:$0xff]  ;;  %v19260_v57 = vld [vmem:[#allocation29_spill] sm:$0xff]  ;;  %10180 = vmatpush2.bf16.msra.mxu1 %v12860_v16 }
 0x5f6   :  { %19252 = vst [vmem:[#allocation207_spill] sm:$0xff] %v17387_v35  ;;  %v17395_v40 = vadd.f32 %v6999_v29, %v6389_v26  ;;  %v6888_v3 = vpop.f32.mrf.mxu0  ;;  %v6280_v42 = vadd.f32 %v19258_v32, %v19257_v55  ;;  %v6393_v21 = vadd.f32 %v19260_v57, %v19259_v33  ;;  %v12868_v26 = vld [vmem:[#allocation9 + $0x324] ss:$16 sps:$4 sm:$0xff]   ;;  %v12866_v59 = vld [vmem:[#allocation9 + $0x320] ss:$16 sps:$4 sm:$0xff]  }
 0x5f7   :  { %v17399_v48 = vadd.f32 %v6888_v3, %v6278_v15  ;;  %v7001_v12 = vpop.f32.mrf.mxu1  ;;  %v19262_v15 = vld [vmem:[#allocation346_spill] sm:$0xff]  ;;  %10181 = vmatprep.subr.bf16.mxu1 %v12868_v26  ;;  %v19264_v55 = vld [vmem:[#allocation179_spill] sm:$0xff]  ;;  %v19272_v26 = vld [vmem:[#allocation348_spill] sm:$0xff] }
 0x5f8   :  { %v17403_v49 = vadd.f32 %v7001_v12, %v6391_v0  ;;  %v6890_v60 = vpop.f32.mrf.mxu0  ;;  %v6286_v3 = vadd.f32 %v17197_v41, %v19262_v15  ;;  %v19265_v0 = vld [vmem:[#allocation198_spill] sm:$0xff]  ;;  %v19267_v33 = vld [vmem:[#allocation31_spill] sm:$0xff] }
 0x5f9   :  { %v17405_v34 = vadd.f32 %v6890_v60, %v6280_v42  ;;  %v7003_v53 = vpop.f32.mrf.mxu1  ;;  %v6399_v32 = vadd.f32 %v19265_v0, %v19264_v55  ;;  %v19266_v42 = vld [vmem:[#allocation347_spill] sm:$0xff]  ;;  %10182 = vmatpush2.bf16.msra.mxu1 %v12866_v59 }
 0x5fa   :  { %v17407_v29 = vadd.f32 %v7003_v53, %v6393_v21  ;;  %v17409_v63 = vpop.f32.mrf.mxu0  ;;  %v6288_v57 = vadd.f32 %v19267_v33, %v19266_v42  ;;  %v12874_v60 = vld [vmem:[#allocation9 + $0x304] ss:$16 sps:$4 sm:$0xff]   ;;  %v12872_v15 = vld [vmem:[#allocation9 + $0x300] ss:$16 sps:$4 sm:$0xff]  }
 0x5fb   :  { %v17413_v46 = vpop.f32.mrf.mxu1  ;;  %v19269_v53 = vld [vmem:[#allocation180_spill] sm:$0xff]  ;;  %v19270_v35 = vld [vmem:[#allocation199_spill] sm:$0xff]  ;;  %10183 = vmatprep.subr.bf16.mxu1 %v12874_v60  ;;  %v19275_v42 = vld [vmem:[#allocation181_spill] sm:$0xff] }
 0x5fc   :  { %19261 = vst [vmem:[#allocation40_spill] sm:$0xff] %v17407_v29  ;;  %19263 = vst [vmem:[#allocation208_spill] sm:$0xff] %v17413_v46  ;;  %v6896_v12 = vpop.f32.mrf.mxu0  ;;  %v6401_v62 = vadd.f32 %v19270_v35, %v19269_v53  ;;  %v6290_v29 = vadd.f32 %v19273_v39, %v19272_v26  ;;  %v19281_v39 = vld [vmem:[#allocation350_spill] sm:$0xff]  ;;  %v19284_v60 = vld [vmem:[#allocation183_spill] sm:$0xff] }
 0x5fd   :  { %v17419_v16 = vadd.f32 %v6896_v12, %v6286_v3  ;;  %v7009_v21 = vpop.f32.mrf.mxu1  ;;  %v19276_v3 = vld [vmem:[#allocation200_spill] sm:$0xff]  ;;  %10184 = vmatpush2.bf16.msra.mxu1 %v12872_v15 }
 0x5fe   :  { %v17423_v38 = vadd.f32 %v7009_v21, %v6399_v32  ;;  %v6898_v41 = vpop.f32.mrf.mxu0  ;;  %v6403_v12 = vadd.f32 %v19276_v3, %v19275_v42  ;;  %v12883_v32 = vld [vmem:[#allocation9 + $0x6e4] ss:$16 sps:$4 sm:$0xff]  }
 0x5ff   :  { %19268 = vst [vmem:[#allocation41_spill] sm:$0xff] %v17419_v16  ;;  %v17427_v55 = vadd.f32 %v6898_v41, %v6288_v57  ;;  %v7011_v0 = vpop.f32.mrf.mxu1  ;;  %v19282_v57 = vld [vmem:[#allocation34_spill] sm:$0xff]  ;;  %10239 = vmatprep.subr.bf16.mxu1 %v12883_v32  ;;  %v19286_v3 = vld [vmem:[#allocation351_spill] sm:$0xff] }
 0x600   :  { %19271 = vst [vmem:[#allocation209_spill] sm:$0xff] %v17423_v38  ;;  %v17431_v33 = vadd.f32 %v7011_v0, %v6401_v62  ;;  %v6900_v59 = vpop.f32.mrf.mxu0  ;;  %v6296_v41 = vadd.f32 %v19282_v57, %v19281_v39  ;;  %v19285_v42 = vld [vmem:[#allocation202_spill] sm:$0xff]  ;;  %v19292_v39 = vld [vmem:[#allocation352_spill] sm:$0xff] }
 0x601   :  { %19274 = vst [vmem:[#allocation42_spill] sm:$0xff] %v17427_v55  ;;  %v17433_v16 = vadd.f32 %v6900_v59, %v6290_v29  ;;  %v7013_v35 = vpop.f32.mrf.mxu1  ;;  %v6409_v62 = vadd.f32 %v19285_v42, %v19284_v60  ;;  %v19287_v29 = vld [vmem:[#allocation35_spill] sm:$0xff]  ;;  %v19293_v57 = vld [vmem:[#allocation36_spill] sm:$0xff]  ;;  %v19294_v60 = vld [vmem:[#allocation185_spill] sm:$0xff] }
 0x602   :  { %19277 = vst [vmem:[#allocation210_spill] sm:$0xff] %v17431_v33  ;;  %v17435_v21 = vadd.f32 %v7013_v35, %v6403_v12  ;;  %v17437_v53 = vpop.f32.mrf.mxu0  ;;  %v6298_v59 = vadd.f32 %v19287_v29, %v19286_v3  ;;  %v19289_v12 = vld [vmem:[#allocation184_spill] sm:$0xff]  ;;  %v19290_v35 = vld [vmem:[#allocation203_spill] sm:$0xff]  ;;  %v19297_v3 = vld [vmem:[#allocation37_spill] sm:$0xff] }
 0x603   :  { %19278 = vst [vmem:[#allocation43_spill] sm:$0xff] %v17433_v16  ;;  %19280 = vst [vmem:[#allocation44_spill] sm:$0xff] %v17437_v53  ;;  %v17441_v26 = vpop.f32.mrf.mxu1  ;;  %v19295_v42 = vld [vmem:[#allocation204_spill] sm:$0xff] }
 0x604   :  { %19279 = vst [vmem:[#allocation211_spill] sm:$0xff] %v17435_v21  ;;  %19283 = vst [vmem:[#allocation212_spill] sm:$0xff] %v17441_v26  ;;  %v6906_v0 = vpop.f32.mrf.mxu0  ;;  %v6411_v21 = vadd.f32 %v19290_v35, %v19289_v12  ;;  %v6300_v26 = vadd.f32 %v19293_v57, %v19292_v39  ;;  %v6413_v38 = vadd.f32 %v19295_v42, %v19294_v60  ;;  %v19299_v12 = vld [vmem:[#allocation205_spill] sm:$0xff] }
 0x605   :  { %v17447_v16 = vadd.f32 %v6906_v0, %v6296_v41  ;;  %v7019_v15 = vpop.f32.mrf.mxu1  ;;  %v19296_v0 = vld [vmem:[#allocation186_spill] sm:$0xff] }
 0x606   :  { %v17451_v53 = vadd.f32 %v7019_v15, %v6409_v62  ;;  %v6908_v33 = vpop.f32.mrf.mxu0  ;;  %v6302_v29 = vadd.f32 %v19297_v3, %v19296_v0  ;;  %v19298_v15 = vld [vmem:[#allocation187_spill] sm:$0xff] }
 0x607   :  { %19288 = vst [vmem:[#allocation45_spill] sm:$0xff] %v17447_v16  ;;  %v17455_v32 = vadd.f32 %v6908_v33, %v6298_v59  ;;  %v7021_v55 = vpop.f32.mrf.mxu1  ;;  %v6415_v35 = vadd.f32 %v19299_v12, %v19298_v15  ;;  %v19301_v12 = vld [vmem:[#allocation188_spill] sm:$0xff] }
 0x608   :  { %19291 = vst [vmem:[#allocation213_spill] sm:$0xff] %v17451_v53  ;;  %v17459_v46 = vadd.f32 %v7021_v55, %v6411_v21  ;;  %v6910_v41 = vpop.f32.mrf.mxu0 }
 0x609   :  { %v17463_v16 = vadd.f32 %v6910_v41, %v6300_v26  ;;  %v7023_v62 = vpop.f32.mrf.mxu1 }
 0x60a   :  { %v17467_v53 = vadd.f32 %v7023_v62, %v6413_v38  ;;  %v6912_v33 = vpop.f32.mrf.mxu0 }
 0x60b   :  { %v17469_v59 = vadd.f32 %v6912_v33, %v6302_v29  ;;  %v7025_v39 = vpop.f32.mrf.mxu1  ;;  %v19300_v29 = vld [vmem:[#allocation20_spill] sm:$0xff] }
 0x60c   :  { %v17471_v57 = vadd.f32 %v7025_v39, %v6415_v35  ;;  %v6916_v55 = vpop.f32.mrf.mxu0  ;;  %v6312_v62 = vadd.f32 %v17257_v23, %v19300_v29 }
 0x60d   :  { %v17474_v21 = vadd.f32 %v6916_v55, %v17238_v25  ;;  %v7029_v60 = vpop.f32.mrf.mxu1 }
 0x60e   :  { %v17477_v26 = vadd.f32 %v7029_v60, %v17241_v18  ;;  %v6918_v42 = vpop.f32.mrf.mxu0  ;;  %v6425_v18 = vadd.f32 %v17259_v44, %v19301_v12  ;;  %v19305_v44 = vld [vmem:[#allocation21_spill] sm:$0xff] }
 0x60f   :  { %v17480_v41 = vadd.f32 %v6918_v42, %v17244_v37  ;;  %v7031_v38 = vpop.f32.mrf.mxu1 }
 0x610   :  { %v17483_v0 = vadd.f32 %v7031_v38, %v17248_v4  ;;  %v6920_v3 = vpop.f32.mrf.mxu0  ;;  %v19304_v38 = vld [vmem:[#allocation336_spill] sm:$0xff] }
 0x611   :  { %v17488_v15 = vadd.f32 %v6920_v3, %v17252_v14  ;;  %v7033_v25 = vpop.f32.mrf.mxu1  ;;  %v6242_v3 = vadd.f32 %v19305_v44, %v19304_v38 }
 0x612   :  { %v17493_v35 = vadd.f32 %v7033_v25, %v17255_v54  ;;  %v6922_v37 = vpop.f32.mrf.mxu0  ;;  %v19307_v25 = vld [vmem:[#allocation189_spill] sm:$0xff] }
 0x613   :  { %v17495_v33 = vadd.f32 %v6922_v37, %v6312_v62  ;;  %v7035_v39 = vpop.f32.mrf.mxu1  ;;  %v19306_v62 = vld [vmem:[#allocation169_spill] sm:$0xff]  ;;  %v7043_v37 = vadd.f32 %v17285_v19, %v6242_v3 }
 0x614   :  { %v17497_v4 = vadd.f32 %v7035_v39, %v6425_v18  ;;  %v6355_v12 = vadd.f32 %v19307_v25, %v19306_v62 }
 0x615   :  { %19302 = vst [vmem:[#allocation46_spill] sm:$0xff] %v17495_v33  ;;  %v7521_v55 = vpop.f32.mrf.mxu0 }
 0x616   :  { %19303 = vst [vmem:[#allocation214_spill] sm:$0xff] %v17497_v4  ;;  %v17500_v60 = vadd.f32 %v7521_v55, %v17267_v24  ;;  %v7634_v23 = vpop.f32.mrf.mxu1  ;;  %v7045_v55 = vadd.f32 %v17289_v8, %v6355_v12 }
 0x617   :  { %v17503_v14 = vadd.f32 %v7634_v23, %v17271_v28  ;;  %v7523_v42 = vpop.f32.mrf.mxu0 }
 0x618   :  { %v17508_v54 = vadd.f32 %v7523_v42, %v17275_v51  ;;  %v7636_v29 = vpop.f32.mrf.mxu1 }
 0x619   :  { %v17513_v18 = vadd.f32 %v7636_v29, %v17279_v45  ;;  %v7525_v24 = vpop.f32.mrf.mxu0 }
 0x61a   :  { %v17517_v28 = vadd.f32 %v7525_v24, %v17281_v31  ;;  %v7638_v39 = vpop.f32.mrf.mxu1 }
 0x61b   :  { %v17521_v23 = vadd.f32 %v7638_v39, %v17283_v5  ;;  %v7527_v51 = vpop.f32.mrf.mxu0 }
 0x61c   :  { %v17523_v42 = vadd.f32 %v7527_v51, %v7043_v37  ;;  %v7640_v38 = vpop.f32.mrf.mxu1 }
 0x61d   :  { %v17525_v44 = vadd.f32 %v7640_v38, %v7045_v55  ;;  %v7531_v45 = vpop.f32.mrf.mxu0 }
 0x61e   :  { %v17528_v29 = vadd.f32 %v7531_v45, %v17295_v9  ;;  %v7644_v19 = vpop.f32.mrf.mxu1 }
 0x61f   :  { %v17531_v31 = vadd.f32 %v7644_v19, %v17299_v47  ;;  %v7533_v3 = vpop.f32.mrf.mxu0 }
 0x620   :  { %v17534_v8 = vadd.f32 %v7533_v3, %v17303_v52  ;;  %v7646_v5 = vpop.f32.mrf.mxu1 }
 0x621   :  { %v17537_v62 = vadd.f32 %v7646_v5, %v17307_v56  ;;  %v7535_v25 = vpop.f32.mrf.mxu0 }
 0x622   :  { %v17540_v12 = vadd.f32 %v7535_v25, %v17311_v58  ;;  %v7648_v24 = vpop.f32.mrf.mxu1 }
 0x623   :  { %v17543_v9 = vadd.f32 %v7648_v24, %v17315_v7  ;;  %v17545_v37 = vpop.f32.mrf.mxu0 }
 0x624   :  { %v17547_v47 = vpop.f32.mrf.mxu1 }
 0x625   :  { %v7541_v39 = vpop.f32.mrf.mxu0 }
 0x626   :  { %v17550_v52 = vadd.f32 %v7541_v39, %v17327_v43  ;;  %v7654_v55 = vpop.f32.mrf.mxu1 }
 0x627   :  { %v17553_v56 = vadd.f32 %v7654_v55, %v17331_v10  ;;  %v7543_v51 = vpop.f32.mrf.mxu0 }
 0x628   :  { %v17556_v58 = vadd.f32 %v7543_v51, %v17335_v27  ;;  %v7656_v38 = vpop.f32.mrf.mxu1 }
 0x629   :  { %v17559_v7 = vadd.f32 %v7656_v38, %v17339_v6  ;;  %v7545_v45 = vpop.f32.mrf.mxu0 }
 0x62a   :  { %v17562_v19 = vadd.f32 %v7545_v45, %v17343_v61  ;;  %v7658_v3 = vpop.f32.mrf.mxu1 }
 0x62b   :  { %v17565_v43 = vadd.f32 %v7658_v3, %v17347_v11  ;;  %v7547_v5 = vpop.f32.mrf.mxu0 }
 0x62c   :  { %v17568_v10 = vadd.f32 %v7547_v5, %v17351_v22  ;;  %v7660_v25 = vpop.f32.mrf.mxu1 }
 0x62d   :  { %v17571_v27 = vadd.f32 %v7660_v25, %v17355_v20  ;;  %v7551_v24 = vpop.f32.mrf.mxu0 }
 0x62e   :  { %v17574_v6 = vadd.f32 %v7551_v24, %v17359_v50  ;;  %v7664_v39 = vpop.f32.mrf.mxu1 }
 0x62f   :  { %v17577_v61 = vadd.f32 %v7664_v39, %v17363_v30  ;;  %v7553_v55 = vpop.f32.mrf.mxu0  ;;  %v19310_v39 = vld [vmem:[#allocation345_spill] sm:$0xff] }
 0x630   :  { %v17580_v11 = vadd.f32 %v7553_v55, %v17367_v17  ;;  %v7666_v51 = vpop.f32.mrf.mxu1 }
 0x631   :  { %v17583_v22 = vadd.f32 %v7666_v51, %v17371_v2  ;;  %v7555_v38 = vpop.f32.mrf.mxu0 }
 0x632   :  { %v17586_v20 = vadd.f32 %v7555_v38, %v17375_v36  ;;  %v7668_v45 = vpop.f32.mrf.mxu1  ;;  %v19311_v36 = vld [vmem:[#allocation197_spill] sm:$0xff]  ;;  %v19313_v38 = vld [vmem:[#allocation178_spill] sm:$0xff] }
 0x633   :  { %v17589_v50 = vadd.f32 %v7668_v45, %v17379_v1  ;;  %v17591_v3 = vpop.f32.mrf.mxu0  ;;  %v6282_v55 = vadd.f32 %v19311_v36, %v19310_v39  ;;  %v19314_v45 = vld [vmem:[#allocation30_spill] sm:$0xff]  ;;  %v19317_v39 = vld [vmem:[#allocation40_spill] sm:$0xff] }
 0x634   :  { %v17593_v30 = vpop.f32.mrf.mxu1  ;;  %v6395_v4 = vadd.f32 %v19314_v45, %v19313_v38 }
 0x635   :  { %v7561_v5 = vpop.f32.mrf.mxu0 }
 0x636   :  { %v17596_v17 = vadd.f32 %v7561_v5, %v17391_v13  ;;  %v7674_v25 = vpop.f32.mrf.mxu1  ;;  %v7075_v5 = vadd.f32 %v17409_v63, %v6282_v55  ;;  %v19320_v55 = vld [vmem:[#allocation209_spill] sm:$0xff] }
 0x637   :  { %v17599_v2 = vadd.f32 %v7674_v25, %v17395_v40  ;;  %v7563_v24 = vpop.f32.mrf.mxu0 }
 0x638   :  { %19308 = vst [vmem:[#allocation47_spill] sm:$0xff] %v17596_v17  ;;  %v17604_v51 = vadd.f32 %v7563_v24, %v17399_v48  ;;  %v7676_v1 = vpop.f32.mrf.mxu1 }
 0x639   :  { %19309 = vst [vmem:[#allocation215_spill] sm:$0xff] %v17599_v2  ;;  %v17609_v33 = vadd.f32 %v7676_v1, %v17403_v49  ;;  %v7565_v13 = vpop.f32.mrf.mxu0  ;;  %v19316_v2 = vld [vmem:[#allocation208_spill] sm:$0xff]  ;;  %v19319_v1 = vld [vmem:[#allocation41_spill] sm:$0xff] }
 0x63a   :  { %19312 = vst [vmem:[#allocation48_spill] sm:$0xff] %v17604_v51  ;;  %v17613_v40 = vadd.f32 %v7565_v13, %v17405_v34  ;;  %v7678_v25 = vpop.f32.mrf.mxu1  ;;  %v7077_v17 = vadd.f32 %v19316_v2, %v6395_v4 }
 0x63b   :  { %v17617_v36 = vadd.f32 %v7678_v25, %v19317_v39  ;;  %v7567_v48 = vpop.f32.mrf.mxu0  ;;  %v19324_v25 = vld [vmem:[#allocation210_spill] sm:$0xff] }
 0x63c   :  { %19315 = vst [vmem:[#allocation216_spill] sm:$0xff] %v17613_v40  ;;  %v17619_v24 = vadd.f32 %v7567_v48, %v7075_v5  ;;  %v7680_v51 = vpop.f32.mrf.mxu1  ;;  %v19322_v40 = vld [vmem:[#allocation42_spill] sm:$0xff]  ;;  %v19325_v48 = vld [vmem:[#allocation43_spill] sm:$0xff] }
 0x63d   :  { %v17621_v38 = vadd.f32 %v7680_v51, %v7077_v17  ;;  %v7571_v49 = vpop.f32.mrf.mxu0 }
 0x63e   :  { %v17624_v45 = vadd.f32 %v7571_v49, %v19319_v1  ;;  %v7684_v63 = vpop.f32.mrf.mxu1 }
 0x63f   :  { %19318 = vst [vmem:[#allocation49_spill] sm:$0xff] %v17621_v38  ;;  %v17627_v34 = vadd.f32 %v7684_v63, %v19320_v55  ;;  %v7573_v13 = vpop.f32.mrf.mxu0  ;;  %v19327_v38 = vld [vmem:[#allocation211_spill] sm:$0xff] }
 0x640   :  { %v17630_v4 = vadd.f32 %v7573_v13, %v19322_v40  ;;  %v7686_v2 = vpop.f32.mrf.mxu1 }
 0x641   :  { %19321 = vst [vmem:[#allocation217_spill] sm:$0xff] %v17627_v34  ;;  %v17633_v39 = vadd.f32 %v7686_v2, %v19324_v25  ;;  %v7575_v5 = vpop.f32.mrf.mxu0  ;;  %v19329_v34 = vld [vmem:[#allocation45_spill] sm:$0xff] }
 0x642   :  { %19323 = vst [vmem:[#allocation50_spill] sm:$0xff] %v17630_v4  ;;  %v17636_v17 = vadd.f32 %v7575_v5, %v19325_v48  ;;  %v7688_v51 = vpop.f32.mrf.mxu1  ;;  %v19330_v4 = vld [vmem:[#allocation213_spill] sm:$0xff] }
 0x643   :  { %v17639_v49 = vadd.f32 %v7688_v51, %v19327_v38  ;;  %v17641_v1 = vpop.f32.mrf.mxu0 }
 0x644   :  { %19326 = vst [vmem:[#allocation218_spill] sm:$0xff] %v17636_v17  ;;  %v17643_v63 = vpop.f32.mrf.mxu1 }
 0x645   :  { %19328 = vst [vmem:[#allocation51_spill] sm:$0xff] %v17639_v49  ;;  %v7581_v55 = vpop.f32.mrf.mxu0 }
 0x646   :  { %v17646_v40 = vadd.f32 %v7581_v55, %v19329_v34  ;;  %v7694_v13 = vpop.f32.mrf.mxu1 }
 0x647   :  { %v17649_v2 = vadd.f32 %v7694_v13, %v19330_v4  ;;  %v7583_v25 = vpop.f32.mrf.mxu0 }
 0x648   :  { %v17652_v5 = vadd.f32 %v7583_v25, %v17455_v32  ;;  %v7696_v48 = vpop.f32.mrf.mxu1 }
 0x649   :  { %v17655_v38 = vadd.f32 %v7696_v48, %v17459_v46  ;;  %v7585_v51 = vpop.f32.mrf.mxu0 }
 0x64a   :  { %v17658_v49 = vadd.f32 %v7585_v51, %v17463_v16  ;;  %v7698_v17 = vpop.f32.mrf.mxu1 }
 0x64b   :  { %v17661_v34 = vadd.f32 %v7698_v17, %v17467_v53  ;;  %v7587_v55 = vpop.f32.mrf.mxu0 }
 0x64c   :  { %v17664_v4 = vadd.f32 %v7587_v55, %v17469_v59  ;;  %v7700_v13 = vpop.f32.mrf.mxu1 }
 0x64d   :  { %v17667_v32 = vadd.f32 %v7700_v13, %v17471_v57  ;;  %v7591_v25 = vpop.f32.mrf.mxu0 }
 0x64e   :  { %v17670_v46 = vadd.f32 %v7591_v25, %v17474_v21  ;;  %v7704_v48 = vpop.f32.mrf.mxu1 }
 0x64f   :  { %v17673_v16 = vadd.f32 %v7704_v48, %v17477_v26  ;;  %v7593_v51 = vpop.f32.mrf.mxu0 }
 0x650   :  { %v17676_v53 = vadd.f32 %v7593_v51, %v17480_v41  ;;  %v7706_v17 = vpop.f32.mrf.mxu1 }
 0x651   :  { %19331 = vst [vmem:[#allocation219_spill] sm:$0xff] %v17673_v16  ;;  %v17679_v59 = vadd.f32 %v7706_v17, %v17483_v0  ;;  %v7595_v55 = vpop.f32.mrf.mxu0 }
 0x652   :  { %19332 = vst [vmem:[#allocation52_spill] sm:$0xff] %v17676_v53  ;;  %v17682_v57 = vadd.f32 %v7595_v55, %v17488_v15  ;;  %v7708_v13 = vpop.f32.mrf.mxu1 }
 0x653   :  { %19333 = vst [vmem:[#allocation220_spill] sm:$0xff] %v17679_v59  ;;  %v17685_v21 = vadd.f32 %v7708_v13, %v17493_v35  ;;  %v17687_v25 = vpop.f32.mrf.mxu0 }
 0x654   :  { %19334 = vst [vmem:[#allocation53_spill] sm:$0xff] %v17682_v57  ;;  %19336 = vst [vmem:[#allocation54_spill] sm:$0xff] %v17687_v25  ;;  %v17689_v26 = vpop.f32.mrf.mxu1 }
 0x655   :  { %19335 = vst [vmem:[#allocation221_spill] sm:$0xff] %v17685_v21  ;;  %19337 = vst [vmem:[#allocation222_spill] sm:$0xff] %v17689_v26 }
 0x656   :  { %v8196_v48 = vpop.f32.mrf.mxu0 }
 0x657   :  { %v8388_v41 = vadd.f32 %v8196_v48, %v17500_v60  ;;  %v8309_v51 = vpop.f32.mrf.mxu1 }
 0x658   :  { %v8390_v53 = vadd.f32 %v8309_v51, %v17503_v14  ;;  %v8198_v0 = vpop.f32.mrf.mxu0 }
 0x659   :  { %v8389_v17 = vadd.f32 %v8198_v0, %v17508_v54  ;;  %v8311_v59 = vpop.f32.mrf.mxu1 }
 0x65a   :  { %v8452_v15 = vmax.f32 %v8388_v41, %v8390_v53  ;;  %v8391_v55 = vadd.f32 %v8311_v59, %v17513_v18  ;;  %v8200_v57 = vpop.f32.mrf.mxu0  ;;  %v8500_v59 = vld [vmem:[#allocation7] sm:$0x3] }
 0x65b   :  { %v8392_v35 = vadd.f32 %v8200_v57, %v17517_v28  ;;  %v8313_v13 = vpop.f32.mrf.mxu1 }
 0x65c   :  { %v8453_v21 = vmax.f32 %v8389_v17, %v8391_v55  ;;  %v8394_v26 = vadd.f32 %v8313_v13, %v17521_v23  ;;  %v8202_v25 = vpop.f32.mrf.mxu0  ;;  %v19340_v13 = vld [vmem:[#allocation206_spill] sm:$0xff] }
 0x65d   :  { %v8393_v60 = vadd.f32 %v8202_v25, %v17523_v42  ;;  %v8315_v48 = vpop.f32.mrf.mxu1  ;;  %v19338_v25 = vld [vmem:[#allocation38_spill] sm:$0xff] }
 0x65e   :  { %v8454_v16 = vmax.f32 %v8392_v35, %v8394_v26  ;;  %v8395_v14 = vadd.f32 %v8315_v48, %v17525_v44  ;;  %v8206_v51 = vpop.f32.mrf.mxu0  ;;  %v7726_v26 = vadd.f32 %v17545_v37, %v19338_v25  ;;  %v19339_v44 = vld [vmem:[#allocation335_spill] sm:$0xff] }
 0x65f   :  { %v8396_v54 = vadd.f32 %v8206_v51, %v17528_v29  ;;  %v8319_v53 = vpop.f32.mrf.mxu1  ;;  %v17706_v55 = vrot.slane %v8500_v59, %v19339_v44 }
 0x660   :  { %v8455_v41 = vmax.f32 %v8393_v60, %v8395_v14  ;;  %v8398_v18 = vadd.f32 %v8319_v53, %v17531_v31  ;;  %v8208_v28 = vpop.f32.mrf.mxu0  ;;  %v7728_v31 = vadd.f32 %v17547_v47, %v19340_v13 }
 0x661   :  { %v8397_v57 = vadd.f32 %v8208_v28, %v17534_v8  ;;  %v8321_v0 = vpop.f32.mrf.mxu1 }
 0x662   :  { %v8456_v23 = vmax.f32 %v8396_v54, %v8398_v18  ;;  %v8399_v17 = vadd.f32 %v8321_v0, %v17537_v62  ;;  %v8210_v42 = vpop.f32.mrf.mxu0  ;;  %v19341_v54 = vld [vmem:[#allocation168_spill] sm:$0xff] }
 0x663   :  { %v8400_v29 = vadd.f32 %v8210_v42, %v17540_v12  ;;  %v8323_v35 = vpop.f32.mrf.mxu1  ;;  %v17713_v53 = vrot.slane %v8500_v59, %v19341_v54 }
 0x664   :  { %v8484_v60 = vmax.f32 %v8452_v15, %v8456_v23  ;;  %v8457_v48 = vmax.f32 %v8397_v57, %v8399_v17  ;;  %v8402_v8 = vadd.f32 %v8323_v35, %v17543_v9  ;;  %v8212_v14 = vpop.f32.mrf.mxu0 }
 0x665   :  { %v8401_v51 = vadd.f32 %v8212_v14, %v7726_v26  ;;  %v8325_v62 = vpop.f32.mrf.mxu1 }
 0x666   :  { %v8485_v37 = vmax.f32 %v8453_v21, %v8457_v48  ;;  %v8458_v18 = vmax.f32 %v8400_v29, %v8402_v8  ;;  %v8403_v28 = vadd.f32 %v8325_v62, %v7728_v31  ;;  %v8216_v0 = vpop.f32.mrf.mxu0  ;;  %v8512_v12 = vadd.f32 %v17706_v55, %v8484_v60 }
 0x667   :  { %v8404_v42 = vadd.f32 %v8216_v0, %v17550_v52  ;;  %v8329_v25 = vpop.f32.mrf.mxu1 }
 0x668   :  { %v8486_v47 = vmax.f32 %v8454_v16, %v8458_v18  ;;  %v8459_v15 = vmax.f32 %v8401_v51, %v8403_v28  ;;  %v8406_v57 = vadd.f32 %v8329_v25, %v17553_v56  ;;  %v8218_v9 = vpop.f32.mrf.mxu0  ;;  %v8513_v59 = vadd.f32 %v17713_v53, %v8485_v37 }
 0x669   :  { %v8405_v23 = vadd.f32 %v8218_v9, %v17556_v58  ;;  %v8331_v17 = vpop.f32.mrf.mxu1  ;;  %v8528_v31 = vmax.f32 %v8512_v12, 0.0 }
 0x66a   :  { %v8514_v21 = vadd.f32 %v17706_v55, %v8486_v47  ;;  %v8487_v26 = vmax.f32 %v8455_v41, %v8459_v15  ;;  %v8460_v29 = vmax.f32 %v8404_v42, %v8406_v57  ;;  %v8407_v35 = vadd.f32 %v8331_v17, %v17559_v7  ;;  %v8220_v13 = vpop.f32.mrf.mxu0  ;;  %v12857_v47 = vld [vmem:[#allocation9 + $0x4e0] ss:$16 sps:$4 sm:$0xff]   ;;  %v12865_v57 = vld [vmem:[#allocation9 + $0x4c4] ss:$16 sps:$4 sm:$0xff]  }
 0x66b   :  { %v8408_v52 = vadd.f32 %v8220_v13, %v17562_v19  ;;  %v8333_v16 = vpop.f32.mrf.mxu1  ;;  %v8529_v62 = vmax.f32 %v8513_v59, 0.0  ;;  %v19342_v17 = vld [vmem:[#allocation39_spill] sm:$0xff] }
 0x66c   :  { %v8530_v60 = vmax.f32 %v8514_v21, 0.0  ;;  %v8461_v48 = vmax.f32 %v8405_v23, %v8407_v35  ;;  %v8410_v56 = vadd.f32 %v8333_v16, %v17565_v43  ;;  %v8222_v8 = vpop.f32.mrf.mxu0  ;;  %v8515_v58 = vadd.f32 %v17713_v53, %v8487_v26  ;;  %v19343_v21 = vld [vmem:[#allocation207_spill] sm:$0xff] }
 0x66d   :  { %v8409_v14 = vadd.f32 %v8222_v8, %v17568_v10  ;;  %v8335_v51 = vpop.f32.mrf.mxu1  ;;  %v7744_v26 = vadd.f32 %v17593_v30, %v19343_v21  ;;  %v12875_v21 = vld [vmem:[#allocation9 + $0x480] ss:$16 sps:$4 sm:$0xff]  }
 0x66e   :  { %v17726_v41 = vpack.c.bf16 %v8530_v60, %v8528_v31  ;;  %v8462_v37 = vmax.f32 %v8408_v52, %v8410_v56  ;;  %v8411_v7 = vadd.f32 %v8335_v51, %v17571_v27  ;;  %v8226_v18 = vpop.f32.mrf.mxu0  ;;  %v8531_v28 = vmax.f32 %v8515_v58, 0.0  ;;  %v12863_v31 = vld [vmem:[#allocation9 + $0x4c0] ss:$16 sps:$4 sm:$0xff]   ;;  %v12871_v60 = vld [vmem:[#allocation9 + $0x4a4] ss:$16 sps:$4 sm:$0xff]  }
 0x66f   :  { %v8412_v19 = vadd.f32 %v8226_v18, %v17574_v6  ;;  %v8339_v0 = vpop.f32.mrf.mxu1  ;;  %v7742_v6 = vadd.f32 %v17591_v3, %v19342_v17 }
 0x670   :  { %v8463_v12 = vmax.f32 %v8409_v14, %v8411_v7  ;;  %v8414_v43 = vadd.f32 %v8339_v0, %v17577_v61  ;;  %v8228_v42 = vpop.f32.mrf.mxu0  ;;  %v17731_v25 = vpack.c.bf16 %v8531_v28, %v8529_v62  ;;  %v19344_v14 = vld [vmem:[#allocation47_spill] sm:$0xff] }
 0x671   :  { %v8413_v10 = vadd.f32 %v8228_v42, %v17580_v11  ;;  %v8341_v15 = vpop.f32.mrf.mxu1  ;;  %v12869_v28 = vld [vmem:[#allocation9 + $0x4a0] ss:$16 sps:$4 sm:$0xff]  }
 0x672   :  { %v8464_v9 = vmax.f32 %v8412_v19, %v8414_v43  ;;  %v8415_v23 = vadd.f32 %v8341_v15, %v17583_v22  ;;  %10142 = vmatprep.mubr.bf16.mxu0 %v17731_v25  ;;  %v8230_v27 = vpop.f32.mrf.mxu0  ;;  %v19346_v19 = vld [vmem:[#allocation48_spill] sm:$0xff] }
 0x673   :  { %v8416_v59 = vadd.f32 %v8230_v27, %v17586_v20  ;;  %v8343_v61 = vpop.f32.mrf.mxu1  ;;  %10143 = vmatmul.mubr.bf16.vlgmr.msra.gmra.mxu0 %v17726_v41  ;;  %v12877_v43 = vld [vmem:[#allocation9 + $0x484] ss:$16 sps:$4 sm:$0xff]  }
 0x674   :  { %v8488_v11 = vmax.f32 %v8460_v29, %v8464_v9  ;;  %v8465_v35 = vmax.f32 %v8413_v10, %v8415_v23  ;;  %v8418_v13 = vadd.f32 %v8343_v61, %v17589_v50  ;;  %10197 = vmatpush1.bf16.msra.mxu0 %v12857_v47  ;;  %v8232_v22 = vpop.f32.mrf.mxu0  ;;  %v19345_v50 = vld [vmem:[#allocation215_spill] sm:$0xff]  ;;  %v19347_v23 = vld [vmem:[#allocation216_spill] sm:$0xff] }
 0x675   :  { %v8417_v52 = vadd.f32 %v8232_v22, %v7742_v6  ;;  %v8345_v16 = vpop.f32.mrf.mxu1  ;;  %10198 = vmatprep.subr.bf16.mxu0 %v12865_v57 }
 0x676   :  { %v8489_v3 = vmax.f32 %v8461_v48, %v8465_v35  ;;  %v8466_v56 = vmax.f32 %v8416_v59, %v8418_v13  ;;  %v8419_v20 = vadd.f32 %v8345_v16, %v7744_v26  ;;  %v8236_v8 = vpop.f32.mrf.mxu0  ;;  %v8516_v58 = vadd.f32 %v17706_v55, %v8488_v11  ;;  %v12880_v13 = vld [vmem:[#allocation9 + $0x464] ss:$16 sps:$4 sm:$0xff]  }
 0x677   :  { %v17745_v51 = vadd.f32 %v8236_v8, %v19344_v14  ;;  %v8349_v30 = vpop.f32.mrf.mxu1  ;;  %v19351_v8 = vld [vmem:[#allocation182_spill] sm:$0xff] }
 0x678   :  { %v8490_v29 = vmax.f32 %v8462_v37, %v8466_v56  ;;  %v8467_v62 = vmax.f32 %v8417_v52, %v8419_v20  ;;  %v8422_v7 = vadd.f32 %v8349_v30, %v19345_v50  ;;  %10199 = vmatpush1.bf16.msra.mxu0 %v12863_v31  ;;  %v8238_v18 = vpop.f32.mrf.mxu0  ;;  %v8517_v42 = vadd.f32 %v17713_v53, %v8489_v3  ;;  %v19348_v52 = vld [vmem:[#allocation49_spill] sm:$0xff] }
 0x679   :  { %v17749_v0 = vadd.f32 %v8238_v18, %v19346_v19  ;;  %v8351_v48 = vpop.f32.mrf.mxu1  ;;  %10200 = vmatprep.subr.bf16.mxu0 %v12871_v60  ;;  %v8532_v9 = vmax.f32 %v8516_v58, 0.0  ;;  %v19349_v3 = vld [vmem:[#allocation349_spill] sm:$0xff]  ;;  %v19354_v19 = vld [vmem:[#allocation44_spill] sm:$0xff] }
 0x67a   :  { %v8518_v47 = vadd.f32 %v17706_v55, %v8490_v29  ;;  %v8491_v10 = vmax.f32 %v8463_v12, %v8467_v62  ;;  %v8468_v15 = vmax.f32 %v17745_v51, %v8422_v7  ;;  %v17755_v37 = vadd.f32 %v8351_v48, %v17609_v33  ;;  %v8240_v57 = vpop.f32.mrf.mxu0  ;;  %v19350_v56 = vld [vmem:[#allocation33_spill] sm:$0xff]  ;;  %v19355_v48 = vld [vmem:[#allocation212_spill] sm:$0xff] }
 0x67b   :  { %v17758_v27 = vadd.f32 %v8240_v57, %v19347_v23  ;;  %v8353_v17 = vpop.f32.mrf.mxu1  ;;  %v8533_v35 = vmax.f32 %v8517_v42, 0.0  ;;  %v6292_v20 = vadd.f32 %v19350_v56, %v19349_v3  ;;  %v19353_v29 = vld [vmem:[#allocation217_spill] sm:$0xff]  ;;  %v19356_v42 = vld [vmem:[#allocation50_spill] sm:$0xff] }
 0x67c   :  { %v8534_v6 = vmax.f32 %v8518_v47, 0.0  ;;  %v8469_v59 = vmax.f32 %v17749_v0, %v17755_v37  ;;  %v17763_v61 = vadd.f32 %v8353_v17, %v17617_v36  ;;  %10201 = vmatpush1.bf16.msra.mxu0 %v12869_v28  ;;  %v8242_v12 = vpop.f32.mrf.mxu0  ;;  %v8519_v26 = vadd.f32 %v17713_v53, %v8491_v10  ;;  %v12878_v18 = vld [vmem:[#allocation9 + $0x460] ss:$16 sps:$4 sm:$0xff]   ;;  %v12889_v37 = vld [vmem:[#allocation9 + $0x6c4] ss:$16 sps:$4 sm:$0xff]  }
 0x67d   :  { %v17767_v33 = vadd.f32 %v8242_v12, %v17619_v24  ;;  %v8355_v11 = vpop.f32.mrf.mxu1  ;;  %10202 = vmatprep.subr.bf16.mxu0 %v12877_v43  ;;  %v19352_v24 = vld [vmem:[#allocation201_spill] sm:$0xff]  ;;  %v7083_v0 = vadd.f32 %v19354_v19, %v6292_v20 }
 0x67e   :  { %v17769_v22 = vpack.c.bf16 %v8534_v6, %v8532_v9  ;;  %v8470_v31 = vmax.f32 %v17758_v27, %v17763_v61  ;;  %v17774_v36 = vadd.f32 %v8355_v11, %v19348_v52  ;;  %v8246_v16 = vpop.f32.mrf.mxu0  ;;  %v8535_v60 = vmax.f32 %v8519_v26, 0.0  ;;  %v12881_v28 = vld [vmem:[#allocation9 + $0x6e0] ss:$16 sps:$4 sm:$0xff]   ;;  %v19357_v6 = vld [vmem:[#allocation218_spill] sm:$0xff] }
 0x67f   :  { %v6405_v58 = vadd.f32 %v19352_v24, %v19351_v8  ;;  %v8428_v14 = vadd.f32 %v8246_v16, %v17624_v45  ;;  %v8359_v51 = vpop.f32.mrf.mxu1  ;;  %v12886_v45 = vld [vmem:[#allocation9 + $0x444] ss:$16 sps:$4 sm:$0xff]   ;;  %v7758_v27 = vadd.f32 %v17641_v1, %v7083_v0 }
 0x680   :  { %v8471_v30 = vmax.f32 %v17767_v33, %v17774_v36  ;;  %v8430_v62 = vadd.f32 %v8359_v51, %v19353_v29  ;;  %10203 = vmatpush1.bf16.msra.mxu0 %v12875_v21  ;;  %v8248_v50 = vpop.f32.mrf.mxu0  ;;  %v17784_v7 = vpack.c.bf16 %v8535_v60, %v8533_v35  ;;  %v19358_v33 = vld [vmem:[#allocation51_spill] sm:$0xff] }
 0x681   :  { %v7085_v43 = vadd.f32 %v19355_v48, %v6405_v58  ;;  %v8429_v47 = vadd.f32 %v8248_v50, %v19356_v42  ;;  %v8361_v10 = vpop.f32.mrf.mxu1  ;;  %10204 = vmatprep.subr.bf16.mxu0 %v12880_v13  ;;  %v12887_v13 = vld [vmem:[#allocation9 + $0x6c0] ss:$16 sps:$4 sm:$0xff]   ;;  %v12892_v1 = vld [vmem:[#allocation9 + $0x424] ss:$16 sps:$4 sm:$0xff]  }
 0x682   :  { %v8472_v57 = vmax.f32 %v8428_v14, %v8430_v62  ;;  %v8431_v9 = vadd.f32 %v8361_v10, %v17633_v39  ;;  %10185 = vmatprep.mubr.bf16.mxu1 %v17784_v7  ;;  %v8250_v23 = vpop.f32.mrf.mxu0  ;;  %v12884_v39 = vld [vmem:[#allocation9 + $0x440] ss:$16 sps:$4 sm:$0xff]  }
 0x683   :  { %v7760_v17 = vadd.f32 %v17643_v63, %v7085_v43  ;;  %v8432_v61 = vadd.f32 %v8250_v23, %v19357_v6  ;;  %v8363_v12 = vpop.f32.mrf.mxu1  ;;  %10186 = vmatmul.mubr.bf16.vlgmr.msra.gmra.mxu1 %v17769_v22  ;;  %v12895_v63 = vld [vmem:[#allocation9 + $0x6a4] ss:$16 sps:$4 sm:$0xff]   ;;  %v12890_v29 = vld [vmem:[#allocation9 + $0x420] ss:$16 sps:$4 sm:$0xff]  }
 0x684   :  { %v8492_v21 = vmax.f32 %v8468_v15, %v8472_v57  ;;  %v8473_v26 = vmax.f32 %v8429_v47, %v8431_v9  ;;  %v8434_v11 = vadd.f32 %v8363_v12, %v19358_v33  ;;  %10205 = vmatpush1.bf16.msra.mxu0 %v12878_v18  ;;  %10240 = vmatpush1.bf16.msra.mxu1 %v12881_v28  ;;  %v8252_v35 = vpop.f32.mrf.mxu0  ;;  %v12893_v62 = vld [vmem:[#allocation9 + $0x6a0] ss:$16 sps:$4 sm:$0xff]   ;;  %v12898_v18 = vld [vmem:[#allocation9 + $0x404] ss:$16 sps:$4 sm:$0xff]  }
 0x685   :  { %v8433_v52 = vadd.f32 %v8252_v35, %v7758_v27  ;;  %v8365_v36 = vpop.f32.mrf.mxu1  ;;  %10206 = vmatprep.subr.bf16.mxu0 %v12886_v45  ;;  %10241 = vmatprep.subr.bf16.mxu1 %v12889_v37  ;;  %v12896_v37 = vld [vmem:[#allocation9 + $0x400] ss:$16 sps:$4 sm:$0xff]  }
 0x686   :  { %v8520_v16 = vadd.f32 %v17706_v55, %v8492_v21  ;;  %v8493_v60 = vmax.f32 %v8469_v59, %v8473_v26  ;;  %v8474_v3 = vmax.f32 %v8432_v61, %v8434_v11  ;;  %v8435_v56 = vadd.f32 %v8365_v36, %v7760_v17  ;;  %v8256_v15 = vpop.f32.mrf.mxu0  ;;  %v12899_v57 = vld [vmem:[#allocation9 + $0x680] ss:$16 sps:$4 sm:$0xff]   ;;  %v12907_v17 = vld [vmem:[#allocation9 + $0x664] ss:$16 sps:$4 sm:$0xff]  }
 0x687   :  { %v17798_v20 = vadd.f32 %v8256_v15, %v17646_v40  ;;  %v8369_v8 = vpop.f32.mrf.mxu1  ;;  %v12901_v40 = vld [vmem:[#allocation9 + $0x684] ss:$16 sps:$4 sm:$0xff]   ;;  %v12905_v36 = vld [vmem:[#allocation9 + $0x660] ss:$16 sps:$4 sm:$0xff]  }
 0x688   :  { %v8494_v24 = vmax.f32 %v8470_v31, %v8474_v3  ;;  %v8475_v58 = vmax.f32 %v8433_v52, %v8435_v56  ;;  %v17801_v14 = vadd.f32 %v8369_v8, %v17649_v2  ;;  %10207 = vmatpush1.bf16.msra.mxu0 %v12884_v39  ;;  %10242 = vmatpush1.bf16.msra.mxu1 %v12887_v13  ;;  %v8258_v51 = vpop.f32.mrf.mxu0  ;;  %v8536_v43 = vmax.f32 %v8520_v16, 0.0  ;;  %v19359_v11 = vld [vmem:[#allocation219_spill] sm:$0xff]  ;;  %v19361_v3 = vld [vmem:[#allocation220_spill] sm:$0xff]  ;;  %v19363_v8 = vld [vmem:[#allocation54_spill] sm:$0xff] }
 0x689   :  { %v17804_v50 = vadd.f32 %v8258_v51, %v17652_v5  ;;  %v8371_v59 = vpop.f32.mrf.mxu1  ;;  %10208 = vmatprep.subr.bf16.mxu0 %v12892_v1  ;;  %10243 = vmatprep.subr.bf16.mxu1 %v12895_v63  ;;  %v8521_v28 = vadd.f32 %v17713_v53, %v8493_v60  ;;  %v12902_v13 = vld [vmem:[#allocation9 + $0x5e0] ss:$16 sps:$4 sm:$0xff]   ;;  %v19360_v1 = vld [vmem:[#allocation52_spill] sm:$0xff] }
 0x68a   :  { %v8522_v31 = vadd.f32 %v17706_v55, %v8494_v24  ;;  %v8495_v19 = vmax.f32 %v8471_v30, %v8475_v58  ;;  %v8476_v2 = vmax.f32 %v17798_v20, %v17801_v14  ;;  %v17811_v0 = vadd.f32 %v8371_v59, %v17655_v38  ;;  %v8260_v48 = vpop.f32.mrf.mxu0  ;;  %v12913_v60 = vld [vmem:[#allocation9 + $0x644] ss:$16 sps:$4 sm:$0xff]  }
 0x68b   :  { %v17814_v5 = vadd.f32 %v8260_v48, %v17658_v49  ;;  %v8373_v42 = vpop.f32.mrf.mxu1  ;;  %v12904_v49 = vld [vmem:[#allocation9 + $0x5e4] ss:$16 sps:$4 sm:$0xff]   ;;  %v8537_v27 = vmax.f32 %v8521_v28, 0.0 }
 0x68c   :  { %v8538_v47 = vmax.f32 %v8522_v31, 0.0  ;;  %v8477_v10 = vmax.f32 %v17804_v50, %v17811_v0  ;;  %v8442_v45 = vadd.f32 %v8373_v42, %v17661_v34  ;;  %10209 = vmatpush1.bf16.msra.mxu0 %v12890_v29  ;;  %10244 = vmatpush1.bf16.msra.mxu1 %v12893_v62  ;;  %v8262_v30 = vpop.f32.mrf.mxu0  ;;  %v8523_v38 = vadd.f32 %v17713_v53, %v8495_v19  ;;  %v19362_v20 = vld [vmem:[#allocation46_spill] sm:$0xff]  ;;  %v19366_v29 = vld [vmem:[#allocation53_spill] sm:$0xff] }
 0x68d   :  { %v17821_v9 = vadd.f32 %v8262_v30, %v17664_v4  ;;  %v8375_v23 = vpop.f32.mrf.mxu1  ;;  %10210 = vmatprep.subr.bf16.mxu0 %v12898_v18  ;;  %10245 = vmatprep.subr.bf16.mxu1 %v12901_v40  ;;  %v7774_v24 = vadd.f32 %v19363_v8, %v19362_v20  ;;  %v19364_v58 = vld [vmem:[#allocation214_spill] sm:$0xff]  ;;  %v19367_v40 = vld [vmem:[#allocation221_spill] sm:$0xff] }
 0x68e   :  { %v17823_v6 = vpack.c.bf16 %v8538_v47, %v8536_v43  ;;  %v8478_v34 = vmax.f32 %v17814_v5, %v8442_v45  ;;  %v8443_v61 = vadd.f32 %v8375_v23, %v17667_v32  ;;  %v8266_v12 = vpop.f32.mrf.mxu0  ;;  %v8539_v21 = vmax.f32 %v8523_v38, 0.0  ;;  %v12910_v32 = vld [vmem:[#allocation9 + $0x5c4] ss:$16 sps:$4 sm:$0xff]   ;;  %v12908_v19 = vld [vmem:[#allocation9 + $0x5c0] ss:$16 sps:$4 sm:$0xff]  }
 0x68f   :  { %v8444_v26 = vadd.f32 %v8266_v12, %v17670_v46  ;;  %v8379_v33 = vpop.f32.mrf.mxu1  ;;  %v19365_v14 = vld [vmem:[#allocation222_spill] sm:$0xff]  ;;  %v12911_v0 = vld [vmem:[#allocation9 + $0x640] ss:$16 sps:$4 sm:$0xff]  }
 0x690   :  { %v8479_v4 = vmax.f32 %v17821_v9, %v8443_v61  ;;  %v8446_v35 = vadd.f32 %v8379_v33, %v19359_v11  ;;  %10211 = vmatpush1.bf16.msra.mxu0 %v12896_v37  ;;  %10246 = vmatpush1.bf16.msra.mxu1 %v12899_v57  ;;  %v8268_v39 = vpop.f32.mrf.mxu0  ;;  %v17830_v52 = vpack.c.bf16 %v8539_v21, %v8537_v27  ;;  %v12916_v5 = vld [vmem:[#allocation9 + $0x5a4] ss:$16 sps:$4 sm:$0xff]   ;;  %v12914_v38 = vld [vmem:[#allocation9 + $0x5a0] ss:$16 sps:$4 sm:$0xff]  }
 0x691   :  { %v8445_v63 = vadd.f32 %v8268_v39, %v19360_v1  ;;  %v8381_v16 = vpop.f32.mrf.mxu1  ;;  %10212 = vmatprep.subr.bf16.mxu0 %v12904_v49  ;;  %10247 = vmatprep.subr.bf16.mxu1 %v12907_v17  ;;  %v7776_v51 = vadd.f32 %v19365_v14, %v19364_v58  ;;  %v12919_v42 = vld [vmem:[#allocation9 + $0x624] ss:$16 sps:$4 sm:$0xff]   ;;  %v12917_v9 = vld [vmem:[#allocation9 + $0x620] ss:$16 sps:$4 sm:$0xff]   ;;  %v12955_v58 = vld [vmem:[#allocation9 + $0xec] ss:$16 sps:$4 sm:$0xff]  }
 0x692   :  { %v8480_v46 = vmax.f32 %v8444_v26, %v8446_v35  ;;  %v8447_v56 = vadd.f32 %v8381_v16, %v19361_v3  ;;  %10228 = vmatprep.mubr.bf16.mxu0 %v17830_v52  ;;  %v8270_v15 = vpop.f32.mrf.mxu0  ;;  %v12922_v23 = vld [vmem:[#allocation9 + $0x584] ss:$16 sps:$4 sm:$0xff]   ;;  %v12935_v16 = vld [vmem:[#allocation9 + $0x7c0] ss:$16 sps:$4 sm:$0xff]  }
 0x693   :  { %v8448_v62 = vadd.f32 %v8270_v15, %v19366_v29  ;;  %v8383_v50 = vpop.f32.mrf.mxu1  ;;  %v12925_v49 = vld [vmem:[#allocation9 + $0x604] ss:$16 sps:$4 sm:$0xff]   ;;  %v12941_v3 = vld [vmem:[#allocation9 + $0x7a0] ss:$16 sps:$4 sm:$0xff]  }
 0x694   :  { %v8496_v59 = vmax.f32 %v8476_v2, %v8480_v46  ;;  %v8481_v18 = vmax.f32 %v8445_v63, %v8447_v56  ;;  %v8450_v28 = vadd.f32 %v8383_v50, %v19367_v40  ;;  %10213 = vmatpush2.bf16.msra.mxu0 %v12902_v13  ;;  %10248 = vmatpush1.bf16.msra.mxu1 %v12905_v36  ;;  %v8272_v31 = vpop.f32.mrf.mxu0  ;;  %v12928_v33 = vld [vmem:[#allocation9 + $0x564] ss:$16 sps:$4 sm:$0xff]   ;;  %v12938_v46 = vld [vmem:[#allocation9 + $0x520] ss:$16 sps:$4 sm:$0xff]   ;;  %v12967_v40 = vld [vmem:[#allocation9 + $0xac] ss:$16 sps:$4 sm:$0xff]  }
 0x695   :  { %v8449_v48 = vadd.f32 %v8272_v31, %v7774_v24  ;;  %v8385_v43 = vpop.f32.mrf.mxu1  ;;  %10214 = vmatprep.subr.bf16.mxu0 %v12910_v32  ;;  %10249 = vmatprep.subr.bf16.mxu1 %v12913_v60  ;;  %v12931_v11 = vld [vmem:[#allocation9 + $0x7e4] ss:$16 sps:$4 sm:$0xff]   ;;  %v12944_v20 = vld [vmem:[#allocation9 + $0x500] ss:$16 sps:$4 sm:$0xff]   ;;  %v12965_v31 = vld [vmem:[#allocation9 + $0xa8] ss:$16 sps:$4 sm:$0xff]  }
 0x696   :  { %v8524_v47 = vadd.f32 %v17706_v55, %v8496_v59  ;;  %v8497_v45 = vmax.f32 %v8477_v10, %v8481_v18  ;;  %v8482_v30 = vmax.f32 %v8448_v62, %v8450_v28  ;;  %v8451_v37 = vadd.f32 %v8385_v43, %v7776_v51  ;;  %v12920_v10 = vld [vmem:[#allocation9 + $0x580] ss:$16 sps:$4 sm:$0xff]   ;;  %v12934_v1 = vld [vmem:[#allocation9 + $0x544] ss:$16 sps:$4 sm:$0xff]   ;;  %v12953_v51 = vld [vmem:[#allocation9 + $0xe8] ss:$16 sps:$4 sm:$0xff]  }
 0x697   :  { %v12937_v63 = vld [vmem:[#allocation9 + $0x7c4] ss:$16 sps:$4 sm:$0xff]   ;;  %v12947_v8 = vld [vmem:[#allocation9 + $0x780] ss:$16 sps:$4 sm:$0xff]   ;;  %v12961_v62 = vld [vmem:[#allocation9 + $0xcc] ss:$16 sps:$4 sm:$0xff]  }
 0x698   :  { %v8498_v2 = vmax.f32 %v8478_v34, %v8482_v30  ;;  %v8483_v57 = vmax.f32 %v8449_v48, %v8451_v37  ;;  %10215 = vmatpush2.bf16.msra.mxu0 %v12908_v19  ;;  %10250 = vmatpush1.bf16.msra.mxu1 %v12911_v0  ;;  %v8525_v61 = vadd.f32 %v17713_v53, %v8497_v45  ;;  %v8540_v12 = vmax.f32 %v8524_v47, 0.0  ;;  %v12923_v34 = vld [vmem:[#allocation9 + $0x600] ss:$16 sps:$4 sm:$0xff]   ;;  %v12940_v32 = vld [vmem:[#allocation9 + $0x524] ss:$16 sps:$4 sm:$0xff]  }
 0x699   :  { %10216 = vmatprep.subr.bf16.mxu0 %v12916_v5  ;;  %10251 = vmatprep.subr.bf16.mxu1 %v12919_v42  ;;  %v12943_v60 = vld [vmem:[#allocation9 + $0x7a4] ss:$16 sps:$4 sm:$0xff]   ;;  %v12950_v14 = vld [vmem:[#allocation9 + $0x760] ss:$16 sps:$4 sm:$0xff]   ;;  %v12959_v59 = vld [vmem:[#allocation9 + $0xc8] ss:$16 sps:$4 sm:$0xff]  }
 0x69a   :  { %v8526_v27 = vadd.f32 %v17706_v55, %v8498_v2  ;;  %v8499_v17 = vmax.f32 %v8479_v4, %v8483_v57  ;;  %v8541_v39 = vmax.f32 %v8525_v61, 0.0  ;;  %v12926_v55 = vld [vmem:[#allocation9 + $0x560] ss:$16 sps:$4 sm:$0xff]   ;;  %v12946_v56 = vld [vmem:[#allocation9 + $0x504] ss:$16 sps:$4 sm:$0xff]  }
 0x69b   :  { %v12929_v4 = vld [vmem:[#allocation9 + $0x7e0] ss:$16 sps:$4 sm:$0xff]   ;;  %v12949_v15 = vld [vmem:[#allocation9 + $0x784] ss:$16 sps:$4 sm:$0xff]   ;;  %v12973_v0 = vld [vmem:[#allocation9 + $0x8c] ss:$16 sps:$4 sm:$0xff]  }
 0x69c   :  { %v8542_v21 = vmax.f32 %v8526_v27, 0.0  ;;  %10217 = vmatpush2.bf16.msra.mxu0 %v12914_v38  ;;  %10252 = vmatpush1.bf16.msra.mxu1 %v12917_v9  ;;  %v8527_v26 = vadd.f32 %v17713_v53, %v8499_v17  ;;  %v12932_v53 = vld [vmem:[#allocation9 + $0x540] ss:$16 sps:$4 sm:$0xff]   ;;  %v12952_v24 = vld [vmem:[#allocation9 + $0x764] ss:$16 sps:$4 sm:$0xff]  }
 0x69d   :  { %10218 = vmatprep.subr.bf16.mxu0 %v12922_v23  ;;  %10253 = vmatprep.subr.bf16.mxu1 %v12925_v49  ;;  %v12958_v29 = vld [vmem:[#allocation9 + $0x744] ss:$16 sps:$4 sm:$0xff]   ;;  %v12956_v50 = vld [vmem:[#allocation9 + $0x740] ss:$16 sps:$4 sm:$0xff]   ;;  %v12971_v43 = vld [vmem:[#allocation9 + $0x88] ss:$16 sps:$4 sm:$0xff]  }
 0x69e   :  { %v17845_v35 = vpack.c.bf16 %v8542_v21, %v8540_v12  ;;  %v8543_v13 = vmax.f32 %v8527_v26, 0.0  ;;  %v12964_v18 = vld [vmem:[#allocation9 + $0x724] ss:$16 sps:$4 sm:$0xff]   ;;  %v12962_v28 = vld [vmem:[#allocation9 + $0x720] ss:$16 sps:$4 sm:$0xff]  }
 0x69f   :  { %v12970_v19 = vld [vmem:[#allocation9 + $0x704] ss:$16 sps:$4 sm:$0xff]   ;;  %v12968_v48 = vld [vmem:[#allocation9 + $0x700] ss:$16 sps:$4 sm:$0xff]   ;;  %v12976_v5 = vld [vmem:[#allocation9 + $0x6c] ss:$16 sps:$4 sm:$0xff]  }
 0x6a0   :  { %10219 = vmatpush2.bf16.msra.mxu0 %v12920_v10  ;;  %10254 = vmatpush1.bf16.msra.mxu1 %v12923_v34  ;;  %v17847_v36 = vpack.c.bf16 %v8543_v13, %v8541_v39  ;;  %v12974_v42 = vld [vmem:[#allocation9 + $0x68] ss:$16 sps:$4 sm:$0xff]   ;;  %v12982_v45 = vld [vmem:[#allocation9 + $0x4c] ss:$16 sps:$4 sm:$0xff]  }
 0x6a1   :  { %10220 = vmatprep.subr.bf16.mxu0 %v12928_v33  ;;  %10255 = vmatprep.subr.bf16.mxu1 %v12931_v11  ;;  %v12977_v47 = vld [vmem:[#allocation9 + $0x2e8] ss:$16 sps:$4 sm:$0xff]   ;;  %v12985_v30 = vld [vmem:[#allocation9 + $0x2cc] ss:$16 sps:$4 sm:$0xff]  }
 0x6a2   :  { %10271 = vmatprep.mubr.bf16.mxu1 %v17847_v36  ;;  %v12980_v37 = vld [vmem:[#allocation9 + $0x48] ss:$16 sps:$4 sm:$0xff]   ;;  %v12988_v57 = vld [vmem:[#allocation9 + $0x2c] ss:$16 sps:$4 sm:$0xff]  }
 0x6a3   :  { %v12983_v2 = vld [vmem:[#allocation9 + $0x2c8] ss:$16 sps:$4 sm:$0xff]   ;;  %v12991_v38 = vld [vmem:[#allocation9 + $0x2ac] ss:$16 sps:$4 sm:$0xff]  }
 0x6a4   :  { %10221 = vmatpush2.bf16.msra.mxu0 %v12926_v55  ;;  %10256 = vmatpush2.bf16.msra.mxu1 %v12929_v4  ;;  %v12986_v9 = vld [vmem:[#allocation9 + $0x28] ss:$16 sps:$4 sm:$0xff]   ;;  %v12994_v49 = vld [vmem:[#allocation9 + $0xc] ss:$16 sps:$4 sm:$0xff]  }
 0x6a5   :  { %10222 = vmatprep.subr.bf16.mxu0 %v12934_v1  ;;  %10257 = vmatprep.subr.bf16.mxu1 %v12937_v63  ;;  %v12989_v23 = vld [vmem:[#allocation9 + $0x2a8] ss:$16 sps:$4 sm:$0xff]   ;;  %v12997_v27 = vld [vmem:[#allocation9 + $0x28c] ss:$16 sps:$4 sm:$0xff]  }
 0x6a6   :  { %v12992_v17 = vld [vmem:[#allocation9 + $0x8] ss:$16 sps:$4 sm:$0xff]   ;;  %v13000_v12 = vld [vmem:[#allocation9 + $0x1ec] ss:$16 sps:$4 sm:$0xff]  }
 0x6a7   :  { %v12995_v61 = vld [vmem:[#allocation9 + $0x288] ss:$16 sps:$4 sm:$0xff]   ;;  %v13006_v34 = vld [vmem:[#allocation9 + $0x1cc] ss:$16 sps:$4 sm:$0xff]  }
 0x6a8   :  { %10223 = vmatpush2.bf16.msra.mxu0 %v12932_v53  ;;  %10258 = vmatpush2.bf16.msra.mxu1 %v12935_v16  ;;  %v12998_v21 = vld [vmem:[#allocation9 + $0x1e8] ss:$16 sps:$4 sm:$0xff]   ;;  %v13009_v26 = vld [vmem:[#allocation9 + $0x24c] ss:$16 sps:$4 sm:$0xff]  }
 0x6a9   :  { %10224 = vmatprep.subr.bf16.mxu0 %v12940_v32  ;;  %10259 = vmatprep.subr.bf16.mxu1 %v12943_v60  ;;  %v13001_v10 = vld [vmem:[#allocation9 + $0x268] ss:$16 sps:$4 sm:$0xff]   ;;  %v13012_v39 = vld [vmem:[#allocation9 + $0x1ac] ss:$16 sps:$4 sm:$0xff]  }
 0x6aa   :  { %v13004_v33 = vld [vmem:[#allocation9 + $0x1c8] ss:$16 sps:$4 sm:$0xff]   ;;  %v13015_v13 = vld [vmem:[#allocation9 + $0x22c] ss:$16 sps:$4 sm:$0xff]  }
 0x6ab   :  { %v13007_v11 = vld [vmem:[#allocation9 + $0x248] ss:$16 sps:$4 sm:$0xff]   ;;  %v13018_v1 = vld [vmem:[#allocation9 + $0x18c] ss:$16 sps:$4 sm:$0xff]  }
 0x6ac   :  { %10225 = vmatpush2.bf16.msra.mxu0 %v12938_v46  ;;  %10260 = vmatpush2.bf16.msra.mxu1 %v12941_v3  ;;  %v13010_v55 = vld [vmem:[#allocation9 + $0x1a8] ss:$16 sps:$4 sm:$0xff]   ;;  %v13021_v63 = vld [vmem:[#allocation9 + $0x20c] ss:$16 sps:$4 sm:$0xff]  }
 0x6ad   :  { %10226 = vmatprep.subr.bf16.mxu0 %v12946_v56  ;;  %10261 = vmatprep.subr.bf16.mxu1 %v12949_v15  ;;  %v13013_v4 = vld [vmem:[#allocation9 + $0x228] ss:$16 sps:$4 sm:$0xff]   ;;  %v13024_v32 = vld [vmem:[#allocation9 + $0x16c] ss:$16 sps:$4 sm:$0xff]  }
 0x6ae   :  { %v13016_v53 = vld [vmem:[#allocation9 + $0x188] ss:$16 sps:$4 sm:$0xff]   ;;  %v13027_v60 = vld [vmem:[#allocation9 + $0x3ec] ss:$16 sps:$4 sm:$0xff]  }
 0x6af   :  { %v13019_v16 = vld [vmem:[#allocation9 + $0x208] ss:$16 sps:$4 sm:$0xff]   ;;  %v13030_v56 = vld [vmem:[#allocation9 + $0x14c] ss:$16 sps:$4 sm:$0xff]  }
 0x6b0   :  { %10227 = vmatpush2.bf16.msra.mxu0 %v12944_v20  ;;  %10262 = vmatpush2.bf16.msra.mxu1 %v12947_v8  ;;  %v13022_v46 = vld [vmem:[#allocation9 + $0x168] ss:$16 sps:$4 sm:$0xff]   ;;  %v13033_v15 = vld [vmem:[#allocation9 + $0x3cc] ss:$16 sps:$4 sm:$0xff]  }
 0x6b1   :  { %10263 = vmatprep.subr.bf16.mxu1 %v12952_v24  ;;  %10282 = vmatprep.subr.bf16.mxu0 %v12955_v58  ;;  %v13025_v3 = vld [vmem:[#allocation9 + $0x3e8] ss:$16 sps:$4 sm:$0xff]   ;;  %v13036_v24 = vld [vmem:[#allocation9 + $0x12c] ss:$16 sps:$4 sm:$0xff]  }
 0x6b2   :  { %v13028_v20 = vld [vmem:[#allocation9 + $0x148] ss:$16 sps:$4 sm:$0xff]   ;;  %v13039_v58 = vld [vmem:[#allocation9 + $0x3ac] ss:$16 sps:$4 sm:$0xff]  }
 0x6b3   :  { %10229 = vmatmul.mubr.bf16.vlgmr.msra.gmra.mxu0 %v17823_v6  ;;  %v13031_v8 = vld [vmem:[#allocation9 + $0x3c8] ss:$16 sps:$4 sm:$0xff]  }
 0x6b4   :  { %10264 = vmatpush2.bf16.msra.mxu1 %v12950_v14  ;;  %10283 = vmatpush1.bf16.msra.mxu0 %v12953_v51  ;;  %v13034_v14 = vld [vmem:[#allocation9 + $0x128] ss:$16 sps:$4 sm:$0xff]  }
 0x6b5   :  { %10314 = vmatprep.mubr.bf16.mxu0 %v17731_v25  ;;  %10265 = vmatprep.subr.bf16.mxu1 %v12958_v29  ;;  %v12979_v25 = vld [vmem:[#allocation9 + $0x2ec] ss:$16 sps:$4 sm:$0xff]   ;;  %v13037_v51 = vld [vmem:[#allocation9 + $0x3a8] ss:$16 sps:$4 sm:$0xff]  }
 0x6b6   :  { %10284 = vmatprep.subr.bf16.mxu0 %v12961_v62  ;;  %v13042_v29 = vld [vmem:[#allocation9 + $0x10c] ss:$16 sps:$4 sm:$0xff]  }
 0x6b7   :  { %v13045_v62 = vld [vmem:[#allocation9 + $0x38c] ss:$16 sps:$4 sm:$0xff]  }
 0x6b8   :  { %10266 = vmatpush2.bf16.msra.mxu1 %v12956_v50  ;;  %10285 = vmatpush1.bf16.msra.mxu0 %v12959_v59  ;;  %v13040_v50 = vld [vmem:[#allocation9 + $0x108] ss:$16 sps:$4 sm:$0xff]  }
 0x6b9   :  { %10267 = vmatprep.subr.bf16.mxu1 %v12964_v18  ;;  %10286 = vmatprep.subr.bf16.mxu0 %v12967_v40  ;;  %v13043_v59 = vld [vmem:[#allocation9 + $0x388] ss:$16 sps:$4 sm:$0xff]   ;;  %v13048_v18 = vld [vmem:[#allocation9 + $0x36c] ss:$16 sps:$4 sm:$0xff]  }
 0x6ba   :  { %v13051_v40 = vld [vmem:[#allocation9 + $0x4ec] ss:$16 sps:$4 sm:$0xff]  }
 0x6bc   :  { %10268 = vmatpush2.bf16.msra.mxu1 %v12962_v28  ;;  %10287 = vmatpush1.bf16.msra.mxu0 %v12965_v31  ;;  %v13046_v28 = vld [vmem:[#allocation9 + $0x368] ss:$16 sps:$4 sm:$0xff]  }
 0x6bd   :  { %10269 = vmatprep.subr.bf16.mxu1 %v12970_v19  ;;  %10288 = vmatprep.subr.bf16.mxu0 %v12973_v0  ;;  %v13049_v31 = vld [vmem:[#allocation9 + $0x4e8] ss:$16 sps:$4 sm:$0xff]   ;;  %v13054_v19 = vld [vmem:[#allocation9 + $0x34c] ss:$16 sps:$4 sm:$0xff]  }
 0x6be   :  { %v13057_v0 = vld [vmem:[#allocation9 + $0x4cc] ss:$16 sps:$4 sm:$0xff]  }
 0x6c0   :  { %10270 = vmatpush2.bf16.msra.mxu1 %v12968_v48  ;;  %10289 = vmatpush1.bf16.msra.mxu0 %v12971_v43  ;;  %v13052_v48 = vld [vmem:[#allocation9 + $0x348] ss:$16 sps:$4 sm:$0xff]  }
 0x6c1   :  { %10290 = vmatprep.subr.bf16.mxu0 %v12976_v5  ;;  %10325 = vmatprep.subr.bf16.mxu1 %v12979_v25  ;;  %v13055_v43 = vld [vmem:[#allocation9 + $0x4c8] ss:$16 sps:$4 sm:$0xff]   ;;  %v13060_v5 = vld [vmem:[#allocation9 + $0x32c] ss:$16 sps:$4 sm:$0xff]  }
 0x6c2   :  { %v13063_v25 = vld [vmem:[#allocation9 + $0x4ac] ss:$16 sps:$4 sm:$0xff]  }
 0x6c3   :  { %10272 = vmatmul.mubr.bf16.vlgmr.msra.gmra.mxu1 %v17845_v35 }
 0x6c4   :  { %10291 = vmatpush1.bf16.msra.mxu0 %v12974_v42  ;;  %10326 = vmatpush1.bf16.msra.mxu1 %v12977_v47  ;;  %v13058_v42 = vld [vmem:[#allocation9 + $0x328] ss:$16 sps:$4 sm:$0xff]  }
 0x6c5   :  { %10357 = vmatprep.mubr.bf16.mxu1 %v17784_v7  ;;  %10292 = vmatprep.subr.bf16.mxu0 %v12982_v45  ;;  %v13003_v7 = vld [vmem:[#allocation9 + $0x26c] ss:$16 sps:$4 sm:$0xff]   ;;  %v13061_v47 = vld [vmem:[#allocation9 + $0x4a8] ss:$16 sps:$4 sm:$0xff]  }
 0x6c6   :  { %10327 = vmatprep.subr.bf16.mxu1 %v12985_v30  ;;  %v13066_v45 = vld [vmem:[#allocation9 + $0x30c] ss:$16 sps:$4 sm:$0xff]  }
 0x6c7   :  { %v13069_v30 = vld [vmem:[#allocation9 + $0x48c] ss:$16 sps:$4 sm:$0xff]  }
 0x6c8   :  { %10293 = vmatpush1.bf16.msra.mxu0 %v12980_v37  ;;  %10328 = vmatpush1.bf16.msra.mxu1 %v12983_v2  ;;  %v13067_v37 = vld [vmem:[#allocation9 + $0x488] ss:$16 sps:$4 sm:$0xff]   ;;  %v13072_v2 = vld [vmem:[#allocation9 + $0x46c] ss:$16 sps:$4 sm:$0xff]  }
 0x6c9   :  { %10294 = vmatprep.subr.bf16.mxu0 %v12988_v57  ;;  %10329 = vmatprep.subr.bf16.mxu1 %v12991_v38  ;;  %v13070_v57 = vld [vmem:[#allocation9 + $0x468] ss:$16 sps:$4 sm:$0xff]  }
 0x6ca   :  { %v13073_v38 = vld [vmem:[#allocation9 + $0x6e8] ss:$16 sps:$4 sm:$0xff]  }
 0x6cc   :  { %10295 = vmatpush1.bf16.msra.mxu0 %v12986_v9  ;;  %10330 = vmatpush1.bf16.msra.mxu1 %v12989_v23  ;;  %v13078_v9 = vld [vmem:[#allocation9 + $0x44c] ss:$16 sps:$4 sm:$0xff]  }
 0x6cd   :  { %10296 = vmatprep.subr.bf16.mxu0 %v12994_v49  ;;  %10331 = vmatprep.subr.bf16.mxu1 %v12997_v27  ;;  %v13081_v23 = vld [vmem:[#allocation9 + $0x6cc] ss:$16 sps:$4 sm:$0xff]   ;;  %v13076_v49 = vld [vmem:[#allocation9 + $0x448] ss:$16 sps:$4 sm:$0xff]  }
 0x6ce   :  { %v13079_v27 = vld [vmem:[#allocation9 + $0x6c8] ss:$16 sps:$4 sm:$0xff]  }
 0x6d0   :  { %10297 = vmatpush1.bf16.msra.mxu0 %v12992_v17  ;;  %10332 = vmatpush1.bf16.msra.mxu1 %v12995_v61  ;;  %v13084_v17 = vld [vmem:[#allocation9 + $0x42c] ss:$16 sps:$4 sm:$0xff]  }
 0x6d1   :  { %10298 = vmatprep.subr.bf16.mxu0 %v13000_v12  ;;  %10333 = vmatprep.subr.bf16.mxu1 %v13003_v7  ;;  %v13087_v61 = vld [vmem:[#allocation9 + $0x6ac] ss:$16 sps:$4 sm:$0xff]   ;;  %v13082_v12 = vld [vmem:[#allocation9 + $0x428] ss:$16 sps:$4 sm:$0xff]  }
 0x6d2   :  { %v13085_v7 = vld [vmem:[#allocation9 + $0x6a8] ss:$16 sps:$4 sm:$0xff]  }
 0x6d4   :  { %10299 = vmatpush2.bf16.msra.mxu0 %v12998_v21  ;;  %10334 = vmatpush1.bf16.msra.mxu1 %v13001_v10  ;;  %v13090_v21 = vld [vmem:[#allocation9 + $0x40c] ss:$16 sps:$4 sm:$0xff]  }
 0x6d5   :  { %10300 = vmatprep.subr.bf16.mxu0 %v13006_v34  ;;  %10335 = vmatprep.subr.bf16.mxu1 %v13009_v26  ;;  %v13093_v10 = vld [vmem:[#allocation9 + $0x68c] ss:$16 sps:$4 sm:$0xff]   ;;  %v13091_v34 = vld [vmem:[#allocation9 + $0x688] ss:$16 sps:$4 sm:$0xff]  }
 0x6d6   :  { %v13096_v26 = vld [vmem:[#allocation9 + $0x5ec] ss:$16 sps:$4 sm:$0xff]  }
 0x6d8   :  { %10301 = vmatpush2.bf16.msra.mxu0 %v13004_v33  ;;  %10336 = vmatpush1.bf16.msra.mxu1 %v13007_v11  ;;  %v13094_v33 = vld [vmem:[#allocation9 + $0x5e8] ss:$16 sps:$4 sm:$0xff]  }
 0x6d9   :  { %10302 = vmatprep.subr.bf16.mxu0 %v13012_v39  ;;  %10337 = vmatprep.subr.bf16.mxu1 %v13015_v13  ;;  %v13097_v11 = vld [vmem:[#allocation9 + $0x668] ss:$16 sps:$4 sm:$0xff]   ;;  %v13102_v39 = vld [vmem:[#allocation9 + $0x5cc] ss:$16 sps:$4 sm:$0xff]  }
 0x6da   :  { %v13105_v13 = vld [vmem:[#allocation9 + $0x64c] ss:$16 sps:$4 sm:$0xff]  }
 0x6dc   :  { %10303 = vmatpush2.bf16.msra.mxu0 %v13010_v55  ;;  %10338 = vmatpush1.bf16.msra.mxu1 %v13013_v4  ;;  %v13100_v55 = vld [vmem:[#allocation9 + $0x5c8] ss:$16 sps:$4 sm:$0xff]  }
 0x6dd   :  { %10304 = vmatprep.subr.bf16.mxu0 %v13018_v1  ;;  %10339 = vmatprep.subr.bf16.mxu1 %v13021_v63  ;;  %v13103_v4 = vld [vmem:[#allocation9 + $0x648] ss:$16 sps:$4 sm:$0xff]   ;;  %v13108_v1 = vld [vmem:[#allocation9 + $0x5ac] ss:$16 sps:$4 sm:$0xff]  }
 0x6de   :  { %v13111_v63 = vld [vmem:[#allocation9 + $0x62c] ss:$16 sps:$4 sm:$0xff]  }
 0x6e0   :  { %10305 = vmatpush2.bf16.msra.mxu0 %v13016_v53  ;;  %10340 = vmatpush1.bf16.msra.mxu1 %v13019_v16  ;;  %v13106_v53 = vld [vmem:[#allocation9 + $0x5a8] ss:$16 sps:$4 sm:$0xff]  }
 0x6e1   :  { %10306 = vmatprep.subr.bf16.mxu0 %v13024_v32  ;;  %10341 = vmatprep.subr.bf16.mxu1 %v13027_v60  ;;  %v13109_v16 = vld [vmem:[#allocation9 + $0x628] ss:$16 sps:$4 sm:$0xff]   ;;  %v13114_v32 = vld [vmem:[#allocation9 + $0x58c] ss:$16 sps:$4 sm:$0xff]  }
 0x6e2   :  { %v13117_v60 = vld [vmem:[#allocation9 + $0x60c] ss:$16 sps:$4 sm:$0xff]  }
 0x6e4   :  { %10307 = vmatpush2.bf16.msra.mxu0 %v13022_v46  ;;  %10342 = vmatpush2.bf16.msra.mxu1 %v13025_v3  ;;  %v13112_v46 = vld [vmem:[#allocation9 + $0x588] ss:$16 sps:$4 sm:$0xff]  }
 0x6e5   :  { %10308 = vmatprep.subr.bf16.mxu0 %v13030_v56  ;;  %10343 = vmatprep.subr.bf16.mxu1 %v13033_v15  ;;  %v13115_v3 = vld [vmem:[#allocation9 + $0x608] ss:$16 sps:$4 sm:$0xff]   ;;  %v13120_v56 = vld [vmem:[#allocation9 + $0x56c] ss:$16 sps:$4 sm:$0xff]  }
 0x6e6   :  { %v13123_v15 = vld [vmem:[#allocation9 + $0x7ec] ss:$16 sps:$4 sm:$0xff]  }
 0x6e8   :  { %10309 = vmatpush2.bf16.msra.mxu0 %v13028_v20  ;;  %10344 = vmatpush2.bf16.msra.mxu1 %v13031_v8  ;;  %v13118_v20 = vld [vmem:[#allocation9 + $0x568] ss:$16 sps:$4 sm:$0xff]  }
 0x6e9   :  { %10310 = vmatprep.subr.bf16.mxu0 %v13036_v24  ;;  %10345 = vmatprep.subr.bf16.mxu1 %v13039_v58  ;;  %v13121_v8 = vld [vmem:[#allocation9 + $0x7e8] ss:$16 sps:$4 sm:$0xff]   ;;  %v13126_v24 = vld [vmem:[#allocation9 + $0x54c] ss:$16 sps:$4 sm:$0xff]  }
 0x6ea   :  { %v13129_v58 = vld [vmem:[#allocation9 + $0x7cc] ss:$16 sps:$4 sm:$0xff]  }
 0x6ec   :  { %10311 = vmatpush2.bf16.msra.mxu0 %v13034_v14  ;;  %10346 = vmatpush2.bf16.msra.mxu1 %v13037_v51  ;;  %v13124_v14 = vld [vmem:[#allocation9 + $0x548] ss:$16 sps:$4 sm:$0xff]  }
 0x6ed   :  { %10312 = vmatprep.subr.bf16.mxu0 %v13042_v29  ;;  %10347 = vmatprep.subr.bf16.mxu1 %v13045_v62  ;;  %v13127_v51 = vld [vmem:[#allocation9 + $0x7c8] ss:$16 sps:$4 sm:$0xff]   ;;  %v13132_v29 = vld [vmem:[#allocation9 + $0x52c] ss:$16 sps:$4 sm:$0xff]  }
 0x6ee   :  { %v13135_v62 = vld [vmem:[#allocation9 + $0x7ac] ss:$16 sps:$4 sm:$0xff]  }
 0x6f0   :  { %10313 = vmatpush2.bf16.msra.mxu0 %v13040_v50  ;;  %10348 = vmatpush2.bf16.msra.mxu1 %v13043_v59  ;;  %v13130_v50 = vld [vmem:[#allocation9 + $0x528] ss:$16 sps:$4 sm:$0xff]  }
 0x6f1   :  { %10349 = vmatprep.subr.bf16.mxu1 %v13048_v18  ;;  %10368 = vmatprep.subr.bf16.mxu0 %v13051_v40  ;;  %v13133_v59 = vld [vmem:[#allocation9 + $0x7a8] ss:$16 sps:$4 sm:$0xff]   ;;  %v13138_v18 = vld [vmem:[#allocation9 + $0x50c] ss:$16 sps:$4 sm:$0xff]  }
 0x6f2   :  { %v13141_v40 = vld [vmem:[#allocation9 + $0x78c] ss:$16 sps:$4 sm:$0xff]  }
 0x6f3   :  { %10315 = vmatmul.mubr.bf16.vlgmr.msra.gmra.mxu0 %v17726_v41  ;;  %v13064_v41 = vld [vmem:[#allocation9 + $0x308] ss:$16 sps:$4 sm:$0xff]  }
 0x6f4   :  { %10350 = vmatpush2.bf16.msra.mxu1 %v13046_v28  ;;  %10369 = vmatpush1.bf16.msra.mxu0 %v13049_v31  ;;  %v13136_v28 = vld [vmem:[#allocation9 + $0x508] ss:$16 sps:$4 sm:$0xff]  }
 0x6f5   :  { %10400 = vmatprep.mubr.bf16.mxu0 %v17830_v52  ;;  %10351 = vmatprep.subr.bf16.mxu1 %v13054_v19  ;;  %v13075_v52 = vld [vmem:[#allocation9 + $0x6ec] ss:$16 sps:$4 sm:$0xff]   ;;  %v13139_v31 = vld [vmem:[#allocation9 + $0x788] ss:$16 sps:$4 sm:$0xff]  }
 0x6f6   :  { %10370 = vmatprep.subr.bf16.mxu0 %v13057_v0  ;;  %v13144_v19 = vld [vmem:[#allocation9 + $0x76c] ss:$16 sps:$4 sm:$0xff]  }
 0x6f7   :  { %v13154_v0 = vld [vmem:[#allocation12 + $0x78] sm:$0xff]  }
 0x6f8   :  { %10352 = vmatpush2.bf16.msra.mxu1 %v13052_v48  ;;  %10371 = vmatpush1.bf16.msra.mxu0 %v13055_v43  ;;  %v13142_v48 = vld [vmem:[#allocation9 + $0x768] ss:$16 sps:$4 sm:$0xff]   ;;  %v13155_v43 = vld [vmem:[#allocation12 + $0x38] sm:$0xff]  }
 0x6f9   :  { %10353 = vmatprep.subr.bf16.mxu1 %v13060_v5  ;;  %10372 = vmatprep.subr.bf16.mxu0 %v13063_v25  ;;  %v13147_v5 = vld [vmem:[#allocation9 + $0x74c] ss:$16 sps:$4 sm:$0xff]   ;;  %v13156_v25 = vld [vmem:[#allocation12 + $0x70] sm:$0xff]  }
 0x6fc   :  { %10354 = vmatpush2.bf16.msra.mxu1 %v13058_v42  ;;  %10373 = vmatpush1.bf16.msra.mxu0 %v13061_v47  ;;  %v13145_v42 = vld [vmem:[#allocation9 + $0x748] ss:$16 sps:$4 sm:$0xff]  }
 0x6fd   :  { %10355 = vmatprep.subr.bf16.mxu1 %v13066_v45  ;;  %10374 = vmatprep.subr.bf16.mxu0 %v13069_v30  ;;  %v13157_v47 = vld [vmem:[#allocation12 + $0x30] sm:$0xff]   ;;  %v13150_v45 = vld [vmem:[#allocation9 + $0x72c] ss:$16 sps:$4 sm:$0xff]  }
 0x6fe   :  { %v13158_v30 = vld [vmem:[#allocation12 + $0x68] sm:$0xff]  }
 0x700   :  { %10356 = vmatpush2.bf16.msra.mxu1 %v13064_v41  ;;  %10375 = vmatpush1.bf16.msra.mxu0 %v13067_v37  ;;  %v13148_v41 = vld [vmem:[#allocation9 + $0x728] ss:$16 sps:$4 sm:$0xff]   ;;  %v13159_v37 = vld [vmem:[#allocation12 + $0x28] sm:$0xff]  }
 0x701   :  { %10376 = vmatprep.subr.bf16.mxu0 %v13072_v2  ;;  %10411 = vmatprep.subr.bf16.mxu1 %v13075_v52  ;;  %v13153_v2 = vld [vmem:[#allocation9 + $0x70c] ss:$16 sps:$4 sm:$0xff]   ;;  %v13160_v52 = vld [vmem:[#allocation12 + $0x60] sm:$0xff]  }
 0x703   :  { %10358 = vmatmul.mubr.bf16.vlgmr.msra.gmra.mxu1 %v17769_v22  ;;  %v13088_v22 = vld [vmem:[#allocation9 + $0x408] ss:$16 sps:$4 sm:$0xff]  }
 0x704   :  { %10377 = vmatpush1.bf16.msra.mxu0 %v13070_v57  ;;  %10412 = vmatpush1.bf16.msra.mxu1 %v13073_v38  ;;  %v13151_v57 = vld [vmem:[#allocation9 + $0x708] ss:$16 sps:$4 sm:$0xff]   ;;  %v13162_v38 = vld [vmem:[#allocation12 + $0x58] sm:$0xff]  }
 0x705   :  { %10443 = vmatprep.mubr.bf16.mxu1 %v17847_v36  ;;  %10378 = vmatprep.subr.bf16.mxu0 %v13078_v9  ;;  %v13099_v36 = vld [vmem:[#allocation9 + $0x66c] ss:$16 sps:$4 sm:$0xff]  }
 0x706   :  { %10413 = vmatprep.subr.bf16.mxu1 %v13081_v23  ;;  %v13163_v9 = vld [vmem:[#allocation12 + $0x18] sm:$0xff]   ;;  %v13164_v23 = vld [vmem:[#allocation12 + $0x50] sm:$0xff]  }
 0x708   :  { %10379 = vmatpush1.bf16.msra.mxu0 %v13076_v49  ;;  %10414 = vmatpush1.bf16.msra.mxu1 %v13079_v27  ;;  %v13165_v49 = vld [vmem:[#allocation12 + $0x10] sm:$0xff]   ;;  %v13166_v27 = vld [vmem:[#allocation12 + $0x48] sm:$0xff]  }
 0x709   :  { %10380 = vmatprep.subr.bf16.mxu0 %v13084_v17  ;;  %10415 = vmatprep.subr.bf16.mxu1 %v13087_v61  ;;  %v13167_v17 = vld [vmem:[#allocation12 + $0x8] sm:$0xff]   ;;  %v13168_v61 = vld [vmem:[#allocation12 + $0x40] sm:$0xff]  }
 0x70c   :  { %10381 = vmatpush1.bf16.msra.mxu0 %v13082_v12  ;;  %10416 = vmatpush1.bf16.msra.mxu1 %v13085_v7  ;;  %v13170_v12 = vld [vmem:[#allocation12 + $0xf8] sm:$0xff]  }
 0x70d   :  { %10382 = vmatprep.subr.bf16.mxu0 %v13090_v21  ;;  %10417 = vmatprep.subr.bf16.mxu1 %v13093_v10  ;;  %v13171_v7 = vld [vmem:[#allocation12 + $0xb8] sm:$0xff]   ;;  %v13169_v21 = vld [vmem:[#allocation12] sm:$0xff]  }
 0x710   :  { %10383 = vmatpush1.bf16.msra.mxu0 %v13088_v22  ;;  %10418 = vmatpush1.bf16.msra.mxu1 %v13091_v34 }
 0x711   :  { %10384 = vmatprep.subr.bf16.mxu0 %v13096_v26  ;;  %10419 = vmatprep.subr.bf16.mxu1 %v13099_v36  ;;  %v13173_v36 = vld [vmem:[#allocation12 + $0xb0] sm:$0xff]  }
 0x714   :  { %10385 = vmatpush2.bf16.msra.mxu0 %v13094_v33  ;;  %10420 = vmatpush1.bf16.msra.mxu1 %v13097_v11  ;;  %v13174_v11 = vld [vmem:[#allocation12 + $0xe8] sm:$0xff]  }
 0x715   :  { %10386 = vmatprep.subr.bf16.mxu0 %v13102_v39  ;;  %10421 = vmatprep.subr.bf16.mxu1 %v13105_v13 }
 0x718   :  { %10387 = vmatpush2.bf16.msra.mxu0 %v13100_v55  ;;  %10422 = vmatpush1.bf16.msra.mxu1 %v13103_v4  ;;  %v13175_v55 = vld [vmem:[#allocation12 + $0xa8] sm:$0xff]   ;;  %v13176_v4 = vld [vmem:[#allocation12 + $0xe0] sm:$0xff]  }
 0x719   :  { %10388 = vmatprep.subr.bf16.mxu0 %v13108_v1  ;;  %10423 = vmatprep.subr.bf16.mxu1 %v13111_v63  ;;  %v13177_v1 = vld [vmem:[#allocation12 + $0xa0] sm:$0xff]   ;;  %v17860_v63 = vld [vmem:[#allocation10] sm:$0xf] }
 0x71c   :  { %10389 = vmatpush2.bf16.msra.mxu0 %v13106_v53  ;;  %10424 = vmatpush1.bf16.msra.mxu1 %v13109_v16  ;;  %v13178_v53 = vld [vmem:[#allocation12 + $0xd8] sm:$0xff]  }
 0x71d   :  { %10390 = vmatprep.subr.bf16.mxu0 %v13114_v32  ;;  %10425 = vmatprep.subr.bf16.mxu1 %v13117_v60  ;;  %v8817_v60 = vrot.slane %v17860_v63, %v19341_v54 }
 0x720   :  { %10391 = vmatpush2.bf16.msra.mxu0 %v13112_v46  ;;  %10426 = vmatpush1.bf16.msra.mxu1 %v13115_v3  ;;  %v8813_v46 = vrot.slane %v17860_v63, %v19339_v44  ;;  %v13179_v3 = vld [vmem:[#allocation12 + $0x98] sm:$0xff]  }
 0x721   :  { %10392 = vmatprep.subr.bf16.mxu0 %v13120_v56  ;;  %10427 = vmatprep.subr.bf16.mxu1 %v13123_v15 }
 0x724   :  { %10393 = vmatpush2.bf16.msra.mxu0 %v13118_v20  ;;  %10428 = vmatpush2.bf16.msra.mxu1 %v13121_v8 }
 0x725   :  { %10394 = vmatprep.subr.bf16.mxu0 %v13126_v24  ;;  %10429 = vmatprep.subr.bf16.mxu1 %v13129_v58 }
 0x728   :  { %10395 = vmatpush2.bf16.msra.mxu0 %v13124_v14  ;;  %10430 = vmatpush2.bf16.msra.mxu1 %v13127_v51 }
 0x729   :  { %10396 = vmatprep.subr.bf16.mxu0 %v13132_v29  ;;  %10431 = vmatprep.subr.bf16.mxu1 %v13135_v62  ;;  %v13180_v62 = vld [vmem:[#allocation12 + $0xd0] sm:$0xff]  }
 0x72c   :  { %10397 = vmatpush2.bf16.msra.mxu0 %v13130_v50  ;;  %10432 = vmatpush2.bf16.msra.mxu1 %v13133_v59 }
 0x72d   :  { %10398 = vmatprep.subr.bf16.mxu0 %v13138_v18  ;;  %10433 = vmatprep.subr.bf16.mxu1 %v13141_v40  ;;  %v13181_v18 = vld [vmem:[#allocation12 + $0x90] sm:$0xff]  }
 0x730   :  { %10399 = vmatpush2.bf16.msra.mxu0 %v13136_v28  ;;  %10434 = vmatpush2.bf16.msra.mxu1 %v13139_v31 }
 0x731   :  { %10435 = vmatprep.subr.bf16.mxu1 %v13144_v19  ;;  %12053 = vmatprep.subr.bf16.mxu0 %v13154_v0 }
 0x733   :  { %10401 = vmatmul.mubr.bf16.vlgmr.msra.gmra.mxu0 %v17823_v6  ;;  %v13161_v6 = vld [vmem:[#allocation12 + $0x20] sm:$0xff]   ;;  %v10144_v10 = vpop.f32.mrf.mxu0 }
 0x734   :  { %10436 = vmatpush2.bf16.msra.mxu1 %v13142_v48  ;;  %12054 = vmatpush3.bf16.msra.mxu0 %v13155_v43  ;;  %v10145_v24 = vadd.f32 %v10144_v10, %v8813_v46 }
 0x735   :  { %10437 = vmatprep.subr.bf16.mxu1 %v13147_v5  ;;  %12055 = vmatprep.subr.bf16.mxu0 %v13156_v25  ;;  %v10146_v22 = vpop.f32.mrf.mxu0  ;;  %v13182_v5 = vld [vmem:[#allocation12 + $0xc8] sm:$0xff]  }
 0x736   :  { %v10147_v20 = vadd.f32 %v10146_v22, %v8817_v60 }
 0x737   :  { %v10148_v34 = vpop.f32.mrf.mxu0 }
 0x738   :  { %10438 = vmatpush2.bf16.msra.mxu1 %v13145_v42  ;;  %12056 = vmatpush3.bf16.msra.mxu0 %v13157_v47  ;;  %v10149_v8 = vadd.f32 %v10148_v34, %v8813_v46  ;;  %v13183_v47 = vld [vmem:[#allocation12 + $0x88] sm:$0xff]  }
 0x739   :  { %10439 = vmatprep.subr.bf16.mxu1 %v13150_v45  ;;  %12057 = vmatprep.subr.bf16.mxu0 %v13158_v30  ;;  %v10150_v33 = vpop.f32.mrf.mxu0 }
 0x73a   :  { %v10151_v14 = vadd.f32 %v10150_v33, %v8817_v60 }
 0x73c   :  { %10440 = vmatpush2.bf16.msra.mxu1 %v13148_v41  ;;  %12058 = vmatpush3.bf16.msra.mxu0 %v13159_v37 }
 0x73d   :  { %10441 = vmatprep.subr.bf16.mxu1 %v13153_v2  ;;  %12059 = vmatprep.subr.bf16.mxu0 %v13160_v52  ;;  %v13184_v2 = vld [vmem:[#allocation12 + $0xc0] sm:$0xff]  }
 0x740   :  { %10442 = vmatpush2.bf16.msra.mxu1 %v13151_v57  ;;  %12060 = vmatpush3.bf16.msra.mxu0 %v13161_v6  ;;  %v13185_v57 = vld [vmem:[#allocation12 + $0x80] sm:$0xff]  }
 0x741   :  { %12061 = vmatprep.subr.bf16.mxu0 %v13162_v38  ;;  %12075 = vmatprep.subr.bf16.mxu1 %v13170_v12 }
 0x743   :  { %10444 = vmatmul.mubr.bf16.vlgmr.msra.gmra.mxu1 %v17845_v35  ;;  %v13172_v35 = vld [vmem:[#allocation12 + $0xf0] sm:$0xff]   ;;  %v10187_v26 = vpop.f32.mrf.mxu1 }
 0x744   :  { %12062 = vmatpush3.bf16.msra.mxu0 %v13163_v9  ;;  %12076 = vmatpush3.bf16.msra.mxu1 %v13171_v7  ;;  %v10188_v50 = vadd.f32 %v10187_v26, %v10145_v24  ;;  %v19368_v7 = vld [vmem:[#allocation167_spill] sm:$0xff] }
 0x745   :  { %12063 = vmatprep.subr.bf16.mxu0 %v13164_v23  ;;  %12077 = vmatprep.subr.bf16.mxu1 %v13172_v35  ;;  %v10189_v39 = vpop.f32.mrf.mxu1  ;;  %v8820_v10 = vsub.s32 2, %v19368_v7 }
 0x746   :  { %v10190_v51 = vadd.f32 %v10189_v39, %v10147_v20 }
 0x747   :  { %v10191_v16 = vpop.f32.mrf.mxu1  ;;  %v8821_v26 = vrot.slane %v17860_v63, %v8820_v10 }
 0x748   :  { %12064 = vmatpush3.bf16.msra.mxu0 %v13165_v49  ;;  %12078 = vmatpush3.bf16.msra.mxu1 %v13173_v36  ;;  %v10192_v29 = vadd.f32 %v10191_v16, %v10149_v8 }
 0x749   :  { %12065 = vmatprep.subr.bf16.mxu0 %v13166_v27  ;;  %12079 = vmatprep.subr.bf16.mxu1 %v13174_v11  ;;  %v10193_v56 = vpop.f32.mrf.mxu1 }
 0x74a   :  { %v10194_v40 = vadd.f32 %v10193_v56, %v10151_v14 }
 0x74c   :  { %12066 = vmatpush3.bf16.msra.mxu0 %v13167_v17  ;;  %12080 = vmatpush3.bf16.msra.mxu1 %v13175_v55 }
 0x74d   :  { %12067 = vmatprep.subr.bf16.mxu0 %v13168_v61  ;;  %12081 = vmatprep.subr.bf16.mxu1 %v13176_v4 }
 0x750   :  { %12068 = vmatpush3.bf16.msra.mxu0 %v13169_v21  ;;  %12082 = vmatpush3.bf16.msra.mxu1 %v13177_v1  ;;  %v8824_v21 = vsub.s32 3, %v19368_v7 }
 0x751   :  { %12083 = vmatprep.subr.bf16.mxu1 %v13178_v53 }
 0x752   :  { %v8825_v35 = vrot.slane %v17860_v63, %v8824_v21 }
 0x754   :  { %12084 = vmatpush3.bf16.msra.mxu1 %v13179_v3 }
 0x755   :  { %12085 = vmatprep.subr.bf16.mxu1 %v13180_v62 }
 0x758   :  { %12086 = vmatpush3.bf16.msra.mxu1 %v13181_v18 }
 0x759   :  { %12087 = vmatprep.subr.bf16.mxu1 %v13182_v5 }
 0x75c   :  { %12088 = vmatpush3.bf16.msra.mxu1 %v13183_v47 }
 0x75d   :  { %12089 = vmatprep.subr.bf16.mxu1 %v13184_v2 }
 0x760   :  { %12090 = vmatpush3.bf16.msra.mxu1 %v13185_v57 }
 0x773   :  { %v10230_v13 = vpop.f32.mrf.mxu0 }
 0x774   :  { %v10231_v31 = vadd.f32 %v10230_v13, %v10188_v50 }
 0x775   :  { %v10232_v32 = vpop.f32.mrf.mxu0 }
 0x776   :  { %v10233_v44 = vadd.f32 %v10232_v32, %v10190_v51 }
 0x777   :  { %v10234_v15 = vpop.f32.mrf.mxu0 }
 0x778   :  { %v10235_v28 = vadd.f32 %v10234_v15, %v10192_v29 }
 0x779   :  { %v10236_v59 = vpop.f32.mrf.mxu0 }
 0x77a   :  { %v10237_v0 = vadd.f32 %v10236_v59, %v10194_v40 }
 0x783   :  { %v10273_v58 = vpop.f32.mrf.mxu1 }
 0x784   :  { %v10274_v25 = vadd.f32 %v10273_v58, %v10231_v31 }
 0x785   :  { %v10275_v54 = vpop.f32.mrf.mxu1 }
 0x786   :  { %v10276_v48 = vadd.f32 %v10275_v54, %v10233_v44  ;;  %v10454_v52 = vmax.f32 %v10274_v25, 0.0 }
 0x787   :  { %v10277_v19 = vpop.f32.mrf.mxu1 }
 0x788   :  { %v10278_v43 = vadd.f32 %v10277_v19, %v10235_v28  ;;  %v10455_v41 = vmax.f32 %v10276_v48, 0.0  ;;  %v12020_v19 = vld [vmem:[#allocation13] ss:$0 sm:$0xff] }
 0x789   :  { %v10279_v42 = vpop.f32.mrf.mxu1 }
 0x78a   :  { %v10280_v45 = vadd.f32 %v10279_v42, %v10237_v0  ;;  %v10458_v30 = vmax.f32 %v10278_v43, 0.0 }
 0x78c   :  { %v10459_v37 = vmax.f32 %v10280_v45, 0.0  ;;  %v10462_v38 = vpack.c.bf16 %v10458_v30, %v10454_v52 }
 0x78e   :  { %v10463_v6 = vpack.c.bf16 %v10459_v37, %v10455_v41 }
 0x790   :  { %10761 = vmatprep.mubr.bf16.mxu0 %v10463_v6 }
 0x791   :  { %10762 = vmatmul.mubr.bf16.vlgmr.msra.gmra.mxu0 %v10462_v38 }
 0x7b3   :  { %v10316_v9 = vpop.f32.mrf.mxu0 }
 0x7b4   :  { %v10317_v13 = vadd.f32 %v10316_v9, %v8821_v26 }
 0x7b5   :  { %v10318_v23 = vpop.f32.mrf.mxu0 }
 0x7b6   :  { %v10319_v11 = vadd.f32 %v10318_v23, %v8825_v35 }
 0x7b7   :  { %v10320_v49 = vpop.f32.mrf.mxu0 }
 0x7b8   :  { %v10321_v39 = vadd.f32 %v10320_v49, %v8821_v26 }
 0x7b9   :  { %v10322_v17 = vpop.f32.mrf.mxu0 }
 0x7ba   :  { %v10323_v4 = vadd.f32 %v10322_v17, %v8825_v35 }
 0x7c3   :  { %v10359_v27 = vpop.f32.mrf.mxu1 }
 0x7c4   :  { %v10360_v16 = vadd.f32 %v10359_v27, %v10317_v13 }
 0x7c5   :  { %v10361_v61 = vpop.f32.mrf.mxu1 }
 0x7c6   :  { %v10362_v1 = vadd.f32 %v10361_v61, %v10319_v11 }
 0x7c7   :  { %v10363_v22 = vpop.f32.mrf.mxu1 }
 0x7c8   :  { %v10364_v53 = vadd.f32 %v10363_v22, %v10321_v39 }
 0x7c9   :  { %v10365_v36 = vpop.f32.mrf.mxu1 }
 0x7ca   :  { %v10366_v46 = vadd.f32 %v10365_v36, %v10323_v4 }
 0x7f3   :  { %v10402_v12 = vpop.f32.mrf.mxu0 }
 0x7f4   :  { %v10403_v15 = vadd.f32 %v10402_v12, %v10360_v16 }
 0x7f5   :  { %v10404_v34 = vpop.f32.mrf.mxu0 }
 0x7f6   :  { %v10405_v3 = vadd.f32 %v10404_v34, %v10362_v1 }
 0x7f7   :  { %v10406_v33 = vpop.f32.mrf.mxu0 }
 0x7f8   :  { %v10407_v56 = vadd.f32 %v10406_v33, %v10364_v53 }
 0x7f9   :  { %v10408_v32 = vpop.f32.mrf.mxu0 }
 0x7fa   :  { %v10409_v8 = vadd.f32 %v10408_v32, %v10366_v46 }
 0x803   :  { %v10445_v55 = vpop.f32.mrf.mxu1 }
 0x804   :  { %v10446_v58 = vadd.f32 %v10445_v55, %v10403_v15 }
 0x805   :  { %v10447_v60 = vpop.f32.mrf.mxu1 }
 0x806   :  { %v10448_v24 = vadd.f32 %v10447_v60, %v10405_v3  ;;  %v10456_v59 = vmax.f32 %v10446_v58, 0.0 }
 0x807   :  { %v10449_v20 = vpop.f32.mrf.mxu1 }
 0x808   :  { %v10450_v63 = vadd.f32 %v10449_v20, %v10407_v56  ;;  %v10457_v62 = vmax.f32 %v10448_v24, 0.0 }
 0x809   :  { %v10451_v14 = vpop.f32.mrf.mxu1 }
 0x80a   :  { %v10452_v51 = vadd.f32 %v10451_v14, %v10409_v8  ;;  %v10460_v29 = vmax.f32 %v10450_v63, 0.0 }
 0x80c   :  { %v10461_v50 = vmax.f32 %v10452_v51, 0.0  ;;  %v10464_v18 = vpack.c.bf16 %v10460_v29, %v10456_v59 }
 0x80e   :  { %v10465_v54 = vpack.c.bf16 %v10461_v50, %v10457_v62 }
 0x810   :  { %10802 = vmatprep.mubr.bf16.mxu1 %v10465_v54 }
 0x811   :  { %10803 = vmatmul.mubr.bf16.vlgmr.msra.gmra.mxu1 %v10464_v18 }
 0x851   :  { %v12069_v40 = vpop.f32.mrf.mxu0 }
 0x853   :  { %v12070_v44 = vpop.f32.mrf.mxu0 }
 0x854   :  { %v12071_v31 = vadd.f32 %v12070_v44, %v12069_v40 }
 0x855   :  { %v12072_v28 = vpop.f32.mrf.mxu0 }
 0x856   :  { %v10764_v5 = vadd.f32 %v12071_v31, %v12020_v19 }
 0x857   :  { %v12073_v0 = vpop.f32.mrf.mxu0 }
 0x858   :  { %v12074_v25 = vadd.f32 %v12073_v0, %v12072_v28 }
 0x85a   :  { %v10767_v41 = vadd.f32 %v12074_v25, %v12020_v19 }
 0x8d1   :  { %v12091_v48 = vpop.f32.mrf.mxu1 }
 0x8d3   :  { %v12092_v43 = vpop.f32.mrf.mxu1 }
 0x8d4   :  { %v12093_v42 = vadd.f32 %v12092_v43, %v12091_v48 }
 0x8d5   :  { %v12094_v47 = vpop.f32.mrf.mxu1 }
 0x8d6   :  { %v10805_v45 = vadd.f32 %v12093_v42, %v10764_v5 }
 0x8d7   :  { %v12095_v30 = vpop.f32.mrf.mxu1 }
 0x8d8   :  { %v12096_v37 = vadd.f32 %v12095_v30, %v12094_v47  ;;  %10811 = vmax.xlane.f32.xlu0 %v10805_v45 }
 0x8da   :  { %v10808_v2 = vadd.f32 %v12096_v37, %v10767_v41 }
 0x8dc   :  { %10813 = vmax.xlane.f32.xlu0 %v10808_v2 }
 0x961   :  { %v10812_v52 = vpop.xlane.xlu0 %10811 }
 0x962   :  { %v10815_v57 = vsub.f32 %v10805_v45, %v10812_v52 }
 0x964   :  { %v10817_v6 = vmul.f32 1.442695, %v10815_v57 }
 0x965   :  { %v10814_v38 = vpop.xlane.xlu0 %10813 }
 0x966   :  { %v10816_v9 = vsub.f32 %v10808_v2, %v10814_v38  ;;  %13186 = vpow2.f32 %v10817_v6 }
 0x968   :  { %v10819_v23 = vmul.f32 1.442695, %v10816_v9 }
 0x96a   :  { %13188 = vpow2.f32 %v10819_v23 }
 0x973   :  { %v13187_v49 = vpop.eup %13186 }
 0x974   :  { %10821 = vadd.xlane.f32.xlu1 %v13187_v49 }
 0x977   :  { %v13189_v27 = vpop.eup %13188 }
 0x978   :  { %10823 = vadd.xlane.f32.xlu1 %v13189_v27 }
 0x9fd   :  { %v10822_v17 = vpop.xlane.xlu1 %10821 }
 0x9fe   :  { %13190 = vlog2.f32 %v10822_v17 }
 0xa01   :  { %v10824_v61 = vpop.xlane.xlu1 %10823 }
 0xa02   :  { %13192 = vlog2.f32 %v10824_v61 }
 0xa0b   :  { %v13191_v12 = vpop.eup %13190 }
 0xa0c   :  { %v10826_v7 = vmul.f32 0.6931472, %v13191_v12 }
 0xa0e   :  { %v10829_v21 = vsub.f32 %v10815_v57, %v10826_v7 }
 0xa0f   :  { %v13193_v10 = vpop.eup %13192 }
 0xa10   :  { %10831 = vst [vmem:[%s17885_s9] sm:$0xff] %v10829_v21  ;;  %v10828_v22 = vmul.f32 0.6931472, %v13193_v10 }
 0xa12   :  { %v10830_v34 = vsub.f32 %v10816_v9, %v10828_v22 }
 0xa14   :  { %10832 = vst [vmem:[%s17885_s9 + $0x8] sm:$0xff] %v10830_v34 }
 0xa15   :  { %10837 = vsyncpa [#allocation3], 1 }
 0xa16   :  { %10838 = vsyncpa [#allocation5], 1 }
 0xa17   :  { %10839 = vsyncpa [#allocation8], 1 }
 0xa18   :  { %10840 = vsyncpa [#allocation11], 1 }
 0xa19   :  { %10841 = vsyncpa [#allocation14], 1 }

</bundles_post_ra>
